<compile_context>
chip_gen: v7x
topology: tpu7x:2x2x1
jax: 0.10.0
libtpu: 0.0.40
codegen_flags: <defaults>
</compile_context>

<pallas_src>
import functools

import jax
import jax.numpy as jnp
from jax.experimental import pallas as pl
from jax.experimental.pallas import tpu as pltpu


_BN_EPS = 1e-5
_VMEM_LIMIT_BYTES = 32 * 1024 * 1024   # safe on v5e/v6e (128 MiB) and v7x (64 MiB)


# ----------------------------------------------------------------------------
# Fused forward kernel
# ----------------------------------------------------------------------------
def _bias_relu_bn_pool(y, b_ref, s_ref, t_ref):
    """y: [Hs, Ws, N, C] conv accumulator -> bias + ReLU + BN(eval) + MaxPool2d(2)."""
    Hs, Ws, Nn, C = y.shape
    y = jnp.maximum(y + b_ref[...], 0.0) * s_ref[...] + t_ref[...]
    # Leading-dim split is layout-free; pool = tree-max over the four positions.
    y = y.reshape(Hs // 2, 2, Ws // 2, 2, Nn, C)
    return jnp.maximum(jnp.maximum(y[:, 0, :, 0], y[:, 0, :, 1]),
                       jnp.maximum(y[:, 1, :, 0], y[:, 1, :, 1]))


def fused_forward_kernel(
        x_ref,
        w1_ref, b1_ref, s1_ref, t1_ref,
        w2_ref, b2_ref, s2_ref, t2_ref,
        w3_ref, b3_ref, s3_ref, t3_ref,
        fw1_ref, fb1_ref, fw2_ref, fb2_ref, fw3_ref, fb3_ref,
        aw1_ref, ab1_ref, aw2_ref, ab2_ref, aw3_ref, ab3_ref,
        main_ref, aux_ref,
        pad0_ref, pad1_ref, pad2_ref,
        *, B):
    """Whole no_w_a_net forward.  Activation layout is [H, W, N, C] (N = 2B)."""
    N = 2 * B

    # ---------------- Stage 1: Conv(1->32) on the VPU ----------------
    H1 = pad0_ref.shape[0] - 2
    W1 = pad0_ref.shape[1] - 2
    C1 = w1_ref.shape[-1]
    pad0_ref[...] = jnp.zeros_like(pad0_ref)                 # zero border (and interior)
    pad0_ref[1:H1 + 1, 1:W1 + 1, :, :] = x_ref[...]          # write interior
    acc = jnp.zeros((H1, W1, N, C1), jnp.float32)
    for tap in range(9):                                     # K = 9*1 would underfill the MXU
        ky, kx = divmod(tap, 3)
        v = pad0_ref[ky:ky + H1, kx:kx + W1, :, :]           # [H1, W1, N, 1] shifted halo view
        acc = acc + v * w1_ref[tap]                          # broadcast MAC -> [H1, W1, N, C1]
    p1 = _bias_relu_bn_pool(acc, b1_ref, s1_ref, t1_ref)     # [H1/2, W1/2, N, C1]

    # ---------- Stages 2/3: Conv via 9 accumulating bf16 MXU matmuls ----------
    def conv_mxu_stage(prev, pad_ref, w_ref, b_ref, s_ref, t_ref):
        Hs = pad_ref.shape[0] - 2
        Ws = pad_ref.shape[1] - 2
        Cin = w_ref.shape[1]
        Cout = w_ref.shape[2]
        M = Hs * Ws * N
        pad_ref[...] = jnp.zeros_like(pad_ref)
        pad_ref[1:Hs + 1, 1:Ws + 1, :, :] = prev
        acc = jnp.zeros((M, Cout), jnp.float32)
        for tap in range(9):
            ky, kx = divmod(tap, 3)
            v = pad_ref[ky:ky + Hs, kx:kx + Ws, :, :].reshape(M, Cin)
            acc = acc + jnp.dot(v.astype(jnp.bfloat16), w_ref[tap],
                                preferred_element_type=jnp.float32)
        return _bias_relu_bn_pool(acc.reshape(Hs, Ws, N, Cout), b_ref, s_ref, t_ref)

    p2 = conv_mxu_stage(p1, pad1_ref, w2_ref, b2_ref, s2_ref, t2_ref)   # [H/4, W/4, N, 64]
    p3 = conv_mxu_stage(p2, pad2_ref, w3_ref, b3_ref, s3_ref, t3_ref)   # [1, 1, N, 128]

    C3 = w3_ref.shape[-1]
    feats = p3.reshape(N, C3)                                # [2B, 128] f32, stays in VMEM
    feats_b = feats.astype(jnp.bfloat16)
    f1 = feats[0:B, :].astype(jnp.bfloat16)                  # branch-1 features
    f2 = feats[B:N, :].astype(jnp.bfloat16)                  # branch-2 features

    # ---------------- Main head: 256 -> 128 -> 128 -> 1, Sigmoid ----------------
    # Linear(256,128) as a split matmul over the two branches (no concat needed).
    h = (jnp.dot(f1, fw1_ref[0:C3, :], preferred_element_type=jnp.float32)
         + jnp.dot(f2, fw1_ref[C3:2 * C3, :], preferred_element_type=jnp.float32)
         + fb1_ref[...])
    h = jnp.maximum(h, 0.0)
    h = jnp.dot(h.astype(jnp.bfloat16), fw2_ref[...],
                preferred_element_type=jnp.float32) + fb2_ref[...]
    h = jnp.maximum(h, 0.0)
    logit = jnp.dot(h.astype(jnp.bfloat16), fw3_ref[...],
                    preferred_element_type=jnp.float32) + fb3_ref[...]
    main_ref[...] = 1.0 / (1.0 + jnp.exp(-logit))            # Sigmoid (exact)

    # ---------------- Aux head: 128 -> 64 -> 64 -> 10, both branches stacked ----------------
    a = jnp.dot(feats_b, aw1_ref[...], preferred_element_type=jnp.float32) + ab1_ref[...]
    a = jnp.maximum(a, 0.0)
    a = jnp.dot(a.astype(jnp.bfloat16), aw2_ref[...],
                preferred_element_type=jnp.float32) + ab2_ref[...]
    a = jnp.maximum(a, 0.0)
    aux_ref[...] = jnp.dot(a.astype(jnp.bfloat16), aw3_ref[...],
                           preferred_element_type=jnp.float32) + ab3_ref[...]


# ----------------------------------------------------------------------------
# Wrapper: one pallas_call for the whole forward
# ----------------------------------------------------------------------------
def no_w_a_net_pallas(x, params):
    # x: [B, 2, H, W] (NCHW, as in PyTorch).  The fc head (input 256) pins H = W = 8.
    B, two, H, W = x.shape
    assert two == 2 and H == 8 and W == 8
    N = 2 * B

    # Branch-major fold into the batch axis: rows 0..B-1 = x[:,0], rows B..2B-1 = x[:,1].
    # Valid because conv2 = deepcopy(conv1) at init (identical weights).
    xs = jnp.transpose(x, (2, 3, 1, 0)).reshape(H, W, N, 1)  # [H, W, 2B, 1]

    (w1, b1, s1, t1), (w2, b2, s2, t2), (w3, b3, s3, t3) = params["conv"]
    fw1, fb1, fw2, fb2, fw3, fb3 = params["fc"]
    aw1, ab1, aw2, ab2, aw3, ab3 = params["aux"]
    C1, C2 = w1.shape[-1], w2.shape[-1]

    args = (xs,
            w1, b1, s1, t1, w2, b2, s2, t2, w3, b3, s3, t3,
            fw1, fb1, fw2, fb2, fw3, fb3,
            aw1, ab1, aw2, ab2, aw3, ab3)

    def whole(a):
        nd = a.ndim
        return pl.BlockSpec(a.shape, lambda i, _nd=nd: (0,) * _nd)

    main_out, aux_all = pl.pallas_call(
        functools.partial(fused_forward_kernel, B=B),
        out_shape=(jax.ShapeDtypeStruct((B, 1), jnp.float32),
                   jax.ShapeDtypeStruct((N, 10), jnp.float32)),
        grid=(1,),
        in_specs=[whole(a) for a in args],
        out_specs=(pl.BlockSpec((B, 1), lambda i: (0, 0)),
                   pl.BlockSpec((N, 10), lambda i: (0, 0))),
        scratch_shapes=[
            # Zero-padded activation buffers for the in-kernel 3x3 halo gather.
            pltpu.VMEM((H + 2, W + 2, N, 1), jnp.float32),
            pltpu.VMEM((H // 2 + 2, W // 2 + 2, N, C1), jnp.float32),
            pltpu.VMEM((H // 4 + 2, W // 4 + 2, N, C2), jnp.float32),
        ],
        compiler_params=pltpu.CompilerParams(
            dimension_semantics=("arbitrary",),
            vmem_limit_bytes=_VMEM_LIMIT_BYTES,
        ),
    )(*args)

    return main_out, aux_all[:B], aux_all[B:]


no_w_a_net_forward = jax.jit(no_w_a_net_pallas)


# ----------------------------------------------------------------------------
# Parameter init (deterministic, in-script; conv2 shares conv1's params)
# ----------------------------------------------------------------------------
def init_params(key):
    keys = iter(jax.random.split(key, 64))

    def conv_stage_params(cin, cout, mxu):
        w = 0.1 * jax.random.normal(next(keys), (9, cin, cout), jnp.float32)
        b = 0.1 * jax.random.normal(next(keys), (1, cout), jnp.float32)
        gamma = jax.random.uniform(next(keys), (1, cout), jnp.float32, 0.5, 1.5)
        beta = 0.1 * jax.random.normal(next(keys), (1, cout), jnp.float32)
        mean = 0.1 * jax.random.normal(next(keys), (1, cout), jnp.float32)
        var = jax.random.uniform(next(keys), (1, cout), jnp.float32, 0.5, 1.5)
        scale = gamma / jnp.sqrt(var + _BN_EPS)
        shift = beta - mean * scale
        wq = w.astype(jnp.bfloat16) if mxu else w           # stage 1 stays f32 (VPU path)
        return (wq, b, scale, shift)

    def linear(din, dout):
        w = 0.1 * jax.random.normal(next(keys), (din, dout), jnp.float32)
        b = 0.1 * jax.random.normal(next(keys), (1, dout), jnp.float32)
        return w.astype(jnp.bfloat16), b

    conv = [conv_stage_params(1, 32, mxu=False),
            conv_stage_params(32, 64, mxu=True),
            conv_stage_params(64, 128, mxu=True)]

    # main head: fc_net(256,1,1, num_classes=1) -> 256->128->128->1, Sigmoid
    fw1, fb1 = linear(256, 128)
    fw2, fb2 = linear(128, 128)
    fw3, fb3 = linear(128, 1)
    fc = (fw1, fb1, fw2, fb2, fw3, fb3)

    # aux head (shared by both branches): fc_net(128,...,10, aux=True) -> 128->64->64->10
    aw1, ab1 = linear(128, 64)
    aw2, ab2 = linear(64, 64)
    aw3, ab3 = linear(64, 10)
    aux = (aw1, ab1, aw2, ab2, aw3, ab3)

    return {"conv": conv, "fc": fc, "aux": aux}


# ----------------------------------------------------------------------------
# Pure-JAX f32 reference (same math, same folded-BN eval semantics)
# ----------------------------------------------------------------------------
def _reference_forward(x, params):
    B, _, H, W = x.shape
    a = jnp.transpose(x, (2, 3, 1, 0)).reshape(H, W, 2 * B, 1).astype(jnp.float32)
    for (w, b, s, t) in params["conv"]:
        Hs, Ws, Nn, _ = a.shape
        Cout = w.shape[-1]
        ap = jnp.pad(a, ((1, 1), (1, 1), (0, 0), (0, 0)))
        acc = jnp.zeros((Hs, Ws, Nn, Cout), jnp.float32)
        for tap in range(9):
            ky, kx = divmod(tap, 3)
            v = ap[ky:ky + Hs, kx:kx + Ws]
            acc = acc + jnp.einsum("hwnc,cd->hwnd", v, w[tap].astype(jnp.float32))
        y = jnp.maximum(acc + b, 0.0) * s + t
        a = y.reshape(Hs // 2, 2, Ws // 2, 2, Nn, Cout).max(axis=(1, 3))
    feats = a.reshape(2 * B, -1)
    f1, f2 = feats[:B], feats[B:]

    def mlp(x_, p):
        w1, b1, w2, b2, w3, b3 = p
        h = jnp.maximum(x_ @ w1.astype(jnp.float32) + b1, 0.0)
        h = jnp.maximum(h @ w2.astype(jnp.float32) + b2, 0.0)
        return h @ w3.astype(jnp.float32) + b3

    main = jax.nn.sigmoid(mlp(jnp.concatenate([f1, f2], axis=-1), params["fc"]))
    aux1 = mlp(f1, params["aux"])
    aux2 = mlp(f2, params["aux"])
    return main, aux1, aux2


if __name__ == "__main__":
    key = jax.random.PRNGKey(0)
    k_param, k_x = jax.random.split(key)

    params = init_params(k_param)
    # batch=2, 2 image channels, 8x8 spatial (8 -> 4 -> 2 -> 1 after the three
    # conv+pool stages, so the flattened feature is 128 per branch, 256 combined).
    x = jax.random.normal(k_x, (2, 2, 8, 8), jnp.float32)

    main_out, aux_out1, aux_out2 = no_w_a_net_forward(x, params)
    jax.block_until_ready((main_out, aux_out1, aux_out2))

    assert main_out.shape == (2, 1)
    assert aux_out1.shape == (2, 10)
    assert aux_out2.shape == (2, 10)
    assert bool(jnp.all(jnp.isfinite(main_out)))
    assert bool(jnp.all(jnp.isfinite(aux_out1)))
    assert bool(jnp.all(jnp.isfinite(aux_out2)))
    assert bool(jnp.all((main_out >= 0.0) & (main_out <= 1.0)))   # sigmoid range

    # Tolerance check against the pure-JAX f32 reference (bf16 matmul inputs in
    # the kernel give ~<1% relative error).
    r_main, r_aux1, r_aux2 = _reference_forward(x, params)
    assert bool(jnp.allclose(main_out, r_main, rtol=5e-2, atol=5e-2))
    assert bool(jnp.allclose(aux_out1, r_aux1, rtol=5e-2, atol=5e-2))
    assert bool(jnp.allclose(aux_out2, r_aux2, rtol=5e-2, atol=5e-2))

    print("KERNEL_OK")
</pallas_src>

<mosaic_0001>
module attributes {stable_mosaic.version = 11 : i64} {
  func.func @fused_forward_kernel(%arg0: i32, %arg1: memref<8x8x4x1xf32, #tpu.memory_space<vmem>>, %arg2: memref<9x1x32xf32, #tpu.memory_space<vmem>>, %arg3: memref<1x32xf32, #tpu.memory_space<vmem>>, %arg4: memref<1x32xf32, #tpu.memory_space<vmem>>, %arg5: memref<1x32xf32, #tpu.memory_space<vmem>>, %arg6: memref<9x32x64xbf16, #tpu.memory_space<vmem>>, %arg7: memref<1x64xf32, #tpu.memory_space<vmem>>, %arg8: memref<1x64xf32, #tpu.memory_space<vmem>>, %arg9: memref<1x64xf32, #tpu.memory_space<vmem>>, %arg10: memref<9x64x128xbf16, #tpu.memory_space<vmem>>, %arg11: memref<1x128xf32, #tpu.memory_space<vmem>>, %arg12: memref<1x128xf32, #tpu.memory_space<vmem>>, %arg13: memref<1x128xf32, #tpu.memory_space<vmem>>, %arg14: memref<256x128xbf16, #tpu.memory_space<vmem>>, %arg15: memref<1x128xf32, #tpu.memory_space<vmem>>, %arg16: memref<128x128xbf16, #tpu.memory_space<vmem>>, %arg17: memref<1x128xf32, #tpu.memory_space<vmem>>, %arg18: memref<128x1xbf16, #tpu.memory_space<vmem>>, %arg19: memref<1x1xf32, #tpu.memory_space<vmem>>, %arg20: memref<128x64xbf16, #tpu.memory_space<vmem>>, %arg21: memref<1x64xf32, #tpu.memory_space<vmem>>, %arg22: memref<64x64xbf16, #tpu.memory_space<vmem>>, %arg23: memref<1x64xf32, #tpu.memory_space<vmem>>, %arg24: memref<64x10xbf16, #tpu.memory_space<vmem>>, %arg25: memref<1x10xf32, #tpu.memory_space<vmem>>, %arg26: memref<2x1xf32, #tpu.memory_space<vmem>>, %arg27: memref<4x10xf32, #tpu.memory_space<vmem>>, %arg28: memref<10x10x4x1xf32, #tpu.memory_space<vmem>>, %arg29: memref<6x6x4x32xf32, #tpu.memory_space<vmem>>, %arg30: memref<4x4x4x64xf32, #tpu.memory_space<vmem>>) attributes {dimension_semantics = [#tpu.dimension_semantics<arbitrary>], iteration_bounds = array<i64: 1>, scalar_prefetch = 0 : i64, scratch_operands = 3 : i64, tpu.core_type = #tpu.core_type<tc>, window_params = [{pipeline_mode = #tpu.pipeline_mode<synchronous>, transform_indices = @transform_0, window_bounds = array<i64: 8, 8, 4, 1>}, {pipeline_mode = #tpu.pipeline_mode<synchronous>, transform_indices = @transform_1, window_bounds = array<i64: 9, 1, 32>}, {pipeline_mode = #tpu.pipeline_mode<synchronous>, transform_indices = @transform_2, window_bounds = array<i64: 1, 32>}, {pipeline_mode = #tpu.pipeline_mode<synchronous>, transform_indices = @transform_3, window_bounds = array<i64: 1, 32>}, {pipeline_mode = #tpu.pipeline_mode<synchronous>, transform_indices = @transform_4, window_bounds = array<i64: 1, 32>}, {pipeline_mode = #tpu.pipeline_mode<synchronous>, transform_indices = @transform_5, window_bounds = array<i64: 9, 32, 64>}, {pipeline_mode = #tpu.pipeline_mode<synchronous>, transform_indices = @transform_6, window_bounds = array<i64: 1, 64>}, {pipeline_mode = #tpu.pipeline_mode<synchronous>, transform_indices = @transform_7, window_bounds = array<i64: 1, 64>}, {pipeline_mode = #tpu.pipeline_mode<synchronous>, transform_indices = @transform_8, window_bounds = array<i64: 1, 64>}, {pipeline_mode = #tpu.pipeline_mode<synchronous>, transform_indices = @transform_9, window_bounds = array<i64: 9, 64, 128>}, {pipeline_mode = #tpu.pipeline_mode<synchronous>, transform_indices = @transform_10, window_bounds = array<i64: 1, 128>}, {pipeline_mode = #tpu.pipeline_mode<synchronous>, transform_indices = @transform_11, window_bounds = array<i64: 1, 128>}, {pipeline_mode = #tpu.pipeline_mode<synchronous>, transform_indices = @transform_12, window_bounds = array<i64: 1, 128>}, {pipeline_mode = #tpu.pipeline_mode<synchronous>, transform_indices = @transform_13, window_bounds = array<i64: 256, 128>}, {pipeline_mode = #tpu.pipeline_mode<synchronous>, transform_indices = @transform_14, window_bounds = array<i64: 1, 128>}, {pipeline_mode = #tpu.pipeline_mode<synchronous>, transform_indices = @transform_15, window_bounds = array<i64: 128, 128>}, {pipeline_mode = #tpu.pipeline_mode<synchronous>, transform_indices = @transform_16, window_bounds = array<i64: 1, 128>}, {pipeline_mode = #tpu.pipeline_mode<synchronous>, transform_indices = @transform_17, window_bounds = array<i64: 128, 1>}, {pipeline_mode = #tpu.pipeline_mode<synchronous>, transform_indices = @transform_18, window_bounds = array<i64: 1, 1>}, {pipeline_mode = #tpu.pipeline_mode<synchronous>, transform_indices = @transform_19, window_bounds = array<i64: 128, 64>}, {pipeline_mode = #tpu.pipeline_mode<synchronous>, transform_indices = @transform_20, window_bounds = array<i64: 1, 64>}, {pipeline_mode = #tpu.pipeline_mode<synchronous>, transform_indices = @transform_21, window_bounds = array<i64: 64, 64>}, {pipeline_mode = #tpu.pipeline_mode<synchronous>, transform_indices = @transform_22, window_bounds = array<i64: 1, 64>}, {pipeline_mode = #tpu.pipeline_mode<synchronous>, transform_indices = @transform_23, window_bounds = array<i64: 64, 10>}, {pipeline_mode = #tpu.pipeline_mode<synchronous>, transform_indices = @transform_24, window_bounds = array<i64: 1, 10>}, {pipeline_mode = #tpu.pipeline_mode<synchronous>, transform_indices = @transform_25, window_bounds = array<i64: 2, 1>}, {pipeline_mode = #tpu.pipeline_mode<synchronous>, transform_indices = @transform_26, window_bounds = array<i64: 4, 10>}]} {
    %cst = arith.constant 0.000000e+00 : f32
    %0 = vector.broadcast %cst : f32 to vector<10x10x4x1xf32>
    %c0 = arith.constant 0 : index
    %c0_0 = arith.constant 0 : index
    %c0_1 = arith.constant 0 : index
    %c0_2 = arith.constant 0 : index
    %1 = vector.load %arg28[%c0, %c0_0, %c0_1, %c0_2] : memref<10x10x4x1xf32, #tpu.memory_space<vmem>>, vector<10x10x4x1xf32>
    tpu.vector_store %arg28[%c0, %c0_0, %c0_1, %c0_2], %0 {strides = array<i32>} : memref<10x10x4x1xf32, #tpu.memory_space<vmem>>, vector<10x10x4x1xf32>,
    %c0_3 = arith.constant 0 : index
    %c0_4 = arith.constant 0 : index
    %c0_5 = arith.constant 0 : index
    %c0_6 = arith.constant 0 : index
    %2 = vector.load %arg1[%c0_3, %c0_4, %c0_5, %c0_6] : memref<8x8x4x1xf32, #tpu.memory_space<vmem>>, vector<8x8x4x1xf32>
    %c1 = arith.constant 1 : index
    %c1_7 = arith.constant 1 : index
    %c0_8 = arith.constant 0 : index
    %c0_9 = arith.constant 0 : index
    %3 = vector.load %arg28[%c1, %c1_7, %c0_8, %c0_9] : memref<10x10x4x1xf32, #tpu.memory_space<vmem>>, vector<8x8x4x1xf32>
    tpu.vector_store %arg28[%c1, %c1_7, %c0_8, %c0_9], %2 {strides = array<i32>} : memref<10x10x4x1xf32, #tpu.memory_space<vmem>>, vector<8x8x4x1xf32>,
    %cst_10 = arith.constant 0.000000e+00 : f32
    %4 = vector.broadcast %cst_10 : f32 to vector<8x8x4x32xf32>
    %c0_11 = arith.constant 0 : index
    %c0_12 = arith.constant 0 : index
    %c0_13 = arith.constant 0 : index
    %c0_14 = arith.constant 0 : index
    %5 = vector.load %arg28[%c0_11, %c0_12, %c0_13, %c0_14] : memref<10x10x4x1xf32, #tpu.memory_space<vmem>>, vector<8x8x4x1xf32>
    %c0_15 = arith.constant 0 : index
    %c0_16 = arith.constant 0 : index
    %c0_17 = arith.constant 0 : index
    %6 = vector.load %arg2[%c0_15, %c0_16, %c0_17] : memref<9x1x32xf32, #tpu.memory_space<vmem>>, vector<1x1x32xf32>
    %7 = vector.shape_cast %6 : vector<1x1x32xf32> to vector<1x32xf32>
    %8 = vector.shape_cast %7 : vector<1x32xf32> to vector<1x1x1x32xf32>
    %9 = vector.broadcast %5 : vector<8x8x4x1xf32> to vector<8x8x4x32xf32>
    %10 = vector.broadcast %8 : vector<1x1x1x32xf32> to vector<8x8x4x32xf32>
    %11 = arith.mulf %9, %10 : vector<8x8x4x32xf32>
    %12 = arith.addf %4, %11 : vector<8x8x4x32xf32>
    %c0_18 = arith.constant 0 : index
    %c1_19 = arith.constant 1 : index
    %c0_20 = arith.constant 0 : index
    %c0_21 = arith.constant 0 : index
    %13 = vector.load %arg28[%c0_18, %c1_19, %c0_20, %c0_21] : memref<10x10x4x1xf32, #tpu.memory_space<vmem>>, vector<8x8x4x1xf32>
    %c1_22 = arith.constant 1 : index
    %c0_23 = arith.constant 0 : index
    %c0_24 = arith.constant 0 : index
    %14 = vector.load %arg2[%c1_22, %c0_23, %c0_24] : memref<9x1x32xf32, #tpu.memory_space<vmem>>, vector<1x1x32xf32>
    %15 = vector.shape_cast %14 : vector<1x1x32xf32> to vector<1x32xf32>
    %16 = vector.shape_cast %15 : vector<1x32xf32> to vector<1x1x1x32xf32>
    %17 = vector.broadcast %13 : vector<8x8x4x1xf32> to vector<8x8x4x32xf32>
    %18 = vector.broadcast %16 : vector<1x1x1x32xf32> to vector<8x8x4x32xf32>
    %19 = arith.mulf %17, %18 : vector<8x8x4x32xf32>
    %20 = arith.addf %12, %19 : vector<8x8x4x32xf32>
    %c0_25 = arith.constant 0 : index
    %c2 = arith.constant 2 : index
    %c0_26 = arith.constant 0 : index
    %c0_27 = arith.constant 0 : index
    %21 = vector.load %arg28[%c0_25, %c2, %c0_26, %c0_27] : memref<10x10x4x1xf32, #tpu.memory_space<vmem>>, vector<8x8x4x1xf32>
    %c2_28 = arith.constant 2 : index
    %c0_29 = arith.constant 0 : index
    %c0_30 = arith.constant 0 : index
    %22 = vector.load %arg2[%c2_28, %c0_29, %c0_30] : memref<9x1x32xf32, #tpu.memory_space<vmem>>, vector<1x1x32xf32>
    %23 = vector.shape_cast %22 : vector<1x1x32xf32> to vector<1x32xf32>
    %24 = vector.shape_cast %23 : vector<1x32xf32> to vector<1x1x1x32xf32>
    %25 = vector.broadcast %21 : vector<8x8x4x1xf32> to vector<8x8x4x32xf32>
    %26 = vector.broadcast %24 : vector<1x1x1x32xf32> to vector<8x8x4x32xf32>
    %27 = arith.mulf %25, %26 : vector<8x8x4x32xf32>
    %28 = arith.addf %20, %27 : vector<8x8x4x32xf32>
    %c1_31 = arith.constant 1 : index
    %c0_32 = arith.constant 0 : index
    %c0_33 = arith.constant 0 : index
    %c0_34 = arith.constant 0 : index
    %29 = vector.load %arg28[%c1_31, %c0_32, %c0_33, %c0_34] : memref<10x10x4x1xf32, #tpu.memory_space<vmem>>, vector<8x8x4x1xf32>
    %c3 = arith.constant 3 : index
    %c0_35 = arith.constant 0 : index
    %c0_36 = arith.constant 0 : index
    %30 = vector.load %arg2[%c3, %c0_35, %c0_36] : memref<9x1x32xf32, #tpu.memory_space<vmem>>, vector<1x1x32xf32>
    %31 = vector.shape_cast %30 : vector<1x1x32xf32> to vector<1x32xf32>
    %32 = vector.shape_cast %31 : vector<1x32xf32> to vector<1x1x1x32xf32>
    %33 = vector.broadcast %29 : vector<8x8x4x1xf32> to vector<8x8x4x32xf32>
    %34 = vector.broadcast %32 : vector<1x1x1x32xf32> to vector<8x8x4x32xf32>
    %35 = arith.mulf %33, %34 : vector<8x8x4x32xf32>
    %36 = arith.addf %28, %35 : vector<8x8x4x32xf32>
    %c1_37 = arith.constant 1 : index
    %c1_38 = arith.constant 1 : index
    %c0_39 = arith.constant 0 : index
    %c0_40 = arith.constant 0 : index
    %37 = vector.load %arg28[%c1_37, %c1_38, %c0_39, %c0_40] : memref<10x10x4x1xf32, #tpu.memory_space<vmem>>, vector<8x8x4x1xf32>
    %c4 = arith.constant 4 : index
    %c0_41 = arith.constant 0 : index
    %c0_42 = arith.constant 0 : index
    %38 = vector.load %arg2[%c4, %c0_41, %c0_42] : memref<9x1x32xf32, #tpu.memory_space<vmem>>, vector<1x1x32xf32>
    %39 = vector.shape_cast %38 : vector<1x1x32xf32> to vector<1x32xf32>
    %40 = vector.shape_cast %39 : vector<1x32xf32> to vector<1x1x1x32xf32>
    %41 = vector.broadcast %37 : vector<8x8x4x1xf32> to vector<8x8x4x32xf32>
    %42 = vector.broadcast %40 : vector<1x1x1x32xf32> to vector<8x8x4x32xf32>
    %43 = arith.mulf %41, %42 : vector<8x8x4x32xf32>
    %44 = arith.addf %36, %43 : vector<8x8x4x32xf32>
    %c1_43 = arith.constant 1 : index
    %c2_44 = arith.constant 2 : index
    %c0_45 = arith.constant 0 : index
    %c0_46 = arith.constant 0 : index
    %45 = vector.load %arg28[%c1_43, %c2_44, %c0_45, %c0_46] : memref<10x10x4x1xf32, #tpu.memory_space<vmem>>, vector<8x8x4x1xf32>
    %c5 = arith.constant 5 : index
    %c0_47 = arith.constant 0 : index
    %c0_48 = arith.constant 0 : index
    %46 = vector.load %arg2[%c5, %c0_47, %c0_48] : memref<9x1x32xf32, #tpu.memory_space<vmem>>, vector<1x1x32xf32>
    %47 = vector.shape_cast %46 : vector<1x1x32xf32> to vector<1x32xf32>
    %48 = vector.shape_cast %47 : vector<1x32xf32> to vector<1x1x1x32xf32>
    %49 = vector.broadcast %45 : vector<8x8x4x1xf32> to vector<8x8x4x32xf32>
    %50 = vector.broadcast %48 : vector<1x1x1x32xf32> to vector<8x8x4x32xf32>
    %51 = arith.mulf %49, %50 : vector<8x8x4x32xf32>
    %52 = arith.addf %44, %51 : vector<8x8x4x32xf32>
    %c2_49 = arith.constant 2 : index
    %c0_50 = arith.constant 0 : index
    %c0_51 = arith.constant 0 : index
    %c0_52 = arith.constant 0 : index
    %53 = vector.load %arg28[%c2_49, %c0_50, %c0_51, %c0_52] : memref<10x10x4x1xf32, #tpu.memory_space<vmem>>, vector<8x8x4x1xf32>
    %c6 = arith.constant 6 : index
    %c0_53 = arith.constant 0 : index
    %c0_54 = arith.constant 0 : index
    %54 = vector.load %arg2[%c6, %c0_53, %c0_54] : memref<9x1x32xf32, #tpu.memory_space<vmem>>, vector<1x1x32xf32>
    %55 = vector.shape_cast %54 : vector<1x1x32xf32> to vector<1x32xf32>
    %56 = vector.shape_cast %55 : vector<1x32xf32> to vector<1x1x1x32xf32>
    %57 = vector.broadcast %53 : vector<8x8x4x1xf32> to vector<8x8x4x32xf32>
    %58 = vector.broadcast %56 : vector<1x1x1x32xf32> to vector<8x8x4x32xf32>
    %59 = arith.mulf %57, %58 : vector<8x8x4x32xf32>
    %60 = arith.addf %52, %59 : vector<8x8x4x32xf32>
    %c2_55 = arith.constant 2 : index
    %c1_56 = arith.constant 1 : index
    %c0_57 = arith.constant 0 : index
    %c0_58 = arith.constant 0 : index
    %61 = vector.load %arg28[%c2_55, %c1_56, %c0_57, %c0_58] : memref<10x10x4x1xf32, #tpu.memory_space<vmem>>, vector<8x8x4x1xf32>
    %c7 = arith.constant 7 : index
    %c0_59 = arith.constant 0 : index
    %c0_60 = arith.constant 0 : index
    %62 = vector.load %arg2[%c7, %c0_59, %c0_60] : memref<9x1x32xf32, #tpu.memory_space<vmem>>, vector<1x1x32xf32>
    %63 = vector.shape_cast %62 : vector<1x1x32xf32> to vector<1x32xf32>
    %64 = vector.shape_cast %63 : vector<1x32xf32> to vector<1x1x1x32xf32>
    %65 = vector.broadcast %61 : vector<8x8x4x1xf32> to vector<8x8x4x32xf32>
    %66 = vector.broadcast %64 : vector<1x1x1x32xf32> to vector<8x8x4x32xf32>
    %67 = arith.mulf %65, %66 : vector<8x8x4x32xf32>
    %68 = arith.addf %60, %67 : vector<8x8x4x32xf32>
    %c2_61 = arith.constant 2 : index
    %c2_62 = arith.constant 2 : index
    %c0_63 = arith.constant 0 : index
    %c0_64 = arith.constant 0 : index
    %69 = vector.load %arg28[%c2_61, %c2_62, %c0_63, %c0_64] : memref<10x10x4x1xf32, #tpu.memory_space<vmem>>, vector<8x8x4x1xf32>
    %c8 = arith.constant 8 : index
    %c0_65 = arith.constant 0 : index
    %c0_66 = arith.constant 0 : index
    %70 = vector.load %arg2[%c8, %c0_65, %c0_66] : memref<9x1x32xf32, #tpu.memory_space<vmem>>, vector<1x1x32xf32>
    %71 = vector.shape_cast %70 : vector<1x1x32xf32> to vector<1x32xf32>
    %72 = vector.shape_cast %71 : vector<1x32xf32> to vector<1x1x1x32xf32>
    %73 = vector.broadcast %69 : vector<8x8x4x1xf32> to vector<8x8x4x32xf32>
    %74 = vector.broadcast %72 : vector<1x1x1x32xf32> to vector<8x8x4x32xf32>
    %75 = arith.mulf %73, %74 : vector<8x8x4x32xf32>
    %76 = arith.addf %68, %75 : vector<8x8x4x32xf32>
    %c0_67 = arith.constant 0 : index
    %c0_68 = arith.constant 0 : index
    %77 = vector.load %arg3[%c0_67, %c0_68] : memref<1x32xf32, #tpu.memory_space<vmem>>, vector<1x32xf32>
    %78 = vector.shape_cast %77 : vector<1x32xf32> to vector<1x1x1x32xf32>
    %79 = vector.broadcast %78 : vector<1x1x1x32xf32> to vector<8x8x4x32xf32>
    %80 = arith.addf %76, %79 : vector<8x8x4x32xf32>
    %cst_69 = arith.constant 0.000000e+00 : f32
    %81 = vector.broadcast %cst_69 : f32 to vector<8x8x4x32xf32>
    %82 = arith.maximumf %80, %81 : vector<8x8x4x32xf32>
    %c0_70 = arith.constant 0 : index
    %c0_71 = arith.constant 0 : index
    %83 = vector.load %arg4[%c0_70, %c0_71] : memref<1x32xf32, #tpu.memory_space<vmem>>, vector<1x32xf32>
    %84 = vector.shape_cast %83 : vector<1x32xf32> to vector<1x1x1x32xf32>
    %85 = vector.broadcast %84 : vector<1x1x1x32xf32> to vector<8x8x4x32xf32>
    %86 = arith.mulf %82, %85 : vector<8x8x4x32xf32>
    %c0_72 = arith.constant 0 : index
    %c0_73 = arith.constant 0 : index
    %87 = vector.load %arg5[%c0_72, %c0_73] : memref<1x32xf32, #tpu.memory_space<vmem>>, vector<1x32xf32>
    %88 = vector.shape_cast %87 : vector<1x32xf32> to vector<1x1x1x32xf32>
    %89 = vector.broadcast %88 : vector<1x1x1x32xf32> to vector<8x8x4x32xf32>
    %90 = arith.addf %86, %89 : vector<8x8x4x32xf32>
    %91 = vector.shape_cast %90 : vector<8x8x4x32xf32> to vector<4x2x4x2x4x32xf32>
    %92 = vector.extract_strided_slice %91 {offsets = [0, 0, 0, 0, 0, 0], sizes = [4, 1, 4, 1, 4, 32], strides = [1, 1, 1, 1, 1, 1]} : vector<4x2x4x2x4x32xf32> to vector<4x1x4x1x4x32xf32>
    %93 = vector.shape_cast %92 : vector<4x1x4x1x4x32xf32> to vector<4x4x4x32xf32>
    %94 = vector.extract_strided_slice %91 {offsets = [0, 0, 0, 1, 0, 0], sizes = [4, 1, 4, 1, 4, 32], strides = [1, 1, 1, 1, 1, 1]} : vector<4x2x4x2x4x32xf32> to vector<4x1x4x1x4x32xf32>
    %95 = vector.shape_cast %94 : vector<4x1x4x1x4x32xf32> to vector<4x4x4x32xf32>
    %96 = arith.maximumf %93, %95 : vector<4x4x4x32xf32>
    %97 = vector.extract_strided_slice %91 {offsets = [0, 1, 0, 0, 0, 0], sizes = [4, 1, 4, 1, 4, 32], strides = [1, 1, 1, 1, 1, 1]} : vector<4x2x4x2x4x32xf32> to vector<4x1x4x1x4x32xf32>
    %98 = vector.shape_cast %97 : vector<4x1x4x1x4x32xf32> to vector<4x4x4x32xf32>
    %99 = vector.extract_strided_slice %91 {offsets = [0, 1, 0, 1, 0, 0], sizes = [4, 1, 4, 1, 4, 32], strides = [1, 1, 1, 1, 1, 1]} : vector<4x2x4x2x4x32xf32> to vector<4x1x4x1x4x32xf32>
    %100 = vector.shape_cast %99 : vector<4x1x4x1x4x32xf32> to vector<4x4x4x32xf32>
    %101 = arith.maximumf %98, %100 : vector<4x4x4x32xf32>
    %102 = arith.maximumf %96, %101 : vector<4x4x4x32xf32>
    %cst_74 = arith.constant 0.000000e+00 : f32
    %103 = vector.broadcast %cst_74 : f32 to vector<6x6x4x32xf32>
    %c0_75 = arith.constant 0 : index
    %c0_76 = arith.constant 0 : index
    %c0_77 = arith.constant 0 : index
    %c0_78 = arith.constant 0 : index
    %104 = vector.load %arg29[%c0_75, %c0_76, %c0_77, %c0_78] : memref<6x6x4x32xf32, #tpu.memory_space<vmem>>, vector<6x6x4x32xf32>
    tpu.vector_store %arg29[%c0_75, %c0_76, %c0_77, %c0_78], %103 {strides = array<i32>} : memref<6x6x4x32xf32, #tpu.memory_space<vmem>>, vector<6x6x4x32xf32>,
    %c1_79 = arith.constant 1 : index
    %c1_80 = arith.constant 1 : index
    %c0_81 = arith.constant 0 : index
    %c0_82 = arith.constant 0 : index
    %105 = vector.load %arg29[%c1_79, %c1_80, %c0_81, %c0_82] : memref<6x6x4x32xf32, #tpu.memory_space<vmem>>, vector<4x4x4x32xf32>
    tpu.vector_store %arg29[%c1_79, %c1_80, %c0_81, %c0_82], %102 {strides = array<i32>} : memref<6x6x4x32xf32, #tpu.memory_space<vmem>>, vector<4x4x4x32xf32>,
    %cst_83 = arith.constant 0.000000e+00 : f32
    %106 = vector.broadcast %cst_83 : f32 to vector<64x64xf32>
    %c0_84 = arith.constant 0 : index
    %c0_85 = arith.constant 0 : index
    %c0_86 = arith.constant 0 : index
    %c0_87 = arith.constant 0 : index
    %107 = vector.load %arg29[%c0_84, %c0_85, %c0_86, %c0_87] : memref<6x6x4x32xf32, #tpu.memory_space<vmem>>, vector<4x4x4x32xf32>
    %108 = vector.shape_cast %107 : vector<4x4x4x32xf32> to vector<64x32xf32>
    %109 = arith.truncf %108 : vector<64x32xf32> to vector<64x32xbf16>
    %c0_88 = arith.constant 0 : index
    %c0_89 = arith.constant 0 : index
    %c0_90 = arith.constant 0 : index
    %110 = vector.load %arg6[%c0_88, %c0_89, %c0_90] : memref<9x32x64xbf16, #tpu.memory_space<vmem>>, vector<1x32x64xbf16>
    %111 = vector.shape_cast %110 : vector<1x32x64xbf16> to vector<32x64xbf16>
    %cst_91 = arith.constant dense<0.000000e+00> : vector<64x64xf32>
    %112 = tpu.matmul %109, %111, %cst_91 {dimension_numbers = #tpu.dot_dimension_numbers<[1], [0], [0], [1], [0, 0, 1, 1], [], []>} : vector<64x32xbf16>, vector<32x64xbf16>, vector<64x64xf32> -> vector<64x64xf32>
    %113 = arith.addf %106, %112 : vector<64x64xf32>
    %c0_92 = arith.constant 0 : index
    %c1_93 = arith.constant 1 : index
    %c0_94 = arith.constant 0 : index
    %c0_95 = arith.constant 0 : index
    %114 = vector.load %arg29[%c0_92, %c1_93, %c0_94, %c0_95] : memref<6x6x4x32xf32, #tpu.memory_space<vmem>>, vector<4x4x4x32xf32>
    %115 = vector.shape_cast %114 : vector<4x4x4x32xf32> to vector<64x32xf32>
    %116 = arith.truncf %115 : vector<64x32xf32> to vector<64x32xbf16>
    %c1_96 = arith.constant 1 : index
    %c0_97 = arith.constant 0 : index
    %c0_98 = arith.constant 0 : index
    %117 = vector.load %arg6[%c1_96, %c0_97, %c0_98] : memref<9x32x64xbf16, #tpu.memory_space<vmem>>, vector<1x32x64xbf16>
    %118 = vector.shape_cast %117 : vector<1x32x64xbf16> to vector<32x64xbf16>
    %cst_99 = arith.constant dense<0.000000e+00> : vector<64x64xf32>
    %119 = tpu.matmul %116, %118, %cst_99 {dimension_numbers = #tpu.dot_dimension_numbers<[1], [0], [0], [1], [0, 0, 1, 1], [], []>} : vector<64x32xbf16>, vector<32x64xbf16>, vector<64x64xf32> -> vector<64x64xf32>
    %120 = arith.addf %113, %119 : vector<64x64xf32>
    %c0_100 = arith.constant 0 : index
    %c2_101 = arith.constant 2 : index
    %c0_102 = arith.constant 0 : index
    %c0_103 = arith.constant 0 : index
    %121 = vector.load %arg29[%c0_100, %c2_101, %c0_102, %c0_103] : memref<6x6x4x32xf32, #tpu.memory_space<vmem>>, vector<4x4x4x32xf32>
    %122 = vector.shape_cast %121 : vector<4x4x4x32xf32> to vector<64x32xf32>
    %123 = arith.truncf %122 : vector<64x32xf32> to vector<64x32xbf16>
    %c2_104 = arith.constant 2 : index
    %c0_105 = arith.constant 0 : index
    %c0_106 = arith.constant 0 : index
    %124 = vector.load %arg6[%c2_104, %c0_105, %c0_106] : memref<9x32x64xbf16, #tpu.memory_space<vmem>>, vector<1x32x64xbf16>
    %125 = vector.shape_cast %124 : vector<1x32x64xbf16> to vector<32x64xbf16>
    %cst_107 = arith.constant dense<0.000000e+00> : vector<64x64xf32>
    %126 = tpu.matmul %123, %125, %cst_107 {dimension_numbers = #tpu.dot_dimension_numbers<[1], [0], [0], [1], [0, 0, 1, 1], [], []>} : vector<64x32xbf16>, vector<32x64xbf16>, vector<64x64xf32> -> vector<64x64xf32>
    %127 = arith.addf %120, %126 : vector<64x64xf32>
    %c1_108 = arith.constant 1 : index
    %c0_109 = arith.constant 0 : index
    %c0_110 = arith.constant 0 : index
    %c0_111 = arith.constant 0 : index
    %128 = vector.load %arg29[%c1_108, %c0_109, %c0_110, %c0_111] : memref<6x6x4x32xf32, #tpu.memory_space<vmem>>, vector<4x4x4x32xf32>
    %129 = vector.shape_cast %128 : vector<4x4x4x32xf32> to vector<64x32xf32>
    %130 = arith.truncf %129 : vector<64x32xf32> to vector<64x32xbf16>
    %c3_112 = arith.constant 3 : index
    %c0_113 = arith.constant 0 : index
    %c0_114 = arith.constant 0 : index
    %131 = vector.load %arg6[%c3_112, %c0_113, %c0_114] : memref<9x32x64xbf16, #tpu.memory_space<vmem>>, vector<1x32x64xbf16>
    %132 = vector.shape_cast %131 : vector<1x32x64xbf16> to vector<32x64xbf16>
    %cst_115 = arith.constant dense<0.000000e+00> : vector<64x64xf32>
    %133 = tpu.matmul %130, %132, %cst_115 {dimension_numbers = #tpu.dot_dimension_numbers<[1], [0], [0], [1], [0, 0, 1, 1], [], []>} : vector<64x32xbf16>, vector<32x64xbf16>, vector<64x64xf32> -> vector<64x64xf32>
    %134 = arith.addf %127, %133 : vector<64x64xf32>
    %c1_116 = arith.constant 1 : index
    %c1_117 = arith.constant 1 : index
    %c0_118 = arith.constant 0 : index
    %c0_119 = arith.constant 0 : index
    %135 = vector.load %arg29[%c1_116, %c1_117, %c0_118, %c0_119] : memref<6x6x4x32xf32, #tpu.memory_space<vmem>>, vector<4x4x4x32xf32>
    %136 = vector.shape_cast %135 : vector<4x4x4x32xf32> to vector<64x32xf32>
    %137 = arith.truncf %136 : vector<64x32xf32> to vector<64x32xbf16>
    %c4_120 = arith.constant 4 : index
    %c0_121 = arith.constant 0 : index
    %c0_122 = arith.constant 0 : index
    %138 = vector.load %arg6[%c4_120, %c0_121, %c0_122] : memref<9x32x64xbf16, #tpu.memory_space<vmem>>, vector<1x32x64xbf16>
    %139 = vector.shape_cast %138 : vector<1x32x64xbf16> to vector<32x64xbf16>
    %cst_123 = arith.constant dense<0.000000e+00> : vector<64x64xf32>
    %140 = tpu.matmul %137, %139, %cst_123 {dimension_numbers = #tpu.dot_dimension_numbers<[1], [0], [0], [1], [0, 0, 1, 1], [], []>} : vector<64x32xbf16>, vector<32x64xbf16>, vector<64x64xf32> -> vector<64x64xf32>
    %141 = arith.addf %134, %140 : vector<64x64xf32>
    %c1_124 = arith.constant 1 : index
    %c2_125 = arith.constant 2 : index
    %c0_126 = arith.constant 0 : index
    %c0_127 = arith.constant 0 : index
    %142 = vector.load %arg29[%c1_124, %c2_125, %c0_126, %c0_127] : memref<6x6x4x32xf32, #tpu.memory_space<vmem>>, vector<4x4x4x32xf32>
    %143 = vector.shape_cast %142 : vector<4x4x4x32xf32> to vector<64x32xf32>
    %144 = arith.truncf %143 : vector<64x32xf32> to vector<64x32xbf16>
    %c5_128 = arith.constant 5 : index
    %c0_129 = arith.constant 0 : index
    %c0_130 = arith.constant 0 : index
    %145 = vector.load %arg6[%c5_128, %c0_129, %c0_130] : memref<9x32x64xbf16, #tpu.memory_space<vmem>>, vector<1x32x64xbf16>
    %146 = vector.shape_cast %145 : vector<1x32x64xbf16> to vector<32x64xbf16>
    %cst_131 = arith.constant dense<0.000000e+00> : vector<64x64xf32>
    %147 = tpu.matmul %144, %146, %cst_131 {dimension_numbers = #tpu.dot_dimension_numbers<[1], [0], [0], [1], [0, 0, 1, 1], [], []>} : vector<64x32xbf16>, vector<32x64xbf16>, vector<64x64xf32> -> vector<64x64xf32>
    %148 = arith.addf %141, %147 : vector<64x64xf32>
    %c2_132 = arith.constant 2 : index
    %c0_133 = arith.constant 0 : index
    %c0_134 = arith.constant 0 : index
    %c0_135 = arith.constant 0 : index
    %149 = vector.load %arg29[%c2_132, %c0_133, %c0_134, %c0_135] : memref<6x6x4x32xf32, #tpu.memory_space<vmem>>, vector<4x4x4x32xf32>
    %150 = vector.shape_cast %149 : vector<4x4x4x32xf32> to vector<64x32xf32>
    %151 = arith.truncf %150 : vector<64x32xf32> to vector<64x32xbf16>
    %c6_136 = arith.constant 6 : index
    %c0_137 = arith.constant 0 : index
    %c0_138 = arith.constant 0 : index
    %152 = vector.load %arg6[%c6_136, %c0_137, %c0_138] : memref<9x32x64xbf16, #tpu.memory_space<vmem>>, vector<1x32x64xbf16>
    %153 = vector.shape_cast %152 : vector<1x32x64xbf16> to vector<32x64xbf16>
    %cst_139 = arith.constant dense<0.000000e+00> : vector<64x64xf32>
    %154 = tpu.matmul %151, %153, %cst_139 {dimension_numbers = #tpu.dot_dimension_numbers<[1], [0], [0], [1], [0, 0, 1, 1], [], []>} : vector<64x32xbf16>, vector<32x64xbf16>, vector<64x64xf32> -> vector<64x64xf32>
    %155 = arith.addf %148, %154 : vector<64x64xf32>
    %c2_140 = arith.constant 2 : index
    %c1_141 = arith.constant 1 : index
    %c0_142 = arith.constant 0 : index
    %c0_143 = arith.constant 0 : index
    %156 = vector.load %arg29[%c2_140, %c1_141, %c0_142, %c0_143] : memref<6x6x4x32xf32, #tpu.memory_space<vmem>>, vector<4x4x4x32xf32>
    %157 = vector.shape_cast %156 : vector<4x4x4x32xf32> to vector<64x32xf32>
    %158 = arith.truncf %157 : vector<64x32xf32> to vector<64x32xbf16>
    %c7_144 = arith.constant 7 : index
    %c0_145 = arith.constant 0 : index
    %c0_146 = arith.constant 0 : index
    %159 = vector.load %arg6[%c7_144, %c0_145, %c0_146] : memref<9x32x64xbf16, #tpu.memory_space<vmem>>, vector<1x32x64xbf16>
    %160 = vector.shape_cast %159 : vector<1x32x64xbf16> to vector<32x64xbf16>
    %cst_147 = arith.constant dense<0.000000e+00> : vector<64x64xf32>
    %161 = tpu.matmul %158, %160, %cst_147 {dimension_numbers = #tpu.dot_dimension_numbers<[1], [0], [0], [1], [0, 0, 1, 1], [], []>} : vector<64x32xbf16>, vector<32x64xbf16>, vector<64x64xf32> -> vector<64x64xf32>
    %162 = arith.addf %155, %161 : vector<64x64xf32>
    %c2_148 = arith.constant 2 : index
    %c2_149 = arith.constant 2 : index
    %c0_150 = arith.constant 0 : index
    %c0_151 = arith.constant 0 : index
    %163 = vector.load %arg29[%c2_148, %c2_149, %c0_150, %c0_151] : memref<6x6x4x32xf32, #tpu.memory_space<vmem>>, vector<4x4x4x32xf32>
    %164 = vector.shape_cast %163 : vector<4x4x4x32xf32> to vector<64x32xf32>
    %165 = arith.truncf %164 : vector<64x32xf32> to vector<64x32xbf16>
    %c8_152 = arith.constant 8 : index
    %c0_153 = arith.constant 0 : index
    %c0_154 = arith.constant 0 : index
    %166 = vector.load %arg6[%c8_152, %c0_153, %c0_154] : memref<9x32x64xbf16, #tpu.memory_space<vmem>>, vector<1x32x64xbf16>
    %167 = vector.shape_cast %166 : vector<1x32x64xbf16> to vector<32x64xbf16>
    %cst_155 = arith.constant dense<0.000000e+00> : vector<64x64xf32>
    %168 = tpu.matmul %165, %167, %cst_155 {dimension_numbers = #tpu.dot_dimension_numbers<[1], [0], [0], [1], [0, 0, 1, 1], [], []>} : vector<64x32xbf16>, vector<32x64xbf16>, vector<64x64xf32> -> vector<64x64xf32>
    %169 = arith.addf %162, %168 : vector<64x64xf32>
    %170 = vector.shape_cast %169 : vector<64x64xf32> to vector<4x4x4x64xf32>
    %c0_156 = arith.constant 0 : index
    %c0_157 = arith.constant 0 : index
    %171 = vector.load %arg7[%c0_156, %c0_157] : memref<1x64xf32, #tpu.memory_space<vmem>>, vector<1x64xf32>
    %172 = vector.shape_cast %171 : vector<1x64xf32> to vector<1x1x1x64xf32>
    %173 = vector.broadcast %172 : vector<1x1x1x64xf32> to vector<4x4x4x64xf32>
    %174 = arith.addf %170, %173 : vector<4x4x4x64xf32>
    %cst_158 = arith.constant 0.000000e+00 : f32
    %175 = vector.broadcast %cst_158 : f32 to vector<4x4x4x64xf32>
    %176 = arith.maximumf %174, %175 : vector<4x4x4x64xf32>
    %c0_159 = arith.constant 0 : index
    %c0_160 = arith.constant 0 : index
    %177 = vector.load %arg8[%c0_159, %c0_160] : memref<1x64xf32, #tpu.memory_space<vmem>>, vector<1x64xf32>
    %178 = vector.shape_cast %177 : vector<1x64xf32> to vector<1x1x1x64xf32>
    %179 = vector.broadcast %178 : vector<1x1x1x64xf32> to vector<4x4x4x64xf32>
    %180 = arith.mulf %176, %179 : vector<4x4x4x64xf32>
    %c0_161 = arith.constant 0 : index
    %c0_162 = arith.constant 0 : index
    %181 = vector.load %arg9[%c0_161, %c0_162] : memref<1x64xf32, #tpu.memory_space<vmem>>, vector<1x64xf32>
    %182 = vector.shape_cast %181 : vector<1x64xf32> to vector<1x1x1x64xf32>
    %183 = vector.broadcast %182 : vector<1x1x1x64xf32> to vector<4x4x4x64xf32>
    %184 = arith.addf %180, %183 : vector<4x4x4x64xf32>
    %185 = vector.shape_cast %184 : vector<4x4x4x64xf32> to vector<2x2x2x2x4x64xf32>
    %186 = vector.extract_strided_slice %185 {offsets = [0, 0, 0, 0, 0, 0], sizes = [2, 1, 2, 1, 4, 64], strides = [1, 1, 1, 1, 1, 1]} : vector<2x2x2x2x4x64xf32> to vector<2x1x2x1x4x64xf32>
    %187 = vector.shape_cast %186 : vector<2x1x2x1x4x64xf32> to vector<2x2x4x64xf32>
    %188 = vector.extract_strided_slice %185 {offsets = [0, 0, 0, 1, 0, 0], sizes = [2, 1, 2, 1, 4, 64], strides = [1, 1, 1, 1, 1, 1]} : vector<2x2x2x2x4x64xf32> to vector<2x1x2x1x4x64xf32>
    %189 = vector.shape_cast %188 : vector<2x1x2x1x4x64xf32> to vector<2x2x4x64xf32>
    %190 = arith.maximumf %187, %189 : vector<2x2x4x64xf32>
    %191 = vector.extract_strided_slice %185 {offsets = [0, 1, 0, 0, 0, 0], sizes = [2, 1, 2, 1, 4, 64], strides = [1, 1, 1, 1, 1, 1]} : vector<2x2x2x2x4x64xf32> to vector<2x1x2x1x4x64xf32>
    %192 = vector.shape_cast %191 : vector<2x1x2x1x4x64xf32> to vector<2x2x4x64xf32>
    %193 = vector.extract_strided_slice %185 {offsets = [0, 1, 0, 1, 0, 0], sizes = [2, 1, 2, 1, 4, 64], strides = [1, 1, 1, 1, 1, 1]} : vector<2x2x2x2x4x64xf32> to vector<2x1x2x1x4x64xf32>
    %194 = vector.shape_cast %193 : vector<2x1x2x1x4x64xf32> to vector<2x2x4x64xf32>
    %195 = arith.maximumf %192, %194 : vector<2x2x4x64xf32>
    %196 = arith.maximumf %190, %195 : vector<2x2x4x64xf32>
    %cst_163 = arith.constant 0.000000e+00 : f32
    %197 = vector.broadcast %cst_163 : f32 to vector<4x4x4x64xf32>
    %c0_164 = arith.constant 0 : index
    %c0_165 = arith.constant 0 : index
    %c0_166 = arith.constant 0 : index
    %c0_167 = arith.constant 0 : index
    %198 = vector.load %arg30[%c0_164, %c0_165, %c0_166, %c0_167] : memref<4x4x4x64xf32, #tpu.memory_space<vmem>>, vector<4x4x4x64xf32>
    tpu.vector_store %arg30[%c0_164, %c0_165, %c0_166, %c0_167], %197 {strides = array<i32>} : memref<4x4x4x64xf32, #tpu.memory_space<vmem>>, vector<4x4x4x64xf32>,
    %c1_168 = arith.constant 1 : index
    %c1_169 = arith.constant 1 : index
    %c0_170 = arith.constant 0 : index
    %c0_171 = arith.constant 0 : index
    %199 = vector.load %arg30[%c1_168, %c1_169, %c0_170, %c0_171] : memref<4x4x4x64xf32, #tpu.memory_space<vmem>>, vector<2x2x4x64xf32>
    tpu.vector_store %arg30[%c1_168, %c1_169, %c0_170, %c0_171], %196 {strides = array<i32>} : memref<4x4x4x64xf32, #tpu.memory_space<vmem>>, vector<2x2x4x64xf32>,
    %cst_172 = arith.constant 0.000000e+00 : f32
    %200 = vector.broadcast %cst_172 : f32 to vector<16x128xf32>
    %c0_173 = arith.constant 0 : index
    %c0_174 = arith.constant 0 : index
    %c0_175 = arith.constant 0 : index
    %c0_176 = arith.constant 0 : index
    %201 = vector.load %arg30[%c0_173, %c0_174, %c0_175, %c0_176] : memref<4x4x4x64xf32, #tpu.memory_space<vmem>>, vector<2x2x4x64xf32>
    %202 = vector.shape_cast %201 : vector<2x2x4x64xf32> to vector<16x64xf32>
    %203 = arith.truncf %202 : vector<16x64xf32> to vector<16x64xbf16>
    %c0_177 = arith.constant 0 : index
    %c0_178 = arith.constant 0 : index
    %c0_179 = arith.constant 0 : index
    %204 = vector.load %arg10[%c0_177, %c0_178, %c0_179] : memref<9x64x128xbf16, #tpu.memory_space<vmem>>, vector<1x64x128xbf16>
    %205 = vector.shape_cast %204 : vector<1x64x128xbf16> to vector<64x128xbf16>
    %cst_180 = arith.constant dense<0.000000e+00> : vector<16x128xf32>
    %206 = tpu.matmul %203, %205, %cst_180 {dimension_numbers = #tpu.dot_dimension_numbers<[1], [0], [0], [1], [0, 0, 1, 1], [], []>} : vector<16x64xbf16>, vector<64x128xbf16>, vector<16x128xf32> -> vector<16x128xf32>
    %207 = arith.addf %200, %206 : vector<16x128xf32>
    %c0_181 = arith.constant 0 : index
    %c1_182 = arith.constant 1 : index
    %c0_183 = arith.constant 0 : index
    %c0_184 = arith.constant 0 : index
    %208 = vector.load %arg30[%c0_181, %c1_182, %c0_183, %c0_184] : memref<4x4x4x64xf32, #tpu.memory_space<vmem>>, vector<2x2x4x64xf32>
    %209 = vector.shape_cast %208 : vector<2x2x4x64xf32> to vector<16x64xf32>
    %210 = arith.truncf %209 : vector<16x64xf32> to vector<16x64xbf16>
    %c1_185 = arith.constant 1 : index
    %c0_186 = arith.constant 0 : index
    %c0_187 = arith.constant 0 : index
    %211 = vector.load %arg10[%c1_185, %c0_186, %c0_187] : memref<9x64x128xbf16, #tpu.memory_space<vmem>>, vector<1x64x128xbf16>
    %212 = vector.shape_cast %211 : vector<1x64x128xbf16> to vector<64x128xbf16>
    %cst_188 = arith.constant dense<0.000000e+00> : vector<16x128xf32>
    %213 = tpu.matmul %210, %212, %cst_188 {dimension_numbers = #tpu.dot_dimension_numbers<[1], [0], [0], [1], [0, 0, 1, 1], [], []>} : vector<16x64xbf16>, vector<64x128xbf16>, vector<16x128xf32> -> vector<16x128xf32>
    %214 = arith.addf %207, %213 : vector<16x128xf32>
    %c0_189 = arith.constant 0 : index
    %c2_190 = arith.constant 2 : index
    %c0_191 = arith.constant 0 : index
    %c0_192 = arith.constant 0 : index
    %215 = vector.load %arg30[%c0_189, %c2_190, %c0_191, %c0_192] : memref<4x4x4x64xf32, #tpu.memory_space<vmem>>, vector<2x2x4x64xf32>
    %216 = vector.shape_cast %215 : vector<2x2x4x64xf32> to vector<16x64xf32>
    %217 = arith.truncf %216 : vector<16x64xf32> to vector<16x64xbf16>
    %c2_193 = arith.constant 2 : index
    %c0_194 = arith.constant 0 : index
    %c0_195 = arith.constant 0 : index
    %218 = vector.load %arg10[%c2_193, %c0_194, %c0_195] : memref<9x64x128xbf16, #tpu.memory_space<vmem>>, vector<1x64x128xbf16>
    %219 = vector.shape_cast %218 : vector<1x64x128xbf16> to vector<64x128xbf16>
    %cst_196 = arith.constant dense<0.000000e+00> : vector<16x128xf32>
    %220 = tpu.matmul %217, %219, %cst_196 {dimension_numbers = #tpu.dot_dimension_numbers<[1], [0], [0], [1], [0, 0, 1, 1], [], []>} : vector<16x64xbf16>, vector<64x128xbf16>, vector<16x128xf32> -> vector<16x128xf32>
    %221 = arith.addf %214, %220 : vector<16x128xf32>
    %c1_197 = arith.constant 1 : index
    %c0_198 = arith.constant 0 : index
    %c0_199 = arith.constant 0 : index
    %c0_200 = arith.constant 0 : index
    %222 = vector.load %arg30[%c1_197, %c0_198, %c0_199, %c0_200] : memref<4x4x4x64xf32, #tpu.memory_space<vmem>>, vector<2x2x4x64xf32>
    %223 = vector.shape_cast %222 : vector<2x2x4x64xf32> to vector<16x64xf32>
    %224 = arith.truncf %223 : vector<16x64xf32> to vector<16x64xbf16>
    %c3_201 = arith.constant 3 : index
    %c0_202 = arith.constant 0 : index
    %c0_203 = arith.constant 0 : index
    %225 = vector.load %arg10[%c3_201, %c0_202, %c0_203] : memref<9x64x128xbf16, #tpu.memory_space<vmem>>, vector<1x64x128xbf16>
    %226 = vector.shape_cast %225 : vector<1x64x128xbf16> to vector<64x128xbf16>
    %cst_204 = arith.constant dense<0.000000e+00> : vector<16x128xf32>
    %227 = tpu.matmul %224, %226, %cst_204 {dimension_numbers = #tpu.dot_dimension_numbers<[1], [0], [0], [1], [0, 0, 1, 1], [], []>} : vector<16x64xbf16>, vector<64x128xbf16>, vector<16x128xf32> -> vector<16x128xf32>
    %228 = arith.addf %221, %227 : vector<16x128xf32>
    %c1_205 = arith.constant 1 : index
    %c1_206 = arith.constant 1 : index
    %c0_207 = arith.constant 0 : index
    %c0_208 = arith.constant 0 : index
    %229 = vector.load %arg30[%c1_205, %c1_206, %c0_207, %c0_208] : memref<4x4x4x64xf32, #tpu.memory_space<vmem>>, vector<2x2x4x64xf32>
    %230 = vector.shape_cast %229 : vector<2x2x4x64xf32> to vector<16x64xf32>
    %231 = arith.truncf %230 : vector<16x64xf32> to vector<16x64xbf16>
    %c4_209 = arith.constant 4 : index
    %c0_210 = arith.constant 0 : index
    %c0_211 = arith.constant 0 : index
    %232 = vector.load %arg10[%c4_209, %c0_210, %c0_211] : memref<9x64x128xbf16, #tpu.memory_space<vmem>>, vector<1x64x128xbf16>
    %233 = vector.shape_cast %232 : vector<1x64x128xbf16> to vector<64x128xbf16>
    %cst_212 = arith.constant dense<0.000000e+00> : vector<16x128xf32>
    %234 = tpu.matmul %231, %233, %cst_212 {dimension_numbers = #tpu.dot_dimension_numbers<[1], [0], [0], [1], [0, 0, 1, 1], [], []>} : vector<16x64xbf16>, vector<64x128xbf16>, vector<16x128xf32> -> vector<16x128xf32>
    %235 = arith.addf %228, %234 : vector<16x128xf32>
    %c1_213 = arith.constant 1 : index
    %c2_214 = arith.constant 2 : index
    %c0_215 = arith.constant 0 : index
    %c0_216 = arith.constant 0 : index
    %236 = vector.load %arg30[%c1_213, %c2_214, %c0_215, %c0_216] : memref<4x4x4x64xf32, #tpu.memory_space<vmem>>, vector<2x2x4x64xf32>
    %237 = vector.shape_cast %236 : vector<2x2x4x64xf32> to vector<16x64xf32>
    %238 = arith.truncf %237 : vector<16x64xf32> to vector<16x64xbf16>
    %c5_217 = arith.constant 5 : index
    %c0_218 = arith.constant 0 : index
    %c0_219 = arith.constant 0 : index
    %239 = vector.load %arg10[%c5_217, %c0_218, %c0_219] : memref<9x64x128xbf16, #tpu.memory_space<vmem>>, vector<1x64x128xbf16>
    %240 = vector.shape_cast %239 : vector<1x64x128xbf16> to vector<64x128xbf16>
    %cst_220 = arith.constant dense<0.000000e+00> : vector<16x128xf32>
    %241 = tpu.matmul %238, %240, %cst_220 {dimension_numbers = #tpu.dot_dimension_numbers<[1], [0], [0], [1], [0, 0, 1, 1], [], []>} : vector<16x64xbf16>, vector<64x128xbf16>, vector<16x128xf32> -> vector<16x128xf32>
    %242 = arith.addf %235, %241 : vector<16x128xf32>
    %c2_221 = arith.constant 2 : index
    %c0_222 = arith.constant 0 : index
    %c0_223 = arith.constant 0 : index
    %c0_224 = arith.constant 0 : index
    %243 = vector.load %arg30[%c2_221, %c0_222, %c0_223, %c0_224] : memref<4x4x4x64xf32, #tpu.memory_space<vmem>>, vector<2x2x4x64xf32>
    %244 = vector.shape_cast %243 : vector<2x2x4x64xf32> to vector<16x64xf32>
    %245 = arith.truncf %244 : vector<16x64xf32> to vector<16x64xbf16>
    %c6_225 = arith.constant 6 : index
    %c0_226 = arith.constant 0 : index
    %c0_227 = arith.constant 0 : index
    %246 = vector.load %arg10[%c6_225, %c0_226, %c0_227] : memref<9x64x128xbf16, #tpu.memory_space<vmem>>, vector<1x64x128xbf16>
    %247 = vector.shape_cast %246 : vector<1x64x128xbf16> to vector<64x128xbf16>
    %cst_228 = arith.constant dense<0.000000e+00> : vector<16x128xf32>
    %248 = tpu.matmul %245, %247, %cst_228 {dimension_numbers = #tpu.dot_dimension_numbers<[1], [0], [0], [1], [0, 0, 1, 1], [], []>} : vector<16x64xbf16>, vector<64x128xbf16>, vector<16x128xf32> -> vector<16x128xf32>
    %249 = arith.addf %242, %248 : vector<16x128xf32>
    %c2_229 = arith.constant 2 : index
    %c1_230 = arith.constant 1 : index
    %c0_231 = arith.constant 0 : index
    %c0_232 = arith.constant 0 : index
    %250 = vector.load %arg30[%c2_229, %c1_230, %c0_231, %c0_232] : memref<4x4x4x64xf32, #tpu.memory_space<vmem>>, vector<2x2x4x64xf32>
    %251 = vector.shape_cast %250 : vector<2x2x4x64xf32> to vector<16x64xf32>
    %252 = arith.truncf %251 : vector<16x64xf32> to vector<16x64xbf16>
    %c7_233 = arith.constant 7 : index
    %c0_234 = arith.constant 0 : index
    %c0_235 = arith.constant 0 : index
    %253 = vector.load %arg10[%c7_233, %c0_234, %c0_235] : memref<9x64x128xbf16, #tpu.memory_space<vmem>>, vector<1x64x128xbf16>
    %254 = vector.shape_cast %253 : vector<1x64x128xbf16> to vector<64x128xbf16>
    %cst_236 = arith.constant dense<0.000000e+00> : vector<16x128xf32>
    %255 = tpu.matmul %252, %254, %cst_236 {dimension_numbers = #tpu.dot_dimension_numbers<[1], [0], [0], [1], [0, 0, 1, 1], [], []>} : vector<16x64xbf16>, vector<64x128xbf16>, vector<16x128xf32> -> vector<16x128xf32>
    %256 = arith.addf %249, %255 : vector<16x128xf32>
    %c2_237 = arith.constant 2 : index
    %c2_238 = arith.constant 2 : index
    %c0_239 = arith.constant 0 : index
    %c0_240 = arith.constant 0 : index
    %257 = vector.load %arg30[%c2_237, %c2_238, %c0_239, %c0_240] : memref<4x4x4x64xf32, #tpu.memory_space<vmem>>, vector<2x2x4x64xf32>
    %258 = vector.shape_cast %257 : vector<2x2x4x64xf32> to vector<16x64xf32>
    %259 = arith.truncf %258 : vector<16x64xf32> to vector<16x64xbf16>
    %c8_241 = arith.constant 8 : index
    %c0_242 = arith.constant 0 : index
    %c0_243 = arith.constant 0 : index
    %260 = vector.load %arg10[%c8_241, %c0_242, %c0_243] : memref<9x64x128xbf16, #tpu.memory_space<vmem>>, vector<1x64x128xbf16>
    %261 = vector.shape_cast %260 : vector<1x64x128xbf16> to vector<64x128xbf16>
    %cst_244 = arith.constant dense<0.000000e+00> : vector<16x128xf32>
    %262 = tpu.matmul %259, %261, %cst_244 {dimension_numbers = #tpu.dot_dimension_numbers<[1], [0], [0], [1], [0, 0, 1, 1], [], []>} : vector<16x64xbf16>, vector<64x128xbf16>, vector<16x128xf32> -> vector<16x128xf32>
    %263 = arith.addf %256, %262 : vector<16x128xf32>
    %264 = vector.shape_cast %263 : vector<16x128xf32> to vector<2x2x4x128xf32>
    %c0_245 = arith.constant 0 : index
    %c0_246 = arith.constant 0 : index
    %265 = vector.load %arg11[%c0_245, %c0_246] : memref<1x128xf32, #tpu.memory_space<vmem>>, vector<1x128xf32>
    %266 = vector.shape_cast %265 : vector<1x128xf32> to vector<1x1x1x128xf32>
    %267 = vector.broadcast %266 : vector<1x1x1x128xf32> to vector<2x2x4x128xf32>
    %268 = arith.addf %264, %267 : vector<2x2x4x128xf32>
    %cst_247 = arith.constant 0.000000e+00 : f32
    %269 = vector.broadcast %cst_247 : f32 to vector<2x2x4x128xf32>
    %270 = arith.maximumf %268, %269 : vector<2x2x4x128xf32>
    %c0_248 = arith.constant 0 : index
    %c0_249 = arith.constant 0 : index
    %271 = vector.load %arg12[%c0_248, %c0_249] : memref<1x128xf32, #tpu.memory_space<vmem>>, vector<1x128xf32>
    %272 = vector.shape_cast %271 : vector<1x128xf32> to vector<1x1x1x128xf32>
    %273 = vector.broadcast %272 : vector<1x1x1x128xf32> to vector<2x2x4x128xf32>
    %274 = arith.mulf %270, %273 : vector<2x2x4x128xf32>
    %c0_250 = arith.constant 0 : index
    %c0_251 = arith.constant 0 : index
    %275 = vector.load %arg13[%c0_250, %c0_251] : memref<1x128xf32, #tpu.memory_space<vmem>>, vector<1x128xf32>
    %276 = vector.shape_cast %275 : vector<1x128xf32> to vector<1x1x1x128xf32>
    %277 = vector.broadcast %276 : vector<1x1x1x128xf32> to vector<2x2x4x128xf32>
    %278 = arith.addf %274, %277 : vector<2x2x4x128xf32>
    %279 = vector.shape_cast %278 : vector<2x2x4x128xf32> to vector<1x2x1x2x4x128xf32>
    %280 = vector.extract_strided_slice %279 {offsets = [0, 0, 0, 0, 0, 0], sizes = [1, 1, 1, 1, 4, 128], strides = [1, 1, 1, 1, 1, 1]} : vector<1x2x1x2x4x128xf32> to vector<1x1x1x1x4x128xf32>
    %281 = vector.shape_cast %280 : vector<1x1x1x1x4x128xf32> to vector<1x1x4x128xf32>
    %282 = vector.extract_strided_slice %279 {offsets = [0, 0, 0, 1, 0, 0], sizes = [1, 1, 1, 1, 4, 128], strides = [1, 1, 1, 1, 1, 1]} : vector<1x2x1x2x4x128xf32> to vector<1x1x1x1x4x128xf32>
    %283 = vector.shape_cast %282 : vector<1x1x1x1x4x128xf32> to vector<1x1x4x128xf32>
    %284 = arith.maximumf %281, %283 : vector<1x1x4x128xf32>
    %285 = vector.extract_strided_slice %279 {offsets = [0, 1, 0, 0, 0, 0], sizes = [1, 1, 1, 1, 4, 128], strides = [1, 1, 1, 1, 1, 1]} : vector<1x2x1x2x4x128xf32> to vector<1x1x1x1x4x128xf32>
    %286 = vector.shape_cast %285 : vector<1x1x1x1x4x128xf32> to vector<1x1x4x128xf32>
    %287 = vector.extract_strided_slice %279 {offsets = [0, 1, 0, 1, 0, 0], sizes = [1, 1, 1, 1, 4, 128], strides = [1, 1, 1, 1, 1, 1]} : vector<1x2x1x2x4x128xf32> to vector<1x1x1x1x4x128xf32>
    %288 = vector.shape_cast %287 : vector<1x1x1x1x4x128xf32> to vector<1x1x4x128xf32>
    %289 = arith.maximumf %286, %288 : vector<1x1x4x128xf32>
    %290 = arith.maximumf %284, %289 : vector<1x1x4x128xf32>
    %291 = vector.shape_cast %290 : vector<1x1x4x128xf32> to vector<4x128xf32>
    %292 = arith.truncf %291 : vector<4x128xf32> to vector<4x128xbf16>
    %293 = vector.extract_strided_slice %291 {offsets = [0, 0], sizes = [2, 128], strides = [1, 1]} : vector<4x128xf32> to vector<2x128xf32>
    %294 = arith.truncf %293 : vector<2x128xf32> to vector<2x128xbf16>
    %295 = vector.extract_strided_slice %291 {offsets = [2, 0], sizes = [2, 128], strides = [1, 1]} : vector<4x128xf32> to vector<2x128xf32>
    %296 = arith.truncf %295 : vector<2x128xf32> to vector<2x128xbf16>
    %c0_252 = arith.constant 0 : index
    %c0_253 = arith.constant 0 : index
    %297 = vector.load %arg14[%c0_252, %c0_253] : memref<256x128xbf16, #tpu.memory_space<vmem>>, vector<128x128xbf16>
    %cst_254 = arith.constant dense<0.000000e+00> : vector<2x128xf32>
    %298 = tpu.matmul %294, %297, %cst_254 {dimension_numbers = #tpu.dot_dimension_numbers<[1], [0], [0], [1], [0, 0, 1, 1], [], []>} : vector<2x128xbf16>, vector<128x128xbf16>, vector<2x128xf32> -> vector<2x128xf32>
    %c128 = arith.constant 128 : index
    %c0_255 = arith.constant 0 : index
    %299 = vector.load %arg14[%c128, %c0_255] : memref<256x128xbf16, #tpu.memory_space<vmem>>, vector<128x128xbf16>
    %cst_256 = arith.constant dense<0.000000e+00> : vector<2x128xf32>
    %300 = tpu.matmul %296, %299, %cst_256 {dimension_numbers = #tpu.dot_dimension_numbers<[1], [0], [0], [1], [0, 0, 1, 1], [], []>} : vector<2x128xbf16>, vector<128x128xbf16>, vector<2x128xf32> -> vector<2x128xf32>
    %301 = arith.addf %298, %300 : vector<2x128xf32>
    %c0_257 = arith.constant 0 : index
    %c0_258 = arith.constant 0 : index
    %302 = vector.load %arg15[%c0_257, %c0_258] : memref<1x128xf32, #tpu.memory_space<vmem>>, vector<1x128xf32>
    %303 = vector.broadcast %302 : vector<1x128xf32> to vector<2x128xf32>
    %304 = arith.addf %301, %303 : vector<2x128xf32>
    %cst_259 = arith.constant 0.000000e+00 : f32
    %305 = vector.broadcast %cst_259 : f32 to vector<2x128xf32>
    %306 = arith.maximumf %304, %305 : vector<2x128xf32>
    %307 = arith.truncf %306 : vector<2x128xf32> to vector<2x128xbf16>
    %c0_260 = arith.constant 0 : index
    %c0_261 = arith.constant 0 : index
    %308 = vector.load %arg16[%c0_260, %c0_261] : memref<128x128xbf16, #tpu.memory_space<vmem>>, vector<128x128xbf16>
    %cst_262 = arith.constant dense<0.000000e+00> : vector<2x128xf32>
    %309 = tpu.matmul %307, %308, %cst_262 {dimension_numbers = #tpu.dot_dimension_numbers<[1], [0], [0], [1], [0, 0, 1, 1], [], []>} : vector<2x128xbf16>, vector<128x128xbf16>, vector<2x128xf32> -> vector<2x128xf32>
    %c0_263 = arith.constant 0 : index
    %c0_264 = arith.constant 0 : index
    %310 = vector.load %arg17[%c0_263, %c0_264] : memref<1x128xf32, #tpu.memory_space<vmem>>, vector<1x128xf32>
    %311 = vector.broadcast %310 : vector<1x128xf32> to vector<2x128xf32>
    %312 = arith.addf %309, %311 : vector<2x128xf32>
    %cst_265 = arith.constant 0.000000e+00 : f32
    %313 = vector.broadcast %cst_265 : f32 to vector<2x128xf32>
    %314 = arith.maximumf %312, %313 : vector<2x128xf32>
    %315 = arith.truncf %314 : vector<2x128xf32> to vector<2x128xbf16>
    %c0_266 = arith.constant 0 : index
    %c0_267 = arith.constant 0 : index
    %316 = vector.load %arg18[%c0_266, %c0_267] : memref<128x1xbf16, #tpu.memory_space<vmem>>, vector<128x1xbf16>
    %cst_268 = arith.constant dense<0.000000e+00> : vector<2x1xf32>
    %317 = tpu.matmul %315, %316, %cst_268 {dimension_numbers = #tpu.dot_dimension_numbers<[1], [0], [0], [1], [0, 0, 1, 1], [], []>} : vector<2x128xbf16>, vector<128x1xbf16>, vector<2x1xf32> -> vector<2x1xf32>
    %c0_269 = arith.constant 0 : index
    %c0_270 = arith.constant 0 : index
    %318 = vector.load %arg19[%c0_269, %c0_270] : memref<1x1xf32, #tpu.memory_space<vmem>>, vector<1x1xf32>
    %319 = vector.broadcast %318 : vector<1x1xf32> to vector<2x1xf32>
    %320 = arith.addf %317, %319 : vector<2x1xf32>
    %cst_271 = arith.constant 0.000000e+00 : f32
    %321 = vector.broadcast %cst_271 : f32 to vector<2x1xf32>
    %322 = arith.subf %321, %320 : vector<2x1xf32>
    %323 = math.exp %322 : vector<2x1xf32>
    %cst_272 = arith.constant 1.000000e+00 : f32
    %324 = vector.broadcast %cst_272 : f32 to vector<2x1xf32>
    %325 = arith.addf %324, %323 : vector<2x1xf32>
    %cst_273 = arith.constant 1.000000e+00 : f32
    %326 = vector.broadcast %cst_273 : f32 to vector<2x1xf32>
    %327 = arith.divf %326, %325 : vector<2x1xf32>
    %c0_274 = arith.constant 0 : index
    %c0_275 = arith.constant 0 : index
    %328 = vector.load %arg26[%c0_274, %c0_275] : memref<2x1xf32, #tpu.memory_space<vmem>>, vector<2x1xf32>
    tpu.vector_store %arg26[%c0_274, %c0_275], %327 {strides = array<i32>} : memref<2x1xf32, #tpu.memory_space<vmem>>, vector<2x1xf32>,
    %c0_276 = arith.constant 0 : index
    %c0_277 = arith.constant 0 : index
    %329 = vector.load %arg20[%c0_276, %c0_277] : memref<128x64xbf16, #tpu.memory_space<vmem>>, vector<128x64xbf16>
    %cst_278 = arith.constant dense<0.000000e+00> : vector<4x64xf32>
    %330 = tpu.matmul %292, %329, %cst_278 {dimension_numbers = #tpu.dot_dimension_numbers<[1], [0], [0], [1], [0, 0, 1, 1], [], []>} : vector<4x128xbf16>, vector<128x64xbf16>, vector<4x64xf32> -> vector<4x64xf32>
    %c0_279 = arith.constant 0 : index
    %c0_280 = arith.constant 0 : index
    %331 = vector.load %arg21[%c0_279, %c0_280] : memref<1x64xf32, #tpu.memory_space<vmem>>, vector<1x64xf32>
    %332 = vector.broadcast %331 : vector<1x64xf32> to vector<4x64xf32>
    %333 = arith.addf %330, %332 : vector<4x64xf32>
    %cst_281 = arith.constant 0.000000e+00 : f32
    %334 = vector.broadcast %cst_281 : f32 to vector<4x64xf32>
    %335 = arith.maximumf %333, %334 : vector<4x64xf32>
    %336 = arith.truncf %335 : vector<4x64xf32> to vector<4x64xbf16>
    %c0_282 = arith.constant 0 : index
    %c0_283 = arith.constant 0 : index
    %337 = vector.load %arg22[%c0_282, %c0_283] : memref<64x64xbf16, #tpu.memory_space<vmem>>, vector<64x64xbf16>
    %cst_284 = arith.constant dense<0.000000e+00> : vector<4x64xf32>
    %338 = tpu.matmul %336, %337, %cst_284 {dimension_numbers = #tpu.dot_dimension_numbers<[1], [0], [0], [1], [0, 0, 1, 1], [], []>} : vector<4x64xbf16>, vector<64x64xbf16>, vector<4x64xf32> -> vector<4x64xf32>
    %c0_285 = arith.constant 0 : index
    %c0_286 = arith.constant 0 : index
    %339 = vector.load %arg23[%c0_285, %c0_286] : memref<1x64xf32, #tpu.memory_space<vmem>>, vector<1x64xf32>
    %340 = vector.broadcast %339 : vector<1x64xf32> to vector<4x64xf32>
    %341 = arith.addf %338, %340 : vector<4x64xf32>
    %cst_287 = arith.constant 0.000000e+00 : f32
    %342 = vector.broadcast %cst_287 : f32 to vector<4x64xf32>
    %343 = arith.maximumf %341, %342 : vector<4x64xf32>
    %344 = arith.truncf %343 : vector<4x64xf32> to vector<4x64xbf16>
    %c0_288 = arith.constant 0 : index
    %c0_289 = arith.constant 0 : index
    %345 = vector.load %arg24[%c0_288, %c0_289] : memref<64x10xbf16, #tpu.memory_space<vmem>>, vector<64x10xbf16>
    %cst_290 = arith.constant dense<0.000000e+00> : vector<4x10xf32>
    %346 = tpu.matmul %344, %345, %cst_290 {dimension_numbers = #tpu.dot_dimension_numbers<[1], [0], [0], [1], [0, 0, 1, 1], [], []>} : vector<4x64xbf16>, vector<64x10xbf16>, vector<4x10xf32> -> vector<4x10xf32>
    %c0_291 = arith.constant 0 : index
    %c0_292 = arith.constant 0 : index
    %347 = vector.load %arg25[%c0_291, %c0_292] : memref<1x10xf32, #tpu.memory_space<vmem>>, vector<1x10xf32>
    %348 = vector.broadcast %347 : vector<1x10xf32> to vector<4x10xf32>
    %349 = arith.addf %346, %348 : vector<4x10xf32>
    %c0_293 = arith.constant 0 : index
    %c0_294 = arith.constant 0 : index
    %350 = vector.load %arg27[%c0_293, %c0_294] : memref<4x10xf32, #tpu.memory_space<vmem>>, vector<4x10xf32>
    tpu.vector_store %arg27[%c0_293, %c0_294], %349 {strides = array<i32>} : memref<4x10xf32, #tpu.memory_space<vmem>>, vector<4x10xf32>,
    return
  }
  func.func @transform_0(%arg0: i32) -> (i32, i32, i32, i32) {
    %c0_i32 = arith.constant 0 : i32
    %c0_i32_0 = arith.constant 0 : i32
    %c0_i32_1 = arith.constant 0 : i32
    %c0_i32_2 = arith.constant 0 : i32
    %c0_i32_3 = arith.constant 0 : i32
    return %c0_i32, %c0_i32_0, %c0_i32_1, %c0_i32_2 : i32, i32, i32, i32
  }
  func.func @transform_1(%arg0: i32) -> (i32, i32, i32) {
    %c0_i32 = arith.constant 0 : i32
    %c0_i32_0 = arith.constant 0 : i32
    %c0_i32_1 = arith.constant 0 : i32
    %c0_i32_2 = arith.constant 0 : i32
    return %c0_i32, %c0_i32_0, %c0_i32_1 : i32, i32, i32
  }
  func.func @transform_2(%arg0: i32) -> (i32, i32) {
    %c0_i32 = arith.constant 0 : i32
    %c0_i32_0 = arith.constant 0 : i32
    %c0_i32_1 = arith.constant 0 : i32
    return %c0_i32, %c0_i32_0 : i32, i32
  }
  func.func @transform_3(%arg0: i32) -> (i32, i32) {
    %c0_i32 = arith.constant 0 : i32
    %c0_i32_0 = arith.constant 0 : i32
    %c0_i32_1 = arith.constant 0 : i32
    return %c0_i32, %c0_i32_0 : i32, i32
  }
  func.func @transform_4(%arg0: i32) -> (i32, i32) {
    %c0_i32 = arith.constant 0 : i32
    %c0_i32_0 = arith.constant 0 : i32
    %c0_i32_1 = arith.constant 0 : i32
    return %c0_i32, %c0_i32_0 : i32, i32
  }
  func.func @transform_5(%arg0: i32) -> (i32, i32, i32) {
    %c0_i32 = arith.constant 0 : i32
    %c0_i32_0 = arith.constant 0 : i32
    %c0_i32_1 = arith.constant 0 : i32
    %c0_i32_2 = arith.constant 0 : i32
    return %c0_i32, %c0_i32_0, %c0_i32_1 : i32, i32, i32
  }
  func.func @transform_6(%arg0: i32) -> (i32, i32) {
    %c0_i32 = arith.constant 0 : i32
    %c0_i32_0 = arith.constant 0 : i32
    %c0_i32_1 = arith.constant 0 : i32
    return %c0_i32, %c0_i32_0 : i32, i32
  }
  func.func @transform_7(%arg0: i32) -> (i32, i32) {
    %c0_i32 = arith.constant 0 : i32
    %c0_i32_0 = arith.constant 0 : i32
    %c0_i32_1 = arith.constant 0 : i32
    return %c0_i32, %c0_i32_0 : i32, i32
  }
  func.func @transform_8(%arg0: i32) -> (i32, i32) {
    %c0_i32 = arith.constant 0 : i32
    %c0_i32_0 = arith.constant 0 : i32
    %c0_i32_1 = arith.constant 0 : i32
    return %c0_i32, %c0_i32_0 : i32, i32
  }
  func.func @transform_9(%arg0: i32) -> (i32, i32, i32) {
    %c0_i32 = arith.constant 0 : i32
    %c0_i32_0 = arith.constant 0 : i32
    %c0_i32_1 = arith.constant 0 : i32
    %c0_i32_2 = arith.constant 0 : i32
    return %c0_i32, %c0_i32_0, %c0_i32_1 : i32, i32, i32
  }
  func.func @transform_10(%arg0: i32) -> (i32, i32) {
    %c0_i32 = arith.constant 0 : i32
    %c0_i32_0 = arith.constant 0 : i32
    %c0_i32_1 = arith.constant 0 : i32
    return %c0_i32, %c0_i32_0 : i32, i32
  }
  func.func @transform_11(%arg0: i32) -> (i32, i32) {
    %c0_i32 = arith.constant 0 : i32
    %c0_i32_0 = arith.constant 0 : i32
    %c0_i32_1 = arith.constant 0 : i32
    return %c0_i32, %c0_i32_0 : i32, i32
  }
  func.func @transform_12(%arg0: i32) -> (i32, i32) {
    %c0_i32 = arith.constant 0 : i32
    %c0_i32_0 = arith.constant 0 : i32
    %c0_i32_1 = arith.constant 0 : i32
    return %c0_i32, %c0_i32_0 : i32, i32
  }
  func.func @transform_13(%arg0: i32) -> (i32, i32) {
    %c0_i32 = arith.constant 0 : i32
    %c0_i32_0 = arith.constant 0 : i32
    %c0_i32_1 = arith.constant 0 : i32
    return %c0_i32, %c0_i32_0 : i32, i32
  }
  func.func @transform_14(%arg0: i32) -> (i32, i32) {
    %c0_i32 = arith.constant 0 : i32
    %c0_i32_0 = arith.constant 0 : i32
    %c0_i32_1 = arith.constant 0 : i32
    return %c0_i32, %c0_i32_0 : i32, i32
  }
  func.func @transform_15(%arg0: i32) -> (i32, i32) {
    %c0_i32 = arith.constant 0 : i32
    %c0_i32_0 = arith.constant 0 : i32
    %c0_i32_1 = arith.constant 0 : i32
    return %c0_i32, %c0_i32_0 : i32, i32
  }
  func.func @transform_16(%arg0: i32) -> (i32, i32) {
    %c0_i32 = arith.constant 0 : i32
    %c0_i32_0 = arith.constant 0 : i32
    %c0_i32_1 = arith.constant 0 : i32
    return %c0_i32, %c0_i32_0 : i32, i32
  }
  func.func @transform_17(%arg0: i32) -> (i32, i32) {
    %c0_i32 = arith.constant 0 : i32
    %c0_i32_0 = arith.constant 0 : i32
    %c0_i32_1 = arith.constant 0 : i32
    return %c0_i32, %c0_i32_0 : i32, i32
  }
  func.func @transform_18(%arg0: i32) -> (i32, i32) {
    %c0_i32 = arith.constant 0 : i32
    %c0_i32_0 = arith.constant 0 : i32
    %c0_i32_1 = arith.constant 0 : i32
    return %c0_i32, %c0_i32_0 : i32, i32
  }
  func.func @transform_19(%arg0: i32) -> (i32, i32) {
    %c0_i32 = arith.constant 0 : i32
    %c0_i32_0 = arith.constant 0 : i32
    %c0_i32_1 = arith.constant 0 : i32
    return %c0_i32, %c0_i32_0 : i32, i32
  }
  func.func @transform_20(%arg0: i32) -> (i32, i32) {
    %c0_i32 = arith.constant 0 : i32
    %c0_i32_0 = arith.constant 0 : i32
    %c0_i32_1 = arith.constant 0 : i32
    return %c0_i32, %c0_i32_0 : i32, i32
  }
  func.func @transform_21(%arg0: i32) -> (i32, i32) {
    %c0_i32 = arith.constant 0 : i32
    %c0_i32_0 = arith.constant 0 : i32
    %c0_i32_1 = arith.constant 0 : i32
    return %c0_i32, %c0_i32_0 : i32, i32
  }
  func.func @transform_22(%arg0: i32) -> (i32, i32) {
    %c0_i32 = arith.constant 0 : i32
    %c0_i32_0 = arith.constant 0 : i32
    %c0_i32_1 = arith.constant 0 : i32
    return %c0_i32, %c0_i32_0 : i32, i32
  }
  func.func @transform_23(%arg0: i32) -> (i32, i32) {
    %c0_i32 = arith.constant 0 : i32
    %c0_i32_0 = arith.constant 0 : i32
    %c0_i32_1 = arith.constant 0 : i32
    return %c0_i32, %c0_i32_0 : i32, i32
  }
  func.func @transform_24(%arg0: i32) -> (i32, i32) {
    %c0_i32 = arith.constant 0 : i32
    %c0_i32_0 = arith.constant 0 : i32
    %c0_i32_1 = arith.constant 0 : i32
    return %c0_i32, %c0_i32_0 : i32, i32
  }
  func.func @transform_25(%arg0: i32) -> (i32, i32) {
    %c0_i32 = arith.constant 0 : i32
    %c0_i32_0 = arith.constant 0 : i32
    %c0_i32_1 = arith.constant 0 : i32
    return %c0_i32, %c0_i32_0 : i32, i32
  }
  func.func @transform_26(%arg0: i32) -> (i32, i32) {
    %c0_i32 = arith.constant 0 : i32
    %c0_i32_0 = arith.constant 0 : i32
    %c0_i32_1 = arith.constant 0 : i32
    return %c0_i32, %c0_i32_0 : i32, i32
  }
}

</mosaic_0001>

<bundles_post_ra>
// kernel: no_w_a_net_pallas.1
= control target key start
LH: loop header
LB: loop body
LE: loop exit
PB: predicated region body
PF: predicated region fallthrough
CT: control target
= control target key end

     0   :  { %s14462_s0 = inlined_call_operand.vmem [shape: f32[8,8,4,1], index: 0, kind: input, shape index: {}]   ;;  %s14463_s1 = inlined_call_operand.hbm [shape: f32[9,1,32], index: 1, kind: input, shape index: {}]   ;;  %s14464_s2 = inlined_call_operand.vmem [shape: f32[1,32], index: 2, kind: input, shape index: {}]   ;;  %s14465_s3 = inlined_call_operand.vmem [shape: f32[1,32], index: 3, kind: input, shape index: {}]   ;;  %s14466_s4 = inlined_call_operand.vmem [shape: f32[1,32], index: 4, kind: input, shape index: {}]   ;;  %s14467_s5 = inlined_call_operand.vmem [shape: bf16[9,32,64], index: 5, kind: input, shape index: {}]   ;;  %s14468_s6 = inlined_call_operand.hbm [shape: f32[1,64], index: 6, kind: input, shape index: {}]   ;;  %s14469_s7 = inlined_call_operand.hbm [shape: f32[1,64], index: 7, kind: input, shape index: {}]   ;;  %s14470_s8 = inlined_call_operand.hbm [shape: f32[1,64], index: 8, kind: input, shape index: {}]   ;;  %s14471_s9 = inlined_call_operand.vmem [shape: bf16[9,64,128], index: 9, kind: input, shape index: {}]   ;;  %s14472_s10 = inlined_call_operand.hbm [shape: f32[1,128], index: 10, kind: input, shape index: {}]   ;;  %s14473_s11 = inlined_call_operand.hbm [shape: f32[1,128], index: 11, kind: input, shape index: {}]   ;;  %s14474_s12 = inlined_call_operand.hbm [shape: f32[1,128], index: 12, kind: input, shape index: {}]   ;;  %s14475_s13 = inlined_call_operand.vmem [shape: bf16[256,128], index: 13, kind: input, shape index: {}]   ;;  %s14476_s14 = inlined_call_operand.hbm [shape: f32[1,128], index: 14, kind: input, shape index: {}]   ;;  %s14477_s15 = inlined_call_operand.hbm [shape: bf16[128,128], index: 15, kind: input, shape index: {}]   ;;  %s14478_s16 = inlined_call_operand.hbm [shape: f32[1,128], index: 16, kind: input, shape index: {}]   ;;  %s14479_s17 = inlined_call_operand.vmem [shape: bf16[128,1], index: 17, kind: input, shape index: {}]   ;;  %s14480_s18 = inlined_call_operand.<no memory space> [shape: f32[1,1], index: 18, kind: input, shape index: {}]   ;;  %s14481_s19 = inlined_call_operand.vmem [shape: bf16[128,64], index: 19, kind: input, shape index: {}]   ;;  %s14482_s20 = inlined_call_operand.hbm [shape: f32[1,64], index: 20, kind: input, shape index: {}]   ;;  %s14483_s21 = inlined_call_operand.vmem [shape: bf16[64,64], index: 21, kind: input, shape index: {}]   ;;  %s14484_s22 = inlined_call_operand.hbm [shape: f32[1,64], index: 22, kind: input, shape index: {}]   ;;  %s14485_s23 = inlined_call_operand.vmem [shape: bf16[64,10], index: 23, kind: input, shape index: {}]   ;;  %s14486_s24 = inlined_call_operand.hbm [shape: f32[1,10], index: 24, kind: input, shape index: {}]   ;;  %s14487_s25 = inlined_call_operand.vmem [shape: f32[2,1], index: 25, kind: output, shape index: {0}]   ;;  %s14488_s26 = inlined_call_operand.vmem [shape: f32[4,10], index: 26, kind: output, shape index: {1}]  }
   0x1   :  { %14505 = sst [smem:[#allocation285_spill]] %s14462_s0  ;;  %v32_v0 = vstv %s14480_s18 }
   0x2   :  { %14506 = sst [smem:[#allocation286_spill]] %s14463_s1  ;;  %33 = vst [vmem:[#allocation5] sm:$0x1] %v32_v0 }
   0x3   :  { %14507 = sst [smem:[#allocation287_spill]] %s14464_s2 }
   0x4   :  { %14508 = sst [smem:[#allocation288_spill]] %s14465_s3 }
   0x5   :  { %14509 = sst [smem:[#allocation289_spill]] %s14466_s4 }
   0x6   :  { %14510 = sst [smem:[#allocation290_spill]] %s14467_s5 }
   0x7   :  { %14511 = sst [smem:[#allocation291_spill]] %s14468_s6 }
   0x8   :  { %14512 = sst [smem:[#allocation292_spill]] %s14469_s7 }
   0x9   :  { %14513 = sst [smem:[#allocation293_spill]] %s14470_s8 }
   0xa   :  { %14514 = sst [smem:[#allocation294_spill]] %s14471_s9 }
   0xb   :  { %14515 = sst [smem:[#allocation295_spill]] %s14472_s10 }
   0xc   :  { %34 = vsyncpa [#allocation7], 0 }
   0xd   :  { %35 = vsyncpa [#allocation9], 0 }
   0xe   :  { %36 = vsyncpa [#allocation12], 0 }
   0xf   :  { %37 = vsyncpa [#allocation15], 0 }
  0x10   :  { %38 = vsyncpa [#allocation18], 0 }
  0x11   :  { %39 = vsyncpa [#allocation21], 0 }
  0x12   :  { %40 = vsyncpa [#allocation24], 0  ;;  %s10083_s7 = smov [#allocation8]   ;;  %s10084_s8 = smov [#allocation11]  }
  0x13   :  { %s69_s28 = sshll.u32 %s10083_s7, 4  ;;  %s89_s4 = sshll.u32 %s10084_s8, 4  ;;  %s70_s28 = int_to_ptr.vmem [resolvable:$true] %s69_s28  ;;  %s90_s4 = int_to_ptr.vmem [resolvable:$true] %s89_s4 }
  0x14   :  { %s14516_s9 = sld [smem:[#allocation291_spill]] }
  0x1a   :  { %s9783_s30 = scalar_lea.hbm %s14516_s9, 16 }
  0x1b   :  { %p9784_p0 = scmp.ne.s32.totalorder %s14516_s9, %s9783_s30  ;;  %p9787_p1 = scmp.lt.u32.totalorder %s9783_s30, %s14516_s9 }
  0x1d   :  { %p9789_p2 = pnand %p9787_p1, %p9784_p0 }
  0x1f   :  { %9792 = shalt.err (!%p9789_p2)
}
  0x20   :  { %s9793_s6 = scalar_lea.vmem %s70_s28, 16  ;;  %s9797_s1 = scalar_lea.vmem %s70_s28, 32 }
  0x21   :  { %p9794_p3 = scmp.ne.s32.totalorder %s70_s28, %s9793_s6  ;;  %p9798_p4 = scmp.lt.s32.totalorder %s70_s28, %s70_s28 }
  0x22   :  { %p9799_p5 = scmp.lt.s32.totalorder %s9797_s1, %s9793_s6 }
  0x24   :  { %p9800_p6 = por %p9799_p5, %p9798_p4 }
  0x26   :  { %p9801_p7 = pnand %p9800_p6, %p9794_p3 }
  0x28   :  { %9804 = shalt.err (!%p9801_p7)
}
  0x29   :  { %72 = dma.hbm_to_vmem [thread:$0]  %s14516_s9, 16, %s70_s28, [#allocation9]  }
  0x2a   :  { %s14517_s29 = sld [smem:[#allocation293_spill]] }
  0x30   :  { %s9805_s0 = scalar_lea.hbm %s14517_s29, 16 }
  0x31   :  { %p9806_p8 = scmp.ne.s32.totalorder %s14517_s29, %s9805_s0  ;;  %p9809_p9 = scmp.lt.u32.totalorder %s9805_s0, %s14517_s29 }
  0x33   :  { %p9811_p10 = pnand %p9809_p9, %p9806_p8 }
  0x35   :  { %9814 = shalt.err (!%p9811_p10)
}
  0x36   :  { %s9815_s10 = scalar_lea.vmem %s90_s4, 16  ;;  %s9819_s6 = scalar_lea.vmem %s90_s4, 32 }
  0x37   :  { %p9816_p11 = scmp.ne.s32.totalorder %s90_s4, %s9815_s10  ;;  %p9820_p12 = scmp.lt.s32.totalorder %s90_s4, %s90_s4 }
  0x38   :  { %p9821_p13 = scmp.lt.s32.totalorder %s9819_s6, %s9815_s10 }
  0x3a   :  { %p9822_p0 = por %p9821_p13, %p9820_p12 }
  0x3c   :  { %p9823_p1 = pnand %p9822_p0, %p9816_p11 }
  0x3e   :  { %9826 = shalt.err (!%p9823_p1)
}
  0x3f   :  { %92 = dma.hbm_to_vmem [thread:$0]  %s14517_s29, 16, %s90_s4, [#allocation12]  }
  0x40   :  { %s10085_s1 = smov [#allocation14]   ;;  %s10086_s3 = smov [#allocation17]  }
  0x41   :  { %s111_s27 = sshll.u32 %s10085_s1, 4  ;;  %s133_s7 = sshll.u32 %s10086_s3, 4  ;;  %s112_s27 = int_to_ptr.vmem [resolvable:$true] %s111_s27  ;;  %s134_s7 = int_to_ptr.vmem [resolvable:$true] %s133_s7 }
  0x42   :  { %s9827_s2 = scalar_lea.hbm %s14473_s11, 16 }
  0x43   :  { %p9828_p2 = scmp.ne.s32.totalorder %s14473_s11, %s9827_s2  ;;  %p9831_p3 = scmp.lt.u32.totalorder %s9827_s2, %s14473_s11 }
  0x45   :  { %p9833_p4 = pnand %p9831_p3, %p9828_p2 }
  0x47   :  { %9836 = shalt.err (!%p9833_p4)
}
  0x48   :  { %s9837_s4 = scalar_lea.vmem %s112_s27, 16  ;;  %s9841_s29 = scalar_lea.vmem %s112_s27, 32 }
  0x49   :  { %p9838_p5 = scmp.ne.s32.totalorder %s112_s27, %s9837_s4  ;;  %p9842_p6 = scmp.lt.s32.totalorder %s112_s27, %s112_s27 }
  0x4a   :  { %p9843_p7 = scmp.lt.s32.totalorder %s9841_s29, %s9837_s4 }
  0x4c   :  { %p9844_p8 = por %p9843_p7, %p9842_p6 }
  0x4e   :  { %p9845_p9 = pnand %p9844_p8, %p9838_p5 }
  0x50   :  { %9848 = shalt.err (!%p9845_p9)
}
  0x51   :  { %114 = dma.hbm_to_vmem [thread:$0]  %s14473_s11, 16, %s112_s27, [#allocation15]  }
  0x52   :  { %s9849_s3 = scalar_lea.hbm %s14476_s14, 16 }
  0x53   :  { %p9850_p10 = scmp.ne.s32.totalorder %s14476_s14, %s9849_s3  ;;  %p9853_p11 = scmp.lt.u32.totalorder %s9849_s3, %s14476_s14 }
  0x55   :  { %p9855_p12 = pnand %p9853_p11, %p9850_p10 }
  0x57   :  { %9858 = shalt.err (!%p9855_p12)
}
  0x58   :  { %s9859_s18 = scalar_lea.vmem %s134_s7, 16  ;;  %s9863_s5 = scalar_lea.vmem %s134_s7, 32 }
  0x59   :  { %p9860_p13 = scmp.ne.s32.totalorder %s134_s7, %s9859_s18  ;;  %p9864_p0 = scmp.lt.s32.totalorder %s134_s7, %s134_s7 }
  0x5a   :  { %p9865_p1 = scmp.lt.s32.totalorder %s9863_s5, %s9859_s18 }
  0x5c   :  { %p9866_p2 = por %p9865_p1, %p9864_p0 }
  0x5e   :  { %p9867_p3 = pnand %p9866_p2, %p9860_p13 }
  0x60   :  { %9870 = shalt.err (!%p9867_p3)
}
  0x61   :  { %136 = dma.hbm_to_vmem [thread:$0]  %s14476_s14, 16, %s134_s7, [#allocation18]  }
  0x62   :  { %s10087_s10 = smov [#allocation20]   ;;  %s10088_s29 = smov [#allocation23]  }
  0x63   :  { %s155_s4 = sshll.u32 %s10087_s10, 4  ;;  %s183_s6 = sshll.u32 %s10088_s29, 4  ;;  %s156_s4 = int_to_ptr.vmem [resolvable:$true] %s155_s4  ;;  %s184_s6 = int_to_ptr.vmem [resolvable:$true] %s183_s6 }
  0x64   :  { %s9871_s1 = scalar_lea.hbm %s14478_s16, 16 }
  0x65   :  { %p9872_p4 = scmp.ne.s32.totalorder %s14478_s16, %s9871_s1  ;;  %p9875_p5 = scmp.lt.u32.totalorder %s9871_s1, %s14478_s16 }
  0x67   :  { %p9877_p6 = pnand %p9875_p5, %p9872_p4 }
  0x69   :  { %9880 = shalt.err (!%p9877_p6)
}
  0x6a   :  { %s9881_s14 = scalar_lea.vmem %s156_s4, 16  ;;  %s9885_s7 = scalar_lea.vmem %s156_s4, 32 }
  0x6b   :  { %p9882_p7 = scmp.ne.s32.totalorder %s156_s4, %s9881_s14  ;;  %p9886_p8 = scmp.lt.s32.totalorder %s156_s4, %s156_s4 }
  0x6c   :  { %p9887_p9 = scmp.lt.s32.totalorder %s9885_s7, %s9881_s14 }
  0x6e   :  { %p9888_p10 = por %p9887_p9, %p9886_p8 }
  0x70   :  { %p9889_p11 = pnand %p9888_p10, %p9882_p7 }
  0x72   :  { %9892 = shalt.err (!%p9889_p11)
}
  0x73   :  { %158 = dma.hbm_to_vmem [thread:$0]  %s14478_s16, 16, %s156_s4, [#allocation21]  }
  0x74   :  { %s9893_s27 = scalar_lea.hbm %s14484_s22, 16 }
  0x75   :  { %p9894_p12 = scmp.ne.s32.totalorder %s14484_s22, %s9893_s27  ;;  %p9897_p13 = scmp.lt.u32.totalorder %s9893_s27, %s14484_s22 }
  0x77   :  { %p9899_p0 = pnand %p9897_p13, %p9894_p12 }
  0x79   :  { %9902 = shalt.err (!%p9899_p0)
}
  0x7a   :  { %s9903_s1 = scalar_lea.vmem %s184_s6, 16  ;;  %s9907_s3 = scalar_lea.vmem %s184_s6, 32 }
  0x7b   :  { %p9904_p1 = scmp.ne.s32.totalorder %s184_s6, %s9903_s1  ;;  %p9908_p2 = scmp.lt.s32.totalorder %s184_s6, %s184_s6 }
  0x7c   :  { %p9909_p3 = scmp.lt.s32.totalorder %s9907_s3, %s9903_s1 }
  0x7e   :  { %p9910_p4 = por %p9909_p3, %p9908_p2 }
  0x80   :  { %p9911_p5 = pnand %p9910_p4, %p9904_p1 }
  0x82   :  { %9914 = shalt.err (!%p9911_p5)
}
  0x83   :  { %186 = dma.hbm_to_vmem [thread:$0]  %s14484_s22, 16, %s184_s6, [#allocation24]  }
  0x84   :  { %s10089_s8 = smov [#allocation6]   ;;  %s14518_s7 = sld [smem:[#allocation286_spill]] }
  0x85   :  { %s48_s0 = sshll.u32 %s10089_s8, 4  ;;  %s49_s0 = int_to_ptr.vmem [resolvable:$true] %s48_s0 }
  0x8a   :  { %s9915_s30 = scalar_lea.hbm %s14518_s7, 144 }
  0x8b   :  { %p9916_p6 = scmp.ne.s32.totalorder %s14518_s7, %s9915_s30  ;;  %p9919_p7 = scmp.lt.u32.totalorder %s9915_s30, %s14518_s7 }
  0x8d   :  { %p9921_p8 = pnand %p9919_p7, %p9916_p6 }
  0x8f   :  { %9924 = shalt.err (!%p9921_p8)
}
  0x90   :  { %s9925_s10 = scalar_lea.vmem %s49_s0, 144  ;;  %s9929_s22 = scalar_lea.vmem %s49_s0, 160 }
  0x91   :  { %p9926_p9 = scmp.ne.s32.totalorder %s49_s0, %s9925_s10  ;;  %p9930_p10 = scmp.lt.s32.totalorder %s49_s0, %s49_s0 }
  0x92   :  { %p9931_p11 = scmp.lt.s32.totalorder %s9929_s22, %s9925_s10 }
  0x94   :  { %p9932_p12 = por %p9931_p11, %p9930_p10 }
  0x96   :  { %p9933_p13 = pnand %p9932_p12, %p9926_p9 }
  0x98   :  { %9936 = shalt.err (!%p9933_p13)
}
  0x99   :  { %s10090_s6 = smov 16   ;;  %s10091_s29 = smov 1  }
  0x9a   :  { %54 = dma.hbm_to_vmem [thread:$0]  %s14518_s7, 144, %s49_s0, [#allocation7], %s10090_s6, %s10090_s6, %s10091_s29  }
  0x9b   :  { %s10092_s1 = smov [#allocation10]   ;;  %s10093_s16 = smov [#allocation13]  }
  0x9c   :  { %s79_s3 = sshll.u32 %s10092_s1, 4  ;;  %s101_s4 = sshll.u32 %s10093_s16, 4  ;;  %s80_s3 = int_to_ptr.vmem [resolvable:$true] %s79_s3  ;;  %s102_s4 = int_to_ptr.vmem [resolvable:$true] %s101_s4 }
  0x9d   :  { %s14519_s14 = sld [smem:[#allocation292_spill]] }
  0xa3   :  { %s9937_s30 = scalar_lea.hbm %s14519_s14, 16 }
  0xa4   :  { %p9938_p0 = scmp.ne.s32.totalorder %s14519_s14, %s9937_s30  ;;  %p9941_p1 = scmp.lt.u32.totalorder %s9937_s30, %s14519_s14 }
  0xa6   :  { %p9943_p2 = pnand %p9941_p1, %p9938_p0 }
  0xa8   :  { %9946 = shalt.err (!%p9943_p2)
}
  0xa9   :  { %s9947_s0 = scalar_lea.vmem %s80_s3, 16  ;;  %s9951_s7 = scalar_lea.vmem %s80_s3, 32 }
  0xaa   :  { %p9948_p3 = scmp.ne.s32.totalorder %s80_s3, %s9947_s0  ;;  %p9952_p4 = scmp.lt.s32.totalorder %s80_s3, %s80_s3 }
  0xab   :  { %p9953_p5 = scmp.lt.s32.totalorder %s9951_s7, %s9947_s0 }
  0xad   :  { %p9954_p6 = por %p9953_p5, %p9952_p4 }
  0xaf   :  { %p9955_p7 = pnand %p9954_p6, %p9948_p3 }
  0xb1   :  { %9958 = shalt.err (!%p9955_p7)
}
  0xb2   :  { %82 = dma.hbm_to_vmem [thread:$0]  %s14519_s14, 16, %s80_s3, [#allocation9]  }
  0xb3   :  { %s14520_s28 = sld [smem:[#allocation295_spill]] }
  0xb9   :  { %s9959_s9 = scalar_lea.hbm %s14520_s28, 16 }
  0xba   :  { %p9960_p8 = scmp.ne.s32.totalorder %s14520_s28, %s9959_s9  ;;  %p9963_p9 = scmp.lt.u32.totalorder %s9959_s9, %s14520_s28 }
  0xbc   :  { %p9965_p10 = pnand %p9963_p9, %p9960_p8 }
  0xbe   :  { %9968 = shalt.err (!%p9965_p10)
}
  0xbf   :  { %s9969_s30 = scalar_lea.vmem %s102_s4, 16  ;;  %s9973_s18 = scalar_lea.vmem %s102_s4, 32 }
  0xc0   :  { %p9970_p11 = scmp.ne.s32.totalorder %s102_s4, %s9969_s30  ;;  %p9974_p12 = scmp.lt.s32.totalorder %s102_s4, %s102_s4 }
  0xc1   :  { %p9975_p13 = scmp.lt.s32.totalorder %s9973_s18, %s9969_s30 }
  0xc3   :  { %p9976_p0 = por %p9975_p13, %p9974_p12 }
  0xc5   :  { %p9977_p1 = pnand %p9976_p0, %p9970_p11 }
  0xc7   :  { %9980 = shalt.err (!%p9977_p1)
}
  0xc8   :  { %104 = dma.hbm_to_vmem [thread:$0]  %s14520_s28, 16, %s102_s4, [#allocation12]  }
  0xc9   :  { %s10094_s5 = smov [#allocation16]   ;;  %s10095_s27 = smov [#allocation19]  }
  0xca   :  { %s121_s11 = sshll.u32 %s10094_s5, 4  ;;  %s142_s0 = sshll.u32 %s10095_s27, 4  ;;  %s122_s11 = int_to_ptr.vmem [resolvable:$true] %s121_s11  ;;  %s143_s0 = int_to_ptr.vmem [resolvable:$true] %s142_s0 }
  0xcb   :  { %s9981_s22 = scalar_lea.hbm %s14474_s12, 16 }
  0xcc   :  { %p9982_p2 = scmp.ne.s32.totalorder %s14474_s12, %s9981_s22  ;;  %p9985_p3 = scmp.lt.u32.totalorder %s9981_s22, %s14474_s12 }
  0xce   :  { %p9987_p4 = pnand %p9985_p3, %p9982_p2 }
  0xd0   :  { %9990 = shalt.err (!%p9987_p4)
}
  0xd1   :  { %s9991_s4 = scalar_lea.vmem %s122_s11, 16  ;;  %s9995_s28 = scalar_lea.vmem %s122_s11, 32 }
  0xd2   :  { %p9992_p5 = scmp.ne.s32.totalorder %s122_s11, %s9991_s4  ;;  %p9996_p6 = scmp.lt.s32.totalorder %s122_s11, %s122_s11 }
  0xd3   :  { %p9997_p7 = scmp.lt.s32.totalorder %s9995_s28, %s9991_s4 }
  0xd5   :  { %p9998_p8 = por %p9997_p7, %p9996_p6 }
  0xd7   :  { %p9999_p9 = pnand %p9998_p8, %p9992_p5 }
  0xd9   :  { %10002 = shalt.err (!%p9999_p9)
}
  0xda   :  { %124 = dma.hbm_to_vmem [thread:$0]  %s14474_s12, 16, %s122_s11, [#allocation15]  }
  0xdb   :  { %s10003_s18 = scalar_lea.hbm %s14477_s15, 1024 }
  0xdc   :  { %p10004_p10 = scmp.ne.s32.totalorder %s14477_s15, %s10003_s18  ;;  %p10007_p11 = scmp.lt.u32.totalorder %s10003_s18, %s14477_s15 }
  0xde   :  { %p10009_p12 = pnand %p10007_p11, %p10004_p10 }
  0xe0   :  { %10012 = shalt.err (!%p10009_p12)
}
  0xe1   :  { %s10013_s7 = scalar_lea.vmem %s143_s0, 1024  ;;  %p10018_p0 = scmp.lt.s32.totalorder %s143_s0, %s143_s0 }
  0xe2   :  { %p10014_p13 = scmp.ne.s32.totalorder %s143_s0, %s10013_s7  ;;  %p10019_p1 = scmp.lt.s32.totalorder %s10013_s7, %s10013_s7 }
  0xe4   :  { %p10020_p2 = por %p10019_p1, %p10018_p0 }
  0xe6   :  { %p10021_p3 = pnand %p10020_p2, %p10014_p13 }
  0xe8   :  { %10024 = shalt.err (!%p10021_p3)
}
  0xe9   :  { %s10096_s12 = smov 64   ;;  %s10097_s11 = smov 4  }
  0xea   :  { %148 = dma.hbm_to_vmem [thread:$0]  %s14477_s15, 1024, %s143_s0, [#allocation18], %s10096_s12, %s10096_s12, %s10097_s11  }
  0xeb   :  { %s10098_s6 = smov [#allocation22]   ;;  %s10099_s9 = smov [#allocation25]  }
  0xec   :  { %s171_s29 = sshll.u32 %s10098_s6, 4  ;;  %s195_s1 = sshll.u32 %s10099_s9, 4  ;;  %s172_s29 = int_to_ptr.vmem [resolvable:$true] %s171_s29  ;;  %s196_s1 = int_to_ptr.vmem [resolvable:$true] %s195_s1 }
  0xed   :  { %s10025_s16 = scalar_lea.hbm %s14482_s20, 16 }
  0xee   :  { %p10026_p4 = scmp.ne.s32.totalorder %s14482_s20, %s10025_s16  ;;  %p10029_p5 = scmp.lt.u32.totalorder %s10025_s16, %s14482_s20 }
  0xf0   :  { %p10031_p6 = pnand %p10029_p5, %p10026_p4 }
  0xf2   :  { %10034 = shalt.err (!%p10031_p6)
}
  0xf3   :  { %s10035_s15 = scalar_lea.vmem %s172_s29, 16  ;;  %s10039_s0 = scalar_lea.vmem %s172_s29, 32 }
  0xf4   :  { %p10036_p7 = scmp.ne.s32.totalorder %s172_s29, %s10035_s15  ;;  %p10040_p8 = scmp.lt.s32.totalorder %s172_s29, %s172_s29 }
  0xf5   :  { %p10041_p9 = scmp.lt.s32.totalorder %s10039_s0, %s10035_s15 }
  0xf7   :  { %p10042_p10 = por %p10041_p9, %p10040_p8 }
  0xf9   :  { %p10043_p11 = pnand %p10042_p10, %p10036_p7 }
  0xfb   :  { %10046 = shalt.err (!%p10043_p11)
}
  0xfc   :  { %174 = dma.hbm_to_vmem [thread:$0]  %s14482_s20, 16, %s172_s29, [#allocation21]  }
  0xfd   :  { %s10047_s7 = scalar_lea.hbm %s14486_s24, 16 }
  0xfe   :  { %p10048_p12 = scmp.ne.s32.totalorder %s14486_s24, %s10047_s7  ;;  %p10051_p13 = scmp.lt.u32.totalorder %s10047_s7, %s14486_s24 }
 0x100   :  { %p10053_p0 = pnand %p10051_p13, %p10048_p12 }
 0x102   :  { %10056 = shalt.err (!%p10053_p0)
}
 0x103   :  { %s10057_s6 = scalar_lea.vmem %s196_s1, 16  ;;  %s10061_s9 = scalar_lea.vmem %s196_s1, 32 }
 0x104   :  { %p10058_p1 = scmp.ne.s32.totalorder %s196_s1, %s10057_s6  ;;  %p10062_p2 = scmp.lt.s32.totalorder %s196_s1, %s196_s1 }
 0x105   :  { %p10063_p3 = scmp.lt.s32.totalorder %s10061_s9, %s10057_s6 }
 0x107   :  { %p10064_p4 = por %p10063_p3, %p10062_p2 }
 0x109   :  { %p10065_p5 = pnand %p10064_p4, %p10058_p1 }
 0x10b   :  { %10068 = shalt.err (!%p10065_p5)
}
 0x10c   :  { %198 = dma.hbm_to_vmem [thread:$0]  %s14486_s24, 16, %s196_s1, [#allocation24]  }
 0x10d   :  { %10069 = dma.done.wait [#allocation7], 144  }
 0x10e   :  { %10070 = vsyncadd [#allocation7], 4294967152 }
 0x10f   :  { %10071 = dma.done.wait [#allocation9], 32  }
 0x110   :  { %10072 = vsyncadd [#allocation9], 4294967264 }
 0x111   :  { %10073 = dma.done.wait [#allocation12], 32  }
 0x112   :  { %10074 = vsyncadd [#allocation12], 4294967264 }
 0x113   :  { %10075 = dma.done.wait [#allocation15], 32  }
 0x114   :  { %10076 = vsyncadd [#allocation15], 4294967264 }
 0x115   :  { %10077 = dma.done.wait [#allocation18], 1040  }
 0x116   :  { %10078 = vsyncadd [#allocation18], 4294966256 }
 0x117   :  { %10079 = dma.done.wait [#allocation21], 32  }
 0x118   :  { %10080 = vsyncadd [#allocation21], 4294967264 }
 0x119   :  { %10081 = dma.done.wait [#allocation24], 32  }
 0x11a   :  { %10082 = vsyncadd [#allocation24], 4294967264  ;;  %vm239_vm0 = vcmask 3072   ;;  %v10100_v1 = vmov 0   ;;  %v14500_v2 = vmov 0.0   ;;  %s14521_s4 = sld [smem:[#allocation285_spill]] }
 0x11b   :  { %9561 = vset.pattern.permute.xlu1 %v10100_v1  ;;  %9560 = vset.pattern.permute.xlu0 %v10100_v1  ;;  %242 = vst.msk [vmem:[#allocation2 + $0x8] sm:$0xf] %vm239_vm0, %v14500_v2  ;;  %240 = vst.msk [vmem:[#allocation2] sm:$0xf] %vm239_vm0, %v14500_v2  ;;  %vm5480_vm1 = vcmask 257024   ;;  %s14757_s29 = sld [smem:[#allocation290_spill]] }
 0x11c   :  { %241 = vst.msk [vmem:[#allocation2 + $0x4] sm:$0xf] %vm239_vm0, %v14500_v2  ;;  %243 = vst.msk [vmem:[#allocation2 + $0xc] sm:$0xf] %vm239_vm0, %v14500_v2  ;;  %9212 = vmatprep.subr.bf16.mxu1 %v14500_v2  ;;  %vm5660_vm2 = vcmask 261120   ;;  %s14861_s8 = sld [smem:[#allocation287_spill]] }
 0x11d   :  { %244 = vst.msk [vmem:[#allocation2 + $0x10] sm:$0xf] %vm239_vm0, %v14500_v2  ;;  %245 = vst.msk [vmem:[#allocation2 + $0x14] sm:$0xf] %vm239_vm0, %v14500_v2  ;;  %s14871_s18 = sld [smem:[#allocation288_spill]]  ;;  %s14874_s3 = sld [smem:[#allocation289_spill]] }
 0x11e   :  { %246 = vst.msk [vmem:[#allocation2 + $0x18] sm:$0xf] %vm239_vm0, %v14500_v2  ;;  %247 = vst.msk [vmem:[#allocation2 + $0x1c] sm:$0xf] %vm239_vm0, %v14500_v2  ;;  %vm7032_vm3 = vcmask 519168   ;;  %s15246_s5 = sld [smem:[#allocation294_spill]] }
 0x11f   :  { %248 = vst.msk [vmem:[#allocation2 + $0x20] sm:$0xf] %vm239_vm0, %v14500_v2  ;;  %249 = vst.msk [vmem:[#allocation2 + $0x24] sm:$0xf] %vm239_vm0, %v14500_v2  ;;  %vm10102_vm4 = vmmov 0   ;;  %vm7122_vm5 = vcmask 523264  }
 0x120   :  { %250 = vst.msk [vmem:[#allocation2 + $0x28] sm:$0xf] %vm239_vm0, %v14500_v2  ;;  %251 = vst.msk [vmem:[#allocation2 + $0x2c] sm:$0xf] %vm239_vm0, %v14500_v2  ;;  %v340_v3 = vld [vmem:[%s14521_s4] sm:$0xf] }
 0x121   :  { %252 = vst.msk [vmem:[#allocation2 + $0x30] sm:$0xf] %vm239_vm0, %v14500_v2  ;;  %253 = vst.msk [vmem:[#allocation2 + $0x34] sm:$0xf] %vm239_vm0, %v14500_v2  ;;  %v342_v4 = vld [vmem:[%s14521_s4 + $0x8] sm:$0xf] }
 0x122   :  { %254 = vst.msk [vmem:[#allocation2 + $0x38] sm:$0xf] %vm239_vm0, %v14500_v2  ;;  %255 = vst.msk [vmem:[#allocation2 + $0x3c] sm:$0xf] %vm239_vm0, %v14500_v2  ;;  %v341_v5 = vld [vmem:[%s14521_s4 + $0x4] sm:$0xf] }
 0x123   :  { %256 = vst.msk [vmem:[#allocation2 + $0x40] sm:$0xf] %vm239_vm0, %v14500_v2  ;;  %257 = vst.msk [vmem:[#allocation2 + $0x44] sm:$0xf] %vm239_vm0, %v14500_v2  ;;  %v471_v6 = vld [vmem:[#allocation2 + $0x8] sm:$0xf] }
 0x124   :  { %258 = vst.msk [vmem:[#allocation2 + $0x48] sm:$0xf] %vm239_vm0, %v14500_v2  ;;  %259 = vst.msk [vmem:[#allocation2 + $0x4c] sm:$0xf] %vm239_vm0, %v14500_v2  ;;  %v469_v7 = vld [vmem:[#allocation2] sm:$0xf]  ;;  %546 = vperm.xlu1 %9561, %v471_v6  }
 0x125   :  { %260 = vst.msk [vmem:[#allocation2 + $0x50] sm:$0xf] %vm239_vm0, %v14500_v2  ;;  %261 = vst.msk [vmem:[#allocation2 + $0x54] sm:$0xf] %vm239_vm0, %v14500_v2  ;;  %536 = vperm.xlu0 %9560, %v469_v7   ;;  %v472_v8 = vld [vmem:[#allocation2 + $0xc] sm:$0xf] }
 0x126   :  { %262 = vst.msk [vmem:[#allocation2 + $0x58] sm:$0xf] %vm239_vm0, %v14500_v2  ;;  %263 = vst.msk [vmem:[#allocation2 + $0x5c] sm:$0xf] %vm239_vm0, %v14500_v2  ;;  %v470_v9 = vld [vmem:[#allocation2 + $0x4] sm:$0xf] }
 0x127   :  { %264 = vst.msk [vmem:[#allocation2 + $0x60] sm:$0xf] %vm239_vm0, %v14500_v2  ;;  %265 = vst.msk [vmem:[#allocation2 + $0x64] sm:$0xf] %vm239_vm0, %v14500_v2  ;;  %v344_v10 = vld [vmem:[%s14521_s4 + $0x10] sm:$0xf] }
 0x128   :  { %266 = vst.msk [vmem:[#allocation2 + $0x68] sm:$0xf] %vm239_vm0, %v14500_v2  ;;  %267 = vst.msk [vmem:[#allocation2 + $0x6c] sm:$0xf] %vm239_vm0, %v14500_v2  ;;  %v343_v11 = vld [vmem:[%s14521_s4 + $0xc] sm:$0xf]  ;;  %551 = vperm.xlu1 %9561, %v472_v8  }
 0x129   :  { %268 = vst.msk [vmem:[#allocation2 + $0x70] sm:$0xf] %vm239_vm0, %v14500_v2  ;;  %269 = vst.msk [vmem:[#allocation2 + $0x74] sm:$0xf] %vm239_vm0, %v14500_v2  ;;  %v346_v12 = vld [vmem:[%s14521_s4 + $0x18] sm:$0xf]  ;;  %541 = vperm.xlu0 %9560, %v470_v9  }
 0x12a   :  { %270 = vst.msk [vmem:[#allocation2 + $0x78] sm:$0xf] %vm239_vm0, %v14500_v2  ;;  %271 = vst.msk [vmem:[#allocation2 + $0x7c] sm:$0xf] %vm239_vm0, %v14500_v2  ;;  %v474_v13 = vld [vmem:[#allocation2 + $0x14] sm:$0xf] }
 0x12b   :  { %272 = vst.msk [vmem:[#allocation2 + $0x80] sm:$0xf] %vm239_vm0, %v14500_v2  ;;  %273 = vst.msk [vmem:[#allocation2 + $0x84] sm:$0xf] %vm239_vm0, %v14500_v2  ;;  %v473_v14 = vld [vmem:[#allocation2 + $0x10] sm:$0xf] }
 0x12c   :  { %274 = vst.msk [vmem:[#allocation2 + $0x88] sm:$0xf] %vm239_vm0, %v14500_v2  ;;  %275 = vst.msk [vmem:[#allocation2 + $0x8c] sm:$0xf] %vm239_vm0, %v14500_v2  ;;  %v345_v15 = vld [vmem:[%s14521_s4 + $0x14] sm:$0xf]  ;;  %561 = vperm.xlu1 %9561, %v474_v13  }
 0x12d   :  { %276 = vst.msk [vmem:[#allocation2 + $0x90] sm:$0xf] %vm239_vm0, %v14500_v2  ;;  %277 = vst.msk [vmem:[#allocation2 + $0x94] sm:$0xf] %vm239_vm0, %v14500_v2  ;;  %v348_v16 = vld [vmem:[%s14521_s4 + $0x20] sm:$0xf]  ;;  %556 = vperm.xlu0 %9560, %v473_v14  }
 0x12e   :  { %278 = vst.msk [vmem:[#allocation2 + $0x98] sm:$0xf] %vm239_vm0, %v14500_v2  ;;  %279 = vst.msk [vmem:[#allocation2 + $0x9c] sm:$0xf] %vm239_vm0, %v14500_v2  ;;  %v350_v17 = vld [vmem:[%s14521_s4 + $0x28] sm:$0xf] }
 0x12f   :  { %280 = vst.msk [vmem:[#allocation2 + $0xa0] sm:$0xf] %vm239_vm0, %v14500_v2  ;;  %281 = vst.msk [vmem:[#allocation2 + $0xa4] sm:$0xf] %vm239_vm0, %v14500_v2  ;;  %v349_v18 = vld [vmem:[%s14521_s4 + $0x24] sm:$0xf] }
 0x130   :  { %282 = vst.msk [vmem:[#allocation2 + $0xa8] sm:$0xf] %vm239_vm0, %v14500_v2  ;;  %283 = vst.msk [vmem:[#allocation2 + $0xac] sm:$0xf] %vm239_vm0, %v14500_v2  ;;  %v352_v19 = vld [vmem:[%s14521_s4 + $0x30] sm:$0xf] }
 0x131   :  { %284 = vst.msk [vmem:[#allocation2 + $0xb0] sm:$0xf] %vm239_vm0, %v14500_v2  ;;  %285 = vst.msk [vmem:[#allocation2 + $0xb4] sm:$0xf] %vm239_vm0, %v14500_v2  ;;  %v351_v20 = vld [vmem:[%s14521_s4 + $0x2c] sm:$0xf] }
 0x132   :  { %286 = vst.msk [vmem:[#allocation2 + $0xb8] sm:$0xf] %vm239_vm0, %v14500_v2  ;;  %287 = vst.msk [vmem:[#allocation2 + $0xbc] sm:$0xf] %vm239_vm0, %v14500_v2  ;;  %v354_v21 = vld [vmem:[%s14521_s4 + $0x38] sm:$0xf] }
 0x133   :  { %288 = vst.msk [vmem:[#allocation2 + $0xc0] sm:$0xf] %vm239_vm0, %v14500_v2  ;;  %289 = vst.msk [vmem:[#allocation2 + $0xc4] sm:$0xf] %vm239_vm0, %v14500_v2  ;;  %v353_v22 = vld [vmem:[%s14521_s4 + $0x34] sm:$0xf] }
 0x134   :  { %290 = vst.msk [vmem:[#allocation2 + $0xc8] sm:$0xf] %vm239_vm0, %v14500_v2  ;;  %291 = vst.msk [vmem:[#allocation2 + $0xcc] sm:$0xf] %vm239_vm0, %v14500_v2  ;;  %v476_v23 = vld [vmem:[#allocation2 + $0x1c] sm:$0xf] }
 0x135   :  { %292 = vst.msk [vmem:[#allocation2 + $0xd0] sm:$0xf] %vm239_vm0, %v14500_v2  ;;  %293 = vst.msk [vmem:[#allocation2 + $0xd4] sm:$0xf] %vm239_vm0, %v14500_v2  ;;  %v475_v24 = vld [vmem:[#allocation2 + $0x18] sm:$0xf]  ;;  %571 = vperm.xlu1 %9561, %v476_v23  }
 0x136   :  { %294 = vst.msk [vmem:[#allocation2 + $0xd8] sm:$0xf] %vm239_vm0, %v14500_v2  ;;  %295 = vst.msk [vmem:[#allocation2 + $0xdc] sm:$0xf] %vm239_vm0, %v14500_v2  ;;  %v356_v25 = vld [vmem:[%s14521_s4 + $0x40] sm:$0xf]  ;;  %566 = vperm.xlu0 %9560, %v475_v24  }
 0x137   :  { %296 = vst.msk [vmem:[#allocation2 + $0xe0] sm:$0xf] %vm239_vm0, %v14500_v2  ;;  %297 = vst.msk [vmem:[#allocation2 + $0xe4] sm:$0xf] %vm239_vm0, %v14500_v2  ;;  %v358_v26 = vld [vmem:[%s14521_s4 + $0x48] sm:$0xf] }
 0x138   :  { %298 = vst.msk [vmem:[#allocation2 + $0xe8] sm:$0xf] %vm239_vm0, %v14500_v2  ;;  %299 = vst.msk [vmem:[#allocation2 + $0xec] sm:$0xf] %vm239_vm0, %v14500_v2  ;;  %v357_v27 = vld [vmem:[%s14521_s4 + $0x44] sm:$0xf] }
 0x139   :  { %300 = vst.msk [vmem:[#allocation2 + $0xf0] sm:$0xf] %vm239_vm0, %v14500_v2  ;;  %301 = vst.msk [vmem:[#allocation2 + $0xf4] sm:$0xf] %vm239_vm0, %v14500_v2  ;;  %v360_v28 = vld [vmem:[%s14521_s4 + $0x50] sm:$0xf] }
 0x13a   :  { %302 = vst.msk [vmem:[#allocation2 + $0xf8] sm:$0xf] %vm239_vm0, %v14500_v2  ;;  %303 = vst.msk [vmem:[#allocation2 + $0xfc] sm:$0xf] %vm239_vm0, %v14500_v2  ;;  %v359_v29 = vld [vmem:[%s14521_s4 + $0x4c] sm:$0xf] }
 0x13b   :  { %304 = vst.msk [vmem:[#allocation2 + $0x100] sm:$0xf] %vm239_vm0, %v14500_v2  ;;  %305 = vst.msk [vmem:[#allocation2 + $0x104] sm:$0xf] %vm239_vm0, %v14500_v2  ;;  %v362_v30 = vld [vmem:[%s14521_s4 + $0x58] sm:$0xf] }
 0x13c   :  { %306 = vst.msk [vmem:[#allocation2 + $0x108] sm:$0xf] %vm239_vm0, %v14500_v2  ;;  %307 = vst.msk [vmem:[#allocation2 + $0x10c] sm:$0xf] %vm239_vm0, %v14500_v2  ;;  %v361_v31 = vld [vmem:[%s14521_s4 + $0x54] sm:$0xf] }
 0x13d   :  { %308 = vst.msk [vmem:[#allocation2 + $0x110] sm:$0xf] %vm239_vm0, %v14500_v2  ;;  %309 = vst.msk [vmem:[#allocation2 + $0x114] sm:$0xf] %vm239_vm0, %v14500_v2  ;;  %v364_v32 = vld [vmem:[%s14521_s4 + $0x60] sm:$0xf] }
 0x13e   :  { %310 = vst.msk [vmem:[#allocation2 + $0x118] sm:$0xf] %vm239_vm0, %v14500_v2  ;;  %311 = vst.msk [vmem:[#allocation2 + $0x11c] sm:$0xf] %vm239_vm0, %v14500_v2  ;;  %v477_v34 = vld [vmem:[#allocation2 + $0x28] sm:$0xf] }
 0x13f   :  { %312 = vst.msk [vmem:[#allocation2 + $0x120] sm:$0xf] %vm239_vm0, %v14500_v2  ;;  %313 = vst.msk [vmem:[#allocation2 + $0x124] sm:$0xf] %vm239_vm0, %v14500_v2  ;;  %v366_v35 = vld [vmem:[%s14521_s4 + $0x68] sm:$0xf]  ;;  %576 = vperm.xlu0 %9560, %v477_v34  }
 0x140   :  { %314 = vst.msk [vmem:[#allocation2 + $0x128] sm:$0xf] %vm239_vm0, %v14500_v2  ;;  %315 = vst.msk [vmem:[#allocation2 + $0x12c] sm:$0xf] %vm239_vm0, %v14500_v2  ;;  %v365_v36 = vld [vmem:[%s14521_s4 + $0x64] sm:$0xf] }
 0x141   :  { %316 = vst.msk [vmem:[#allocation2 + $0x130] sm:$0xf] %vm239_vm0, %v14500_v2  ;;  %317 = vst.msk [vmem:[#allocation2 + $0x134] sm:$0xf] %vm239_vm0, %v14500_v2  ;;  %v368_v37 = vld [vmem:[%s14521_s4 + $0x70] sm:$0xf] }
 0x142   :  { %318 = vst.msk [vmem:[#allocation2 + $0x138] sm:$0xf] %vm239_vm0, %v14500_v2  ;;  %319 = vst.msk [vmem:[#allocation2 + $0x13c] sm:$0xf] %vm239_vm0, %v14500_v2  ;;  %v367_v38 = vld [vmem:[%s14521_s4 + $0x6c] sm:$0xf] }
 0x143   :  { %320 = vst.msk [vmem:[#allocation2 + $0x140] sm:$0xf] %vm239_vm0, %v14500_v2  ;;  %321 = vst.msk [vmem:[#allocation2 + $0x144] sm:$0xf] %vm239_vm0, %v14500_v2  ;;  %v370_v41 = vld [vmem:[%s14521_s4 + $0x78] sm:$0xf] }
 0x144   :  { %322 = vst.msk [vmem:[#allocation2 + $0x148] sm:$0xf] %vm239_vm0, %v14500_v2  ;;  %323 = vst.msk [vmem:[#allocation2 + $0x14c] sm:$0xf] %vm239_vm0, %v14500_v2  ;;  %v369_v42 = vld [vmem:[%s14521_s4 + $0x74] sm:$0xf] }
 0x145   :  { %324 = vst.msk [vmem:[#allocation2 + $0x150] sm:$0xf] %vm239_vm0, %v14500_v2  ;;  %325 = vst.msk [vmem:[#allocation2 + $0x154] sm:$0xf] %vm239_vm0, %v14500_v2  ;;  %v372_v43 = vld [vmem:[%s14521_s4 + $0x80] sm:$0xf] }
 0x146   :  { %326 = vst.msk [vmem:[#allocation2 + $0x158] sm:$0xf] %vm239_vm0, %v14500_v2  ;;  %327 = vst.msk [vmem:[#allocation2 + $0x15c] sm:$0xf] %vm239_vm0, %v14500_v2  ;;  %v374_v45 = vld [vmem:[%s14521_s4 + $0x88] sm:$0xf] }
 0x147   :  { %328 = vst.msk [vmem:[#allocation2 + $0x160] sm:$0xf] %vm239_vm0, %v14500_v2  ;;  %329 = vst.msk [vmem:[#allocation2 + $0x164] sm:$0xf] %vm239_vm0, %v14500_v2  ;;  %v373_v46 = vld [vmem:[%s14521_s4 + $0x84] sm:$0xf] }
 0x148   :  { %330 = vst.msk [vmem:[#allocation2 + $0x168] sm:$0xf] %vm239_vm0, %v14500_v2  ;;  %331 = vst.msk [vmem:[#allocation2 + $0x16c] sm:$0xf] %vm239_vm0, %v14500_v2  ;;  %v376_v47 = vld [vmem:[%s14521_s4 + $0x90] sm:$0xf] }
 0x149   :  { %332 = vst.msk [vmem:[#allocation2 + $0x170] sm:$0xf] %vm239_vm0, %v14500_v2  ;;  %333 = vst.msk [vmem:[#allocation2 + $0x174] sm:$0xf] %vm239_vm0, %v14500_v2  ;;  %v375_v48 = vld [vmem:[%s14521_s4 + $0x8c] sm:$0xf] }
 0x14a   :  { %334 = vst.msk [vmem:[#allocation2 + $0x178] sm:$0xf] %vm239_vm0, %v14500_v2  ;;  %335 = vst.msk [vmem:[#allocation2 + $0x17c] sm:$0xf] %vm239_vm0, %v14500_v2  ;;  %v378_v49 = vld [vmem:[%s14521_s4 + $0x98] sm:$0xf] }
 0x14b   :  { %336 = vst.msk [vmem:[#allocation2 + $0x180] sm:$0xf] %vm239_vm0, %v14500_v2  ;;  %337 = vst.msk [vmem:[#allocation2 + $0x184] sm:$0xf] %vm239_vm0, %v14500_v2  ;;  %v377_v51 = vld [vmem:[%s14521_s4 + $0x94] sm:$0xf] }
 0x14c   :  { %338 = vst.msk [vmem:[#allocation2 + $0x188] sm:$0xf] %vm239_vm0, %v14500_v2  ;;  %339 = vst.msk [vmem:[#allocation2 + $0x18c] sm:$0xf] %vm239_vm0, %v14500_v2  ;;  %v380_v52 = vld [vmem:[%s14521_s4 + $0xa0] sm:$0xf] }
 0x14d   :  { %405 = vst.msk [vmem:[#allocation2 + $0x2c] sm:$0xf] %vm239_vm0, %v340_v3  ;;  %407 = vst.msk [vmem:[#allocation2 + $0x34] sm:$0xf] %vm239_vm0, %v342_v4  ;;  %v382_v54 = vld [vmem:[%s14521_s4 + $0xa8] sm:$0xf] }
 0x14e   :  { %406 = vst.msk [vmem:[#allocation2 + $0x30] sm:$0xf] %vm239_vm0, %v341_v5  ;;  %409 = vst.msk [vmem:[#allocation2 + $0x3c] sm:$0xf] %vm239_vm0, %v344_v10  ;;  %v381_v55 = vld [vmem:[%s14521_s4 + $0xa4] sm:$0xf] }
 0x14f   :  { %408 = vst.msk [vmem:[#allocation2 + $0x38] sm:$0xf] %vm239_vm0, %v343_v11  ;;  %411 = vst.msk [vmem:[#allocation2 + $0x44] sm:$0xf] %vm239_vm0, %v346_v12  ;;  %v384_v56 = vld [vmem:[%s14521_s4 + $0xb0] sm:$0xf] }
 0x150   :  { %410 = vst.msk [vmem:[#allocation2 + $0x40] sm:$0xf] %vm239_vm0, %v345_v15  ;;  %413 = vst.msk [vmem:[#allocation2 + $0x54] sm:$0xf] %vm239_vm0, %v348_v16  ;;  %v383_v57 = vld [vmem:[%s14521_s4 + $0xac] sm:$0xf] }
 0x151   :  { %415 = vst.msk [vmem:[#allocation2 + $0x5c] sm:$0xf] %vm239_vm0, %v350_v17  ;;  %414 = vst.msk [vmem:[#allocation2 + $0x58] sm:$0xf] %vm239_vm0, %v349_v18  ;;  %v386_v58 = vld [vmem:[%s14521_s4 + $0xb8] sm:$0xf] }
 0x152   :  { %417 = vst.msk [vmem:[#allocation2 + $0x64] sm:$0xf] %vm239_vm0, %v352_v19  ;;  %416 = vst.msk [vmem:[#allocation2 + $0x60] sm:$0xf] %vm239_vm0, %v351_v20  ;;  %v385_v60 = vld [vmem:[%s14521_s4 + $0xb4] sm:$0xf] }
 0x153   :  { %419 = vst.msk [vmem:[#allocation2 + $0x6c] sm:$0xf] %vm239_vm0, %v354_v21  ;;  %418 = vst.msk [vmem:[#allocation2 + $0x68] sm:$0xf] %vm239_vm0, %v353_v22  ;;  %v388_v61 = vld [vmem:[%s14521_s4 + $0xc0] sm:$0xf] }
 0x154   :  { %421 = vst.msk [vmem:[#allocation2 + $0x7c] sm:$0xf] %vm239_vm0, %v356_v25  ;;  %423 = vst.msk [vmem:[#allocation2 + $0x84] sm:$0xf] %vm239_vm0, %v358_v26  ;;  %v478_v33 = vld [vmem:[#allocation2 + $0x2c] sm:$0xf] }
 0x155   :  { %422 = vst.msk [vmem:[#allocation2 + $0x80] sm:$0xf] %vm239_vm0, %v357_v27  ;;  %425 = vst.msk [vmem:[#allocation2 + $0x8c] sm:$0xf] %vm239_vm0, %v360_v28  ;;  %581 = vperm.xlu1 %9561, %v478_v33   ;;  %v480_v39 = vld [vmem:[#allocation2 + $0x34] sm:$0xf] }
 0x156   :  { %424 = vst.msk [vmem:[#allocation2 + $0x88] sm:$0xf] %vm239_vm0, %v359_v29  ;;  %427 = vst.msk [vmem:[#allocation2 + $0x94] sm:$0xf] %vm239_vm0, %v362_v30  ;;  %v479_v40 = vld [vmem:[#allocation2 + $0x30] sm:$0xf] }
 0x157   :  { %426 = vst.msk [vmem:[#allocation2 + $0x90] sm:$0xf] %vm239_vm0, %v361_v31  ;;  %429 = vst.msk [vmem:[#allocation2 + $0xa4] sm:$0xf] %vm239_vm0, %v364_v32  ;;  %v482_v44 = vld [vmem:[#allocation2 + $0x3c] sm:$0xf]  ;;  %586 = vperm.xlu0 %9560, %v479_v40  }
 0x158   :  { %431 = vst.msk [vmem:[#allocation2 + $0xac] sm:$0xf] %vm239_vm0, %v366_v35  ;;  %430 = vst.msk [vmem:[#allocation2 + $0xa8] sm:$0xf] %vm239_vm0, %v365_v36  ;;  %v481_v50 = vld [vmem:[#allocation2 + $0x38] sm:$0xf] }
 0x159   :  { %433 = vst.msk [vmem:[#allocation2 + $0xb4] sm:$0xf] %vm239_vm0, %v368_v37  ;;  %432 = vst.msk [vmem:[#allocation2 + $0xb0] sm:$0xf] %vm239_vm0, %v367_v38  ;;  %591 = vperm.xlu1 %9561, %v480_v39   ;;  %v484_v53 = vld [vmem:[#allocation2 + $0x44] sm:$0xf] }
 0x15a   :  { %435 = vst.msk [vmem:[#allocation2 + $0xbc] sm:$0xf] %vm239_vm0, %v370_v41  ;;  %434 = vst.msk [vmem:[#allocation2 + $0xb8] sm:$0xf] %vm239_vm0, %v369_v42  ;;  %v483_v59 = vld [vmem:[#allocation2 + $0x40] sm:$0xf] }
 0x15b   :  { %437 = vst.msk [vmem:[#allocation2 + $0xcc] sm:$0xf] %vm239_vm0, %v372_v43  ;;  %439 = vst.msk [vmem:[#allocation2 + $0xd4] sm:$0xf] %vm239_vm0, %v374_v45  ;;  %596 = vperm.xlu0 %9560, %v481_v50   ;;  %v390_v62 = vld [vmem:[%s14521_s4 + $0xc8] sm:$0xf] }
 0x15c   :  { %438 = vst.msk [vmem:[#allocation2 + $0xd0] sm:$0xf] %vm239_vm0, %v373_v46  ;;  %441 = vst.msk [vmem:[#allocation2 + $0xdc] sm:$0xf] %vm239_vm0, %v376_v47  ;;  %v486_v63 = vld [vmem:[#allocation2 + $0x54] sm:$0xf] }
 0x15d   :  { %440 = vst.msk [vmem:[#allocation2 + $0xd8] sm:$0xf] %vm239_vm0, %v375_v48  ;;  %443 = vst.msk [vmem:[#allocation2 + $0xe4] sm:$0xf] %vm239_vm0, %v378_v49  ;;  %601 = vperm.xlu1 %9561, %v482_v44   ;;  %v485_v0 = vld [vmem:[#allocation2 + $0x50] sm:$0xf] }
 0x15e   :  { %442 = vst.msk [vmem:[#allocation2 + $0xe0] sm:$0xf] %vm239_vm0, %v377_v51  ;;  %445 = vst.msk [vmem:[#allocation2 + $0xf4] sm:$0xf] %vm239_vm0, %v380_v52  ;;  %v389_v1 = vld [vmem:[%s14521_s4 + $0xc4] sm:$0xf] }
 0x15f   :  { %447 = vst.msk [vmem:[#allocation2 + $0xfc] sm:$0xf] %vm239_vm0, %v382_v54  ;;  %446 = vst.msk [vmem:[#allocation2 + $0xf8] sm:$0xf] %vm239_vm0, %v381_v55  ;;  %606 = vperm.xlu0 %9560, %v483_v59   ;;  %v392_v3 = vld [vmem:[%s14521_s4 + $0xd0] sm:$0xf] }
 0x160   :  { %449 = vst.msk [vmem:[#allocation2 + $0x104] sm:$0xf] %vm239_vm0, %v384_v56  ;;  %448 = vst.msk [vmem:[#allocation2 + $0x100] sm:$0xf] %vm239_vm0, %v383_v57  ;;  %v391_v4 = vld [vmem:[%s14521_s4 + $0xcc] sm:$0xf] }
 0x161   :  { %451 = vst.msk [vmem:[#allocation2 + $0x10c] sm:$0xf] %vm239_vm0, %v386_v58  ;;  %450 = vst.msk [vmem:[#allocation2 + $0x108] sm:$0xf] %vm239_vm0, %v385_v60  ;;  %611 = vperm.xlu1 %9561, %v484_v53   ;;  %v394_v5 = vld [vmem:[%s14521_s4 + $0xd8] sm:$0xf] }
 0x162   :  { %453 = vst.msk [vmem:[#allocation2 + $0x11c] sm:$0xf] %vm239_vm0, %v388_v61  ;;  %455 = vst.msk [vmem:[#allocation2 + $0x124] sm:$0xf] %vm239_vm0, %v390_v62  ;;  %v393_v6 = vld [vmem:[%s14521_s4 + $0xd4] sm:$0xf] }
 0x163   :  { %454 = vst.msk [vmem:[#allocation2 + $0x120] sm:$0xf] %vm239_vm0, %v389_v1  ;;  %457 = vst.msk [vmem:[#allocation2 + $0x12c] sm:$0xf] %vm239_vm0, %v392_v3  ;;  %616 = vperm.xlu0 %9560, %v485_v0   ;;  %v488_v7 = vld [vmem:[#allocation2 + $0x5c] sm:$0xf] }
 0x164   :  { %456 = vst.msk [vmem:[#allocation2 + $0x128] sm:$0xf] %vm239_vm0, %v391_v4  ;;  %459 = vst.msk [vmem:[#allocation2 + $0x134] sm:$0xf] %vm239_vm0, %v394_v5  ;;  %v487_v8 = vld [vmem:[#allocation2 + $0x58] sm:$0xf] }
 0x165   :  { %621 = vperm.xlu1 %9561, %v486_v63   ;;  %458 = vst.msk [vmem:[#allocation2 + $0x130] sm:$0xf] %vm239_vm0, %v393_v6  ;;  %v490_v9 = vld [vmem:[#allocation2 + $0x64] sm:$0xf]  ;;  %v489_v10 = vld [vmem:[#allocation2 + $0x60] sm:$0xf] }
 0x166   :  { %v347_v11 = vld [vmem:[%s14521_s4 + $0x1c] sm:$0xf]  ;;  %v492_v12 = vld [vmem:[#allocation2 + $0x6c] sm:$0xf]  ;;  %v491_v13 = vld [vmem:[#allocation2 + $0x68] sm:$0xf] }
 0x167   :  { %626 = vperm.xlu0 %9560, %v487_v8   ;;  %412 = vst.msk [vmem:[#allocation2 + $0x48] sm:$0xf] %vm239_vm0, %v347_v11  ;;  %v494_v14 = vld [vmem:[#allocation2 + $0x7c] sm:$0xf]  ;;  %v493_v15 = vld [vmem:[#allocation2 + $0x78] sm:$0xf] }
 0x168   :  { %v355_v16 = vld [vmem:[%s14521_s4 + $0x3c] sm:$0xf]  ;;  %v496_v17 = vld [vmem:[#allocation2 + $0x84] sm:$0xf]  ;;  %v495_v18 = vld [vmem:[#allocation2 + $0x80] sm:$0xf] }
 0x169   :  { %631 = vperm.xlu1 %9561, %v488_v7   ;;  %420 = vst.msk [vmem:[#allocation2 + $0x70] sm:$0xf] %vm239_vm0, %v355_v16  ;;  %v498_v19 = vld [vmem:[#allocation2 + $0x8c] sm:$0xf]  ;;  %v497_v20 = vld [vmem:[#allocation2 + $0x88] sm:$0xf] }
 0x16a   :  { %v363_v21 = vld [vmem:[%s14521_s4 + $0x5c] sm:$0xf]  ;;  %v500_v22 = vld [vmem:[#allocation2 + $0x94] sm:$0xf]  ;;  %v499_v23 = vld [vmem:[#allocation2 + $0x90] sm:$0xf] }
 0x16b   :  { %636 = vperm.xlu0 %9560, %v489_v10   ;;  %428 = vst.msk [vmem:[#allocation2 + $0x98] sm:$0xf] %vm239_vm0, %v363_v21  ;;  %v501_v24 = vld [vmem:[#allocation2 + $0xa0] sm:$0xf]  ;;  %v502_v25 = vld [vmem:[#allocation2 + $0xa4] sm:$0xf] }
 0x16c   :  { %v504_v26 = vld [vmem:[#allocation2 + $0xac] sm:$0xf]  ;;  %v503_v27 = vld [vmem:[#allocation2 + $0xa8] sm:$0xf]  ;;  %v506_v28 = vld [vmem:[#allocation2 + $0xb4] sm:$0xf] }
 0x16d   :  { %641 = vperm.xlu1 %9561, %v490_v9   ;;  %v505_v29 = vld [vmem:[#allocation2 + $0xb0] sm:$0xf]  ;;  %v371_v30 = vld [vmem:[%s14521_s4 + $0x7c] sm:$0xf]  ;;  %v507_v32 = vld [vmem:[#allocation2 + $0xb8] sm:$0xf] }
 0x16e   :  { %436 = vst.msk [vmem:[#allocation2 + $0xc0] sm:$0xf] %vm239_vm0, %v371_v30  ;;  %v508_v31 = vld [vmem:[#allocation2 + $0xbc] sm:$0xf]  ;;  %v510_v33 = vld [vmem:[#allocation2 + $0xcc] sm:$0xf] }
 0x16f   :  { %646 = vperm.xlu0 %9560, %v491_v13   ;;  %v509_v34 = vld [vmem:[#allocation2 + $0xc8] sm:$0xf]  ;;  %v512_v35 = vld [vmem:[#allocation2 + $0xd4] sm:$0xf]  ;;  %v511_v36 = vld [vmem:[#allocation2 + $0xd0] sm:$0xf] }
 0x170   :  { %v514_v37 = vld [vmem:[#allocation2 + $0xdc] sm:$0xf]  ;;  %v513_v38 = vld [vmem:[#allocation2 + $0xd8] sm:$0xf]  ;;  %v516_v40 = vld [vmem:[#allocation2 + $0xe4] sm:$0xf] }
 0x171   :  { %651 = vperm.xlu1 %9561, %v492_v12   ;;  %v379_v39 = vld [vmem:[%s14521_s4 + $0x9c] sm:$0xf]  ;;  %v515_v41 = vld [vmem:[#allocation2 + $0xe0] sm:$0xf]  ;;  %v518_v42 = vld [vmem:[#allocation2 + $0xf4] sm:$0xf] }
 0x172   :  { %444 = vst.msk [vmem:[#allocation2 + $0xe8] sm:$0xf] %vm239_vm0, %v379_v39  ;;  %v517_v43 = vld [vmem:[#allocation2 + $0xf0] sm:$0xf]  ;;  %v520_v44 = vld [vmem:[#allocation2 + $0xfc] sm:$0xf] }
 0x173   :  { %656 = vperm.xlu0 %9560, %v493_v15   ;;  %v519_v45 = vld [vmem:[#allocation2 + $0xf8] sm:$0xf]  ;;  %v522_v46 = vld [vmem:[#allocation2 + $0x104] sm:$0xf]  ;;  %v521_v47 = vld [vmem:[#allocation2 + $0x100] sm:$0xf] }
 0x174   :  { %v387_v48 = vld [vmem:[%s14521_s4 + $0xbc] sm:$0xf]  ;;  %v524_v49 = vld [vmem:[#allocation2 + $0x10c] sm:$0xf]  ;;  %v523_v50 = vld [vmem:[#allocation2 + $0x108] sm:$0xf] }
 0x175   :  { %661 = vperm.xlu1 %9561, %v494_v14   ;;  %452 = vst.msk [vmem:[#allocation2 + $0x110] sm:$0xf] %vm239_vm0, %v387_v48  ;;  %v526_v51 = vld [vmem:[#allocation2 + $0x11c] sm:$0xf]  ;;  %v525_v52 = vld [vmem:[#allocation2 + $0x118] sm:$0xf] }
 0x176   :  { %v528_v53 = vld [vmem:[#allocation2 + $0x124] sm:$0xf]  ;;  %v527_v54 = vld [vmem:[#allocation2 + $0x120] sm:$0xf]  ;;  %v530_v55 = vld [vmem:[#allocation2 + $0x12c] sm:$0xf] }
 0x177   :  { %666 = vperm.xlu0 %9560, %v495_v18   ;;  %v529_v56 = vld [vmem:[#allocation2 + $0x128] sm:$0xf]  ;;  %v395_v57 = vld [vmem:[%s14521_s4 + $0xdc] sm:$0xf]  ;;  %v532_v58 = vld [vmem:[#allocation2 + $0x134] sm:$0xf] }
 0x178   :  { %460 = vst.msk [vmem:[#allocation2 + $0x138] sm:$0xf] %vm239_vm0, %v395_v57  ;;  %v531_v59 = vld [vmem:[#allocation2 + $0x130] sm:$0xf]  ;;  %v990_v60 = vld [vmem:[#allocation2 + $0x8] sm:$0xf] }
 0x179   :  { %671 = vperm.xlu1 %9561, %v496_v17   ;;  %v989_v61 = vld [vmem:[#allocation2 + $0x4] sm:$0xf]  ;;  %v992_v0 = vld [vmem:[#allocation2 + $0x10] sm:$0xf]  ;;  %v991_v1 = vld [vmem:[#allocation2 + $0xc] sm:$0xf] }
 0x17a   :  { %v994_v5 = vld [vmem:[#allocation2 + $0x18] sm:$0xf]  ;;  %v993_v6 = vld [vmem:[#allocation2 + $0x14] sm:$0xf]  ;;  %v996_v9 = vld [vmem:[#allocation2 + $0x20] sm:$0xf] }
 0x17b   :  { %676 = vperm.xlu0 %9560, %v497_v20   ;;  %v995_v10 = vld [vmem:[#allocation2 + $0x1c] sm:$0xf]  ;;  %v998_v13 = vld [vmem:[#allocation2 + $0x30] sm:$0xf]  ;;  %v997_v14 = vld [vmem:[#allocation2 + $0x2c] sm:$0xf] }
 0x17c   :  { %v1000_v17 = vld [vmem:[#allocation2 + $0x38] sm:$0xf]  ;;  %v999_v18 = vld [vmem:[#allocation2 + $0x34] sm:$0xf]  ;;  %v1002_v21 = vld [vmem:[#allocation2 + $0x40] sm:$0xf] }
 0x17d   :  { %681 = vperm.xlu1 %9561, %v498_v19   ;;  %v1005_v30 = vld [vmem:[#allocation2 + $0x54] sm:$0xf]  ;;  %v1020_v57 = vld [vmem:[#allocation2 + $0x98] sm:$0xf]  ;;  %v1045_v2 = vld [vmem:[#allocation2 + $0x11c] sm:$0xf] }
 0x17e   :  { %vm8383_vm6 = vcmask 1024   ;;  %vm8664_vm7 = vcmask 76800  }
 0x17f   :  { %686 = vperm.xlu0 %9560, %v499_v23  }
 0x181   :  { %691 = vperm.xlu1 %9561, %v500_v22   ;;  %v1001_v22 = vld [vmem:[#allocation2 + $0x3c] sm:$0xf] }
 0x183   :  { %696 = vperm.xlu0 %9560, %v501_v24  }
 0x185   :  { %701 = vperm.xlu1 %9561, %v502_v25   ;;  %v1004_v25 = vld [vmem:[#allocation2 + $0x48] sm:$0xf] }
 0x187   :  { %706 = vperm.xlu0 %9560, %v503_v27  }
 0x189   :  { %711 = vperm.xlu1 %9561, %v504_v26   ;;  %v1003_v26 = vld [vmem:[#allocation2 + $0x44] sm:$0xf] }
 0x18b   :  { %716 = vperm.xlu0 %9560, %v505_v29   ;;  %v1006_v29 = vld [vmem:[#allocation2 + $0x58] sm:$0xf] }
 0x18d   :  { %721 = vperm.xlu1 %9561, %v506_v28  }
 0x18f   :  { %726 = vperm.xlu0 %9560, %v507_v32  }
 0x191   :  { %731 = vperm.xlu1 %9561, %v508_v31  }
 0x193   :  { %736 = vperm.xlu0 %9560, %v509_v34   ;;  %v1007_v34 = vld [vmem:[#allocation2 + $0x5c] sm:$0xf] }
 0x195   :  { %741 = vperm.xlu1 %9561, %v510_v33   ;;  %v1008_v33 = vld [vmem:[#allocation2 + $0x60] sm:$0xf] }
 0x197   :  { %746 = vperm.xlu0 %9560, %v511_v36  }
 0x199   :  { %751 = vperm.xlu1 %9561, %v512_v35  }
 0x19b   :  { %756 = vperm.xlu0 %9560, %v513_v38   ;;  %v1009_v38 = vld [vmem:[#allocation2 + $0x64] sm:$0xf] }
 0x19d   :  { %761 = vperm.xlu1 %9561, %v514_v37   ;;  %v1010_v37 = vld [vmem:[#allocation2 + $0x68] sm:$0xf] }
 0x19f   :  { %766 = vperm.xlu0 %9560, %v515_v41   ;;  %v1012_v41 = vld [vmem:[#allocation2 + $0x70] sm:$0xf] }
 0x1a1   :  { %771 = vperm.xlu1 %9561, %v516_v40  }
 0x1a3   :  { %776 = vperm.xlu0 %9560, %v517_v43   ;;  %v10822_v62 = vpop.permute.xlu1 %546 }
 0x1a4   :  { %v10824_v63 = vpop.permute.xlu0 %536 }
 0x1a5   :  { %781 = vperm.xlu1 %9561, %v518_v42   ;;  %v1011_v42 = vld [vmem:[#allocation2 + $0x6c] sm:$0xf] }
 0x1a7   :  { %786 = vperm.xlu0 %9560, %v519_v45   ;;  %v10826_v3 = vpop.permute.xlu1 %551  ;;  %v1014_v45 = vld [vmem:[#allocation2 + $0x80] sm:$0xf] }
 0x1a8   :  { %v10828_v4 = vpop.permute.xlu0 %541 }
 0x1a9   :  { %791 = vperm.xlu1 %9561, %v520_v44  }
 0x1ab   :  { %796 = vperm.xlu0 %9560, %v521_v47   ;;  %v10830_v7 = vpop.permute.xlu1 %561 }
 0x1ac   :  { %v10832_v8 = vpop.permute.xlu0 %556 }
 0x1ad   :  { %801 = vperm.xlu1 %9561, %v522_v46   ;;  %v1013_v46 = vld [vmem:[#allocation2 + $0x7c] sm:$0xf] }
 0x1af   :  { %806 = vperm.xlu0 %9560, %v523_v50   ;;  %v1015_v50 = vld [vmem:[#allocation2 + $0x84] sm:$0xf] }
 0x1b1   :  { %811 = vperm.xlu1 %9561, %v524_v49   ;;  %v1016_v49 = vld [vmem:[#allocation2 + $0x88] sm:$0xf] }
 0x1b3   :  { %816 = vperm.xlu0 %9560, %v525_v52  }
 0x1b4   :  { %v10834_v11 = vpop.permute.xlu1 %571 }
 0x1b5   :  { %821 = vperm.xlu1 %9561, %v526_v51   ;;  %v10836_v12 = vpop.permute.xlu0 %566 }
 0x1b7   :  { %826 = vperm.xlu0 %9560, %v527_v54   ;;  %v1017_v54 = vld [vmem:[#allocation2 + $0x8c] sm:$0xf] }
 0x1b9   :  { %831 = vperm.xlu1 %9561, %v528_v53   ;;  %v1018_v53 = vld [vmem:[#allocation2 + $0x90] sm:$0xf] }
 0x1bb   :  { %836 = vperm.xlu0 %9560, %v529_v56  }
 0x1bd   :  { %841 = vperm.xlu1 %9561, %v530_v55  }
 0x1be   :  { %v10840_v16 = vpop.permute.xlu0 %576 }
 0x1bf   :  { %846 = vperm.xlu0 %9560, %v531_v59  }
 0x1c1   :  { %851 = vperm.xlu1 %9561, %v532_v58   ;;  %v1019_v58 = vld [vmem:[#allocation2 + $0x94] sm:$0xf] }
 0x1c3   :  { %1057 = vperm.xlu0 %9560, %v989_v61   ;;  %v1022_v61 = vld [vmem:[#allocation2 + $0xa8] sm:$0xf] }
 0x1c5   :  { %1062 = vperm.xlu1 %9561, %v990_v60  }
 0x1c7   :  { %1067 = vperm.xlu0 %9560, %v991_v1  }
 0x1c9   :  { %1072 = vperm.xlu1 %9561, %v992_v0   ;;  %v1021_v0 = vld [vmem:[#allocation2 + $0xa4] sm:$0xf] }
 0x1cb   :  { %1077 = vperm.xlu0 %9560, %v993_v6   ;;  %v1024_v6 = vld [vmem:[#allocation2 + $0xb0] sm:$0xf] }
 0x1cd   :  { %1082 = vperm.xlu1 %9561, %v994_v5  }
 0x1cf   :  { %1087 = vperm.xlu0 %9560, %v995_v10  }
 0x1d1   :  { %1092 = vperm.xlu1 %9561, %v996_v9   ;;  %v1023_v9 = vld [vmem:[#allocation2 + $0xac] sm:$0xf] }
 0x1d3   :  { %1097 = vperm.xlu0 %9560, %v997_v14   ;;  %v1026_v14 = vld [vmem:[#allocation2 + $0xb8] sm:$0xf] }
 0x1d4   :  { %v10838_v15 = vpop.permute.xlu1 %581 }
 0x1d5   :  { %1102 = vperm.xlu1 %9561, %v998_v13  }
 0x1d6   :  { %v10844_v20 = vpop.permute.xlu0 %586 }
 0x1d7   :  { %1107 = vperm.xlu0 %9560, %v999_v18  }
 0x1d8   :  { %v10842_v19 = vpop.permute.xlu1 %591 }
 0x1d9   :  { %1112 = vperm.xlu1 %9561, %v1000_v17   ;;  %v1025_v17 = vld [vmem:[#allocation2 + $0xb4] sm:$0xf] }
 0x1da   :  { %v10848_v24 = vpop.permute.xlu0 %596 }
 0x1db   :  { %1117 = vperm.xlu0 %9560, %v1001_v22   ;;  %v1028_v22 = vld [vmem:[#allocation2 + $0xc0] sm:$0xf] }
 0x1dc   :  { %v10846_v23 = vpop.permute.xlu1 %601 }
 0x1dd   :  { %1122 = vperm.xlu1 %9561, %v1002_v21  }
 0x1de   :  { %v10852_v28 = vpop.permute.xlu0 %606 }
 0x1df   :  { %1127 = vperm.xlu0 %9560, %v1003_v26  }
 0x1e0   :  { %v10850_v27 = vpop.permute.xlu1 %611 }
 0x1e1   :  { %1132 = vperm.xlu1 %9561, %v1004_v25   ;;  %v1027_v25 = vld [vmem:[#allocation2 + $0xbc] sm:$0xf] }
 0x1e2   :  { %v10856_v32 = vpop.permute.xlu0 %616 }
 0x1e3   :  { %14523 = vst [vmem:[#allocation34_spill] sm:$0xff] %v10856_v32  ;;  %1137 = vperm.xlu0 %9560, %v1005_v30   ;;  %v1030_v30 = vld [vmem:[#allocation2 + $0xd0] sm:$0xf]  ;;  %v1551_v32 = vld [vmem:[#allocation2 + $0xd4] sm:$0xf] }
 0x1e4   :  { %v10854_v31 = vpop.permute.xlu1 %621 }
 0x1e5   :  { %14522 = vst [vmem:[#allocation33_spill] sm:$0xff] %v10854_v31  ;;  %1142 = vperm.xlu1 %9561, %v1006_v29   ;;  %v1550_v31 = vld [vmem:[#allocation2 + $0xd0] sm:$0xf] }
 0x1e6   :  { %v10860_v36 = vpop.permute.xlu0 %626 }
 0x1e7   :  { %14525 = vst [vmem:[#allocation36_spill] sm:$0xff] %v10860_v36  ;;  %1147 = vperm.xlu0 %9560, %v1007_v34   ;;  %v1549_v36 = vld [vmem:[#allocation2 + $0xc4] sm:$0xf] }
 0x1e8   :  { %v10858_v35 = vpop.permute.xlu1 %631 }
 0x1e9   :  { %14524 = vst [vmem:[#allocation35_spill] sm:$0xff] %v10858_v35  ;;  %1152 = vperm.xlu1 %9561, %v1008_v33   ;;  %v1029_v33 = vld [vmem:[#allocation2 + $0xcc] sm:$0xf]  ;;  %v1548_v35 = vld [vmem:[#allocation2 + $0xc0] sm:$0xf] }
 0x1ea   :  { %v10864_v40 = vpop.permute.xlu0 %636 }
 0x1eb   :  { %14527 = vst [vmem:[#allocation38_spill] sm:$0xff] %v10864_v40  ;;  %1157 = vperm.xlu0 %9560, %v1009_v38   ;;  %v1032_v38 = vld [vmem:[#allocation2 + $0xd8] sm:$0xf]  ;;  %v1547_v40 = vld [vmem:[#allocation2 + $0xbc] sm:$0xf] }
 0x1ec   :  { %v10862_v39 = vpop.permute.xlu1 %641 }
 0x1ed   :  { %14526 = vst [vmem:[#allocation37_spill] sm:$0xff] %v10862_v39  ;;  %1162 = vperm.xlu1 %9561, %v1010_v37   ;;  %v1546_v39 = vld [vmem:[#allocation2 + $0xb8] sm:$0xf] }
 0x1ee   :  { %v10868_v44 = vpop.permute.xlu0 %646 }
 0x1ef   :  { %14529 = vst [vmem:[#allocation40_spill] sm:$0xff] %v10868_v44  ;;  %1167 = vperm.xlu0 %9560, %v1011_v42   ;;  %v1545_v44 = vld [vmem:[#allocation2 + $0xb4] sm:$0xf] }
 0x1f0   :  { %v10866_v43 = vpop.permute.xlu1 %651 }
 0x1f1   :  { %14528 = vst [vmem:[#allocation39_spill] sm:$0xff] %v10866_v43  ;;  %1172 = vperm.xlu1 %9561, %v1012_v41   ;;  %v1031_v41 = vld [vmem:[#allocation2 + $0xd4] sm:$0xf]  ;;  %v1544_v43 = vld [vmem:[#allocation2 + $0xb0] sm:$0xf] }
 0x1f2   :  { %v10872_v48 = vpop.permute.xlu0 %656 }
 0x1f3   :  { %14531 = vst [vmem:[#allocation42_spill] sm:$0xff] %v10872_v48  ;;  %1177 = vperm.xlu0 %9560, %v1013_v46   ;;  %v1034_v46 = vld [vmem:[#allocation2 + $0xe0] sm:$0xf]  ;;  %v1543_v48 = vld [vmem:[#allocation2 + $0xac] sm:$0xf] }
 0x1f4   :  { %v10870_v47 = vpop.permute.xlu1 %661 }
 0x1f5   :  { %14530 = vst [vmem:[#allocation41_spill] sm:$0xff] %v10870_v47  ;;  %1182 = vperm.xlu1 %9561, %v1014_v45   ;;  %v1542_v47 = vld [vmem:[#allocation2 + $0xa8] sm:$0xf] }
 0x1f6   :  { %v10876_v52 = vpop.permute.xlu0 %666 }
 0x1f7   :  { %14533 = vst [vmem:[#allocation44_spill] sm:$0xff] %v10876_v52  ;;  %1187 = vperm.xlu0 %9560, %v1015_v50   ;;  %v1541_v52 = vld [vmem:[#allocation2 + $0x9c] sm:$0xf] }
 0x1f8   :  { %v10874_v51 = vpop.permute.xlu1 %671 }
 0x1f9   :  { %14532 = vst [vmem:[#allocation43_spill] sm:$0xff] %v10874_v51  ;;  %1192 = vperm.xlu1 %9561, %v1016_v49   ;;  %v1033_v49 = vld [vmem:[#allocation2 + $0xdc] sm:$0xf]  ;;  %v1540_v51 = vld [vmem:[#allocation2 + $0x98] sm:$0xf] }
 0x1fa   :  { %v10880_v56 = vpop.permute.xlu0 %676 }
 0x1fb   :  { %14535 = vst [vmem:[#allocation46_spill] sm:$0xff] %v10880_v56  ;;  %1197 = vperm.xlu0 %9560, %v1017_v54   ;;  %v1036_v54 = vld [vmem:[#allocation2 + $0xe8] sm:$0xf]  ;;  %v1539_v56 = vld [vmem:[#allocation2 + $0x94] sm:$0xf] }
 0x1fc   :  { %v10878_v55 = vpop.permute.xlu1 %681 }
 0x1fd   :  { %14534 = vst [vmem:[#allocation45_spill] sm:$0xff] %v10878_v55  ;;  %1202 = vperm.xlu1 %9561, %v1018_v53   ;;  %v1538_v55 = vld [vmem:[#allocation2 + $0x90] sm:$0xf] }
 0x1fe   :  { %v10884_v60 = vpop.permute.xlu0 %686 }
 0x1ff   :  { %14537 = vst [vmem:[#allocation48_spill] sm:$0xff] %v10884_v60  ;;  %1207 = vperm.xlu0 %9560, %v1019_v58   ;;  %v1537_v60 = vld [vmem:[#allocation2 + $0x8c] sm:$0xf] }
 0x200   :  { %v10882_v59 = vpop.permute.xlu1 %691 }
 0x201   :  { %14536 = vst [vmem:[#allocation47_spill] sm:$0xff] %v10882_v59  ;;  %1212 = vperm.xlu1 %9561, %v1020_v57   ;;  %v1035_v57 = vld [vmem:[#allocation2 + $0xe4] sm:$0xf]  ;;  %v1536_v59 = vld [vmem:[#allocation2 + $0x88] sm:$0xf] }
 0x202   :  { %v10888_v5 = vpop.permute.xlu0 %696 }
 0x203   :  { %14539 = vst [vmem:[#allocation50_spill] sm:$0xff] %v10888_v5  ;;  %1217 = vperm.xlu0 %9560, %v1021_v0   ;;  %v1038_v0 = vld [vmem:[#allocation2 + $0xf8] sm:$0xf]  ;;  %v1535_v5 = vld [vmem:[#allocation2 + $0x84] sm:$0xf] }
 0x204   :  { %v10886_v1 = vpop.permute.xlu1 %701 }
 0x205   :  { %14538 = vst [vmem:[#allocation49_spill] sm:$0xff] %v10886_v1  ;;  %1222 = vperm.xlu1 %9561, %v1022_v61   ;;  %v1534_v1 = vld [vmem:[#allocation2 + $0x80] sm:$0xf] }
 0x206   :  { %v10892_v13 = vpop.permute.xlu0 %706 }
 0x207   :  { %14541 = vst [vmem:[#allocation52_spill] sm:$0xff] %v10892_v13  ;;  %1227 = vperm.xlu0 %9560, %v1023_v9   ;;  %v1533_v13 = vld [vmem:[#allocation2 + $0x74] sm:$0xf] }
 0x208   :  { %v10890_v10 = vpop.permute.xlu1 %711 }
 0x209   :  { %14540 = vst [vmem:[#allocation51_spill] sm:$0xff] %v10890_v10  ;;  %1232 = vperm.xlu1 %9561, %v1024_v6   ;;  %v1037_v6 = vld [vmem:[#allocation2 + $0xf4] sm:$0xf]  ;;  %v1532_v10 = vld [vmem:[#allocation2 + $0x70] sm:$0xf] }
 0x20a   :  { %v10896_v21 = vpop.permute.xlu0 %716 }
 0x20b   :  { %14543 = vst [vmem:[#allocation54_spill] sm:$0xff] %v10896_v21  ;;  %1237 = vperm.xlu0 %9560, %v1025_v17   ;;  %v1040_v17 = vld [vmem:[#allocation2 + $0x100] sm:$0xf]  ;;  %v2036_v21 = vld [vmem:[#allocation2 + $0x3c] sm:$0xf] }
 0x20c   :  { %v10894_v18 = vpop.permute.xlu1 %721 }
 0x20d   :  { %14542 = vst [vmem:[#allocation53_spill] sm:$0xff] %v10894_v18  ;;  %1242 = vperm.xlu1 %9561, %v1026_v14   ;;  %v2035_v18 = vld [vmem:[#allocation2 + $0x38] sm:$0xf] }
 0x20e   :  { %v10900_v29 = vpop.permute.xlu0 %726 }
 0x20f   :  { %14545 = vst [vmem:[#allocation56_spill] sm:$0xff] %v10900_v29  ;;  %1247 = vperm.xlu0 %9560, %v1027_v25   ;;  %v2034_v29 = vld [vmem:[#allocation2 + $0x34] sm:$0xf] }
 0x210   :  { %v10898_v26 = vpop.permute.xlu1 %731 }
 0x211   :  { %14544 = vst [vmem:[#allocation55_spill] sm:$0xff] %v10898_v26  ;;  %1252 = vperm.xlu1 %9561, %v1028_v22   ;;  %v1039_v22 = vld [vmem:[#allocation2 + $0xfc] sm:$0xf]  ;;  %v2033_v26 = vld [vmem:[#allocation2 + $0x30] sm:$0xf] }
 0x212   :  { %v10904_v37 = vpop.permute.xlu0 %736 }
 0x213   :  { %14547 = vst [vmem:[#allocation58_spill] sm:$0xff] %v10904_v37  ;;  %1257 = vperm.xlu0 %9560, %v1029_v33   ;;  %v1042_v33 = vld [vmem:[#allocation2 + $0x108] sm:$0xf]  ;;  %v2032_v37 = vld [vmem:[#allocation2 + $0x2c] sm:$0xf] }
 0x214   :  { %v10902_v34 = vpop.permute.xlu1 %741 }
 0x215   :  { %14546 = vst [vmem:[#allocation57_spill] sm:$0xff] %v10902_v34  ;;  %1262 = vperm.xlu1 %9561, %v1030_v30   ;;  %v2031_v34 = vld [vmem:[#allocation2 + $0x28] sm:$0xf] }
 0x216   :  { %v10908_v45 = vpop.permute.xlu0 %746 }
 0x217   :  { %14549 = vst [vmem:[#allocation60_spill] sm:$0xff] %v10908_v45  ;;  %1267 = vperm.xlu0 %9560, %v1031_v41   ;;  %v1525_v45 = vld [vmem:[#allocation2 + $0x4c] sm:$0xf] }
 0x218   :  { %v10906_v42 = vpop.permute.xlu1 %751 }
 0x219   :  { %14548 = vst [vmem:[#allocation59_spill] sm:$0xff] %v10906_v42  ;;  %1272 = vperm.xlu1 %9561, %v1032_v38   ;;  %v1041_v38 = vld [vmem:[#allocation2 + $0x104] sm:$0xf]  ;;  %v1524_v42 = vld [vmem:[#allocation2 + $0x48] sm:$0xf] }
 0x21a   :  { %v10912_v53 = vpop.permute.xlu0 %756 }
 0x21b   :  { %14551 = vst [vmem:[#allocation62_spill] sm:$0xff] %v10912_v53  ;;  %1277 = vperm.xlu0 %9560, %v1033_v49   ;;  %v1044_v49 = vld [vmem:[#allocation2 + $0x110] sm:$0xf]  ;;  %v1523_v53 = vld [vmem:[#allocation2 + $0x44] sm:$0xf] }
 0x21c   :  { %v10910_v50 = vpop.permute.xlu1 %761 }
 0x21d   :  { %14550 = vst [vmem:[#allocation61_spill] sm:$0xff] %v10910_v50  ;;  %1282 = vperm.xlu1 %9561, %v1034_v46   ;;  %v1522_v50 = vld [vmem:[#allocation2 + $0x40] sm:$0xf] }
 0x21e   :  { %v10916_v61 = vpop.permute.xlu0 %766 }
 0x21f   :  { %14553 = vst [vmem:[#allocation64_spill] sm:$0xff] %v10916_v61  ;;  %1287 = vperm.xlu0 %9560, %v1035_v57   ;;  %v1521_v61 = vld [vmem:[#allocation2 + $0x3c] sm:$0xf] }
 0x220   :  { %v10914_v58 = vpop.permute.xlu1 %771 }
 0x221   :  { %14552 = vst [vmem:[#allocation63_spill] sm:$0xff] %v10914_v58  ;;  %1292 = vperm.xlu1 %9561, %v1036_v54   ;;  %v1043_v54 = vld [vmem:[#allocation2 + $0x10c] sm:$0xf]  ;;  %v1520_v58 = vld [vmem:[#allocation2 + $0x38] sm:$0xf] }
 0x222   :  { %v10920_v14 = vpop.permute.xlu0 %776 }
 0x223   :  { %14555 = vst [vmem:[#allocation66_spill] sm:$0xff] %v10920_v14  ;;  %1297 = vperm.xlu0 %9560, %v1037_v6   ;;  %v1046_v6 = vld [vmem:[#allocation2 + $0x120] sm:$0xf]  ;;  %v1519_v14 = vld [vmem:[#allocation2 + $0x34] sm:$0xf] }
 0x224   :  { %v10918_v9 = vpop.permute.xlu1 %781 }
 0x225   :  { %14554 = vst [vmem:[#allocation65_spill] sm:$0xff] %v10918_v9  ;;  %1302 = vperm.xlu1 %9561, %v1038_v0   ;;  %v1518_v9 = vld [vmem:[#allocation2 + $0x30] sm:$0xf] }
 0x226   :  { %v10924_v30 = vpop.permute.xlu0 %786 }
 0x227   :  { %14557 = vst [vmem:[#allocation68_spill] sm:$0xff] %v10924_v30  ;;  %1307 = vperm.xlu0 %9560, %v1039_v22   ;;  %v1517_v30 = vld [vmem:[#allocation2 + $0x24] sm:$0xf] }
 0x228   :  { %v10922_v25 = vpop.permute.xlu1 %791 }
 0x229   :  { %14556 = vst [vmem:[#allocation67_spill] sm:$0xff] %v10922_v25  ;;  %1312 = vperm.xlu1 %9561, %v1040_v17   ;;  %v1516_v25 = vld [vmem:[#allocation2 + $0x20] sm:$0xf] }
 0x22a   :  { %v10928_v46 = vpop.permute.xlu0 %796 }
 0x22b   :  { %14559 = vst [vmem:[#allocation70_spill] sm:$0xff] %v10928_v46  ;;  %1317 = vperm.xlu0 %9560, %v1041_v38   ;;  %v1047_v46 = vld [vmem:[#allocation2 + $0x124] sm:$0xf] }
 0x22c   :  { %v10926_v41 = vpop.permute.xlu1 %801 }
 0x22d   :  { %14558 = vst [vmem:[#allocation69_spill] sm:$0xff] %v10926_v41  ;;  %1322 = vperm.xlu1 %9561, %v1042_v33   ;;  %v1048_v41 = vld [vmem:[#allocation2 + $0x128] sm:$0xf] }
 0x22e   :  { %v10932_v0 = vpop.permute.xlu0 %806 }
 0x22f   :  { %14561 = vst [vmem:[#allocation72_spill] sm:$0xff] %v10932_v0  ;;  %1327 = vperm.xlu0 %9560, %v1043_v54   ;;  %v1049_v0 = vld [vmem:[#allocation2 + $0x12c] sm:$0xf] }
 0x230   :  { %v10930_v57 = vpop.permute.xlu1 %811 }
 0x231   :  { %14560 = vst [vmem:[#allocation71_spill] sm:$0xff] %v10930_v57  ;;  %1332 = vperm.xlu1 %9561, %v1044_v49   ;;  %v1050_v57 = vld [vmem:[#allocation2 + $0x130] sm:$0xf] }
 0x232   :  { %v10936_v22 = vpop.permute.xlu0 %816 }
 0x233   :  { %14563 = vst [vmem:[#allocation74_spill] sm:$0xff] %v10936_v22  ;;  %1337 = vperm.xlu0 %9560, %v1045_v2   ;;  %v1051_v22 = vld [vmem:[#allocation2 + $0x134] sm:$0xf] }
 0x234   :  { %v10934_v17 = vpop.permute.xlu1 %821 }
 0x235   :  { %14562 = vst [vmem:[#allocation73_spill] sm:$0xff] %v10934_v17  ;;  %1342 = vperm.xlu1 %9561, %v1046_v6   ;;  %v1052_v17 = vld [vmem:[#allocation2 + $0x138] sm:$0xf] }
 0x236   :  { %v10940_v38 = vpop.permute.xlu0 %826 }
 0x237   :  { %14565 = vst [vmem:[#allocation76_spill] sm:$0xff] %v10940_v38  ;;  %1347 = vperm.xlu0 %9560, %v1047_v46   ;;  %v1510_v38 = vld [vmem:[#allocation2 + $0x8] sm:$0xf] }
 0x238   :  { %v10938_v33 = vpop.permute.xlu1 %831 }
 0x239   :  { %14564 = vst [vmem:[#allocation75_spill] sm:$0xff] %v10938_v33  ;;  %1352 = vperm.xlu1 %9561, %v1048_v41   ;;  %v1511_v33 = vld [vmem:[#allocation2 + $0xc] sm:$0xf] }
 0x23a   :  { %v10944_v54 = vpop.permute.xlu0 %836 }
 0x23b   :  { %14567 = vst [vmem:[#allocation78_spill] sm:$0xff] %v10944_v54  ;;  %1357 = vperm.xlu0 %9560, %v1049_v0   ;;  %v1512_v54 = vld [vmem:[#allocation2 + $0x10] sm:$0xf] }
 0x23c   :  { %v10942_v49 = vpop.permute.xlu1 %841 }
 0x23d   :  { %14566 = vst [vmem:[#allocation77_spill] sm:$0xff] %v10942_v49  ;;  %1362 = vperm.xlu1 %9561, %v1050_v57   ;;  %v1513_v49 = vld [vmem:[#allocation2 + $0x14] sm:$0xf] }
 0x23e   :  { %v10948_v2 = vpop.permute.xlu0 %846 }
 0x23f   :  { %14569 = vst [vmem:[#allocation80_spill] sm:$0xff] %v10948_v2  ;;  %1367 = vperm.xlu0 %9560, %v1051_v22   ;;  %v1514_v2 = vld [vmem:[#allocation2 + $0x18] sm:$0xf] }
 0x240   :  { %v10946_v6 = vpop.permute.xlu1 %851 }
 0x241   :  { %14568 = vst [vmem:[#allocation79_spill] sm:$0xff] %v10946_v6  ;;  %1372 = vperm.xlu1 %9561, %v1052_v17   ;;  %v1515_v6 = vld [vmem:[#allocation2 + $0x1c] sm:$0xf] }
 0x242   :  { %v10952_v46 = vpop.permute.xlu0 %1057 }
 0x243   :  { %1578 = vperm.xlu0 %9560, %v1510_v38  }
 0x244   :  { %v10950_v41 = vpop.permute.xlu1 %1062 }
 0x245   :  { %1583 = vperm.xlu1 %9561, %v1511_v33  }
 0x246   :  { %v10956_v0 = vpop.permute.xlu0 %1067 }
 0x247   :  { %1588 = vperm.xlu0 %9560, %v1512_v54  }
 0x248   :  { %v10954_v57 = vpop.permute.xlu1 %1072 }
 0x249   :  { %1593 = vperm.xlu1 %9561, %v1513_v49  }
 0x24a   :  { %v10960_v22 = vpop.permute.xlu0 %1077 }
 0x24b   :  { %1598 = vperm.xlu0 %9560, %v1514_v2  }
 0x24c   :  { %v10958_v17 = vpop.permute.xlu1 %1082 }
 0x24d   :  { %1603 = vperm.xlu1 %9561, %v1515_v6  }
 0x24e   :  { %v10964_v38 = vpop.permute.xlu0 %1087 }
 0x24f   :  { %1608 = vperm.xlu0 %9560, %v1516_v25  }
 0x250   :  { %v10962_v33 = vpop.permute.xlu1 %1092 }
 0x251   :  { %1613 = vperm.xlu1 %9561, %v1517_v30  }
 0x252   :  { %v10968_v54 = vpop.permute.xlu0 %1097 }
 0x253   :  { %1618 = vperm.xlu0 %9560, %v1518_v9  }
 0x254   :  { %v10966_v49 = vpop.permute.xlu1 %1102 }
 0x255   :  { %1623 = vperm.xlu1 %9561, %v1519_v14  }
 0x256   :  { %v10972_v2 = vpop.permute.xlu0 %1107 }
 0x257   :  { %1628 = vperm.xlu0 %9560, %v1520_v58  }
 0x258   :  { %v10970_v6 = vpop.permute.xlu1 %1112 }
 0x259   :  { %1633 = vperm.xlu1 %9561, %v1521_v61  }
 0x25a   :  { %v10976_v25 = vpop.permute.xlu0 %1117 }
 0x25b   :  { %1638 = vperm.xlu0 %9560, %v1522_v50  }
 0x25c   :  { %v10974_v30 = vpop.permute.xlu1 %1122 }
 0x25d   :  { %1643 = vperm.xlu1 %9561, %v1523_v53  }
 0x25e   :  { %v10980_v9 = vpop.permute.xlu0 %1127 }
 0x25f   :  { %1648 = vperm.xlu0 %9560, %v1524_v42  }
 0x260   :  { %v10978_v14 = vpop.permute.xlu1 %1132 }
 0x261   :  { %1653 = vperm.xlu1 %9561, %v1525_v45  }
 0x262   :  { %v10984_v58 = vpop.permute.xlu0 %1137 }
 0x263   :  { %14571 = vst [vmem:[#allocation82_spill] sm:$0xff] %v10984_v58  ;;  %2099 = vperm.xlu0 %9560, %v2031_v34   ;;  %v2037_v58 = vld [vmem:[#allocation2 + $0x40] sm:$0xf] }
 0x264   :  { %v10982_v61 = vpop.permute.xlu1 %1142 }
 0x265   :  { %14570 = vst [vmem:[#allocation81_spill] sm:$0xff] %v10982_v61  ;;  %2104 = vperm.xlu1 %9561, %v2032_v37   ;;  %v2038_v61 = vld [vmem:[#allocation2 + $0x44] sm:$0xf] }
 0x266   :  { %v10988_v50 = vpop.permute.xlu0 %1147 }
 0x267   :  { %14573 = vst [vmem:[#allocation84_spill] sm:$0xff] %v10988_v50  ;;  %2109 = vperm.xlu0 %9560, %v2033_v26   ;;  %v2039_v50 = vld [vmem:[#allocation2 + $0x50] sm:$0xf] }
 0x268   :  { %v10986_v53 = vpop.permute.xlu1 %1152 }
 0x269   :  { %14572 = vst [vmem:[#allocation83_spill] sm:$0xff] %v10986_v53  ;;  %2114 = vperm.xlu1 %9561, %v2034_v29   ;;  %v2040_v53 = vld [vmem:[#allocation2 + $0x54] sm:$0xf] }
 0x26a   :  { %v10992_v42 = vpop.permute.xlu0 %1157 }
 0x26b   :  { %14575 = vst [vmem:[#allocation86_spill] sm:$0xff] %v10992_v42  ;;  %2119 = vperm.xlu0 %9560, %v2035_v18   ;;  %v2041_v42 = vld [vmem:[#allocation2 + $0x58] sm:$0xf] }
 0x26c   :  { %v10990_v45 = vpop.permute.xlu1 %1162 }
 0x26d   :  { %14574 = vst [vmem:[#allocation85_spill] sm:$0xff] %v10990_v45  ;;  %2124 = vperm.xlu1 %9561, %v2036_v21   ;;  %v2042_v45 = vld [vmem:[#allocation2 + $0x5c] sm:$0xf] }
 0x26e   :  { %v10996_v34 = vpop.permute.xlu0 %1167 }
 0x26f   :  { %14577 = vst [vmem:[#allocation88_spill] sm:$0xff] %v10996_v34  ;;  %2129 = vperm.xlu0 %9560, %v2037_v58   ;;  %v2043_v34 = vld [vmem:[#allocation2 + $0x60] sm:$0xf] }
 0x270   :  { %v10994_v37 = vpop.permute.xlu1 %1172 }
 0x271   :  { %14576 = vst [vmem:[#allocation87_spill] sm:$0xff] %v10994_v37  ;;  %2134 = vperm.xlu1 %9561, %v2038_v61   ;;  %v2044_v37 = vld [vmem:[#allocation2 + $0x64] sm:$0xf] }
 0x272   :  { %v11000_v26 = vpop.permute.xlu0 %1177 }
 0x273   :  { %14579 = vst [vmem:[#allocation90_spill] sm:$0xff] %v11000_v26  ;;  %2139 = vperm.xlu0 %9560, %v2039_v50   ;;  %v2045_v26 = vld [vmem:[#allocation2 + $0x68] sm:$0xf] }
 0x274   :  { %v10998_v29 = vpop.permute.xlu1 %1182 }
 0x275   :  { %14578 = vst [vmem:[#allocation89_spill] sm:$0xff] %v10998_v29  ;;  %2144 = vperm.xlu1 %9561, %v2040_v53   ;;  %v2046_v29 = vld [vmem:[#allocation2 + $0x6c] sm:$0xf] }
 0x276   :  { %v11004_v18 = vpop.permute.xlu0 %1187 }
 0x277   :  { %14581 = vst [vmem:[#allocation92_spill] sm:$0xff] %v11004_v18  ;;  %2149 = vperm.xlu0 %9560, %v2041_v42   ;;  %v2551_v18 = vld [vmem:[#allocation2 + $0x2c] sm:$0xf] }
 0x278   :  { %v11002_v21 = vpop.permute.xlu1 %1192 }
 0x279   :  { %14580 = vst [vmem:[#allocation91_spill] sm:$0xff] %v11002_v21  ;;  %2154 = vperm.xlu1 %9561, %v2042_v45   ;;  %v2552_v21 = vld [vmem:[#allocation2 + $0x30] sm:$0xf] }
 0x27a   :  { %v11008_v58 = vpop.permute.xlu0 %1197 }
 0x27b   :  { %14583 = vst [vmem:[#allocation94_spill] sm:$0xff] %v11008_v58  ;;  %2159 = vperm.xlu0 %9560, %v2043_v34   ;;  %v2553_v58 = vld [vmem:[#allocation2 + $0x34] sm:$0xf] }
 0x27c   :  { %v11006_v61 = vpop.permute.xlu1 %1202 }
 0x27d   :  { %14582 = vst [vmem:[#allocation93_spill] sm:$0xff] %v11006_v61  ;;  %2164 = vperm.xlu1 %9561, %v2044_v37   ;;  %v2554_v61 = vld [vmem:[#allocation2 + $0x38] sm:$0xf] }
 0x27e   :  { %v11012_v50 = vpop.permute.xlu0 %1207 }
 0x27f   :  { %14585 = vst [vmem:[#allocation96_spill] sm:$0xff] %v11012_v50  ;;  %2169 = vperm.xlu0 %9560, %v2045_v26   ;;  %v2555_v50 = vld [vmem:[#allocation2 + $0x3c] sm:$0xf] }
 0x280   :  { %v11010_v53 = vpop.permute.xlu1 %1212 }
 0x281   :  { %14584 = vst [vmem:[#allocation95_spill] sm:$0xff] %v11010_v53  ;;  %2174 = vperm.xlu1 %9561, %v2046_v29   ;;  %v2556_v53 = vld [vmem:[#allocation2 + $0x40] sm:$0xf] }
 0x282   :  { %v11016_v42 = vpop.permute.xlu0 %1217 }
 0x283   :  { %14587 = vst [vmem:[#allocation98_spill] sm:$0xff] %v11016_v42  ;;  %2619 = vperm.xlu0 %9560, %v2551_v18   ;;  %v2557_v42 = vld [vmem:[#allocation2 + $0x44] sm:$0xf] }
 0x284   :  { %v11014_v45 = vpop.permute.xlu1 %1222 }
 0x285   :  { %14586 = vst [vmem:[#allocation97_spill] sm:$0xff] %v11014_v45  ;;  %2624 = vperm.xlu1 %9561, %v2552_v21   ;;  %v2558_v45 = vld [vmem:[#allocation2 + $0x48] sm:$0xf] }
 0x286   :  { %v11020_v34 = vpop.permute.xlu0 %1227 }
 0x287   :  { %14589 = vst [vmem:[#allocation100_spill] sm:$0xff] %v11020_v34  ;;  %2629 = vperm.xlu0 %9560, %v2553_v58   ;;  %v2559_v34 = vld [vmem:[#allocation2 + $0x54] sm:$0xf] }
 0x288   :  { %v11018_v37 = vpop.permute.xlu1 %1232 }
 0x289   :  { %14588 = vst [vmem:[#allocation99_spill] sm:$0xff] %v11018_v37  ;;  %2634 = vperm.xlu1 %9561, %v2554_v61   ;;  %v2560_v37 = vld [vmem:[#allocation2 + $0x58] sm:$0xf] }
 0x28a   :  { %v11024_v26 = vpop.permute.xlu0 %1237 }
 0x28b   :  { %14591 = vst [vmem:[#allocation102_spill] sm:$0xff] %v11024_v26  ;;  %2639 = vperm.xlu0 %9560, %v2555_v50   ;;  %v2561_v26 = vld [vmem:[#allocation2 + $0x5c] sm:$0xf] }
 0x28c   :  { %v11022_v29 = vpop.permute.xlu1 %1242 }
 0x28d   :  { %14590 = vst [vmem:[#allocation101_spill] sm:$0xff] %v11022_v29  ;;  %2644 = vperm.xlu1 %9561, %v2556_v53   ;;  %v2562_v29 = vld [vmem:[#allocation2 + $0x60] sm:$0xf] }
 0x28e   :  { %v11028_v18 = vpop.permute.xlu0 %1247 }
 0x28f   :  { %14593 = vst [vmem:[#allocation104_spill] sm:$0xff] %v11028_v18  ;;  %2649 = vperm.xlu0 %9560, %v2557_v42   ;;  %v2563_v18 = vld [vmem:[#allocation2 + $0x64] sm:$0xf] }
 0x290   :  { %v11026_v21 = vpop.permute.xlu1 %1252 }
 0x291   :  { %14592 = vst [vmem:[#allocation103_spill] sm:$0xff] %v11026_v21  ;;  %2654 = vperm.xlu1 %9561, %v2558_v45   ;;  %v2564_v21 = vld [vmem:[#allocation2 + $0x68] sm:$0xf] }
 0x292   :  { %v11032_v58 = vpop.permute.xlu0 %1257 }
 0x293   :  { %14595 = vst [vmem:[#allocation106_spill] sm:$0xff] %v11032_v58  ;;  %2659 = vperm.xlu0 %9560, %v2559_v34   ;;  %v2565_v58 = vld [vmem:[#allocation2 + $0x6c] sm:$0xf] }
 0x294   :  { %v11030_v61 = vpop.permute.xlu1 %1262 }
 0x295   :  { %14594 = vst [vmem:[#allocation105_spill] sm:$0xff] %v11030_v61  ;;  %2664 = vperm.xlu1 %9561, %v2560_v37   ;;  %v2566_v61 = vld [vmem:[#allocation2 + $0x70] sm:$0xf] }
 0x296   :  { %v11036_v50 = vpop.permute.xlu0 %1267 }
 0x297   :  { %14597 = vst [vmem:[#allocation108_spill] sm:$0xff] %v11036_v50  ;;  %2669 = vperm.xlu0 %9560, %v2561_v26   ;;  %v3072_v50 = vld [vmem:[#allocation2 + $0x30] sm:$0xf] }
 0x298   :  { %v11034_v53 = vpop.permute.xlu1 %1272 }
 0x299   :  { %14596 = vst [vmem:[#allocation107_spill] sm:$0xff] %v11034_v53  ;;  %2674 = vperm.xlu1 %9561, %v2562_v29   ;;  %v3073_v53 = vld [vmem:[#allocation2 + $0x34] sm:$0xf] }
 0x29a   :  { %v11040_v42 = vpop.permute.xlu0 %1277 }
 0x29b   :  { %14599 = vst [vmem:[#allocation110_spill] sm:$0xff] %v11040_v42  ;;  %2679 = vperm.xlu0 %9560, %v2563_v18   ;;  %v3074_v42 = vld [vmem:[#allocation2 + $0x38] sm:$0xf] }
 0x29c   :  { %v11038_v45 = vpop.permute.xlu1 %1282 }
 0x29d   :  { %14598 = vst [vmem:[#allocation109_spill] sm:$0xff] %v11038_v45  ;;  %2684 = vperm.xlu1 %9561, %v2564_v21   ;;  %v3075_v45 = vld [vmem:[#allocation2 + $0x3c] sm:$0xf] }
 0x29e   :  { %v11044_v34 = vpop.permute.xlu0 %1287 }
 0x29f   :  { %14601 = vst [vmem:[#allocation112_spill] sm:$0xff] %v11044_v34  ;;  %2689 = vperm.xlu0 %9560, %v2565_v58   ;;  %v3076_v34 = vld [vmem:[#allocation2 + $0x40] sm:$0xf] }
 0x2a0   :  { %v11042_v37 = vpop.permute.xlu1 %1292 }
 0x2a1   :  { %14600 = vst [vmem:[#allocation111_spill] sm:$0xff] %v11042_v37  ;;  %2694 = vperm.xlu1 %9561, %v2566_v61   ;;  %v3077_v37 = vld [vmem:[#allocation2 + $0x44] sm:$0xf] }
 0x2a2   :  { %v11048_v26 = vpop.permute.xlu0 %1297 }
 0x2a3   :  { %14603 = vst [vmem:[#allocation114_spill] sm:$0xff] %v11048_v26  ;;  %3140 = vperm.xlu0 %9560, %v3072_v50   ;;  %v3078_v26 = vld [vmem:[#allocation2 + $0x48] sm:$0xf] }
 0x2a4   :  { %v11046_v29 = vpop.permute.xlu1 %1302 }
 0x2a5   :  { %14602 = vst [vmem:[#allocation113_spill] sm:$0xff] %v11046_v29  ;;  %3145 = vperm.xlu1 %9561, %v3073_v53   ;;  %v3079_v29 = vld [vmem:[#allocation2 + $0x4c] sm:$0xf] }
 0x2a6   :  { %v11052_v18 = vpop.permute.xlu0 %1307 }
 0x2a7   :  { %14605 = vst [vmem:[#allocation116_spill] sm:$0xff] %v11052_v18  ;;  %3150 = vperm.xlu0 %9560, %v3074_v42   ;;  %v3080_v18 = vld [vmem:[#allocation2 + $0x58] sm:$0xf] }
 0x2a8   :  { %v11050_v21 = vpop.permute.xlu1 %1312 }
 0x2a9   :  { %14604 = vst [vmem:[#allocation115_spill] sm:$0xff] %v11050_v21  ;;  %3155 = vperm.xlu1 %9561, %v3075_v45   ;;  %v3081_v21 = vld [vmem:[#allocation2 + $0x5c] sm:$0xf] }
 0x2aa   :  { %v11056_v58 = vpop.permute.xlu0 %1317 }
 0x2ab   :  { %14607 = vst [vmem:[#allocation118_spill] sm:$0xff] %v11056_v58  ;;  %3160 = vperm.xlu0 %9560, %v3076_v34   ;;  %v3082_v58 = vld [vmem:[#allocation2 + $0x60] sm:$0xf] }
 0x2ac   :  { %v11054_v61 = vpop.permute.xlu1 %1322 }
 0x2ad   :  { %14606 = vst [vmem:[#allocation117_spill] sm:$0xff] %v11054_v61  ;;  %3165 = vperm.xlu1 %9561, %v3077_v37   ;;  %v3083_v61 = vld [vmem:[#allocation2 + $0x64] sm:$0xf] }
 0x2ae   :  { %v11060_v50 = vpop.permute.xlu0 %1327 }
 0x2af   :  { %14609 = vst [vmem:[#allocation120_spill] sm:$0xff] %v11060_v50  ;;  %3170 = vperm.xlu0 %9560, %v3078_v26   ;;  %v3084_v50 = vld [vmem:[#allocation2 + $0x68] sm:$0xf] }
 0x2b0   :  { %v11058_v53 = vpop.permute.xlu1 %1332 }
 0x2b1   :  { %14608 = vst [vmem:[#allocation119_spill] sm:$0xff] %v11058_v53  ;;  %3175 = vperm.xlu1 %9561, %v3079_v29   ;;  %v3085_v53 = vld [vmem:[#allocation2 + $0x6c] sm:$0xf] }
 0x2b2   :  { %v11064_v42 = vpop.permute.xlu0 %1337 }
 0x2b3   :  { %14611 = vst [vmem:[#allocation122_spill] sm:$0xff] %v11064_v42  ;;  %3180 = vperm.xlu0 %9560, %v3080_v18   ;;  %v3086_v42 = vld [vmem:[#allocation2 + $0x70] sm:$0xf] }
 0x2b4   :  { %v11062_v45 = vpop.permute.xlu1 %1342 }
 0x2b5   :  { %14610 = vst [vmem:[#allocation121_spill] sm:$0xff] %v11062_v45  ;;  %3185 = vperm.xlu1 %9561, %v3081_v21   ;;  %v3087_v45 = vld [vmem:[#allocation2 + $0x74] sm:$0xf] }
 0x2b6   :  { %v11068_v34 = vpop.permute.xlu0 %1347 }
 0x2b7   :  { %14613 = vst [vmem:[#allocation124_spill] sm:$0xff] %v11068_v34  ;;  %3190 = vperm.xlu0 %9560, %v3082_v58   ;;  %v1526_v34 = vld [vmem:[#allocation2 + $0x58] sm:$0xf] }
 0x2b8   :  { %v11066_v37 = vpop.permute.xlu1 %1352 }
 0x2b9   :  { %14612 = vst [vmem:[#allocation123_spill] sm:$0xff] %v11066_v37  ;;  %3195 = vperm.xlu1 %9561, %v3083_v61   ;;  %v1527_v37 = vld [vmem:[#allocation2 + $0x5c] sm:$0xf] }
 0x2ba   :  { %v11072_v26 = vpop.permute.xlu0 %1357 }
 0x2bb   :  { %14615 = vst [vmem:[#allocation126_spill] sm:$0xff] %v11072_v26  ;;  %3200 = vperm.xlu0 %9560, %v3084_v50   ;;  %v1528_v26 = vld [vmem:[#allocation2 + $0x60] sm:$0xf] }
 0x2bc   :  { %v11070_v29 = vpop.permute.xlu1 %1362 }
 0x2bd   :  { %14614 = vst [vmem:[#allocation125_spill] sm:$0xff] %v11070_v29  ;;  %3205 = vperm.xlu1 %9561, %v3085_v53   ;;  %v1529_v29 = vld [vmem:[#allocation2 + $0x64] sm:$0xf] }
 0x2be   :  { %v11076_v18 = vpop.permute.xlu0 %1367 }
 0x2bf   :  { %14617 = vst [vmem:[#allocation128_spill] sm:$0xff] %v11076_v18  ;;  %3210 = vperm.xlu0 %9560, %v3086_v42   ;;  %v1530_v18 = vld [vmem:[#allocation2 + $0x68] sm:$0xf] }
 0x2c0   :  { %v11074_v21 = vpop.permute.xlu1 %1372 }
 0x2c1   :  { %14616 = vst [vmem:[#allocation127_spill] sm:$0xff] %v11074_v21  ;;  %3215 = vperm.xlu1 %9561, %v3087_v45   ;;  %v1531_v21 = vld [vmem:[#allocation2 + $0x6c] sm:$0xf] }
 0x2c2   :  { %v11080_v58 = vpop.permute.xlu0 %1578 }
 0x2c3   :  { %1658 = vperm.xlu0 %9560, %v1526_v34  }
 0x2c4   :  { %v11078_v61 = vpop.permute.xlu1 %1583 }
 0x2c5   :  { %1663 = vperm.xlu1 %9561, %v1527_v37  }
 0x2c6   :  { %v11084_v50 = vpop.permute.xlu0 %1588 }
 0x2c7   :  { %1668 = vperm.xlu0 %9560, %v1528_v26  }
 0x2c8   :  { %v11082_v53 = vpop.permute.xlu1 %1593 }
 0x2c9   :  { %1673 = vperm.xlu1 %9561, %v1529_v29  }
 0x2ca   :  { %v11088_v42 = vpop.permute.xlu0 %1598 }
 0x2cb   :  { %1678 = vperm.xlu0 %9560, %v1530_v18  }
 0x2cc   :  { %v11086_v45 = vpop.permute.xlu1 %1603 }
 0x2cd   :  { %1683 = vperm.xlu1 %9561, %v1531_v21  }
 0x2ce   :  { %v11092_v34 = vpop.permute.xlu0 %1608 }
 0x2cf   :  { %1688 = vperm.xlu0 %9560, %v1532_v10  }
 0x2d0   :  { %v11090_v37 = vpop.permute.xlu1 %1613 }
 0x2d1   :  { %1693 = vperm.xlu1 %9561, %v1533_v13  }
 0x2d2   :  { %v11096_v26 = vpop.permute.xlu0 %1618 }
 0x2d3   :  { %1698 = vperm.xlu0 %9560, %v1534_v1  }
 0x2d4   :  { %v11094_v29 = vpop.permute.xlu1 %1623 }
 0x2d5   :  { %1703 = vperm.xlu1 %9561, %v1535_v5  }
 0x2d6   :  { %v11100_v18 = vpop.permute.xlu0 %1628 }
 0x2d7   :  { %1708 = vperm.xlu0 %9560, %v1536_v59  }
 0x2d8   :  { %v11098_v21 = vpop.permute.xlu1 %1633 }
 0x2d9   :  { %1713 = vperm.xlu1 %9561, %v1537_v60  }
 0x2da   :  { %v11104_v10 = vpop.permute.xlu0 %1638 }
 0x2db   :  { %1718 = vperm.xlu0 %9560, %v1538_v55  }
 0x2dc   :  { %v11102_v13 = vpop.permute.xlu1 %1643 }
 0x2dd   :  { %1723 = vperm.xlu1 %9561, %v1539_v56  }
 0x2de   :  { %v11108_v1 = vpop.permute.xlu0 %1648 }
 0x2df   :  { %14619 = vst [vmem:[#allocation130_spill] sm:$0xff] %v11108_v1  ;;  %1728 = vperm.xlu0 %9560, %v1540_v51  }
 0x2e0   :  { %v11106_v5 = vpop.permute.xlu1 %1653 }
 0x2e1   :  { %14618 = vst [vmem:[#allocation129_spill] sm:$0xff] %v11106_v5  ;;  %1733 = vperm.xlu1 %9561, %v1541_v52   ;;  %v8683_v5 = vld [vmem:[#allocation6 + $0x2] ss:$0 sm:$0xff] }
 0x2e2   :  { %v11112_v59 = vpop.permute.xlu0 %2099 }
 0x2e3   :  { %14621 = vst [vmem:[#allocation132_spill] sm:$0xff] %v11112_v59  ;;  %1738 = vperm.xlu0 %9560, %v1542_v47  }
 0x2e4   :  { %v11110_v60 = vpop.permute.xlu1 %2104 }
 0x2e5   :  { %14620 = vst [vmem:[#allocation131_spill] sm:$0xff] %v11110_v60  ;;  %1743 = vperm.xlu1 %9561, %v1543_v48  }
 0x2e6   :  { %v11116_v55 = vpop.permute.xlu0 %2109 }
 0x2e7   :  { %14623 = vst [vmem:[#allocation134_spill] sm:$0xff] %v11116_v55  ;;  %1748 = vperm.xlu0 %9560, %v1544_v43  }
 0x2e8   :  { %v11114_v56 = vpop.permute.xlu1 %2114 }
 0x2e9   :  { %14622 = vst [vmem:[#allocation133_spill] sm:$0xff] %v11114_v56  ;;  %1753 = vperm.xlu1 %9561, %v1545_v44  }
 0x2ea   :  { %v11120_v51 = vpop.permute.xlu0 %2119 }
 0x2eb   :  { %14625 = vst [vmem:[#allocation136_spill] sm:$0xff] %v11120_v51  ;;  %1758 = vperm.xlu0 %9560, %v1546_v39   ;;  %v1552_v51 = vld [vmem:[#allocation2 + $0xd8] sm:$0xf] }
 0x2ec   :  { %v11118_v52 = vpop.permute.xlu1 %2124 }
 0x2ed   :  { %14624 = vst [vmem:[#allocation135_spill] sm:$0xff] %v11118_v52  ;;  %1763 = vperm.xlu1 %9561, %v1547_v40   ;;  %v1553_v52 = vld [vmem:[#allocation2 + $0xdc] sm:$0xf] }
 0x2ee   :  { %v11124_v47 = vpop.permute.xlu0 %2129 }
 0x2ef   :  { %14627 = vst [vmem:[#allocation138_spill] sm:$0xff] %v11124_v47  ;;  %1768 = vperm.xlu0 %9560, %v1548_v35   ;;  %v1554_v47 = vld [vmem:[#allocation2 + $0xe0] sm:$0xf] }
 0x2f0   :  { %v11122_v48 = vpop.permute.xlu1 %2134 }
 0x2f1   :  { %14626 = vst [vmem:[#allocation137_spill] sm:$0xff] %v11122_v48  ;;  %1773 = vperm.xlu1 %9561, %v1549_v36   ;;  %v1555_v48 = vld [vmem:[#allocation2 + $0xe4] sm:$0xf] }
 0x2f2   :  { %v11128_v43 = vpop.permute.xlu0 %2139 }
 0x2f3   :  { %14629 = vst [vmem:[#allocation140_spill] sm:$0xff] %v11128_v43  ;;  %1778 = vperm.xlu0 %9560, %v1550_v31   ;;  %v1556_v43 = vld [vmem:[#allocation2 + $0xe8] sm:$0xf] }
 0x2f4   :  { %v11126_v44 = vpop.permute.xlu1 %2144 }
 0x2f5   :  { %14628 = vst [vmem:[#allocation139_spill] sm:$0xff] %v11126_v44  ;;  %1783 = vperm.xlu1 %9561, %v1551_v32   ;;  %v1557_v44 = vld [vmem:[#allocation2 + $0xec] sm:$0xf] }
 0x2f6   :  { %v11132_v39 = vpop.permute.xlu0 %2149 }
 0x2f7   :  { %14631 = vst [vmem:[#allocation142_spill] sm:$0xff] %v11132_v39  ;;  %1788 = vperm.xlu0 %9560, %v1552_v51   ;;  %v3593_v39 = vld [vmem:[#allocation2 + $0x50] sm:$0xf] }
 0x2f8   :  { %v11130_v40 = vpop.permute.xlu1 %2154 }
 0x2f9   :  { %14630 = vst [vmem:[#allocation141_spill] sm:$0xff] %v11130_v40  ;;  %1793 = vperm.xlu1 %9561, %v1553_v52   ;;  %v3594_v40 = vld [vmem:[#allocation2 + $0x54] sm:$0xf] }
 0x2fa   :  { %v11136_v35 = vpop.permute.xlu0 %2159 }
 0x2fb   :  { %14633 = vst [vmem:[#allocation144_spill] sm:$0xff] %v11136_v35  ;;  %1798 = vperm.xlu0 %9560, %v1554_v47   ;;  %v3595_v35 = vld [vmem:[#allocation2 + $0x58] sm:$0xf] }
 0x2fc   :  { %v11134_v36 = vpop.permute.xlu1 %2164 }
 0x2fd   :  { %14632 = vst [vmem:[#allocation143_spill] sm:$0xff] %v11134_v36  ;;  %1803 = vperm.xlu1 %9561, %v1555_v48   ;;  %v3596_v36 = vld [vmem:[#allocation2 + $0x5c] sm:$0xf] }
 0x2fe   :  { %v11140_v31 = vpop.permute.xlu0 %2169 }
 0x2ff   :  { %14635 = vst [vmem:[#allocation146_spill] sm:$0xff] %v11140_v31  ;;  %1808 = vperm.xlu0 %9560, %v1556_v43   ;;  %v3597_v31 = vld [vmem:[#allocation2 + $0x60] sm:$0xf] }
 0x300   :  { %v11138_v32 = vpop.permute.xlu1 %2174 }
 0x301   :  { %14634 = vst [vmem:[#allocation145_spill] sm:$0xff] %v11138_v32  ;;  %1813 = vperm.xlu1 %9561, %v1557_v44   ;;  %v3598_v32 = vld [vmem:[#allocation2 + $0x64] sm:$0xf] }
 0x302   :  { %v11144_v51 = vpop.permute.xlu0 %2619 }
 0x303   :  { %14637 = vst [vmem:[#allocation148_spill] sm:$0xff] %v11144_v51  ;;  %3661 = vperm.xlu0 %9560, %v3593_v39   ;;  %v3599_v51 = vld [vmem:[#allocation2 + $0x68] sm:$0xf] }
 0x304   :  { %v11142_v52 = vpop.permute.xlu1 %2624 }
 0x305   :  { %14636 = vst [vmem:[#allocation147_spill] sm:$0xff] %v11142_v52  ;;  %3666 = vperm.xlu1 %9561, %v3594_v40   ;;  %v3600_v52 = vld [vmem:[#allocation2 + $0x6c] sm:$0xf] }
 0x306   :  { %v11148_v47 = vpop.permute.xlu0 %2629 }
 0x307   :  { %14639 = vst [vmem:[#allocation150_spill] sm:$0xff] %v11148_v47  ;;  %3671 = vperm.xlu0 %9560, %v3595_v35   ;;  %v3601_v47 = vld [vmem:[#allocation2 + $0x78] sm:$0xf] }
 0x308   :  { %v11146_v48 = vpop.permute.xlu1 %2634 }
 0x309   :  { %14638 = vst [vmem:[#allocation149_spill] sm:$0xff] %v11146_v48  ;;  %3676 = vperm.xlu1 %9561, %v3596_v36   ;;  %v3602_v48 = vld [vmem:[#allocation2 + $0x7c] sm:$0xf] }
 0x30a   :  { %v11152_v43 = vpop.permute.xlu0 %2639 }
 0x30b   :  { %14641 = vst [vmem:[#allocation152_spill] sm:$0xff] %v11152_v43  ;;  %3681 = vperm.xlu0 %9560, %v3597_v31   ;;  %v3603_v43 = vld [vmem:[#allocation2 + $0x80] sm:$0xf] }
 0x30c   :  { %v11150_v44 = vpop.permute.xlu1 %2644 }
 0x30d   :  { %14640 = vst [vmem:[#allocation151_spill] sm:$0xff] %v11150_v44  ;;  %3686 = vperm.xlu1 %9561, %v3598_v32   ;;  %v3604_v44 = vld [vmem:[#allocation2 + $0x84] sm:$0xf] }
 0x30e   :  { %v11156_v39 = vpop.permute.xlu0 %2649 }
 0x30f   :  { %14643 = vst [vmem:[#allocation154_spill] sm:$0xff] %v11156_v39  ;;  %3691 = vperm.xlu0 %9560, %v3599_v51   ;;  %v3605_v39 = vld [vmem:[#allocation2 + $0x88] sm:$0xf] }
 0x310   :  { %v11154_v40 = vpop.permute.xlu1 %2654 }
 0x311   :  { %14642 = vst [vmem:[#allocation153_spill] sm:$0xff] %v11154_v40  ;;  %3696 = vperm.xlu1 %9561, %v3600_v52   ;;  %v3606_v40 = vld [vmem:[#allocation2 + $0x8c] sm:$0xf] }
 0x312   :  { %v11160_v35 = vpop.permute.xlu0 %2659 }
 0x313   :  { %14645 = vst [vmem:[#allocation156_spill] sm:$0xff] %v11160_v35  ;;  %3701 = vperm.xlu0 %9560, %v3601_v47   ;;  %v3607_v35 = vld [vmem:[#allocation2 + $0x90] sm:$0xf] }
 0x314   :  { %v11158_v36 = vpop.permute.xlu1 %2664 }
 0x315   :  { %14644 = vst [vmem:[#allocation155_spill] sm:$0xff] %v11158_v36  ;;  %3706 = vperm.xlu1 %9561, %v3602_v48   ;;  %v3608_v36 = vld [vmem:[#allocation2 + $0x94] sm:$0xf] }
 0x316   :  { %v11164_v31 = vpop.permute.xlu0 %2669 }
 0x317   :  { %14647 = vst [vmem:[#allocation158_spill] sm:$0xff] %v11164_v31  ;;  %3711 = vperm.xlu0 %9560, %v3603_v43   ;;  %v2047_v31 = vld [vmem:[#allocation2 + $0x78] sm:$0xf] }
 0x318   :  { %v11162_v32 = vpop.permute.xlu1 %2674 }
 0x319   :  { %14646 = vst [vmem:[#allocation157_spill] sm:$0xff] %v11162_v32  ;;  %3716 = vperm.xlu1 %9561, %v3604_v44   ;;  %v2048_v32 = vld [vmem:[#allocation2 + $0x7c] sm:$0xf] }
 0x31a   :  { %v11168_v51 = vpop.permute.xlu0 %2679 }
 0x31b   :  { %14649 = vst [vmem:[#allocation160_spill] sm:$0xff] %v11168_v51  ;;  %3721 = vperm.xlu0 %9560, %v3605_v39   ;;  %v2049_v51 = vld [vmem:[#allocation2 + $0x80] sm:$0xf] }
 0x31c   :  { %v11166_v52 = vpop.permute.xlu1 %2684 }
 0x31d   :  { %14648 = vst [vmem:[#allocation159_spill] sm:$0xff] %v11166_v52  ;;  %3726 = vperm.xlu1 %9561, %v3606_v40   ;;  %v2050_v52 = vld [vmem:[#allocation2 + $0x84] sm:$0xf] }
 0x31e   :  { %v11172_v47 = vpop.permute.xlu0 %2689 }
 0x31f   :  { %14651 = vst [vmem:[#allocation162_spill] sm:$0xff] %v11172_v47  ;;  %3731 = vperm.xlu0 %9560, %v3607_v35   ;;  %v2051_v47 = vld [vmem:[#allocation2 + $0x88] sm:$0xf] }
 0x320   :  { %v11170_v48 = vpop.permute.xlu1 %2694 }
 0x321   :  { %14650 = vst [vmem:[#allocation161_spill] sm:$0xff] %v11170_v48  ;;  %3736 = vperm.xlu1 %9561, %v3608_v36   ;;  %v2052_v48 = vld [vmem:[#allocation2 + $0x8c] sm:$0xf] }
 0x322   :  { %v11176_v43 = vpop.permute.xlu0 %3140 }
 0x323   :  { %14653 = vst [vmem:[#allocation164_spill] sm:$0xff] %v11176_v43  ;;  %2179 = vperm.xlu0 %9560, %v2047_v31   ;;  %v2053_v43 = vld [vmem:[#allocation2 + $0x90] sm:$0xf] }
 0x324   :  { %v11174_v44 = vpop.permute.xlu1 %3145 }
 0x325   :  { %14652 = vst [vmem:[#allocation163_spill] sm:$0xff] %v11174_v44  ;;  %2184 = vperm.xlu1 %9561, %v2048_v32   ;;  %v2054_v44 = vld [vmem:[#allocation2 + $0x94] sm:$0xf] }
 0x326   :  { %v11180_v39 = vpop.permute.xlu0 %3150 }
 0x327   :  { %14655 = vst [vmem:[#allocation166_spill] sm:$0xff] %v11180_v39  ;;  %2189 = vperm.xlu0 %9560, %v2049_v51   ;;  %v2055_v39 = vld [vmem:[#allocation2 + $0xa0] sm:$0xf] }
 0x328   :  { %v11178_v40 = vpop.permute.xlu1 %3155 }
 0x329   :  { %14654 = vst [vmem:[#allocation165_spill] sm:$0xff] %v11178_v40  ;;  %2194 = vperm.xlu1 %9561, %v2050_v52   ;;  %v2056_v40 = vld [vmem:[#allocation2 + $0xa4] sm:$0xf] }
 0x32a   :  { %v11184_v35 = vpop.permute.xlu0 %3160 }
 0x32b   :  { %14657 = vst [vmem:[#allocation168_spill] sm:$0xff] %v11184_v35  ;;  %2199 = vperm.xlu0 %9560, %v2051_v47   ;;  %v2057_v35 = vld [vmem:[#allocation2 + $0xa8] sm:$0xf] }
 0x32c   :  { %v11182_v36 = vpop.permute.xlu1 %3165 }
 0x32d   :  { %14656 = vst [vmem:[#allocation167_spill] sm:$0xff] %v11182_v36  ;;  %2204 = vperm.xlu1 %9561, %v2052_v48   ;;  %v2058_v36 = vld [vmem:[#allocation2 + $0xac] sm:$0xf] }
 0x32e   :  { %v11188_v31 = vpop.permute.xlu0 %3170 }
 0x32f   :  { %14659 = vst [vmem:[#allocation170_spill] sm:$0xff] %v11188_v31  ;;  %2209 = vperm.xlu0 %9560, %v2053_v43   ;;  %v2059_v31 = vld [vmem:[#allocation2 + $0xb0] sm:$0xf] }
 0x330   :  { %v11186_v32 = vpop.permute.xlu1 %3175 }
 0x331   :  { %14658 = vst [vmem:[#allocation169_spill] sm:$0xff] %v11186_v32  ;;  %2214 = vperm.xlu1 %9561, %v2054_v44   ;;  %v2060_v32 = vld [vmem:[#allocation2 + $0xb4] sm:$0xf] }
 0x332   :  { %v11192_v51 = vpop.permute.xlu0 %3180 }
 0x333   :  { %14661 = vst [vmem:[#allocation172_spill] sm:$0xff] %v11192_v51  ;;  %2219 = vperm.xlu0 %9560, %v2055_v39   ;;  %v2061_v51 = vld [vmem:[#allocation2 + $0xb8] sm:$0xf] }
 0x334   :  { %v11190_v52 = vpop.permute.xlu1 %3185 }
 0x335   :  { %14660 = vst [vmem:[#allocation171_spill] sm:$0xff] %v11190_v52  ;;  %2224 = vperm.xlu1 %9561, %v2056_v40   ;;  %v2062_v52 = vld [vmem:[#allocation2 + $0xbc] sm:$0xf] }
 0x336   :  { %v11196_v47 = vpop.permute.xlu0 %3190 }
 0x337   :  { %14663 = vst [vmem:[#allocation174_spill] sm:$0xff] %v11196_v47  ;;  %2229 = vperm.xlu0 %9560, %v2057_v35   ;;  %v2063_v47 = vld [vmem:[#allocation2 + $0xc8] sm:$0xf] }
 0x338   :  { %v11194_v48 = vpop.permute.xlu1 %3195 }
 0x339   :  { %14662 = vst [vmem:[#allocation173_spill] sm:$0xff] %v11194_v48  ;;  %2234 = vperm.xlu1 %9561, %v2058_v36   ;;  %v2064_v48 = vld [vmem:[#allocation2 + $0xcc] sm:$0xf] }
 0x33a   :  { %v11200_v43 = vpop.permute.xlu0 %3200 }
 0x33b   :  { %14665 = vst [vmem:[#allocation176_spill] sm:$0xff] %v11200_v43  ;;  %2239 = vperm.xlu0 %9560, %v2059_v31   ;;  %v2065_v43 = vld [vmem:[#allocation2 + $0xd0] sm:$0xf] }
 0x33c   :  { %v11198_v44 = vpop.permute.xlu1 %3205 }
 0x33d   :  { %14664 = vst [vmem:[#allocation175_spill] sm:$0xff] %v11198_v44  ;;  %2244 = vperm.xlu1 %9561, %v2060_v32   ;;  %v2066_v44 = vld [vmem:[#allocation2 + $0xd4] sm:$0xf] }
 0x33e   :  { %v11204_v39 = vpop.permute.xlu0 %3210 }
 0x33f   :  { %14667 = vst [vmem:[#allocation178_spill] sm:$0xff] %v11204_v39  ;;  %2249 = vperm.xlu0 %9560, %v2061_v51   ;;  %v2067_v39 = vld [vmem:[#allocation2 + $0xd8] sm:$0xf] }
 0x340   :  { %v11202_v40 = vpop.permute.xlu1 %3215 }
 0x341   :  { %14666 = vst [vmem:[#allocation177_spill] sm:$0xff] %v11202_v40  ;;  %2254 = vperm.xlu1 %9561, %v2062_v52   ;;  %v2068_v40 = vld [vmem:[#allocation2 + $0xdc] sm:$0xf] }
 0x342   :  { %v11208_v35 = vpop.permute.xlu0 %1658 }
 0x343   :  { %14669 = vst [vmem:[#allocation180_spill] sm:$0xff] %v11208_v35  ;;  %2259 = vperm.xlu0 %9560, %v2063_v47   ;;  %v2069_v35 = vld [vmem:[#allocation2 + $0xe0] sm:$0xf] }
 0x344   :  { %v11206_v36 = vpop.permute.xlu1 %1663 }
 0x345   :  { %14668 = vst [vmem:[#allocation179_spill] sm:$0xff] %v11206_v36  ;;  %2264 = vperm.xlu1 %9561, %v2064_v48   ;;  %v2070_v36 = vld [vmem:[#allocation2 + $0xe4] sm:$0xf] }
 0x346   :  { %v11212_v31 = vpop.permute.xlu0 %1668 }
 0x347   :  { %14671 = vst [vmem:[#allocation182_spill] sm:$0xff] %v11212_v31  ;;  %2269 = vperm.xlu0 %9560, %v2065_v43   ;;  %v2071_v31 = vld [vmem:[#allocation2 + $0xf0] sm:$0xf] }
 0x348   :  { %v11210_v32 = vpop.permute.xlu1 %1673 }
 0x349   :  { %14670 = vst [vmem:[#allocation181_spill] sm:$0xff] %v11210_v32  ;;  %2274 = vperm.xlu1 %9561, %v2066_v44   ;;  %v2072_v32 = vld [vmem:[#allocation2 + $0xf4] sm:$0xf] }
 0x34a   :  { %v11216_v51 = vpop.permute.xlu0 %1678 }
 0x34b   :  { %14673 = vst [vmem:[#allocation184_spill] sm:$0xff] %v11216_v51  ;;  %2279 = vperm.xlu0 %9560, %v2067_v39   ;;  %v2073_v51 = vld [vmem:[#allocation2 + $0xf8] sm:$0xf] }
 0x34c   :  { %v11214_v52 = vpop.permute.xlu1 %1683 }
 0x34d   :  { %14672 = vst [vmem:[#allocation183_spill] sm:$0xff] %v11214_v52  ;;  %2284 = vperm.xlu1 %9561, %v2068_v40   ;;  %v2074_v52 = vld [vmem:[#allocation2 + $0xfc] sm:$0xf] }
 0x34e   :  { %v11220_v47 = vpop.permute.xlu0 %1688 }
 0x34f   :  { %14675 = vst [vmem:[#allocation186_spill] sm:$0xff] %v11220_v47  ;;  %2289 = vperm.xlu0 %9560, %v2069_v35   ;;  %v2075_v47 = vld [vmem:[#allocation2 + $0x100] sm:$0xf] }
 0x350   :  { %v11218_v48 = vpop.permute.xlu1 %1693 }
 0x351   :  { %14674 = vst [vmem:[#allocation185_spill] sm:$0xff] %v11218_v48  ;;  %2294 = vperm.xlu1 %9561, %v2070_v36   ;;  %v2076_v48 = vld [vmem:[#allocation2 + $0x104] sm:$0xf] }
 0x352   :  { %v11224_v43 = vpop.permute.xlu0 %1698 }
 0x353   :  { %14677 = vst [vmem:[#allocation188_spill] sm:$0xff] %v11224_v43  ;;  %2299 = vperm.xlu0 %9560, %v2071_v31   ;;  %v2077_v43 = vld [vmem:[#allocation2 + $0x108] sm:$0xf] }
 0x354   :  { %v11222_v44 = vpop.permute.xlu1 %1703 }
 0x355   :  { %14676 = vst [vmem:[#allocation187_spill] sm:$0xff] %v11222_v44  ;;  %2304 = vperm.xlu1 %9561, %v2072_v32   ;;  %v2078_v44 = vld [vmem:[#allocation2 + $0x10c] sm:$0xf] }
 0x356   :  { %v11228_v39 = vpop.permute.xlu0 %1708 }
 0x357   :  { %14679 = vst [vmem:[#allocation190_spill] sm:$0xff] %v11228_v39  ;;  %2309 = vperm.xlu0 %9560, %v2073_v51   ;;  %v4114_v39 = vld [vmem:[#allocation2 + $0x54] sm:$0xf] }
 0x358   :  { %v11226_v40 = vpop.permute.xlu1 %1713 }
 0x359   :  { %14678 = vst [vmem:[#allocation189_spill] sm:$0xff] %v11226_v40  ;;  %2314 = vperm.xlu1 %9561, %v2074_v52   ;;  %v4115_v40 = vld [vmem:[#allocation2 + $0x58] sm:$0xf] }
 0x35a   :  { %v11232_v35 = vpop.permute.xlu0 %1718 }
 0x35b   :  { %14681 = vst [vmem:[#allocation192_spill] sm:$0xff] %v11232_v35  ;;  %2319 = vperm.xlu0 %9560, %v2075_v47   ;;  %v4116_v35 = vld [vmem:[#allocation2 + $0x5c] sm:$0xf] }
 0x35c   :  { %v11230_v36 = vpop.permute.xlu1 %1723 }
 0x35d   :  { %14680 = vst [vmem:[#allocation191_spill] sm:$0xff] %v11230_v36  ;;  %2324 = vperm.xlu1 %9561, %v2076_v48   ;;  %v4117_v36 = vld [vmem:[#allocation2 + $0x60] sm:$0xf] }
 0x35e   :  { %v11236_v31 = vpop.permute.xlu0 %1728 }
 0x35f   :  { %14683 = vst [vmem:[#allocation194_spill] sm:$0xff] %v11236_v31  ;;  %2329 = vperm.xlu0 %9560, %v2077_v43   ;;  %v4118_v31 = vld [vmem:[#allocation2 + $0x64] sm:$0xf] }
 0x360   :  { %v11234_v32 = vpop.permute.xlu1 %1733 }
 0x361   :  { %14682 = vst [vmem:[#allocation193_spill] sm:$0xff] %v11234_v32  ;;  %2334 = vperm.xlu1 %9561, %v2078_v44   ;;  %v4119_v32 = vld [vmem:[#allocation2 + $0x68] sm:$0xf] }
 0x362   :  { %v11240_v51 = vpop.permute.xlu0 %1738 }
 0x363   :  { %14685 = vst [vmem:[#allocation196_spill] sm:$0xff] %v11240_v51  ;;  %4182 = vperm.xlu0 %9560, %v4114_v39   ;;  %v4120_v51 = vld [vmem:[#allocation2 + $0x6c] sm:$0xf] }
 0x364   :  { %v11238_v52 = vpop.permute.xlu1 %1743 }
 0x365   :  { %14684 = vst [vmem:[#allocation195_spill] sm:$0xff] %v11238_v52  ;;  %4187 = vperm.xlu1 %9561, %v4115_v40   ;;  %v4121_v52 = vld [vmem:[#allocation2 + $0x70] sm:$0xf] }
 0x366   :  { %v11244_v47 = vpop.permute.xlu0 %1748 }
 0x367   :  { %14687 = vst [vmem:[#allocation198_spill] sm:$0xff] %v11244_v47  ;;  %4192 = vperm.xlu0 %9560, %v4116_v35   ;;  %v4122_v47 = vld [vmem:[#allocation2 + $0x7c] sm:$0xf] }
 0x368   :  { %v11242_v48 = vpop.permute.xlu1 %1753 }
 0x369   :  { %14686 = vst [vmem:[#allocation197_spill] sm:$0xff] %v11242_v48  ;;  %4197 = vperm.xlu1 %9561, %v4117_v36   ;;  %v4123_v48 = vld [vmem:[#allocation2 + $0x80] sm:$0xf] }
 0x36a   :  { %v11248_v43 = vpop.permute.xlu0 %1758 }
 0x36b   :  { %14689 = vst [vmem:[#allocation200_spill] sm:$0xff] %v11248_v43  ;;  %4202 = vperm.xlu0 %9560, %v4118_v31   ;;  %v4124_v43 = vld [vmem:[#allocation2 + $0x84] sm:$0xf] }
 0x36c   :  { %v11246_v44 = vpop.permute.xlu1 %1763 }
 0x36d   :  { %14688 = vst [vmem:[#allocation199_spill] sm:$0xff] %v11246_v44  ;;  %4207 = vperm.xlu1 %9561, %v4119_v32   ;;  %v4125_v44 = vld [vmem:[#allocation2 + $0x88] sm:$0xf] }
 0x36e   :  { %v11252_v39 = vpop.permute.xlu0 %1768 }
 0x36f   :  { %14691 = vst [vmem:[#allocation202_spill] sm:$0xff] %v11252_v39  ;;  %4212 = vperm.xlu0 %9560, %v4120_v51   ;;  %v4126_v39 = vld [vmem:[#allocation2 + $0x8c] sm:$0xf] }
 0x370   :  { %v11250_v40 = vpop.permute.xlu1 %1773 }
 0x371   :  { %14690 = vst [vmem:[#allocation201_spill] sm:$0xff] %v11250_v40  ;;  %4217 = vperm.xlu1 %9561, %v4121_v52   ;;  %v4127_v40 = vld [vmem:[#allocation2 + $0x90] sm:$0xf] }
 0x372   :  { %v11256_v35 = vpop.permute.xlu0 %1778 }
 0x373   :  { %14693 = vst [vmem:[#allocation204_spill] sm:$0xff] %v11256_v35  ;;  %4222 = vperm.xlu0 %9560, %v4122_v47   ;;  %v4128_v35 = vld [vmem:[#allocation2 + $0x94] sm:$0xf] }
 0x374   :  { %v11254_v36 = vpop.permute.xlu1 %1783 }
 0x375   :  { %14692 = vst [vmem:[#allocation203_spill] sm:$0xff] %v11254_v36  ;;  %4227 = vperm.xlu1 %9561, %v4123_v48   ;;  %v4129_v36 = vld [vmem:[#allocation2 + $0x98] sm:$0xf] }
 0x376   :  { %v11260_v31 = vpop.permute.xlu0 %1788 }
 0x377   :  { %14695 = vst [vmem:[#allocation206_spill] sm:$0xff] %v11260_v31  ;;  %4232 = vperm.xlu0 %9560, %v4124_v43   ;;  %v2567_v31 = vld [vmem:[#allocation2 + $0x7c] sm:$0xf] }
 0x378   :  { %v11258_v32 = vpop.permute.xlu1 %1793 }
 0x379   :  { %14694 = vst [vmem:[#allocation205_spill] sm:$0xff] %v11258_v32  ;;  %4237 = vperm.xlu1 %9561, %v4125_v44   ;;  %v2568_v32 = vld [vmem:[#allocation2 + $0x80] sm:$0xf] }
 0x37a   :  { %v11264_v51 = vpop.permute.xlu0 %1798 }
 0x37b   :  { %14697 = vst [vmem:[#allocation208_spill] sm:$0xff] %v11264_v51  ;;  %4242 = vperm.xlu0 %9560, %v4126_v39   ;;  %v2569_v51 = vld [vmem:[#allocation2 + $0x84] sm:$0xf] }
 0x37c   :  { %v11262_v52 = vpop.permute.xlu1 %1803 }
 0x37d   :  { %14696 = vst [vmem:[#allocation207_spill] sm:$0xff] %v11262_v52  ;;  %4247 = vperm.xlu1 %9561, %v4127_v40   ;;  %v2570_v52 = vld [vmem:[#allocation2 + $0x88] sm:$0xf] }
 0x37e   :  { %v11268_v47 = vpop.permute.xlu0 %1808 }
 0x37f   :  { %14699 = vst [vmem:[#allocation210_spill] sm:$0xff] %v11268_v47  ;;  %4252 = vperm.xlu0 %9560, %v4128_v35   ;;  %v2571_v47 = vld [vmem:[#allocation2 + $0x8c] sm:$0xf] }
 0x380   :  { %v11266_v48 = vpop.permute.xlu1 %1813 }
 0x381   :  { %14698 = vst [vmem:[#allocation209_spill] sm:$0xff] %v11266_v48  ;;  %4257 = vperm.xlu1 %9561, %v4129_v36   ;;  %v2572_v48 = vld [vmem:[#allocation2 + $0x90] sm:$0xf] }
 0x382   :  { %v11272_v43 = vpop.permute.xlu0 %3661 }
 0x383   :  { %14701 = vst [vmem:[#allocation212_spill] sm:$0xff] %v11272_v43  ;;  %2699 = vperm.xlu0 %9560, %v2567_v31   ;;  %v2573_v43 = vld [vmem:[#allocation2 + $0x94] sm:$0xf] }
 0x384   :  { %v11270_v44 = vpop.permute.xlu1 %3666 }
 0x385   :  { %14700 = vst [vmem:[#allocation211_spill] sm:$0xff] %v11270_v44  ;;  %2704 = vperm.xlu1 %9561, %v2568_v32   ;;  %v2574_v44 = vld [vmem:[#allocation2 + $0x98] sm:$0xf] }
 0x386   :  { %v11276_v39 = vpop.permute.xlu0 %3671 }
 0x387   :  { %14703 = vst [vmem:[#allocation214_spill] sm:$0xff] %v11276_v39  ;;  %2709 = vperm.xlu0 %9560, %v2569_v51   ;;  %v2575_v39 = vld [vmem:[#allocation2 + $0xa4] sm:$0xf] }
 0x388   :  { %v11274_v40 = vpop.permute.xlu1 %3676 }
 0x389   :  { %14702 = vst [vmem:[#allocation213_spill] sm:$0xff] %v11274_v40  ;;  %2714 = vperm.xlu1 %9561, %v2570_v52   ;;  %v2576_v40 = vld [vmem:[#allocation2 + $0xa8] sm:$0xf] }
 0x38a   :  { %v11280_v35 = vpop.permute.xlu0 %3681 }
 0x38b   :  { %14705 = vst [vmem:[#allocation216_spill] sm:$0xff] %v11280_v35  ;;  %2719 = vperm.xlu0 %9560, %v2571_v47   ;;  %v2577_v35 = vld [vmem:[#allocation2 + $0xac] sm:$0xf] }
 0x38c   :  { %v11278_v36 = vpop.permute.xlu1 %3686 }
 0x38d   :  { %14704 = vst [vmem:[#allocation215_spill] sm:$0xff] %v11278_v36  ;;  %2724 = vperm.xlu1 %9561, %v2572_v48   ;;  %v2578_v36 = vld [vmem:[#allocation2 + $0xb0] sm:$0xf] }
 0x38e   :  { %v11284_v31 = vpop.permute.xlu0 %3691 }
 0x38f   :  { %14707 = vst [vmem:[#allocation218_spill] sm:$0xff] %v11284_v31  ;;  %2729 = vperm.xlu0 %9560, %v2573_v43   ;;  %v2579_v31 = vld [vmem:[#allocation2 + $0xb4] sm:$0xf] }
 0x390   :  { %v11282_v32 = vpop.permute.xlu1 %3696 }
 0x391   :  { %14706 = vst [vmem:[#allocation217_spill] sm:$0xff] %v11282_v32  ;;  %2734 = vperm.xlu1 %9561, %v2574_v44   ;;  %v2580_v32 = vld [vmem:[#allocation2 + $0xb8] sm:$0xf] }
 0x392   :  { %v11288_v51 = vpop.permute.xlu0 %3701 }
 0x393   :  { %14709 = vst [vmem:[#allocation220_spill] sm:$0xff] %v11288_v51  ;;  %2739 = vperm.xlu0 %9560, %v2575_v39   ;;  %v2581_v51 = vld [vmem:[#allocation2 + $0xbc] sm:$0xf] }
 0x394   :  { %v11286_v52 = vpop.permute.xlu1 %3706 }
 0x395   :  { %14708 = vst [vmem:[#allocation219_spill] sm:$0xff] %v11286_v52  ;;  %2744 = vperm.xlu1 %9561, %v2576_v40   ;;  %v2582_v52 = vld [vmem:[#allocation2 + $0xc0] sm:$0xf] }
 0x396   :  { %v11292_v47 = vpop.permute.xlu0 %3711 }
 0x397   :  { %14711 = vst [vmem:[#allocation222_spill] sm:$0xff] %v11292_v47  ;;  %2749 = vperm.xlu0 %9560, %v2577_v35   ;;  %v2583_v47 = vld [vmem:[#allocation2 + $0xcc] sm:$0xf] }
 0x398   :  { %v11290_v48 = vpop.permute.xlu1 %3716 }
 0x399   :  { %14710 = vst [vmem:[#allocation221_spill] sm:$0xff] %v11290_v48  ;;  %2754 = vperm.xlu1 %9561, %v2578_v36   ;;  %v2584_v48 = vld [vmem:[#allocation2 + $0xd0] sm:$0xf] }
 0x39a   :  { %v11296_v43 = vpop.permute.xlu0 %3721 }
 0x39b   :  { %14713 = vst [vmem:[#allocation224_spill] sm:$0xff] %v11296_v43  ;;  %2759 = vperm.xlu0 %9560, %v2579_v31   ;;  %v2585_v43 = vld [vmem:[#allocation2 + $0xd4] sm:$0xf] }
 0x39c   :  { %v11294_v44 = vpop.permute.xlu1 %3726 }
 0x39d   :  { %14712 = vst [vmem:[#allocation223_spill] sm:$0xff] %v11294_v44  ;;  %2764 = vperm.xlu1 %9561, %v2580_v32   ;;  %v2586_v44 = vld [vmem:[#allocation2 + $0xd8] sm:$0xf] }
 0x39e   :  { %v11300_v39 = vpop.permute.xlu0 %3731 }
 0x39f   :  { %14715 = vst [vmem:[#allocation226_spill] sm:$0xff] %v11300_v39  ;;  %2769 = vperm.xlu0 %9560, %v2581_v51   ;;  %v2587_v39 = vld [vmem:[#allocation2 + $0xdc] sm:$0xf] }
 0x3a0   :  { %v11298_v40 = vpop.permute.xlu1 %3736 }
 0x3a1   :  { %14714 = vst [vmem:[#allocation225_spill] sm:$0xff] %v11298_v40  ;;  %2774 = vperm.xlu1 %9561, %v2582_v52   ;;  %v2588_v40 = vld [vmem:[#allocation2 + $0xe0] sm:$0xf] }
 0x3a2   :  { %v11304_v35 = vpop.permute.xlu0 %2179 }
 0x3a3   :  { %14717 = vst [vmem:[#allocation228_spill] sm:$0xff] %v11304_v35  ;;  %2779 = vperm.xlu0 %9560, %v2583_v47   ;;  %v2589_v35 = vld [vmem:[#allocation2 + $0xe4] sm:$0xf] }
 0x3a4   :  { %v11302_v36 = vpop.permute.xlu1 %2184 }
 0x3a5   :  { %14716 = vst [vmem:[#allocation227_spill] sm:$0xff] %v11302_v36  ;;  %2784 = vperm.xlu1 %9561, %v2584_v48   ;;  %v2590_v36 = vld [vmem:[#allocation2 + $0xe8] sm:$0xf] }
 0x3a6   :  { %v11308_v31 = vpop.permute.xlu0 %2189 }
 0x3a7   :  { %14719 = vst [vmem:[#allocation230_spill] sm:$0xff] %v11308_v31  ;;  %2789 = vperm.xlu0 %9560, %v2585_v43   ;;  %v2591_v31 = vld [vmem:[#allocation2 + $0xf4] sm:$0xf] }
 0x3a8   :  { %v11306_v32 = vpop.permute.xlu1 %2194 }
 0x3a9   :  { %14718 = vst [vmem:[#allocation229_spill] sm:$0xff] %v11306_v32  ;;  %2794 = vperm.xlu1 %9561, %v2586_v44   ;;  %v2592_v32 = vld [vmem:[#allocation2 + $0xf8] sm:$0xf] }
 0x3aa   :  { %v11312_v51 = vpop.permute.xlu0 %2199 }
 0x3ab   :  { %14721 = vst [vmem:[#allocation232_spill] sm:$0xff] %v11312_v51  ;;  %2799 = vperm.xlu0 %9560, %v2587_v39   ;;  %v2593_v51 = vld [vmem:[#allocation2 + $0xfc] sm:$0xf] }
 0x3ac   :  { %v11310_v52 = vpop.permute.xlu1 %2204 }
 0x3ad   :  { %14720 = vst [vmem:[#allocation231_spill] sm:$0xff] %v11310_v52  ;;  %2804 = vperm.xlu1 %9561, %v2588_v40   ;;  %v2594_v52 = vld [vmem:[#allocation2 + $0x100] sm:$0xf] }
 0x3ae   :  { %v11316_v47 = vpop.permute.xlu0 %2209 }
 0x3af   :  { %14723 = vst [vmem:[#allocation234_spill] sm:$0xff] %v11316_v47  ;;  %2809 = vperm.xlu0 %9560, %v2589_v35   ;;  %v2595_v47 = vld [vmem:[#allocation2 + $0x104] sm:$0xf] }
 0x3b0   :  { %v11314_v48 = vpop.permute.xlu1 %2214 }
 0x3b1   :  { %14722 = vst [vmem:[#allocation233_spill] sm:$0xff] %v11314_v48  ;;  %2814 = vperm.xlu1 %9561, %v2590_v36   ;;  %v2596_v48 = vld [vmem:[#allocation2 + $0x108] sm:$0xf] }
 0x3b2   :  { %v11320_v43 = vpop.permute.xlu0 %2219 }
 0x3b3   :  { %14725 = vst [vmem:[#allocation236_spill] sm:$0xff] %v11320_v43  ;;  %2819 = vperm.xlu0 %9560, %v2591_v31   ;;  %v2597_v43 = vld [vmem:[#allocation2 + $0x10c] sm:$0xf] }
 0x3b4   :  { %v11318_v44 = vpop.permute.xlu1 %2224 }
 0x3b5   :  { %14724 = vst [vmem:[#allocation235_spill] sm:$0xff] %v11318_v44  ;;  %2824 = vperm.xlu1 %9561, %v2592_v32   ;;  %v2598_v44 = vld [vmem:[#allocation2 + $0x110] sm:$0xf] }
 0x3b6   :  { %v11324_v39 = vpop.permute.xlu0 %2229 }
 0x3b7   :  { %14727 = vst [vmem:[#allocation238_spill] sm:$0xff] %v11324_v39  ;;  %2829 = vperm.xlu0 %9560, %v2593_v51   ;;  %v4635_v39 = vld [vmem:[#allocation2 + $0x58] sm:$0xf] }
 0x3b8   :  { %v11322_v40 = vpop.permute.xlu1 %2234 }
 0x3b9   :  { %14726 = vst [vmem:[#allocation237_spill] sm:$0xff] %v11322_v40  ;;  %2834 = vperm.xlu1 %9561, %v2594_v52   ;;  %v4636_v40 = vld [vmem:[#allocation2 + $0x5c] sm:$0xf] }
 0x3ba   :  { %v11328_v35 = vpop.permute.xlu0 %2239 }
 0x3bb   :  { %14729 = vst [vmem:[#allocation240_spill] sm:$0xff] %v11328_v35  ;;  %2839 = vperm.xlu0 %9560, %v2595_v47   ;;  %v4637_v35 = vld [vmem:[#allocation2 + $0x60] sm:$0xf] }
 0x3bc   :  { %v11326_v36 = vpop.permute.xlu1 %2244 }
 0x3bd   :  { %14728 = vst [vmem:[#allocation239_spill] sm:$0xff] %v11326_v36  ;;  %2844 = vperm.xlu1 %9561, %v2596_v48   ;;  %v4638_v36 = vld [vmem:[#allocation2 + $0x64] sm:$0xf] }
 0x3be   :  { %v11332_v31 = vpop.permute.xlu0 %2249 }
 0x3bf   :  { %14731 = vst [vmem:[#allocation242_spill] sm:$0xff] %v11332_v31  ;;  %2849 = vperm.xlu0 %9560, %v2597_v43   ;;  %v4639_v31 = vld [vmem:[#allocation2 + $0x68] sm:$0xf] }
 0x3c0   :  { %v11330_v32 = vpop.permute.xlu1 %2254 }
 0x3c1   :  { %14730 = vst [vmem:[#allocation241_spill] sm:$0xff] %v11330_v32  ;;  %2854 = vperm.xlu1 %9561, %v2598_v44   ;;  %v4640_v32 = vld [vmem:[#allocation2 + $0x6c] sm:$0xf] }
 0x3c2   :  { %v11336_v51 = vpop.permute.xlu0 %2259 }
 0x3c3   :  { %14733 = vst [vmem:[#allocation244_spill] sm:$0xff] %v11336_v51  ;;  %4703 = vperm.xlu0 %9560, %v4635_v39   ;;  %v4641_v51 = vld [vmem:[#allocation2 + $0x70] sm:$0xf] }
 0x3c4   :  { %v11334_v52 = vpop.permute.xlu1 %2264 }
 0x3c5   :  { %14732 = vst [vmem:[#allocation243_spill] sm:$0xff] %v11334_v52  ;;  %4708 = vperm.xlu1 %9561, %v4636_v40   ;;  %v4642_v52 = vld [vmem:[#allocation2 + $0x74] sm:$0xf] }
 0x3c6   :  { %v11340_v47 = vpop.permute.xlu0 %2269 }
 0x3c7   :  { %14735 = vst [vmem:[#allocation246_spill] sm:$0xff] %v11340_v47  ;;  %4713 = vperm.xlu0 %9560, %v4637_v35   ;;  %v4643_v47 = vld [vmem:[#allocation2 + $0x80] sm:$0xf] }
 0x3c8   :  { %v11338_v48 = vpop.permute.xlu1 %2274 }
 0x3c9   :  { %14734 = vst [vmem:[#allocation245_spill] sm:$0xff] %v11338_v48  ;;  %4718 = vperm.xlu1 %9561, %v4638_v36   ;;  %v4644_v48 = vld [vmem:[#allocation2 + $0x84] sm:$0xf] }
 0x3ca   :  { %v11344_v43 = vpop.permute.xlu0 %2279 }
 0x3cb   :  { %14737 = vst [vmem:[#allocation248_spill] sm:$0xff] %v11344_v43  ;;  %4723 = vperm.xlu0 %9560, %v4639_v31   ;;  %v4645_v43 = vld [vmem:[#allocation2 + $0x88] sm:$0xf] }
 0x3cc   :  { %v11342_v44 = vpop.permute.xlu1 %2284 }
 0x3cd   :  { %14736 = vst [vmem:[#allocation247_spill] sm:$0xff] %v11342_v44  ;;  %4728 = vperm.xlu1 %9561, %v4640_v32   ;;  %v4646_v44 = vld [vmem:[#allocation2 + $0x8c] sm:$0xf] }
 0x3ce   :  { %v11348_v39 = vpop.permute.xlu0 %2289 }
 0x3cf   :  { %14739 = vst [vmem:[#allocation250_spill] sm:$0xff] %v11348_v39  ;;  %4733 = vperm.xlu0 %9560, %v4641_v51   ;;  %v4647_v39 = vld [vmem:[#allocation2 + $0x90] sm:$0xf] }
 0x3d0   :  { %v11346_v40 = vpop.permute.xlu1 %2294 }
 0x3d1   :  { %14738 = vst [vmem:[#allocation249_spill] sm:$0xff] %v11346_v40  ;;  %4738 = vperm.xlu1 %9561, %v4642_v52   ;;  %v4648_v40 = vld [vmem:[#allocation2 + $0x94] sm:$0xf] }
 0x3d2   :  { %v11352_v35 = vpop.permute.xlu0 %2299 }
 0x3d3   :  { %14741 = vst [vmem:[#allocation252_spill] sm:$0xff] %v11352_v35  ;;  %4743 = vperm.xlu0 %9560, %v4643_v47   ;;  %v4649_v35 = vld [vmem:[#allocation2 + $0x98] sm:$0xf] }
 0x3d4   :  { %v11350_v36 = vpop.permute.xlu1 %2304 }
 0x3d5   :  { %14740 = vst [vmem:[#allocation251_spill] sm:$0xff] %v11350_v36  ;;  %4748 = vperm.xlu1 %9561, %v4644_v48   ;;  %v4650_v36 = vld [vmem:[#allocation2 + $0x9c] sm:$0xf] }
 0x3d6   :  { %v11356_v31 = vpop.permute.xlu0 %2309 }
 0x3d7   :  { %14743 = vst [vmem:[#allocation254_spill] sm:$0xff] %v11356_v31  ;;  %4753 = vperm.xlu0 %9560, %v4645_v43   ;;  %v3088_v43 = vld [vmem:[#allocation2 + $0x80] sm:$0xf]  ;;  %v3093_v31 = vld [vmem:[#allocation2 + $0x94] sm:$0xf] }
 0x3d8   :  { %v11354_v32 = vpop.permute.xlu1 %2314 }
 0x3d9   :  { %14742 = vst [vmem:[#allocation253_spill] sm:$0xff] %v11354_v32  ;;  %4758 = vperm.xlu1 %9561, %v4646_v44   ;;  %v14748_v32 = vmov 0.0   ;;  %v3089_v44 = vld [vmem:[#allocation2 + $0x84] sm:$0xf] }
 0x3da   :  { %v11360_v51 = vpop.permute.xlu0 %2319  ;;  %5488 = vst.msk [vmem:[#allocation3 + $0x1c] sm:$0xf] %vm5480_vm1, %v14748_v32  ;;  %5481 = vst.msk [vmem:[#allocation3] sm:$0xf] %vm5480_vm1, %v14748_v32 }
 0x3db   :  { %14745 = vst [vmem:[#allocation256_spill] sm:$0xff] %v11360_v51  ;;  %4763 = vperm.xlu0 %9560, %v4647_v39   ;;  %5482 = vst.msk [vmem:[#allocation3 + $0x4] sm:$0xf] %vm5480_vm1, %v14748_v32 }
 0x3dc   :  { %v11358_v52 = vpop.permute.xlu1 %2324  ;;  %5483 = vst.msk [vmem:[#allocation3 + $0x8] sm:$0xf] %vm5480_vm1, %v14748_v32  ;;  %5484 = vst.msk [vmem:[#allocation3 + $0xc] sm:$0xf] %vm5480_vm1, %v14748_v32 }
 0x3dd   :  { %14744 = vst [vmem:[#allocation255_spill] sm:$0xff] %v11358_v52  ;;  %4768 = vperm.xlu1 %9561, %v4648_v40   ;;  %5485 = vst.msk [vmem:[#allocation3 + $0x10] sm:$0xf] %vm5480_vm1, %v14748_v32 }
 0x3de   :  { %v11364_v47 = vpop.permute.xlu0 %2329  ;;  %5486 = vst.msk [vmem:[#allocation3 + $0x14] sm:$0xf] %vm5480_vm1, %v14748_v32  ;;  %5487 = vst.msk [vmem:[#allocation3 + $0x18] sm:$0xf] %vm5480_vm1, %v14748_v32 }
 0x3df   :  { %14747 = vst [vmem:[#allocation258_spill] sm:$0xff] %v11364_v47  ;;  %5489 = vst.msk [vmem:[#allocation3 + $0x20] sm:$0xf] %vm5480_vm1, %v14748_v32  ;;  %4773 = vperm.xlu0 %9560, %v4649_v35   ;;  %v3091_v47 = vld [vmem:[#allocation2 + $0x8c] sm:$0xf] }
 0x3e0   :  { %v11362_v48 = vpop.permute.xlu1 %2334  ;;  %5490 = vst.msk [vmem:[#allocation3 + $0x24] sm:$0xf] %vm5480_vm1, %v14748_v32  ;;  %5491 = vst.msk [vmem:[#allocation3 + $0x28] sm:$0xf] %vm5480_vm1, %v14748_v32 }
 0x3e1   :  { %14746 = vst [vmem:[#allocation257_spill] sm:$0xff] %v11362_v48  ;;  %5492 = vst.msk [vmem:[#allocation3 + $0x2c] sm:$0xf] %vm5480_vm1, %v14748_v32  ;;  %4778 = vperm.xlu1 %9561, %v4650_v36   ;;  %v3090_v48 = vld [vmem:[#allocation2 + $0x88] sm:$0xf] }
 0x3e2   :  { %5493 = vst.msk [vmem:[#allocation3 + $0x30] sm:$0xf] %vm5480_vm1, %v14748_v32  ;;  %5494 = vst.msk [vmem:[#allocation3 + $0x34] sm:$0xf] %vm5480_vm1, %v14748_v32  ;;  %v11440_v39 = vpop.permute.xlu0 %4182 }
 0x3e3   :  { %5495 = vst.msk [vmem:[#allocation3 + $0x38] sm:$0xf] %vm5480_vm1, %v14748_v32  ;;  %5496 = vst.msk [vmem:[#allocation3 + $0x3c] sm:$0xf] %vm5480_vm1, %v14748_v32  ;;  %3220 = vperm.xlu0 %9560, %v3088_v43  }
 0x3e4   :  { %5497 = vst.msk [vmem:[#allocation3 + $0x40] sm:$0xf] %vm5480_vm1, %v14748_v32  ;;  %5498 = vst.msk [vmem:[#allocation3 + $0x44] sm:$0xf] %vm5480_vm1, %v14748_v32  ;;  %v11438_v40 = vpop.permute.xlu1 %4187 }
 0x3e5   :  { %5499 = vst.msk [vmem:[#allocation3 + $0x48] sm:$0xf] %vm5480_vm1, %v14748_v32  ;;  %5500 = vst.msk [vmem:[#allocation3 + $0x4c] sm:$0xf] %vm5480_vm1, %v14748_v32  ;;  %3225 = vperm.xlu1 %9561, %v3089_v44  }
 0x3e6   :  { %5501 = vst.msk [vmem:[#allocation3 + $0x50] sm:$0xf] %vm5480_vm1, %v14748_v32  ;;  %5502 = vst.msk [vmem:[#allocation3 + $0x54] sm:$0xf] %vm5480_vm1, %v14748_v32  ;;  %v11444_v52 = vpop.permute.xlu0 %4192 }
 0x3e7   :  { %5503 = vst.msk [vmem:[#allocation3 + $0x58] sm:$0xf] %vm5480_vm1, %v14748_v32  ;;  %5504 = vst.msk [vmem:[#allocation3 + $0x5c] sm:$0xf] %vm5480_vm1, %v14748_v32  ;;  %3230 = vperm.xlu0 %9560, %v3090_v48   ;;  %v9562_v48 = vld [vmem:[%s14757_s29 + $0x10] sm:$0xff]  }
 0x3e8   :  { %5505 = vst.msk [vmem:[#allocation3 + $0x60] sm:$0xf] %vm5480_vm1, %v14748_v32  ;;  %5506 = vst.msk [vmem:[#allocation3 + $0x64] sm:$0xf] %vm5480_vm1, %v14748_v32  ;;  %v11442_v51 = vpop.permute.xlu1 %4197  ;;  %9104 = vmatprep.subr.bf16.mxu0 %v9562_v48 }
 0x3e9   :  { %5507 = vst.msk [vmem:[#allocation3 + $0x68] sm:$0xf] %vm5480_vm1, %v14748_v32  ;;  %5508 = vst.msk [vmem:[#allocation3 + $0x6c] sm:$0xf] %vm5480_vm1, %v14748_v32  ;;  %3235 = vperm.xlu1 %9561, %v3091_v47   ;;  %9105 = vmatpush3.bf16.msra.mxu0 %v9562_v48 }
 0x3ea   :  { %5509 = vst.msk [vmem:[#allocation3 + $0x70] sm:$0xf] %vm5480_vm1, %v14748_v32  ;;  %5510 = vst.msk [vmem:[#allocation3 + $0x74] sm:$0xf] %vm5480_vm1, %v14748_v32  ;;  %v11448_v35 = vpop.permute.xlu0 %4202 }
 0x3eb   :  { %5511 = vst.msk [vmem:[#allocation3 + $0x78] sm:$0xf] %vm5480_vm1, %v14748_v32  ;;  %5512 = vst.msk [vmem:[#allocation3 + $0x7c] sm:$0xf] %vm5480_vm1, %v14748_v32 }
 0x3ec   :  { %5513 = vst.msk [vmem:[#allocation3 + $0x80] sm:$0xf] %vm5480_vm1, %v14748_v32  ;;  %5514 = vst.msk [vmem:[#allocation3 + $0x84] sm:$0xf] %vm5480_vm1, %v14748_v32  ;;  %v11446_v36 = vpop.permute.xlu1 %4207 }
 0x3ed   :  { %5515 = vst.msk [vmem:[#allocation3 + $0x88] sm:$0xf] %vm5480_vm1, %v14748_v32  ;;  %5516 = vst.msk [vmem:[#allocation3 + $0x8c] sm:$0xf] %vm5480_vm1, %v14748_v32  ;;  %v3092_v32 = vld [vmem:[#allocation2 + $0x90] sm:$0xf]  ;;  %3245 = vperm.xlu1 %9561, %v3093_v31  }
 0x3ee   :  { %14749 = vst [vmem:[#allocation259_spill] sm:$0xff] %v11438_v40  ;;  %14750 = vst [vmem:[#allocation260_spill] sm:$0xff] %v11440_v39  ;;  %3240 = vperm.xlu0 %9560, %v3092_v32   ;;  %v3095_v40 = vld [vmem:[#allocation2 + $0x9c] sm:$0xf]  ;;  %v3094_v39 = vld [vmem:[#allocation2 + $0x98] sm:$0xf]  ;;  %v11452_v43 = vpop.permute.xlu0 %4212 }
 0x3ef   :  { %14751 = vst [vmem:[#allocation261_spill] sm:$0xff] %v11442_v51  ;;  %14752 = vst [vmem:[#allocation262_spill] sm:$0xff] %v11444_v52  ;;  %v3097_v51 = vld [vmem:[#allocation2 + $0xac] sm:$0xf]  ;;  %v3096_v52 = vld [vmem:[#allocation2 + $0xa8] sm:$0xf] }
 0x3f0   :  { %14753 = vst [vmem:[#allocation263_spill] sm:$0xff] %v11446_v36  ;;  %14754 = vst [vmem:[#allocation264_spill] sm:$0xff] %v11448_v35  ;;  %v11450_v44 = vpop.permute.xlu1 %4217  ;;  %v3099_v32 = vld [vmem:[#allocation2 + $0xb4] sm:$0xf]  ;;  %v3098_v31 = vld [vmem:[#allocation2 + $0xb0] sm:$0xf] }
 0x3f1   :  { %14755 = vst [vmem:[#allocation265_spill] sm:$0xff] %v11450_v44  ;;  %14756 = vst [vmem:[#allocation266_spill] sm:$0xff] %v11452_v43  ;;  %3255 = vperm.xlu1 %9561, %v3095_v40   ;;  %v9563_v40 = vld [vmem:[%s14757_s29 + $0x18] sm:$0xff]  }
 0x3f2   :  { %3250 = vperm.xlu0 %9560, %v3094_v39   ;;  %v11459_v36 = vpop.permute.xlu0 %4222  ;;  %v9564_v44 = vld [vmem:[#allocation3 + $0x4] sm:$0xff]   ;;  %v9565_v35 = vld [vmem:[#allocation3 + $0xc] sm:$0xff]   ;;  %9106 = vmatprep.subr.bf16.mxu0 %v9563_v40 }
 0x3f3   :  { %14759 = vst [vmem:[#allocation268_spill] sm:$0xff] %v11459_v36  ;;  %v3100_v36 = vld [vmem:[#allocation2 + $0xb8] sm:$0xf]  ;;  %9107 = vmatpush3.bf16.msra.mxu0 %v9563_v40 }
 0x3f4   :  { %v11457_v47 = vpop.permute.xlu1 %4227 }
 0x3f5   :  { %14758 = vst [vmem:[#allocation267_spill] sm:$0xff] %v11457_v47  ;;  %3265 = vperm.xlu1 %9561, %v3097_v51   ;;  %v3101_v47 = vld [vmem:[#allocation2 + $0xbc] sm:$0xf] }
 0x3f6   :  { %3260 = vperm.xlu0 %9560, %v3096_v52   ;;  %v11466_v43 = vpop.permute.xlu0 %4232  ;;  %v5639_v52 = vpack.c.bf16 %v9565_v35, %v9564_v44  ;;  %v3104_v35 = vld [vmem:[#allocation2 + $0xd0] sm:$0xf] }
 0x3f7   :  { %14761 = vst [vmem:[#allocation270_spill] sm:$0xff] %v11466_v43  ;;  %v3102_v43 = vld [vmem:[#allocation2 + $0xc0] sm:$0xf] }
 0x3f8   :  { %v11464_v39 = vpop.permute.xlu1 %4237  ;;  %9108 = vmatprep.mubr.msk.bf16.mxu0 %vm5660_vm2, %v5639_v52  ;;  %v3106_v52 = vld [vmem:[#allocation2 + $0xd8] sm:$0xf] }
 0x3f9   :  { %14760 = vst [vmem:[#allocation269_spill] sm:$0xff] %v11464_v39  ;;  %3275 = vperm.xlu1 %9561, %v3099_v32   ;;  %v3103_v39 = vld [vmem:[#allocation2 + $0xc4] sm:$0xf] }
 0x3fa   :  { %3270 = vperm.xlu0 %9560, %v3098_v31   ;;  %v11470_v48 = vpop.permute.xlu0 %4242  ;;  %v3105_v31 = vld [vmem:[#allocation2 + $0xd4] sm:$0xf] }
 0x3fb   :  { %14763 = vst [vmem:[#allocation272_spill] sm:$0xff] %v11470_v48  ;;  %v3107_v48 = vld [vmem:[#allocation2 + $0xdc] sm:$0xf] }
 0x3fc   :  { %v11468_v51 = vpop.permute.xlu1 %4247 }
 0x3fd   :  { %14762 = vst [vmem:[#allocation271_spill] sm:$0xff] %v11468_v51  ;;  %3285 = vperm.xlu1 %9561, %v3101_v47   ;;  %v8681_v51 = vld [vmem:[#allocation6] ss:$0 sm:$0xff] }
 0x3fe   :  { %3280 = vperm.xlu0 %9560, %v3100_v36   ;;  %v11475_v32 = vpop.permute.xlu0 %4252 }
 0x3ff   :  { %14765 = vst [vmem:[#allocation274_spill] sm:$0xff] %v11475_v32  ;;  %v3108_v32 = vld [vmem:[#allocation2 + $0xe0] sm:$0xf] }
 0x400   :  { %v11473_v55 = vpop.permute.xlu1 %4257 }
 0x401   :  { %14764 = vst [vmem:[#allocation273_spill] sm:$0xff] %v11473_v55  ;;  %3295 = vperm.xlu1 %9561, %v3103_v39   ;;  %v3109_v55 = vld [vmem:[#allocation2 + $0xe4] sm:$0xf] }
 0x402   :  { %3290 = vperm.xlu0 %9560, %v3102_v43   ;;  %v11479_v40 = vpop.permute.xlu0 %2699 }
 0x403   :  { %14767 = vst [vmem:[#allocation276_spill] sm:$0xff] %v11479_v40  ;;  %v3111_v40 = vld [vmem:[#allocation2 + $0xec] sm:$0xf] }
 0x404   :  { %v11477_v44 = vpop.permute.xlu1 %2704 }
 0x405   :  { %14766 = vst [vmem:[#allocation275_spill] sm:$0xff] %v11477_v44  ;;  %3305 = vperm.xlu1 %9561, %v3105_v31   ;;  %v3110_v31 = vld [vmem:[#allocation2 + $0xe8] sm:$0xf]  ;;  %v8682_v44 = vld [vmem:[#allocation6 + $0x1] ss:$0 sm:$0xff] }
 0x406   :  { %3300 = vperm.xlu0 %9560, %v3104_v35   ;;  %v11483_v36 = vpop.permute.xlu0 %2709  ;;  %v862_v35 = vmul.f32 %v8681_v51, %v10822_v62  ;;  %v866_v62 = vmul.f32 %v8681_v51, %v10836_v12 }
 0x407   :  { %14769 = vst [vmem:[#allocation278_spill] sm:$0xff] %v11483_v36  ;;  %v3113_v36 = vld [vmem:[#allocation2 + $0xfc] sm:$0xf] }
 0x408   :  { %v11481_v47 = vpop.permute.xlu1 %2714 }
 0x409   :  { %14768 = vst [vmem:[#allocation277_spill] sm:$0xff] %v11481_v47  ;;  %3315 = vperm.xlu1 %9561, %v3107_v48   ;;  %v860_v48 = vmul.f32 %v8681_v51, %v10824_v63  ;;  %v868_v63 = vmul.f32 %v8681_v51, %v10840_v16  ;;  %v1386_v16 = vmul.f32 %v8682_v44, %v10958_v17 }
 0x40a   :  { %3310 = vperm.xlu0 %9560, %v3106_v52   ;;  %v11487_v43 = vpop.permute.xlu0 %2719  ;;  %v863_v52 = vmul.f32 %v8681_v51, %v10826_v3  ;;  %v871_v3 = vmul.f32 %v8681_v51, %v10842_v19  ;;  %v1385_v19 = vmul.f32 %v8682_v44, %v10960_v22  ;;  %v1389_v17 = vmul.f32 %v8682_v44, %v10968_v54 }
 0x40b   :  { %14771 = vst [vmem:[#allocation280_spill] sm:$0xff] %v11487_v43  ;;  %v867_v43 = vmul.f32 %v8681_v51, %v10834_v11  ;;  %v1384_v11 = vmul.f32 %v8682_v44, %v10954_v57  ;;  %v3115_v57 = vld [vmem:[#allocation2 + $0x104] sm:$0xf]  ;;  %v1394_v54 = vmul.f32 %v8682_v44, %v10974_v30  ;;  %v1905_v30 = vmul.f32 %v8683_v5, %v11082_v53 }
 0x40c   :  { %v11485_v39 = vpop.permute.xlu1 %2724  ;;  %v1911_v53 = vmul.f32 %v8683_v5, %v11094_v29  ;;  %v1912_v29 = vmul.f32 %v8683_v5, %v11100_v18  ;;  %v14781_v18 = vld [vmem:[#allocation132_spill] sm:$0xff] }
 0x40d   :  { %14770 = vst [vmem:[#allocation279_spill] sm:$0xff] %v11485_v39  ;;  %3325 = vperm.xlu1 %9561, %v3109_v55   ;;  %v861_v39 = vmul.f32 %v8681_v51, %v10828_v4  ;;  %v865_v55 = vmul.f32 %v8681_v51, %v10830_v7  ;;  %v1382_v4 = vmul.f32 %v8682_v44, %v10950_v41 }
 0x40e   :  { %3320 = vperm.xlu0 %9560, %v3108_v32   ;;  %v11492_v47 = vpop.permute.xlu0 %2729  ;;  %v864_v32 = vmul.f32 %v8681_v51, %v10832_v8  ;;  %v873_v7 = vmul.f32 %v8681_v51, %v10846_v23  ;;  %v1381_v8 = vmul.f32 %v8682_v44, %v10952_v46  ;;  %v1388_v23 = vmul.f32 %v8682_v44, %v10962_v33 }
 0x40f   :  { %14773 = vst [vmem:[#allocation282_spill] sm:$0xff] %v11492_v47  ;;  %v869_v47 = vmul.f32 %v8681_v51, %v10838_v15  ;;  %v1383_v15 = vmul.f32 %v8682_v44, %v10956_v0  ;;  %v1387_v41 = vmul.f32 %v8682_v44, %v10964_v38  ;;  %v1390_v46 = vmul.f32 %v8682_v44, %v10966_v49 }
 0x410   :  { %v11490_v56 = vpop.permute.xlu1 %2734  ;;  %v874_v0 = vmul.f32 %v8681_v51, %v10852_v28  ;;  %v1446_v59 = vadd.f32 %v1382_v4, %v861_v39  ;;  %v1445_v22 = vadd.f32 %v1381_v8, %v860_v48  ;;  %v1450_v60 = vadd.f32 %v1386_v16, %v865_v55  ;;  %v3117_v39 = vld [vmem:[#allocation2 + $0x10c] sm:$0xf]  ;;  %v3116_v48 = vld [vmem:[#allocation2 + $0x108] sm:$0xf] }
 0x411   :  { %14772 = vst [vmem:[#allocation281_spill] sm:$0xff] %v11490_v56  ;;  %3335 = vperm.xlu1 %9561, %v3111_v40   ;;  %v3112_v56 = vld [vmem:[#allocation2 + $0xf8] sm:$0xf]  ;;  %v870_v40 = vmul.f32 %v8681_v51, %v10844_v20  ;;  %v872_v20 = vmul.f32 %v8681_v51, %v10848_v24  ;;  %v1391_v24 = vmul.f32 %v8682_v44, %v10972_v2 }
 0x412   :  { %3330 = vperm.xlu0 %9560, %v3110_v31   ;;  %v11511_v12 = vpop.permute.xlu0 %2739  ;;  %v1447_v49 = vadd.f32 %v1383_v15, %v862_v35  ;;  %v1449_v1 = vadd.f32 %v1385_v19, %v864_v32  ;;  %v1451_v28 = vadd.f32 %v1387_v41, %v866_v62  ;;  %v1393_v2 = vmul.f32 %v8682_v44, %v10976_v25  ;;  %v8684_v19 = vld [vmem:[#allocation6 + $0x3] ss:$0 sm:$0xff]  ;;  %v3609_v41 = vld [vmem:[#allocation2 + $0xa0] sm:$0xf] }
 0x413   :  { %14775 = vst [vmem:[#allocation284_spill] sm:$0xff] %v11511_v12  ;;  %v875_v12 = vmul.f32 %v8681_v51, %v10850_v27  ;;  %v1452_v27 = vadd.f32 %v1388_v23, %v867_v43  ;;  %v1454_v51 = vadd.f32 %v1390_v46, %v869_v47  ;;  %v1395_v4 = vmul.f32 %v8682_v44, %v10980_v9 }
 0x414   :  { %v11509_v31 = vpop.permute.xlu1 %2744  ;;  %v1455_v55 = vadd.f32 %v1391_v24, %v870_v40  ;;  %v1903_v32 = vmul.f32 %v8683_v5, %v11078_v61  ;;  %v1902_v8 = vmul.f32 %v8683_v5, %v11080_v58  ;;  %v1904_v62 = vmul.f32 %v8683_v5, %v11084_v50  ;;  %v3119_v58 = vld [vmem:[#allocation2 + $0x114] sm:$0xf] }
 0x415   :  { %14774 = vst [vmem:[#allocation283_spill] sm:$0xff] %v11509_v31  ;;  %3345 = vperm.xlu1 %9561, %v3113_v36   ;;  %v3114_v31 = vld [vmem:[#allocation2 + $0x100] sm:$0xf]  ;;  %v1448_v36 = vadd.f32 %v1384_v11, %v863_v52  ;;  %v1396_v52 = vmul.f32 %v8682_v44, %v10978_v14  ;;  %v1907_v25 = vmul.f32 %v8683_v5, %v11086_v45 }
 0x416   :  { %3340 = vperm.xlu0 %9560, %v3112_v56   ;;  %v1392_v56 = vmul.f32 %v8682_v44, %v10970_v6  ;;  %v11527_v38 = vpop.permute.xlu0 %2749  ;;  %v1453_v6 = vadd.f32 %v1389_v17, %v868_v63  ;;  %v1458_v14 = vadd.f32 %v1394_v54, %v873_v7  ;;  %v1906_v9 = vmul.f32 %v8683_v5, %v11088_v42  ;;  %v3118_v63 = vld [vmem:[#allocation2 + $0x110] sm:$0xf] }
 0x417   :  { %v1909_v44 = vmul.f32 %v8683_v5, %v11090_v37  ;;  %v1908_v61 = vmul.f32 %v8683_v5, %v11092_v34  ;;  %v1460_v40 = vadd.f32 %v1396_v52, %v875_v12  ;;  %v1459_v11 = vadd.f32 %v1395_v4, %v874_v0  ;;  %v14783_v54 = vld [vmem:[#allocation134_spill] sm:$0xff] }
 0x418   :  { %v11525_v33 = vpop.permute.xlu1 %2754  ;;  %v1456_v35 = vadd.f32 %v1392_v56, %v871_v3  ;;  %v1457_v3 = vadd.f32 %v1393_v2, %v872_v20  ;;  %v1966_v50 = vadd.f32 %v1902_v8, %v1445_v22  ;;  %v1910_v45 = vmul.f32 %v8683_v5, %v11096_v26  ;;  %v14778_v56 = vld [vmem:[#allocation131_spill] sm:$0xff]  ;;  %v3612_v4 = vld [vmem:[#allocation2 + $0xac] sm:$0xf] }
 0x419   :  { %3355 = vperm.xlu1 %9561, %v3115_v57   ;;  %v1913_v15 = vmul.f32 %v8683_v5, %v11098_v21  ;;  %v1969_v37 = vadd.f32 %v1905_v30, %v1448_v36  ;;  %v1968_v16 = vadd.f32 %v1904_v62, %v1447_v49  ;;  %v1971_v34 = vadd.f32 %v1907_v25, %v1450_v60  ;;  %v14776_v57 = vld [vmem:[#allocation129_spill] sm:$0xff]  ;;  %v14777_v60 = vld [vmem:[#allocation130_spill] sm:$0xff] }
 0x41a   :  { %3350 = vperm.xlu0 %9560, %v3114_v31   ;;  %v11537_v47 = vpop.permute.xlu0 %2759  ;;  %v1967_v31 = vadd.f32 %v1903_v32, %v1446_v59  ;;  %v1970_v12 = vadd.f32 %v1906_v9, %v1449_v1  ;;  %v1973_v20 = vadd.f32 %v1909_v44, %v1452_v27  ;;  %v1972_v23 = vadd.f32 %v1908_v61, %v1451_v28  ;;  %v3610_v59 = vld [vmem:[#allocation2 + $0xa4] sm:$0xf]  ;;  %v14787_v62 = vld [vmem:[#allocation138_spill] sm:$0xff]  ;;  %v14788_v61 = vld [vmem:[#allocation139_spill] sm:$0xff] }
 0x41b   :  { %v1975_v26 = vadd.f32 %v1911_v53, %v1454_v51  ;;  %v1915_v21 = vmul.f32 %v8683_v5, %v11102_v13  ;;  %v1914_v46 = vmul.f32 %v8683_v5, %v11104_v10  ;;  %v1917_v0 = vmul.f32 %v8683_v5, %v14776_v57  ;;  %v14782_v28 = vld [vmem:[#allocation133_spill] sm:$0xff] }
 0x41c   :  { %v11535_v43 = vpop.permute.xlu1 %2764  ;;  %v1974_v17 = vadd.f32 %v1910_v45, %v1453_v6  ;;  %v1977_v22 = vadd.f32 %v1913_v15, %v1456_v35  ;;  %v1916_v36 = vmul.f32 %v8683_v5, %v14777_v60  ;;  %v2424_v24 = vmul.f32 %v8684_v19, %v14778_v56  ;;  %v14785_v6 = vld [vmem:[#allocation136_spill] sm:$0xff]  ;;  %v14786_v5 = vld [vmem:[#allocation137_spill] sm:$0xff] }
 0x41d   :  { %3365 = vperm.xlu1 %9561, %v3117_v39   ;;  %v2423_v27 = vmul.f32 %v8684_v19, %v14781_v18  ;;  %v2426_v51 = vmul.f32 %v8684_v19, %v14782_v28  ;;  %v2425_v13 = vmul.f32 %v8684_v19, %v14783_v54  ;;  %v1976_v10 = vadd.f32 %v1912_v29, %v1455_v55  ;;  %v14784_v39 = vld [vmem:[#allocation135_spill] sm:$0xff]  ;;  %v3611_v35 = vld [vmem:[#allocation2 + $0xa8] sm:$0xf] }
 0x41e   :  { %3360 = vperm.xlu0 %9560, %v3116_v48   ;;  %v11550_v42 = vpop.permute.xlu0 %2769  ;;  %v2428_v48 = vmul.f32 %v8684_v19, %v14784_v39  ;;  %v2427_v2 = vmul.f32 %v8684_v19, %v14785_v6  ;;  %v2430_v52 = vmul.f32 %v8684_v19, %v14786_v5  ;;  %v1979_v32 = vadd.f32 %v1915_v21, %v1458_v14  ;;  %v14797_v28 = vld [vmem:[#allocation146_spill] sm:$0xff]  ;;  %v14802_v39 = vld [vmem:[#allocation149_spill] sm:$0xff] }
 0x41f   :  { %v1978_v8 = vadd.f32 %v1914_v46, %v1457_v3  ;;  %v1981_v30 = vadd.f32 %v1917_v0, %v1460_v40  ;;  %v2429_v25 = vmul.f32 %v8684_v19, %v14787_v62  ;;  %v1980_v9 = vadd.f32 %v1916_v36, %v1459_v11  ;;  %v8685_v11 = vld [vmem:[#allocation6 + $0x4] ss:$0 sm:$0xff]  ;;  %v3613_v46 = vld [vmem:[#allocation2 + $0xb0] sm:$0xf] }
 0x420   :  { %v11548_v7 = vpop.permute.xlu1 %2774  ;;  %v2488_v44 = vadd.f32 %v2424_v24, %v1967_v31  ;;  %v2487_v15 = vadd.f32 %v2423_v27, %v1966_v50  ;;  %v2490_v29 = vadd.f32 %v2426_v51, %v1969_v37  ;;  %v2492_v14 = vadd.f32 %v2428_v48, %v1971_v34  ;;  %v3614_v31 = vld [vmem:[#allocation2 + $0xb4] sm:$0xf]  ;;  %v14793_v0 = vld [vmem:[#allocation142_spill] sm:$0xff]  ;;  %v14795_v24 = vld [vmem:[#allocation144_spill] sm:$0xff] }
 0x421   :  { %3375 = vperm.xlu1 %9561, %v3119_v58   ;;  %v2432_v58 = vmul.f32 %v8684_v19, %v14788_v61  ;;  %v2491_v3 = vadd.f32 %v2427_v2, %v1970_v12  ;;  %v2494_v40 = vadd.f32 %v2430_v52, %v1973_v20  ;;  %v2493_v57 = vadd.f32 %v2429_v25, %v1972_v23  ;;  %v14794_v36 = vld [vmem:[#allocation143_spill] sm:$0xff]  ;;  %v14803_v2 = vld [vmem:[#allocation150_spill] sm:$0xff]  ;;  %v14805_v52 = vld [vmem:[#allocation152_spill] sm:$0xff] }
 0x422   :  { %3370 = vperm.xlu0 %9560, %v3118_v63   ;;  %v11560_v49 = vpop.permute.xlu0 %2779  ;;  %v14789_v63 = vld [vmem:[#allocation140_spill] sm:$0xff]  ;;  %v2433_v60 = vmul.f32 %v8684_v19, %v14793_v0  ;;  %v2436_v56 = vmul.f32 %v8684_v19, %v14794_v36  ;;  %v2435_v18 = vmul.f32 %v8684_v19, %v14795_v24  ;;  %v2437_v34 = vmul.f32 %v8684_v19, %v14797_v28  ;;  %v14800_v51 = vld [vmem:[#allocation147_spill] sm:$0xff]  ;;  %v14807_v0 = vld [vmem:[#allocation154_spill] sm:$0xff] }
 0x423   :  { %14780 = vst [vmem:[#allocation130_spill] sm:$0xff] %v11560_v49  ;;  %v2431_v53 = vmul.f32 %v8684_v19, %v14789_v63  ;;  %v2496_v50 = vadd.f32 %v2432_v58, %v1975_v26  ;;  %v2944_v54 = vmul.f32 %v8685_v11, %v14800_v51  ;;  %v2946_v48 = vmul.f32 %v8685_v11, %v14802_v39  ;;  %v14806_v58 = vld [vmem:[#allocation153_spill] sm:$0xff] }
 0x424   :  { %v11558_v1 = vpop.permute.xlu1 %2784  ;;  %v2945_v26 = vmul.f32 %v8685_v11, %v14803_v2  ;;  %v2497_v62 = vadd.f32 %v2433_v60, %v1976_v10  ;;  %v2500_v25 = vadd.f32 %v2436_v56, %v1979_v32  ;;  %v2499_v61 = vadd.f32 %v2435_v18, %v1978_v8  ;;  %v14811_v60 = vld [vmem:[#allocation156_spill] sm:$0xff]  ;;  %v3617_v18 = vld [vmem:[#allocation2 + $0xc8] sm:$0xf]  ;;  %v14814_v2 = vld [vmem:[#allocation159_spill] sm:$0xff] }
 0x425   :  { %14779 = vst [vmem:[#allocation129_spill] sm:$0xff] %v11558_v1  ;;  %3746 = vperm.xlu1 %9561, %v3610_v59   ;;  %v2489_v59 = vadd.f32 %v2425_v13, %v1968_v16  ;;  %v2495_v37 = vadd.f32 %v2431_v53, %v1974_v17  ;;  %v14796_v16 = vld [vmem:[#allocation145_spill] sm:$0xff]  ;;  %v14801_v13 = vld [vmem:[#allocation148_spill] sm:$0xff]  ;;  %v14804_v17 = vld [vmem:[#allocation151_spill] sm:$0xff]  ;;  %v2950_v63 = vmul.f32 %v8685_v11, %v14806_v58 }
 0x426   :  { %3741 = vperm.xlu0 %9560, %v3609_v41   ;;  %v11573_v45 = vpop.permute.xlu0 %2789  ;;  %v14792_v41 = vld [vmem:[#allocation141_spill] sm:$0xff]  ;;  %v2438_v27 = vmul.f32 %v8684_v19, %v14796_v16  ;;  %v2943_v23 = vmul.f32 %v8685_v11, %v14801_v13  ;;  %v2948_v5 = vmul.f32 %v8685_v11, %v14804_v17  ;;  %v2949_v36 = vmul.f32 %v8685_v11, %v14807_v0  ;;  %v14813_v13 = vld [vmem:[#allocation158_spill] sm:$0xff] }
 0x427   :  { %14791 = vst [vmem:[#allocation132_spill] sm:$0xff] %v11573_v45  ;;  %v2434_v21 = vmul.f32 %v8684_v19, %v14792_v41  ;;  %v3616_v19 = vld [vmem:[#allocation2 + $0xbc] sm:$0xf]  ;;  %v2501_v41 = vadd.f32 %v2437_v34, %v1980_v9  ;;  %v3008_v24 = vadd.f32 %v2944_v54, %v2488_v44  ;;  %v3010_v28 = vadd.f32 %v2946_v48, %v2490_v29  ;;  %v3618_v9 = vld [vmem:[#allocation2 + $0xcc] sm:$0xf]  ;;  %v14812_v34 = vld [vmem:[#allocation157_spill] sm:$0xff] }
 0x428   :  { %v11571_v55 = vpop.permute.xlu1 %2794  ;;  %v2502_v53 = vadd.f32 %v2438_v27, %v1981_v30  ;;  %v3007_v16 = vadd.f32 %v2943_v23, %v2487_v15  ;;  %v3009_v10 = vadd.f32 %v2945_v26, %v2489_v59  ;;  %v3012_v32 = vadd.f32 %v2948_v5, %v2492_v14  ;;  %v8686_v30 = vld [vmem:[#allocation6 + $0x5] ss:$0 sm:$0xff]  ;;  %v14815_v29 = vld [vmem:[#allocation160_spill] sm:$0xff]  ;;  %v14819_v48 = vld [vmem:[#allocation162_spill] sm:$0xff] }
 0x429   :  { %14790 = vst [vmem:[#allocation131_spill] sm:$0xff] %v11571_v55  ;;  %3756 = vperm.xlu1 %9561, %v3612_v4   ;;  %v2498_v6 = vadd.f32 %v2434_v21, %v1977_v22  ;;  %v2947_v4 = vmul.f32 %v8685_v11, %v14805_v52  ;;  %v2951_v56 = vmul.f32 %v8685_v11, %v14811_v60  ;;  %v14816_v23 = vld [vmem:[#allocation161_spill] sm:$0xff]  ;;  %v14820_v5 = vld [vmem:[#allocation163_spill] sm:$0xff]  ;;  %v14821_v52 = vld [vmem:[#allocation164_spill] sm:$0xff] }
 0x42a   :  { %3751 = vperm.xlu0 %9560, %v3611_v35   ;;  %v11583_v20 = vpop.permute.xlu0 %2799  ;;  %v3615_v35 = vld [vmem:[#allocation2 + $0xb8] sm:$0xf]  ;;  %v3014_v27 = vadd.f32 %v2950_v63, %v2494_v40  ;;  %v2954_v51 = vmul.f32 %v8685_v11, %v14812_v34  ;;  %v2953_v39 = vmul.f32 %v8685_v11, %v14813_v13  ;;  %v2956_v17 = vmul.f32 %v8685_v11, %v14814_v2 }
 0x42b   :  { %14799 = vst [vmem:[#allocation134_spill] sm:$0xff] %v11583_v20  ;;  %v3011_v8 = vadd.f32 %v2947_v4, %v2491_v3  ;;  %v3013_v44 = vadd.f32 %v2949_v36, %v2493_v57  ;;  %v2955_v54 = vmul.f32 %v8685_v11, %v14815_v29  ;;  %v2958_v59 = vmul.f32 %v8685_v11, %v14816_v23  ;;  %v14824_v63 = vld [vmem:[#allocation167_spill] sm:$0xff]  ;;  %v14825_v13 = vld [vmem:[#allocation168_spill] sm:$0xff]  ;;  %v14826_v23 = vld [vmem:[#allocation169_spill] sm:$0xff] }
 0x42c   :  { %v11581_v12 = vpop.permute.xlu1 %2804  ;;  %v2957_v26 = vmul.f32 %v8685_v11, %v14819_v48  ;;  %v3465_v40 = vmul.f32 %v8686_v30, %v14820_v5  ;;  %v3464_v4 = vmul.f32 %v8686_v30, %v14821_v52  ;;  %v3469_v0 = vmul.f32 %v8686_v30, %v14824_v63  ;;  %v3620_v36 = vld [vmem:[#allocation2 + $0xd4] sm:$0xf]  ;;  %v14832_v63 = vld [vmem:[#allocation173_spill] sm:$0xff] }
 0x42d   :  { %14798 = vst [vmem:[#allocation133_spill] sm:$0xff] %v11581_v12  ;;  %3766 = vperm.xlu1 %9561, %v3614_v31   ;;  %v14808_v31 = vld [vmem:[#allocation155_spill] sm:$0xff]  ;;  %v3017_v60 = vadd.f32 %v2953_v39, %v2497_v62  ;;  %v3020_v34 = vadd.f32 %v2956_v17, %v2500_v25  ;;  %v3019_v2 = vadd.f32 %v2955_v54, %v2499_v61  ;;  %v11622_v61 = vld [vmem:[#allocation6 + $0x6] ss:$0 sm:$0xff] }
 0x42e   :  { %3761 = vperm.xlu0 %9560, %v3613_v46   ;;  %v2952_v46 = vmul.f32 %v8685_v11, %v14808_v31  ;;  %v11596_v21 = vpop.permute.xlu0 %2809  ;;  %v3619_v31 = vld [vmem:[#allocation2 + $0xd0] sm:$0xf]  ;;  %v3468_v11 = vmul.f32 %v8686_v30, %v14825_v13  ;;  %v3022_v29 = vadd.f32 %v2958_v59, %v2502_v53  ;;  %v3471_v48 = vmul.f32 %v8686_v30, %v14826_v23  ;;  %v3622_v53 = vld [vmem:[#allocation2 + $0xdc] sm:$0xf]  ;;  %v3621_v17 = vld [vmem:[#allocation2 + $0xd8] sm:$0xf] }
 0x42f   :  { %14810 = vst [vmem:[#allocation136_spill] sm:$0xff] %v11596_v21  ;;  %v3021_v5 = vadd.f32 %v2957_v26, %v2501_v41  ;;  %v3529_v52 = vadd.f32 %v3465_v40, %v3008_v24  ;;  %v3533_v25 = vadd.f32 %v3469_v0, %v3012_v32  ;;  %v14831_v59 = vld [vmem:[#allocation172_spill] sm:$0xff]  ;;  %v3475_v13 = vmul.f32 %v8686_v30, %v14832_v63  ;;  %v14833_v23 = vld [vmem:[#allocation174_spill] sm:$0xff]  ;;  %v14834_v26 = vld [vmem:[#allocation175_spill] sm:$0xff] }
 0x430   :  { %v11594_v22 = vpop.permute.xlu1 %2814  ;;  %v3016_v15 = vadd.f32 %v2952_v46, %v2496_v50  ;;  %v14823_v50 = vld [vmem:[#allocation166_spill] sm:$0xff]  ;;  %v3018_v46 = vadd.f32 %v2954_v51, %v2498_v6  ;;  %v14830_v51 = vld [vmem:[#allocation171_spill] sm:$0xff]  ;;  %v3532_v54 = vadd.f32 %v3468_v11, %v3011_v8  ;;  %v3474_v41 = vmul.f32 %v8686_v30, %v14833_v23  ;;  %v11637_v11 = vld [vmem:[#allocation6 + $0x7] ss:$0 sm:$0xff] }
 0x431   :  { %14809 = vst [vmem:[#allocation135_spill] sm:$0xff] %v11594_v22  ;;  %3776 = vperm.xlu1 %9561, %v3616_v19   ;;  %v3015_v19 = vadd.f32 %v2951_v56, %v2495_v37  ;;  %v3466_v58 = vmul.f32 %v8686_v30, %v14823_v50  ;;  %v3473_v39 = vmul.f32 %v8686_v30, %v14830_v51  ;;  %v14839_v0 = vld [vmem:[#allocation178_spill] sm:$0xff]  ;;  %v3624_v63 = vld [vmem:[#allocation2 + $0xe4] sm:$0xf]  ;;  %v3623_v23 = vld [vmem:[#allocation2 + $0xe0] sm:$0xf] }
 0x432   :  { %3771 = vperm.xlu0 %9560, %v3615_v35   ;;  %v11606_v3 = vpop.permute.xlu0 %2819  ;;  %v14822_v35 = vld [vmem:[#allocation165_spill] sm:$0xff]  ;;  %v3472_v50 = vmul.f32 %v8686_v30, %v14831_v59  ;;  %v3535_v24 = vadd.f32 %v3471_v48, %v3014_v27  ;;  %v3477_v40 = vmul.f32 %v8686_v30, %v14834_v26  ;;  %v3478_v8 = vmul.f32 %v8686_v30, %v14839_v0  ;;  %v14843_v51 = vld [vmem:[#allocation214_spill] sm:$0xff]  ;;  %v14965_v21 = vld [vmem:[#allocation87_spill] sm:$0xff] }
 0x433   :  { %14818 = vst [vmem:[#allocation138_spill] sm:$0xff] %v11606_v3  ;;  %v3467_v57 = vmul.f32 %v8686_v30, %v14822_v35  ;;  %v3528_v35 = vadd.f32 %v3464_v4, %v3007_v16  ;;  %v3530_v62 = vadd.f32 %v3466_v58, %v3009_v10  ;;  %v3537_v27 = vadd.f32 %v3473_v39, %v3016_v15  ;;  %v14845_v15 = vld [vmem:[#allocation259_spill] sm:$0xff] }
 0x434   :  { %v11604_v14 = vpop.permute.xlu1 %2824  ;;  %v3987_v59 = vmul.f32 %v11622_v61, %v14843_v51  ;;  %v3539_v26 = vadd.f32 %v3475_v13, %v3018_v46  ;;  %v4507_v39 = vmul.f32 %v11637_v11, %v14845_v15  ;;  %v14850_v15 = vld [vmem:[#allocation217_spill] sm:$0xff] }
 0x435   :  { %14817 = vst [vmem:[#allocation137_spill] sm:$0xff] %v11604_v14  ;;  %3786 = vperm.xlu1 %9561, %v3618_v9   ;;  %v14827_v9 = vld [vmem:[#allocation170_spill] sm:$0xff]  ;;  %v3531_v6 = vadd.f32 %v3467_v57, %v3010_v28  ;;  %v14835_v28 = vld [vmem:[#allocation176_spill] sm:$0xff]  ;;  %v14838_v57 = vld [vmem:[#allocation177_spill] sm:$0xff] }
 0x436   :  { %3781 = vperm.xlu0 %9560, %v3617_v18   ;;  %v3470_v18 = vmul.f32 %v8686_v30, %v14827_v9  ;;  %v11619_v56 = vpop.permute.xlu0 %2829  ;;  %v3476_v10 = vmul.f32 %v8686_v30, %v14835_v28  ;;  %v3479_v58 = vmul.f32 %v8686_v30, %v14838_v57  ;;  %v14842_v9 = vld [vmem:[#allocation213_spill] sm:$0xff]  ;;  %v3536_v30 = vadd.f32 %v3472_v50, %v3015_v19  ;;  %v14844_v57 = vld [vmem:[#allocation215_spill] sm:$0xff]  ;;  %v14849_v50 = vld [vmem:[#allocation216_spill] sm:$0xff] }
 0x437   :  { %14829 = vst [vmem:[#allocation140_spill] sm:$0xff] %v11619_v56  ;;  %v3538_v28 = vadd.f32 %v3474_v41, %v3017_v60  ;;  %v3990_v0 = vmul.f32 %v11622_v61, %v14844_v57  ;;  %v11657_v19 = vadd.f32 %v3478_v8, %v3021_v5  ;;  %v3989_v13 = vmul.f32 %v11622_v61, %v14849_v50  ;;  %v11661_v41 = vld [vmem:[#allocation6 + $0x8] ss:$0 sm:$0xff] }
 0x438   :  { %v11617_v37 = vpop.permute.xlu1 %2834  ;;  %v3534_v16 = vadd.f32 %v3470_v18, %v3013_v44  ;;  %v14841_v44 = vld [vmem:[#allocation212_spill] sm:$0xff]  ;;  %v3988_v18 = vmul.f32 %v11622_v61, %v14842_v9  ;;  %v14851_v5 = vld [vmem:[#allocation218_spill] sm:$0xff] }
 0x439   :  { %14828 = vst [vmem:[#allocation139_spill] sm:$0xff] %v11617_v37  ;;  %3796 = vperm.xlu1 %9561, %v3620_v36   ;;  %v14840_v36 = vld [vmem:[#allocation211_spill] sm:$0xff]  ;;  %v3985_v48 = vmul.f32 %v11622_v61, %v14841_v44  ;;  %v11663_v57 = vadd.f32 %v3990_v0, %v3533_v25  ;;  %v4053_v50 = vadd.f32 %v3989_v13, %v3532_v54  ;;  %v14860_v13 = vld [vmem:[#allocation225_spill] sm:$0xff]  ;;  %v14964_v14 = vld [vmem:[#allocation86_spill] sm:$0xff] }
 0x43a   :  { %3791 = vperm.xlu0 %9560, %v3619_v31   ;;  %v11631_v4 = vpop.permute.xlu0 %2839  ;;  %v3986_v31 = vmul.f32 %v11622_v61, %v14840_v36  ;;  %v14846_v36 = vld [vmem:[#allocation260_spill] sm:$0xff] }
 0x43b   :  { %14837 = vst [vmem:[#allocation142_spill] sm:$0xff] %v11631_v4  ;;  %v4506_v44 = vmul.f32 %v11637_v11, %v14846_v36  ;;  %v3543_v4 = vadd.f32 %v3479_v58, %v3022_v29  ;;  %v4049_v60 = vadd.f32 %v3985_v48, %v3528_v35  ;;  %v3992_v29 = vmul.f32 %v11622_v61, %v14850_v15  ;;  %v14852_v58 = vld [vmem:[#allocation219_spill] sm:$0xff]  ;;  %v14854_v48 = vld [vmem:[#allocation261_spill] sm:$0xff] }
 0x43c   :  { %v11629_v32 = vpop.permute.xlu1 %2844  ;;  %v4050_v46 = vadd.f32 %v3986_v31, %v3529_v52  ;;  %v3991_v52 = vmul.f32 %v11622_v61, %v14851_v5  ;;  %v3994_v35 = vmul.f32 %v11622_v61, %v14852_v58  ;;  %v14856_v15 = vld [vmem:[#allocation221_spill] sm:$0xff]  ;;  %v3628_v58 = vld [vmem:[#allocation2 + $0xfc] sm:$0xf] }
 0x43d   :  { %14836 = vst [vmem:[#allocation141_spill] sm:$0xff] %v11629_v32  ;;  %3806 = vperm.xlu1 %9561, %v3622_v53   ;;  %v3541_v53 = vadd.f32 %v3477_v40, %v3020_v34  ;;  %v4052_v34 = vadd.f32 %v3988_v18, %v3531_v6  ;;  %v3626_v40 = vld [vmem:[#allocation2 + $0xf4] sm:$0xf]  ;;  %v14853_v6 = vld [vmem:[#allocation220_spill] sm:$0xff]  ;;  %v4570_v31 = vadd.f32 %v4506_v44, %v4049_v60 }
 0x43e   :  { %3801 = vperm.xlu0 %9560, %v3621_v17   ;;  %v11647_v17 = vadd.f32 %v3476_v10, %v3019_v2  ;;  %v11655_v51 = vpop.permute.xlu0 %2849  ;;  %v4051_v2 = vadd.f32 %v3987_v59, %v3530_v62  ;;  %v3625_v10 = vld [vmem:[#allocation2 + $0xf0] sm:$0xf]  ;;  %v3993_v62 = vmul.f32 %v11622_v61, %v14853_v6  ;;  %v4571_v8 = vadd.f32 %v4507_v39, %v4050_v46 }
 0x43f   :  { %14848 = vst [vmem:[#allocation144_spill] sm:$0xff] %v11655_v51  ;;  %v4509_v18 = vmul.f32 %v11637_v11, %v14854_v48  ;;  %v3996_v5 = vmul.f32 %v11622_v61, %v14856_v15  ;;  %v14857_v39 = vld [vmem:[#allocation222_spill] sm:$0xff]  ;;  %v14858_v46 = vld [vmem:[#allocation223_spill] sm:$0xff]  ;;  %v4056_v6 = vadd.f32 %v3992_v29, %v3535_v24  ;;  %v4055_v48 = vadd.f32 %v3991_v52, %v3534_v16  ;;  %v11692_v15 = vld [vmem:[%s14861_s8] ss:$0 sm:$0xff] }
 0x440   :  { %v11653_v9 = vpop.permute.xlu1 %2854  ;;  %v3995_v44 = vmul.f32 %v11622_v61, %v14857_v39  ;;  %v3998_v60 = vmul.f32 %v11622_v61, %v14858_v46 }
 0x441   :  { %14847 = vst [vmem:[#allocation143_spill] sm:$0xff] %v11653_v9  ;;  %3816 = vperm.xlu1 %9561, %v3624_v63   ;;  %v14855_v63 = vld [vmem:[#allocation262_spill] sm:$0xff]  ;;  %v4058_v9 = vadd.f32 %v3994_v35, %v3537_v27  ;;  %v4573_v24 = vadd.f32 %v4509_v18, %v4052_v34 }
 0x442   :  { %3811 = vperm.xlu0 %9560, %v3623_v23   ;;  %v4704_v25 = vpop.permute.xlu0 %4703  ;;  %v4508_v23 = vmul.f32 %v11637_v11, %v14855_v63  ;;  %v4059_v52 = vadd.f32 %v3995_v44, %v3538_v28  ;;  %v4062_v35 = vadd.f32 %v3998_v60, %v3541_v53  ;;  %v14864_v28 = vld [vmem:[#allocation264_spill] sm:$0xff]  ;;  %v14865_v44 = vld [vmem:[#allocation265_spill] sm:$0xff] }
 0x443   :  { %v5027_v36 = vmul.f32 %v11661_v41, %v4704_v25  ;;  %v4057_v25 = vadd.f32 %v3993_v62, %v3536_v30  ;;  %v4060_v30 = vadd.f32 %v3996_v5, %v3539_v26  ;;  %v14862_v62 = vld [vmem:[#allocation226_spill] sm:$0xff]  ;;  %v4510_v53 = vmul.f32 %v11637_v11, %v14864_v28 }
 0x444   :  { %v4709_v59 = vpop.permute.xlu1 %4708  ;;  %v4572_v16 = vadd.f32 %v4508_v23, %v4051_v2  ;;  %v3629_v2 = vld [vmem:[#allocation2 + $0x100] sm:$0xf]  ;;  %v4513_v60 = vmul.f32 %v11637_v11, %v14865_v44 }
 0x445   :  { %v5028_v0 = vmul.f32 %v11661_v41, %v4709_v59  ;;  %3826 = vperm.xlu1 %9561, %v3626_v40   ;;  %v5091_v51 = vadd.f32 %v5027_v36, %v4570_v31  ;;  %v3627_v59 = vld [vmem:[#allocation2 + $0xf8] sm:$0xf]  ;;  %v3630_v31 = vld [vmem:[#allocation2 + $0x104] sm:$0xf] }
 0x446   :  { %3821 = vperm.xlu0 %9560, %v3625_v10   ;;  %v14859_v40 = vld [vmem:[#allocation224_spill] sm:$0xff]  ;;  %v4000_v10 = vmul.f32 %v11622_v61, %v14860_v13  ;;  %v4714_v46 = vpop.permute.xlu0 %4713 }
 0x447   :  { %v5092_v63 = vadd.f32 %v5028_v0, %v4571_v8  ;;  %v3997_v54 = vmul.f32 %v11622_v61, %v14859_v40  ;;  %v5029_v27 = vmul.f32 %v11661_v41, %v4714_v46  ;;  %v3999_v8 = vmul.f32 %v11622_v61, %v14862_v62 }
 0x448   :  { %v4719_v39 = vpop.permute.xlu1 %4718  ;;  %v5162_v36 = vadd.f32 %v11692_v15, %v5091_v51  ;;  %v11701_v23 = vadd.f32 %v4000_v10, %v3543_v4  ;;  %v14868_v10 = vld [vmem:[#allocation268_spill] sm:$0xff] }
 0x449   :  { %v5030_v29 = vmul.f32 %v11661_v41, %v4719_v39  ;;  %3836 = vperm.xlu1 %9561, %v3628_v58   ;;  %v5163_v0 = vadd.f32 %v11692_v15, %v5092_v63  ;;  %v5093_v34 = vadd.f32 %v5029_v27, %v4572_v16  ;;  %v4061_v18 = vadd.f32 %v3997_v54, %v11647_v17  ;;  %v14863_v58 = vld [vmem:[#allocation263_spill] sm:$0xff]  ;;  %v14866_v63 = vld [vmem:[#allocation266_spill] sm:$0xff]  ;;  %v14869_v16 = vld [vmem:[#allocation269_spill] sm:$0xff] }
 0x44a   :  { %3831 = vperm.xlu0 %9560, %v3627_v59   ;;  %v4511_v26 = vmul.f32 %v11637_v11, %v14863_v58  ;;  %v4724_v5 = vpop.permute.xlu0 %4723  ;;  %v4512_v51 = vmul.f32 %v11637_v11, %v14866_v63  ;;  %v11714_v4 = vadd.f32 %v3999_v8, %v11657_v19  ;;  %v14867_v54 = vld [vmem:[#allocation267_spill] sm:$0xff]  ;;  %v4514_v39 = vmul.f32 %v11637_v11, %v14868_v10  ;;  %v14870_v27 = vld [vmem:[#allocation270_spill] sm:$0xff] }
 0x44b   :  { %v5094_v40 = vadd.f32 %v5030_v29, %v4573_v24  ;;  %v5164_v17 = vadd.f32 %v11692_v15, %v5093_v34  ;;  %v4515_v13 = vmul.f32 %v11637_v11, %v14867_v54  ;;  %v3632_v24 = vld [vmem:[#allocation2 + $0x10c] sm:$0xf]  ;;  %v4517_v29 = vmul.f32 %v11637_v11, %v14869_v16  ;;  %v3631_v19 = vld [vmem:[#allocation2 + $0x108] sm:$0xf]  ;;  %v11729_v34 = vld [vmem:[%s14871_s18] ss:$0 sm:$0xff] }
 0x44c   :  { %v4729_v61 = vpop.permute.xlu1 %4728  ;;  %v4516_v62 = vmul.f32 %v11637_v11, %v14870_v27  ;;  %v4575_v8 = vadd.f32 %v4511_v26, %v11663_v57  ;;  %v4574_v63 = vadd.f32 %v4510_v53, %v4053_v50  ;;  %v4577_v54 = vadd.f32 %v4513_v60, %v4056_v6  ;;  %v14872_v16 = vld [vmem:[#allocation271_spill] sm:$0xff]  ;;  %v14873_v26 = vld [vmem:[#allocation272_spill] sm:$0xff] }
 0x44d   :  { %v5165_v59 = vadd.f32 %v11692_v15, %v5094_v40  ;;  %3846 = vperm.xlu1 %9561, %v3630_v31   ;;  %v5032_v46 = vmul.f32 %v11661_v41, %v4729_v61  ;;  %v5227_v31 = vmax.f32 %v5163_v0, 0.0  ;;  %v5226_v40 = vmax.f32 %v5162_v36, 0.0  ;;  %v3633_v6 = vld [vmem:[#allocation2 + $0x118] sm:$0xf] }
 0x44e   :  { %3841 = vperm.xlu0 %9560, %v3629_v2   ;;  %v5228_v28 = vmax.f32 %v5164_v17, 0.0  ;;  %v5031_v2 = vmul.f32 %v11661_v41, %v4724_v5  ;;  %v4734_v44 = vpop.permute.xlu0 %4733  ;;  %v4576_v10 = vadd.f32 %v4512_v51, %v4055_v48  ;;  %v4519_v0 = vmul.f32 %v11637_v11, %v14872_v16  ;;  %v11741_v48 = vld [vmem:[%s14874_s3] ss:$0 sm:$0xff] }
 0x44f   :  { %v5229_v58 = vmax.f32 %v5165_v59, 0.0  ;;  %v4579_v36 = vadd.f32 %v4515_v13, %v4058_v9  ;;  %v4578_v57 = vadd.f32 %v4514_v39, %v4057_v25  ;;  %v4518_v27 = vmul.f32 %v11637_v11, %v14873_v26  ;;  %v3634_v59 = vld [vmem:[#allocation2 + $0x11c] sm:$0xf]  ;;  %v14875_v13 = vld [vmem:[#allocation273_spill] sm:$0xff] }
 0x450   :  { %v4739_v61 = vpop.permute.xlu1 %4738  ;;  %v5096_v32 = vadd.f32 %v5032_v46, %v4575_v8  ;;  %v4581_v17 = vadd.f32 %v4517_v29, %v4060_v30  ;;  %v4580_v56 = vadd.f32 %v4516_v62, %v4059_v52  ;;  %v5298_v5 = vmul.f32 %v11729_v34, %v5227_v31  ;;  %v14876_v62 = vld [vmem:[#allocation274_spill] sm:$0xff]  ;;  %v3636_v8 = vld [vmem:[#allocation2 + $0x124] sm:$0xf] }
 0x451   :  { %3856 = vperm.xlu1 %9561, %v3632_v24   ;;  %v5297_v50 = vmul.f32 %v11729_v34, %v5226_v40  ;;  %v5300_v9 = vmul.f32 %v11729_v34, %v5229_v58  ;;  %v5299_v25 = vmul.f32 %v11729_v34, %v5228_v28  ;;  %v5095_v53 = vadd.f32 %v5031_v2, %v4574_v63 }
 0x452   :  { %3851 = vperm.xlu0 %9560, %v3631_v19   ;;  %v5034_v60 = vmul.f32 %v11661_v41, %v4739_v61  ;;  %v4744_v30 = vpop.permute.xlu0 %4743  ;;  %v4583_v52 = vadd.f32 %v4519_v0, %v4062_v35  ;;  %v4521_v39 = vmul.f32 %v11637_v11, %v14875_v13  ;;  %v4582_v29 = vadd.f32 %v4518_v27, %v4061_v18  ;;  %v3635_v61 = vld [vmem:[#allocation2 + $0x120] sm:$0xf] }
 0x453   :  { %v5035_v24 = vmul.f32 %v11661_v41, %v4744_v30  ;;  %v4520_v31 = vmul.f32 %v11637_v11, %v14876_v62  ;;  %v5167_v40 = vadd.f32 %v11692_v15, %v5096_v32  ;;  %v5033_v19 = vmul.f32 %v11661_v41, %v4734_v44 }
 0x454   :  { %v4749_v51 = vpop.permute.xlu1 %4748  ;;  %v11755_v35 = vadd.f32 %v11741_v48, %v5298_v5  ;;  %v11758_v58 = vadd.f32 %v11741_v48, %v5297_v50  ;;  %v11761_v18 = vadd.f32 %v11741_v48, %v5300_v9  ;;  %v11764_v11 = vadd.f32 %v11741_v48, %v5299_v25 }
 0x455   :  { %v5036_v46 = vmul.f32 %v11661_v41, %v4749_v51  ;;  %3866 = vperm.xlu1 %9561, %v3634_v59   ;;  %v5099_v2 = vadd.f32 %v5035_v24, %v4578_v57  ;;  %v5166_v32 = vadd.f32 %v11692_v15, %v5095_v53  ;;  %v5098_v44 = vadd.f32 %v5034_v60, %v4577_v54  ;;  %v3637_v53 = vld [vmem:[#allocation2 + $0x128] sm:$0xf] }
 0x456   :  { %3861 = vperm.xlu0 %9560, %v3633_v6   ;;  %v4754_v16 = vpop.permute.xlu0 %4753  ;;  %v4585_v0 = vadd.f32 %v4521_v39, %v11701_v23  ;;  %v4584_v57 = vadd.f32 %v4520_v31, %v11714_v4  ;;  %v5231_v59 = vmax.f32 %v5167_v40, 0.0  ;;  %v5097_v5 = vadd.f32 %v5033_v19, %v4576_v10  ;;  %v3638_v6 = vld [vmem:[#allocation2 + $0x12c] sm:$0xf] }
 0x457   :  { %v5100_v28 = vadd.f32 %v5036_v46, %v4579_v36  ;;  %v5170_v27 = vadd.f32 %v11692_v15, %v5099_v2  ;;  %v5037_v50 = vmul.f32 %v11661_v41, %v4754_v16  ;;  %v5432_v54 = vmax.f32 %v11758_v58, %v11755_v35  ;;  %v3639_v2 = vld [vmem:[#allocation2 + $0x130] sm:$0xf] }
 0x458   :  { %v4759_v63 = vpop.permute.xlu1 %4758  ;;  %v5433_v60 = vmax.f32 %v11764_v11, %v11761_v18  ;;  %v5230_v51 = vmax.f32 %v5166_v32, 0.0  ;;  %v5169_v30 = vadd.f32 %v11692_v15, %v5098_v44  ;;  %v5168_v31 = vadd.f32 %v11692_v15, %v5097_v5  ;;  %v4135_v11 = vld [vmem:[#allocation2 + $0xb8] sm:$0xf] }
 0x459   :  { %v5171_v26 = vadd.f32 %v11692_v15, %v5100_v28  ;;  %v5038_v36 = vmul.f32 %v11661_v41, %v4759_v63  ;;  %3876 = vperm.xlu1 %9561, %v3636_v8   ;;  %v5234_v23 = vmax.f32 %v5170_v27, 0.0  ;;  %v5101_v4 = vadd.f32 %v5037_v50, %v4580_v56  ;;  %v3640_v56 = vld [vmem:[#allocation2 + $0x134] sm:$0xf] }
 0x45a   :  { %3871 = vperm.xlu0 %9560, %v3635_v61   ;;  %v4764_v10 = vpop.permute.xlu0 %4763  ;;  %v5301_v61 = vmul.f32 %v11729_v34, %v5230_v51  ;;  %v5233_v32 = vmax.f32 %v5169_v30, 0.0  ;;  %v5232_v50 = vmax.f32 %v5168_v31, 0.0  ;;  %v4130_v30 = vld [vmem:[#allocation2 + $0xa4] sm:$0xf] }
 0x45b   :  { %v5235_v9 = vmax.f32 %v5171_v26, 0.0  ;;  %v5102_v25 = vadd.f32 %v5038_v36, %v4581_v17  ;;  %v5305_v46 = vmul.f32 %v11729_v34, %v5234_v23  ;;  %v5302_v17 = vmul.f32 %v11729_v34, %v5231_v59  ;;  %v4131_v23 = vld [vmem:[#allocation2 + $0xa8] sm:$0xf] }
 0x45c   :  { %v4769_v13 = vpop.permute.xlu1 %4768  ;;  %v5172_v40 = vadd.f32 %v11692_v15, %v5101_v4  ;;  %v5039_v19 = vmul.f32 %v11661_v41, %v4764_v10 }
 0x45d   :  { %v5306_v39 = vmul.f32 %v11729_v34, %v5235_v9  ;;  %v5173_v24 = vadd.f32 %v11692_v15, %v5102_v25  ;;  %v5040_v62 = vmul.f32 %v11661_v41, %v4769_v13  ;;  %3886 = vperm.xlu1 %9561, %v3638_v6   ;;  %v5376_v35 = vadd.f32 %v11741_v48, %v5305_v46 }
 0x45e   :  { %3881 = vperm.xlu0 %9560, %v3637_v53   ;;  %v5236_v44 = vmax.f32 %v5172_v40, 0.0  ;;  %v5103_v63 = vadd.f32 %v5039_v19, %v4582_v29  ;;  %v4774_v26 = vpop.permute.xlu0 %4773  ;;  %v5373_v4 = vadd.f32 %v11741_v48, %v5302_v17  ;;  %v5303_v17 = vmul.f32 %v11729_v34, %v5232_v50  ;;  %v4133_v19 = vld [vmem:[#allocation2 + $0xb0] sm:$0xf] }
 0x45f   :  { %v5377_v8 = vadd.f32 %v11741_v48, %v5306_v39  ;;  %v5237_v58 = vmax.f32 %v5173_v24, 0.0  ;;  %v5104_v28 = vadd.f32 %v5040_v62, %v4583_v52  ;;  %v5041_v9 = vmul.f32 %v11661_v41, %v4774_v26 }
 0x460   :  { %v4779_v16 = vpop.permute.xlu1 %4778  ;;  %v5307_v6 = vmul.f32 %v11729_v34, %v5236_v44  ;;  %v5174_v52 = vadd.f32 %v11692_v15, %v5103_v63  ;;  %v5304_v62 = vmul.f32 %v11729_v34, %v5233_v32 }
 0x461   :  { %v5448_v27 = vmax.f32 %v5376_v35, %v5377_v8  ;;  %v5308_v36 = vmul.f32 %v11729_v34, %v5237_v58  ;;  %v5175_v59 = vadd.f32 %v11692_v15, %v5104_v28  ;;  %v5042_v5 = vmul.f32 %v11661_v41, %v4779_v16  ;;  %3896 = vperm.xlu1 %9561, %v3640_v56   ;;  %v4132_v35 = vld [vmem:[#allocation2 + $0xac] sm:$0xf] }
 0x462   :  { %3891 = vperm.xlu0 %9560, %v3639_v2   ;;  %v5378_v13 = vadd.f32 %v11741_v48, %v5307_v6  ;;  %v5238_v10 = vmax.f32 %v5174_v52, 0.0  ;;  %v5105_v39 = vadd.f32 %v5041_v9, %v4584_v57  ;;  %v11800_v24 = vpop.permute.xlu0 %3220  ;;  %v5372_v41 = vadd.f32 %v11741_v48, %v5301_v61  ;;  %v4137_v9 = vld [vmem:[#allocation2 + $0xc0] sm:$0xf] }
 0x463   :  { %v5464_v29 = vmax.f32 %v5432_v54, %v5448_v27  ;;  %v5379_v25 = vadd.f32 %v11741_v48, %v5308_v36  ;;  %v5239_v53 = vmax.f32 %v5175_v59, 0.0  ;;  %v5106_v51 = vadd.f32 %v5042_v5, %v4585_v0  ;;  %14878 = vst [vmem:[#allocation146_spill] sm:$0xff] %v11800_v24  ;;  %v4134_v27 = vld [vmem:[#allocation2 + $0xb4] sm:$0xf] }
 0x464   :  { %v11798_v46 = vpop.permute.xlu1 %3225  ;;  %v5309_v57 = vmul.f32 %v11729_v34, %v5238_v10  ;;  %v5176_v40 = vadd.f32 %v11692_v15, %v5105_v39  ;;  %v5434_v44 = vmax.f32 %v5372_v41, %v5373_v4  ;;  %v5375_v63 = vadd.f32 %v11741_v48, %v5304_v62  ;;  %v4141_v4 = vld [vmem:[#allocation2 + $0xd8] sm:$0xf] }
 0x465   :  { %14877 = vst [vmem:[#allocation145_spill] sm:$0xff] %v11798_v46  ;;  %5518 = vst.msk [vmem:[#allocation3 + $0x1c] sm:$0xf] %vm5480_vm1, %v5464_v29  ;;  %v5310_v54 = vmul.f32 %v11729_v34, %v5239_v53  ;;  %v5177_v0 = vadd.f32 %v11692_v15, %v5106_v51  ;;  %4267 = vperm.xlu1 %9561, %v4131_v23   ;;  %v5449_v31 = vmax.f32 %v5378_v13, %v5379_v25  ;;  %v4138_v53 = vld [vmem:[#allocation2 + $0xcc] sm:$0xf]  ;;  %v14960_v46 = vld [vmem:[#allocation84_spill] sm:$0xff] }
 0x466   :  { %4262 = vperm.xlu0 %9560, %v4130_v30   ;;  %v5380_v28 = vadd.f32 %v11741_v48, %v5309_v57  ;;  %v5240_v2 = vmax.f32 %v5176_v40, 0.0  ;;  %v11817_v32 = vpop.permute.xlu0 %3230  ;;  %v5374_v16 = vadd.f32 %v11741_v48, %v5303_v17  ;;  %v4140_v13 = vld [vmem:[#allocation2 + $0xd4] sm:$0xf]  ;;  %v4145_v40 = vld [vmem:[#allocation2 + $0xe8] sm:$0xf] }
 0x467   :  { %v5381_v56 = vadd.f32 %v11741_v48, %v5310_v54  ;;  %v5241_v8 = vmax.f32 %v5177_v0, 0.0  ;;  %v5465_v58 = vmax.f32 %v5433_v60, %v5449_v31  ;;  %14880 = vst [vmem:[#allocation148_spill] sm:$0xff] %v11817_v32  ;;  %v4143_v54 = vld [vmem:[#allocation2 + $0xe0] sm:$0xf]  ;;  %v4142_v0 = vld [vmem:[#allocation2 + $0xdc] sm:$0xf] }
 0x468   :  { %v11815_v61 = vpop.permute.xlu1 %3235  ;;  %v5311_v18 = vmul.f32 %v11729_v34, %v5240_v2  ;;  %v5435_v6 = vmax.f32 %v5374_v16, %v5375_v63  ;;  %v4149_v63 = vld [vmem:[#allocation2 + $0x100] sm:$0xf]  ;;  %v397_v16 = vld [vmem:[%s14521_s4 + $0xe4] sm:$0xf]  ;;  %v14958_v32 = vld [vmem:[#allocation83_spill] sm:$0xff] }
 0x469   :  { %14879 = vst [vmem:[#allocation147_spill] sm:$0xff] %v11815_v61  ;;  %v5312_v15 = vmul.f32 %v11729_v34, %v5241_v8  ;;  %4277 = vperm.xlu1 %9561, %v4133_v19   ;;  %5519 = vst.msk [vmem:[#allocation3 + $0x20] sm:$0xf] %vm5480_vm1, %v5465_v58  ;;  %v5450_v26 = vmax.f32 %v5380_v28, %v5381_v56  ;;  %v4136_v34 = vld [vmem:[#allocation2 + $0xbc] sm:$0xf] }
 0x46a   :  { %4272 = vperm.xlu0 %9560, %v4132_v35   ;;  %v5382_v59 = vadd.f32 %v11741_v48, %v5311_v18  ;;  %v4144_v19 = vld [vmem:[#allocation2 + $0xe4] sm:$0xf]  ;;  %v396_v35 = vld [vmem:[%s14521_s4 + $0xe0] sm:$0xf]  ;;  %v4147_v58 = vld [vmem:[#allocation2 + $0xf8] sm:$0xf] }
 0x46b   :  { %v5383_v60 = vadd.f32 %v11741_v48, %v5312_v15  ;;  %v5466_v36 = vmax.f32 %v5434_v44, %v5450_v26  ;;  %v4139_v48 = vld [vmem:[#allocation2 + $0xd0] sm:$0xf]  ;;  %461 = vst.msk [vmem:[#allocation2 + $0x144] sm:$0xf] %vm239_vm0, %v396_v35  ;;  %v4146_v28 = vld [vmem:[#allocation2 + $0xf4] sm:$0xf] }
 0x46c   :  { %v11826_v5 = vpop.permute.xlu1 %3245  ;;  %v398_v15 = vld [vmem:[%s14521_s4 + $0xe8] sm:$0xf]  ;;  %v4148_v26 = vld [vmem:[#allocation2 + $0xfc] sm:$0xf]  ;;  %462 = vst.msk [vmem:[#allocation2 + $0x148] sm:$0xf] %vm239_vm0, %v397_v16 }
 0x46d   :  { %14881 = vst [vmem:[#allocation149_spill] sm:$0xff] %v11826_v5  ;;  %v11828_v50 = vpop.permute.xlu0 %3240  ;;  %4287 = vperm.xlu1 %9561, %v4135_v11   ;;  %5520 = vst.msk [vmem:[#allocation3 + $0x24] sm:$0xf] %vm5480_vm1, %v5466_v36  ;;  %v5451_v52 = vmax.f32 %v5382_v59, %v5383_v60  ;;  %v400_v60 = vld [vmem:[%s14521_s4 + $0xf0] sm:$0xf] }
 0x46e   :  { %14882 = vst [vmem:[#allocation150_spill] sm:$0xff] %v11828_v50  ;;  %4282 = vperm.xlu0 %9560, %v4134_v27   ;;  %463 = vst.msk [vmem:[#allocation2 + $0x14c] sm:$0xf] %vm239_vm0, %v398_v15  ;;  %v4151_v27 = vld [vmem:[#allocation2 + $0x108] sm:$0xf] }
 0x46f   :  { %v5467_v23 = vmax.f32 %v5435_v6, %v5451_v52  ;;  %465 = vst.msk [vmem:[#allocation2 + $0x154] sm:$0xf] %vm239_vm0, %v400_v60  ;;  %v399_v36 = vld [vmem:[%s14521_s4 + $0xec] sm:$0xf]  ;;  %v4150_v59 = vld [vmem:[#allocation2 + $0x104] sm:$0xf] }
 0x470   :  { %v11831_v29 = vpop.permute.xlu1 %3255  ;;  %v9566_v41 = vld [vmem:[#allocation3 + $0x1c] sm:$0xff]   ;;  %464 = vst.msk [vmem:[#allocation2 + $0x150] sm:$0xf] %vm239_vm0, %v399_v36  ;;  %v4160_v15 = vld [vmem:[#allocation2 + $0x134] sm:$0xf] }
 0x471   :  { %14883 = vst [vmem:[#allocation151_spill] sm:$0xff] %v11831_v29  ;;  %v11833_v25 = vpop.permute.xlu0 %3250  ;;  %4297 = vperm.xlu1 %9561, %v4137_v9   ;;  %5521 = vst.msk [vmem:[#allocation3 + $0x28] sm:$0xf] %vm5480_vm1, %v5467_v23  ;;  %v4153_v9 = vld [vmem:[#allocation2 + $0x110] sm:$0xf] }
 0x472   :  { %14884 = vst [vmem:[#allocation152_spill] sm:$0xff] %v11833_v25  ;;  %4292 = vperm.xlu0 %9560, %v4136_v34   ;;  %v4152_v34 = vld [vmem:[#allocation2 + $0x10c] sm:$0xf]  ;;  %v4667_v61 = vld [vmem:[#allocation2 + $0xf8] sm:$0xf] }
 0x473   :  { %v4652_v60 = vld [vmem:[#allocation2 + $0xac] sm:$0xf] }
 0x474   :  { %v11836_v51 = vpop.permute.xlu1 %3265 }
 0x475   :  { %14885 = vst [vmem:[#allocation153_spill] sm:$0xff] %v11836_v51  ;;  %v11838_v30 = vpop.permute.xlu0 %3260  ;;  %4307 = vperm.xlu1 %9561, %v4139_v48  }
 0x476   :  { %14886 = vst [vmem:[#allocation154_spill] sm:$0xff] %v11838_v30  ;;  %4302 = vperm.xlu0 %9560, %v4138_v53   ;;  %v4155_v53 = vld [vmem:[#allocation2 + $0x120] sm:$0xf] }
 0x478   :  { %v11840_v10 = vpop.permute.xlu1 %3275  ;;  %v9567_v62 = vld [vmem:[#allocation3 + $0x24] sm:$0xff]  }
 0x479   :  { %14887 = vst [vmem:[#allocation155_spill] sm:$0xff] %v11840_v10  ;;  %v11842_v39 = vpop.permute.xlu0 %3270  ;;  %4317 = vperm.xlu1 %9561, %v4141_v4   ;;  %v5640_v17 = vpack.c.bf16 %v9567_v62, %v9566_v41  ;;  %v4154_v4 = vld [vmem:[#allocation2 + $0x11c] sm:$0xf]  ;;  %v4157_v62 = vld [vmem:[#allocation2 + $0x128] sm:$0xf] }
 0x47a   :  { %14888 = vst [vmem:[#allocation156_spill] sm:$0xff] %v11842_v39  ;;  %4312 = vperm.xlu0 %9560, %v4140_v13   ;;  %v14950_v10 = vld [vmem:[#allocation56_spill] sm:$0xff] }
 0x47b   :  { %9109 = vmatmul.mubr.msk.bf16.vlgmr.msra.gmra.mrb[0].mxu0 %vm5660_vm2, %v5640_v17 }
 0x47c   :  { %v11844_v31 = vpop.permute.xlu1 %3285 }
 0x47d   :  { %14889 = vst [vmem:[#allocation157_spill] sm:$0xff] %v11844_v31  ;;  %v11846_v57 = vpop.permute.xlu0 %3280  ;;  %4327 = vperm.xlu1 %9561, %v4143_v54   ;;  %v4156_v54 = vld [vmem:[#allocation2 + $0x124] sm:$0xf] }
 0x47e   :  { %14890 = vst [vmem:[#allocation158_spill] sm:$0xff] %v11846_v57  ;;  %4322 = vperm.xlu0 %9560, %v4142_v0  }
 0x480   :  { %v11849_v56 = vpop.permute.xlu1 %3295 }
 0x481   :  { %14891 = vst [vmem:[#allocation159_spill] sm:$0xff] %v11849_v56  ;;  %v11851_v8 = vpop.permute.xlu0 %3290  ;;  %4337 = vperm.xlu1 %9561, %v4145_v40   ;;  %v4159_v40 = vld [vmem:[#allocation2 + $0x130] sm:$0xf] }
 0x482   :  { %14892 = vst [vmem:[#allocation160_spill] sm:$0xff] %v11851_v8  ;;  %4332 = vperm.xlu0 %9560, %v4144_v19   ;;  %v4158_v19 = vld [vmem:[#allocation2 + $0x12c] sm:$0xf] }
 0x484   :  { %v11857_v2 = vpop.permute.xlu1 %3305 }
 0x485   :  { %14893 = vst [vmem:[#allocation161_spill] sm:$0xff] %v11857_v2  ;;  %v11859_v44 = vpop.permute.xlu0 %3300  ;;  %4347 = vperm.xlu1 %9561, %v4147_v58  }
 0x486   :  { %14894 = vst [vmem:[#allocation162_spill] sm:$0xff] %v11859_v44  ;;  %4342 = vperm.xlu0 %9560, %v4146_v28   ;;  %v4161_v28 = vld [vmem:[#allocation2 + $0x138] sm:$0xf] }
 0x488   :  { %v11869_v18 = vpop.permute.xlu1 %3315 }
 0x489   :  { %14895 = vst [vmem:[#allocation163_spill] sm:$0xff] %v11869_v18  ;;  %v11871_v11 = vpop.permute.xlu0 %3310  ;;  %4357 = vperm.xlu1 %9561, %v4149_v63  }
 0x48a   :  { %14896 = vst [vmem:[#allocation164_spill] sm:$0xff] %v11871_v11  ;;  %4352 = vperm.xlu0 %9560, %v4148_v26   ;;  %v401_v26 = vld [vmem:[%s14521_s4 + $0xf4] sm:$0xf]  ;;  %v4665_v11 = vld [vmem:[#allocation2 + $0xe8] sm:$0xf] }
 0x48b   :  { %466 = vst.msk [vmem:[#allocation2 + $0x158] sm:$0xf] %vm239_vm0, %v401_v26 }
 0x48c   :  { %v11881_v6 = vpop.permute.xlu1 %3325 }
 0x48d   :  { %14897 = vst [vmem:[#allocation165_spill] sm:$0xff] %v11881_v6  ;;  %v11883_v52 = vpop.permute.xlu0 %3320  ;;  %4367 = vperm.xlu1 %9561, %v4151_v27   ;;  %v4651_v27 = vld [vmem:[#allocation2 + $0xa8] sm:$0xf] }
 0x48e   :  { %14898 = vst [vmem:[#allocation166_spill] sm:$0xff] %v11883_v52  ;;  %4362 = vperm.xlu0 %9560, %v4150_v59   ;;  %v14940_v6 = vld [vmem:[#allocation50_spill] sm:$0xff] }
 0x490   :  { %v11885_v23 = vpop.permute.xlu1 %3335 }
 0x491   :  { %14899 = vst [vmem:[#allocation167_spill] sm:$0xff] %v11885_v23  ;;  %v11887_v48 = vpop.permute.xlu0 %3330  ;;  %4377 = vperm.xlu1 %9561, %v4153_v9   ;;  %v4654_v9 = vld [vmem:[#allocation2 + $0xb4] sm:$0xf] }
 0x492   :  { %14900 = vst [vmem:[#allocation168_spill] sm:$0xff] %v11887_v48  ;;  %4372 = vperm.xlu0 %9560, %v4152_v34   ;;  %v4653_v34 = vld [vmem:[#allocation2 + $0xb0] sm:$0xf] }
 0x494   :  { %v11889_v13 = vpop.permute.xlu1 %3345 }
 0x495   :  { %14901 = vst [vmem:[#allocation169_spill] sm:$0xff] %v11889_v13  ;;  %v11891_v41 = vpop.permute.xlu0 %3340  ;;  %4387 = vperm.xlu1 %9561, %v4155_v53  }
 0x496   :  { %14902 = vst [vmem:[#allocation170_spill] sm:$0xff] %v11891_v41  ;;  %4382 = vperm.xlu0 %9560, %v4154_v4   ;;  %v14934_v41 = vld [vmem:[#allocation44_spill] sm:$0xff] }
 0x498   :  { %v11893_v0 = vpop.permute.xlu1 %3355 }
 0x499   :  { %14903 = vst [vmem:[#allocation171_spill] sm:$0xff] %v11893_v0  ;;  %v11895_v17 = vpop.permute.xlu0 %3350  ;;  %4397 = vperm.xlu1 %9561, %v4157_v62   ;;  %v4656_v62 = vld [vmem:[#allocation2 + $0xbc] sm:$0xf] }
 0x49a   :  { %14904 = vst [vmem:[#allocation172_spill] sm:$0xff] %v11895_v17  ;;  %4392 = vperm.xlu0 %9560, %v4156_v54   ;;  %v4655_v54 = vld [vmem:[#allocation2 + $0xb8] sm:$0xf] }
 0x49c   :  { %v11897_v35 = vpop.permute.xlu1 %3365 }
 0x49d   :  { %14905 = vst [vmem:[#allocation173_spill] sm:$0xff] %v11897_v35  ;;  %v11899_v58 = vpop.permute.xlu0 %3360  ;;  %4407 = vperm.xlu1 %9561, %v4159_v40  }
 0x49e   :  { %14906 = vst [vmem:[#allocation174_spill] sm:$0xff] %v11899_v58  ;;  %4402 = vperm.xlu0 %9560, %v4158_v19   ;;  %v14929_v58 = vld [vmem:[#allocation39_spill] sm:$0xff] }
 0x4a0   :  { %v11901_v63 = vpop.permute.xlu1 %3375 }
 0x4a1   :  { %14907 = vst [vmem:[#allocation175_spill] sm:$0xff] %v11901_v63  ;;  %v11903_v16 = vpop.permute.xlu0 %3370  ;;  %4417 = vperm.xlu1 %9561, %v4161_v28   ;;  %v4658_v28 = vld [vmem:[#allocation2 + $0xc4] sm:$0xf] }
 0x4a2   :  { %14908 = vst [vmem:[#allocation176_spill] sm:$0xff] %v11903_v16  ;;  %4412 = vperm.xlu0 %9560, %v4160_v15   ;;  %v4657_v15 = vld [vmem:[#allocation2 + $0xc0] sm:$0xf]  ;;  %v14926_v16 = vld [vmem:[#allocation38_spill] sm:$0xff] }
 0x4a4   :  { %v11909_v36 = vpop.permute.xlu1 %3746 }
 0x4a5   :  { %14909 = vst [vmem:[#allocation177_spill] sm:$0xff] %v11909_v36  ;;  %v11911_v59 = vpop.permute.xlu0 %3741  ;;  %4788 = vperm.xlu1 %9561, %v4652_v60  }
 0x4a6   :  { %14910 = vst [vmem:[#allocation178_spill] sm:$0xff] %v11911_v59  ;;  %4783 = vperm.xlu0 %9560, %v4651_v27   ;;  %v4660_v27 = vld [vmem:[#allocation2 + $0xd4] sm:$0xf] }
 0x4a8   :  { %v11913_v53 = vpop.permute.xlu1 %3756 }
 0x4a9   :  { %14911 = vst [vmem:[#allocation211_spill] sm:$0xff] %v11913_v53  ;;  %v11915_v4 = vpop.permute.xlu0 %3751  ;;  %4798 = vperm.xlu1 %9561, %v4654_v9   ;;  %v14923_v53 = vld [vmem:[#allocation35_spill] sm:$0xff] }
 0x4aa   :  { %14912 = vst [vmem:[#allocation212_spill] sm:$0xff] %v11915_v4  ;;  %4793 = vperm.xlu0 %9560, %v4653_v34   ;;  %v4659_v4 = vld [vmem:[#allocation2 + $0xd0] sm:$0xf] }
 0x4ac   :  { %v11917_v40 = vpop.permute.xlu1 %3766 }
 0x4ad   :  { %14913 = vst [vmem:[#allocation213_spill] sm:$0xff] %v11917_v40  ;;  %v11919_v19 = vpop.permute.xlu0 %3761  ;;  %4808 = vperm.xlu1 %9561, %v4656_v62   ;;  %v4662_v40 = vld [vmem:[#allocation2 + $0xdc] sm:$0xf] }
 0x4ae   :  { %14914 = vst [vmem:[#allocation214_spill] sm:$0xff] %v11919_v19  ;;  %4803 = vperm.xlu0 %9560, %v4655_v54   ;;  %v4661_v19 = vld [vmem:[#allocation2 + $0xd8] sm:$0xf] }
 0x4b0   :  { %v11921_v26 = vpop.permute.xlu1 %3776 }
 0x4b1   :  { %14915 = vst [vmem:[#allocation215_spill] sm:$0xff] %v11921_v26  ;;  %v11923_v60 = vpop.permute.xlu0 %3771  ;;  %4818 = vperm.xlu1 %9561, %v4658_v28   ;;  %v402_v28 = vld [vmem:[%s14521_s4 + $0xf8] sm:$0xf]  ;;  %v4663_v26 = vld [vmem:[#allocation2 + $0xe0] sm:$0xf] }
 0x4b2   :  { %14916 = vst [vmem:[#allocation259_spill] sm:$0xff] %v11923_v60  ;;  %4813 = vperm.xlu0 %9560, %v4657_v15   ;;  %v4664_v15 = vld [vmem:[#allocation2 + $0xe4] sm:$0xf]  ;;  %467 = vst.msk [vmem:[#allocation2 + $0x15c] sm:$0xf] %vm239_vm0, %v402_v28 }
 0x4b3   :  { %v14921_v60 = vld [vmem:[#allocation33_spill] sm:$0xff] }
 0x4b4   :  { %v11925_v9 = vpop.permute.xlu1 %3786 }
 0x4b5   :  { %14917 = vst [vmem:[#allocation260_spill] sm:$0xff] %v11925_v9  ;;  %v11927_v34 = vpop.permute.xlu0 %3781  ;;  %4828 = vperm.xlu1 %9561, %v4660_v27   ;;  %v9758_v9 = vld [vmem:[#allocation6] ss:$0 sm:$0xff]  ;;  %v14922_v27 = vld [vmem:[#allocation34_spill] sm:$0xff] }
 0x4b6   :  { %14918 = vst [vmem:[#allocation216_spill] sm:$0xff] %v11927_v34  ;;  %4823 = vperm.xlu0 %9560, %v4659_v4   ;;  %v877_v34 = vmul.f32 %v9758_v9, %v14921_v60  ;;  %v876_v4 = vmul.f32 %v9758_v9, %v14922_v27  ;;  %v879_v59 = vmul.f32 %v9758_v9, %v14923_v53  ;;  %v14930_v27 = vld [vmem:[#allocation40_spill] sm:$0xff]  ;;  %v14931_v53 = vld [vmem:[#allocation41_spill] sm:$0xff] }
 0x4b7   :  { %v11947_v63 = vmul.f32 %v9758_v9, %v14926_v16  ;;  %v11954_v60 = vmul.f32 %v9758_v9, %v14929_v58  ;;  %v11957_v35 = vmul.f32 %v9758_v9, %v14930_v27  ;;  %v11960_v17 = vmul.f32 %v9758_v9, %v14931_v53  ;;  %v14936_v58 = vld [vmem:[#allocation46_spill] sm:$0xff]  ;;  %v14937_v53 = vld [vmem:[#allocation47_spill] sm:$0xff] }
 0x4b8   :  { %v11929_v62 = vpop.permute.xlu1 %3796  ;;  %v11975_v48 = vmul.f32 %v9758_v9, %v14936_v58  ;;  %v4666_v27 = vld [vmem:[#allocation2 + $0xec] sm:$0xf]  ;;  %v11978_v23 = vmul.f32 %v9758_v9, %v14937_v53  ;;  %v14942_v58 = vld [vmem:[#allocation52_spill] sm:$0xff]  ;;  %v14943_v53 = vld [vmem:[#allocation81_spill] sm:$0xff]  ;;  %v12015_v30 = vmul.f32 %v9758_v9, %v14950_v10 }
 0x4b9   :  { %14919 = vst [vmem:[#allocation217_spill] sm:$0xff] %v11929_v62  ;;  %v11931_v54 = vpop.permute.xlu0 %3791  ;;  %4838 = vperm.xlu1 %9561, %v4662_v40   ;;  %v14924_v62 = vld [vmem:[#allocation36_spill] sm:$0xff]  ;;  %v14925_v40 = vld [vmem:[#allocation37_spill] sm:$0xff]  ;;  %v11993_v44 = vmul.f32 %v9758_v9, %v14942_v58  ;;  %v14949_v58 = vld [vmem:[#allocation55_spill] sm:$0xff] }
 0x4ba   :  { %14920 = vst [vmem:[#allocation218_spill] sm:$0xff] %v11931_v54  ;;  %4833 = vperm.xlu0 %9560, %v4661_v19   ;;  %v11941_v36 = vmul.f32 %v9758_v9, %v14924_v62  ;;  %v11944_v54 = vmul.f32 %v9758_v9, %v14925_v40  ;;  %v14932_v62 = vld [vmem:[#allocation42_spill] sm:$0xff]  ;;  %v14933_v40 = vld [vmem:[#allocation43_spill] sm:$0xff]  ;;  %v12012_v39 = vmul.f32 %v9758_v9, %v14949_v58  ;;  %v14955_v58 = vld [vmem:[#allocation61_spill] sm:$0xff] }
 0x4bb   :  { %v11963_v0 = vmul.f32 %v9758_v9, %v14932_v62  ;;  %v11966_v16 = vmul.f32 %v9758_v9, %v14933_v40  ;;  %v14938_v62 = vld [vmem:[#allocation48_spill] sm:$0xff]  ;;  %v12030_v50 = vmul.f32 %v9758_v9, %v14955_v58  ;;  %v14956_v10 = vld [vmem:[#allocation62_spill] sm:$0xff] }
 0x4bc   :  { %v11949_v19 = vpop.permute.xlu1 %3806  ;;  %v11981_v52 = vmul.f32 %v9758_v9, %v14938_v62  ;;  %v14944_v62 = vld [vmem:[#allocation82_spill] sm:$0xff]  ;;  %v12033_v5 = vmul.f32 %v9758_v9, %v14956_v10 }
 0x4bd   :  { %14927 = vst [vmem:[#allocation219_spill] sm:$0xff] %v11949_v19  ;;  %v11951_v28 = vpop.permute.xlu0 %3801  ;;  %4848 = vperm.xlu1 %9561, %v4664_v15   ;;  %v11969_v19 = vmul.f32 %v9758_v9, %v14934_v41  ;;  %v14939_v15 = vld [vmem:[#allocation49_spill] sm:$0xff]  ;;  %v11987_v41 = vmul.f32 %v9758_v9, %v14940_v6 }
 0x4be   :  { %14928 = vst [vmem:[#allocation220_spill] sm:$0xff] %v11951_v28  ;;  %v14935_v28 = vld [vmem:[#allocation45_spill] sm:$0xff]  ;;  %4843 = vperm.xlu0 %9560, %v4663_v26   ;;  %v11984_v40 = vmul.f32 %v9758_v9, %v14939_v15 }
 0x4bf   :  { %v11972_v13 = vmul.f32 %v9758_v9, %v14935_v28  ;;  %v14941_v28 = vld [vmem:[#allocation51_spill] sm:$0xff]  ;;  %v11995_v26 = vld [vmem:[#allocation6 + $0x1] ss:$0 sm:$0xff] }
 0x4c0   :  { %v11990_v18 = vmul.f32 %v9758_v9, %v14941_v28  ;;  %v1398_v2 = vmul.f32 %v11995_v26, %v14943_v53  ;;  %v1397_v8 = vmul.f32 %v11995_v26, %v14944_v62  ;;  %v12001_v15 = vpop.permute.xlu1 %3816  ;;  %v14947_v6 = vld [vmem:[#allocation53_spill] sm:$0xff]  ;;  %v14948_v28 = vld [vmem:[#allocation54_spill] sm:$0xff]  ;;  %v1399_v58 = vmul.f32 %v11995_v26, %v14960_v46 }
 0x4c1   :  { %14945 = vst [vmem:[#allocation261_spill] sm:$0xff] %v12001_v15  ;;  %v12003_v56 = vpop.permute.xlu0 %3811  ;;  %v12006_v57 = vmul.f32 %v9758_v9, %v14947_v6  ;;  %v12009_v31 = vmul.f32 %v9758_v9, %v14948_v28  ;;  %4858 = vperm.xlu1 %9561, %v4666_v27   ;;  %v14951_v53 = vld [vmem:[#allocation57_spill] sm:$0xff]  ;;  %v14952_v62 = vld [vmem:[#allocation58_spill] sm:$0xff]  ;;  %v14954_v6 = vld [vmem:[#allocation60_spill] sm:$0xff] }
 0x4c2   :  { %14946 = vst [vmem:[#allocation262_spill] sm:$0xff] %v12003_v56  ;;  %v12018_v51 = vmul.f32 %v9758_v9, %v14951_v53  ;;  %v12021_v15 = vmul.f32 %v9758_v9, %v14952_v62  ;;  %v14953_v56 = vld [vmem:[#allocation59_spill] sm:$0xff]  ;;  %v12027_v29 = vmul.f32 %v9758_v9, %v14954_v6  ;;  %4853 = vperm.xlu0 %9560, %v4665_v11   ;;  %v4668_v28 = vld [vmem:[#allocation2 + $0xfc] sm:$0xf] }
 0x4c3   :  { %v12024_v25 = vmul.f32 %v9758_v9, %v14953_v56  ;;  %v14957_v27 = vld [vmem:[#allocation63_spill] sm:$0xff]  ;;  %v1400_v62 = vmul.f32 %v11995_v26, %v14958_v32  ;;  %v14959_v56 = vld [vmem:[#allocation64_spill] sm:$0xff]  ;;  %v12043_v6 = vadd.f32 %v1398_v2, %v877_v34  ;;  %v12045_v11 = vadd.f32 %v1397_v8, %v876_v4  ;;  %v14967_v34 = vld [vmem:[#allocation89_spill] sm:$0xff] }
 0x4c4   :  { %v12036_v53 = vmul.f32 %v9758_v9, %v14957_v27  ;;  %v12041_v24 = vmul.f32 %v9758_v9, %v14959_v56  ;;  %v12049_v37 = vpop.permute.xlu1 %3826  ;;  %v14963_v27 = vld [vmem:[#allocation85_spill] sm:$0xff]  ;;  %v1401_v32 = vmul.f32 %v11995_v26, %v14964_v14  ;;  %v1404_v9 = vmul.f32 %v11995_v26, %v14965_v21  ;;  %v14966_v2 = vld [vmem:[#allocation88_spill] sm:$0xff]  ;;  %v14968_v4 = vld [vmem:[#allocation90_spill] sm:$0xff] }
 0x4c5   :  { %14961 = vst [vmem:[#allocation221_spill] sm:$0xff] %v12049_v37  ;;  %v12051_v10 = vpop.permute.xlu0 %3821  ;;  %v1402_v3 = vmul.f32 %v11995_v26, %v14963_v27  ;;  %v1403_v8 = vmul.f32 %v11995_v26, %v14966_v2  ;;  %4868 = vperm.xlu1 %9561, %v4668_v28   ;;  %v1406_v46 = vmul.f32 %v11995_v26, %v14967_v34  ;;  %v14970_v27 = vld [vmem:[#allocation92_spill] sm:$0xff]  ;;  %v4670_v14 = vld [vmem:[#allocation2 + $0x104] sm:$0xf]  ;;  %v14972_v28 = vld [vmem:[#allocation94_spill] sm:$0xff] }
 0x4c6   :  { %14962 = vst [vmem:[#allocation222_spill] sm:$0xff] %v12051_v10  ;;  %v1405_v56 = vmul.f32 %v11995_v26, %v14968_v4  ;;  %v14969_v10 = vld [vmem:[#allocation91_spill] sm:$0xff]  ;;  %v1407_v22 = vmul.f32 %v11995_v26, %v14970_v27  ;;  %4863 = vperm.xlu0 %9560, %v4667_v61   ;;  %v12069_v20 = vadd.f32 %v1400_v62, %v879_v59  ;;  %v14971_v21 = vld [vmem:[#allocation93_spill] sm:$0xff]  ;;  %v14976_v62 = vld [vmem:[#allocation98_spill] sm:$0xff] }
 0x4c7   :  { %v1408_v37 = vmul.f32 %v11995_v26, %v14969_v10  ;;  %v1410_v2 = vmul.f32 %v11995_v26, %v14971_v21  ;;  %v1409_v12 = vmul.f32 %v11995_v26, %v14972_v28  ;;  %v14973_v34 = vld [vmem:[#allocation95_spill] sm:$0xff]  ;;  %v4669_v4 = vld [vmem:[#allocation2 + $0x100] sm:$0xf]  ;;  %v12078_v55 = vadd.f32 %v1399_v58, %v11941_v36 }
 0x4c8   :  { %v1412_v45 = vmul.f32 %v11995_v26, %v14973_v34  ;;  %v14974_v10 = vld [vmem:[#allocation96_spill] sm:$0xff]  ;;  %v14975_v61 = vld [vmem:[#allocation97_spill] sm:$0xff]  ;;  %v1413_v49 = vmul.f32 %v11995_v26, %v14976_v62  ;;  %v12086_v21 = vpop.permute.xlu1 %3836  ;;  %v12089_v28 = vadd.f32 %v1402_v3, %v11944_v54  ;;  %v12092_v34 = vadd.f32 %v1401_v32, %v11947_v63  ;;  %v4672_v54 = vld [vmem:[#allocation2 + $0x10c] sm:$0xf] }
 0x4c9   :  { %v1411_v27 = vmul.f32 %v11995_v26, %v14974_v10  ;;  %v1414_v59 = vmul.f32 %v11995_v26, %v14975_v61  ;;  %14977 = vst [vmem:[#allocation223_spill] sm:$0xff] %v12086_v21  ;;  %v12095_v36 = vadd.f32 %v1404_v9, %v11954_v60  ;;  %v12098_v58 = vadd.f32 %v1403_v8, %v11957_v35  ;;  %v12100_v10 = vpop.permute.xlu0 %3831  ;;  %v14979_v32 = vld [vmem:[#allocation99_spill] sm:$0xff]  ;;  %v4671_v9 = vld [vmem:[#allocation2 + $0x108] sm:$0xf]  ;;  %v14996_v21 = vld [vmem:[#allocation180_spill] sm:$0xff] }
 0x4ca   :  { %14978 = vst [vmem:[#allocation224_spill] sm:$0xff] %v12100_v10  ;;  %4878 = vperm.xlu1 %9561, %v4670_v14   ;;  %v12103_v61 = vadd.f32 %v1406_v46, %v11960_v17  ;;  %v12106_v62 = vadd.f32 %v1405_v56, %v11963_v0  ;;  %v12109_v3 = vadd.f32 %v1408_v37, %v11966_v16  ;;  %v14983_v16 = vld [vmem:[#allocation102_spill] sm:$0xff]  ;;  %v14984_v46 = vld [vmem:[#allocation103_spill] sm:$0xff]  ;;  %v14985_v56 = vld [vmem:[#allocation104_spill] sm:$0xff] }
 0x4cb   :  { %v12112_v63 = vadd.f32 %v1407_v22, %v11969_v19  ;;  %4873 = vperm.xlu0 %9560, %v4669_v4   ;;  %v12115_v35 = vadd.f32 %v1410_v2, %v11972_v13  ;;  %v12118_v60 = vadd.f32 %v1409_v12, %v11975_v48  ;;  %v12121_v17 = vadd.f32 %v1412_v45, %v11978_v23  ;;  %v14980_v13 = vld [vmem:[#allocation100_spill] sm:$0xff]  ;;  %v14982_v45 = vld [vmem:[#allocation101_spill] sm:$0xff]  ;;  %v14988_v2 = vld [vmem:[#allocation106_spill] sm:$0xff] }
 0x4cc   :  { %v1416_v0 = vmul.f32 %v11995_v26, %v14979_v32  ;;  %v12126_v37 = vadd.f32 %v1411_v27, %v11981_v52  ;;  %v12129_v22 = vadd.f32 %v1414_v59, %v11984_v40  ;;  %v12132_v19 = vadd.f32 %v1413_v49, %v11987_v41  ;;  %v12136_v48 = vpop.permute.xlu1 %3846  ;;  %v14987_v49 = vld [vmem:[#allocation105_spill] sm:$0xff]  ;;  %v14989_v27 = vld [vmem:[#allocation107_spill] sm:$0xff]  ;;  %v14990_v32 = vld [vmem:[#allocation108_spill] sm:$0xff] }
 0x4cd   :  { %v1415_v12 = vmul.f32 %v11995_v26, %v14980_v13  ;;  %14981 = vst [vmem:[#allocation225_spill] sm:$0xff] %v12136_v48  ;;  %v1418_v23 = vmul.f32 %v11995_v26, %v14982_v45  ;;  %v1417_v8 = vmul.f32 %v11995_v26, %v14983_v16  ;;  %v1420_v52 = vmul.f32 %v11995_v26, %v14984_v46  ;;  %v12146_v14 = vpop.permute.xlu0 %3841  ;;  %v4674_v45 = vld [vmem:[#allocation2 + $0x114] sm:$0xf]  ;;  %v14991_v46 = vld [vmem:[#allocation109_spill] sm:$0xff]  ;;  %v4673_v48 = vld [vmem:[#allocation2 + $0x110] sm:$0xf] }
 0x4ce   :  { %v1419_v40 = vmul.f32 %v11995_v26, %v14985_v56  ;;  %14986 = vst [vmem:[#allocation226_spill] sm:$0xff] %v12146_v14  ;;  %4888 = vperm.xlu1 %9561, %v4672_v54   ;;  %v1422_v41 = vmul.f32 %v11995_v26, %v14987_v49  ;;  %v1421_v4 = vmul.f32 %v11995_v26, %v14988_v2  ;;  %v14992_v56 = vld [vmem:[#allocation110_spill] sm:$0xff]  ;;  %v14993_v14 = vld [vmem:[#allocation111_spill] sm:$0xff]  ;;  %v14994_v10 = vld [vmem:[#allocation112_spill] sm:$0xff] }
 0x4cf   :  { %v1424_v59 = vmul.f32 %v11995_v26, %v14989_v27  ;;  %v1423_v13 = vmul.f32 %v11995_v26, %v14990_v32  ;;  %4883 = vperm.xlu0 %9560, %v4671_v9   ;;  %v12157_v16 = vadd.f32 %v1416_v0, %v11990_v18  ;;  %v1426_v54 = vmul.f32 %v11995_v26, %v14991_v46  ;;  %v12170_v32 = vld [vmem:[#allocation6 + $0x2] ss:$0 sm:$0xff]  ;;  %v14995_v18 = vld [vmem:[#allocation179_spill] sm:$0xff] }
 0x4d0   :  { %v1425_v49 = vmul.f32 %v11995_v26, %v14992_v56  ;;  %v1428_v2 = vmul.f32 %v11995_v26, %v14993_v14  ;;  %v12166_v27 = vadd.f32 %v1415_v12, %v11993_v44  ;;  %v1427_v9 = vmul.f32 %v11995_v26, %v14994_v10  ;;  %v12176_v1 = vpop.permute.xlu1 %3856 }
 0x4d1   :  { %v1919_v0 = vmul.f32 %v12170_v32, %v14995_v18  ;;  %v1918_v46 = vmul.f32 %v12170_v32, %v14996_v21  ;;  %14997 = vst [vmem:[#allocation263_spill] sm:$0xff] %v12176_v1  ;;  %v12179_v56 = vadd.f32 %v1418_v23, %v12006_v57  ;;  %v12182_v14 = vadd.f32 %v1417_v8, %v12009_v31  ;;  %v12190_v10 = vpop.permute.xlu0 %3851  ;;  %v14999_v8 = vld [vmem:[#allocation181_spill] sm:$0xff] }
 0x4d2   :  { %v12185_v44 = vadd.f32 %v1420_v52, %v12012_v39  ;;  %v12188_v26 = vadd.f32 %v1419_v40, %v12015_v30  ;;  %14998 = vst [vmem:[#allocation264_spill] sm:$0xff] %v12190_v10  ;;  %4898 = vperm.xlu1 %9561, %v4674_v45   ;;  %v12193_v12 = vadd.f32 %v1422_v41, %v12018_v51  ;;  %v4676_v39 = vld [vmem:[#allocation2 + $0x124] sm:$0xf]  ;;  %v4675_v52 = vld [vmem:[#allocation2 + $0x120] sm:$0xf]  ;;  %v15005_v45 = vld [vmem:[#allocation186_spill] sm:$0xff] }
 0x4d3   :  { %v12196_v21 = vadd.f32 %v1421_v4, %v12021_v15  ;;  %v12199_v57 = vadd.f32 %v1424_v59, %v12024_v25  ;;  %v12202_v31 = vadd.f32 %v1423_v13, %v12027_v29  ;;  %4893 = vperm.xlu0 %9560, %v4673_v48   ;;  %v12205_v30 = vadd.f32 %v1426_v54, %v12030_v50  ;;  %v15000_v50 = vld [vmem:[#allocation182_spill] sm:$0xff]  ;;  %v15003_v4 = vld [vmem:[#allocation184_spill] sm:$0xff]  ;;  %v15004_v13 = vld [vmem:[#allocation185_spill] sm:$0xff] }
 0x4d4   :  { %v12208_v23 = vadd.f32 %v1425_v49, %v12033_v5  ;;  %v12211_v51 = vadd.f32 %v1428_v2, %v12036_v53  ;;  %v1921_v15 = vmul.f32 %v12170_v32, %v14999_v8  ;;  %v12216_v25 = vadd.f32 %v1427_v9, %v12041_v24  ;;  %v12226_v40 = vpop.permute.xlu1 %3866  ;;  %v15002_v53 = vld [vmem:[#allocation183_spill] sm:$0xff]  ;;  %v15008_v2 = vld [vmem:[#allocation188_spill] sm:$0xff]  ;;  %v15009_v18 = vld [vmem:[#allocation189_spill] sm:$0xff] }
 0x4d5   :  { %v12219_v29 = vadd.f32 %v1919_v0, %v12043_v6  ;;  %v12222_v48 = vadd.f32 %v1918_v46, %v12045_v11  ;;  %v1920_v5 = vmul.f32 %v12170_v32, %v15000_v50  ;;  %15001 = vst [vmem:[#allocation265_spill] sm:$0xff] %v12226_v40  ;;  %v1923_v41 = vmul.f32 %v12170_v32, %v15002_v53  ;;  %v12236_v54 = vpop.permute.xlu0 %3861  ;;  %v15007_v11 = vld [vmem:[#allocation187_spill] sm:$0xff]  ;;  %v15010_v46 = vld [vmem:[#allocation190_spill] sm:$0xff] }
 0x4d6   :  { %v1922_v59 = vmul.f32 %v12170_v32, %v15003_v4  ;;  %v1925_v24 = vmul.f32 %v12170_v32, %v15004_v13  ;;  %v1924_v6 = vmul.f32 %v12170_v32, %v15005_v45  ;;  %15006 = vst [vmem:[#allocation266_spill] sm:$0xff] %v12236_v54  ;;  %4908 = vperm.xlu1 %9561, %v4676_v39   ;;  %v4678_v50 = vld [vmem:[#allocation2 + $0x12c] sm:$0xf]  ;;  %v15011_v4 = vld [vmem:[#allocation191_spill] sm:$0xff]  ;;  %v15012_v13 = vld [vmem:[#allocation192_spill] sm:$0xff] }
 0x4d7   :  { %v1927_v49 = vmul.f32 %v12170_v32, %v15007_v11  ;;  %v1926_v9 = vmul.f32 %v12170_v32, %v15008_v2  ;;  %v1929_v0 = vmul.f32 %v12170_v32, %v15009_v18  ;;  %v1928_v8 = vmul.f32 %v12170_v32, %v15010_v46  ;;  %4903 = vperm.xlu0 %9560, %v4675_v52   ;;  %v15013_v11 = vld [vmem:[#allocation193_spill] sm:$0xff]  ;;  %v15014_v40 = vld [vmem:[#allocation194_spill] sm:$0xff]  ;;  %v15015_v46 = vld [vmem:[#allocation195_spill] sm:$0xff] }
 0x4d8   :  { %v12247_v53 = vadd.f32 %v1921_v15, %v12069_v20  ;;  %v1931_v39 = vmul.f32 %v12170_v32, %v15011_v4  ;;  %v1930_v45 = vmul.f32 %v12170_v32, %v15012_v13  ;;  %v1933_v2 = vmul.f32 %v12170_v32, %v15013_v11  ;;  %v4677_v54 = vld [vmem:[#allocation2 + $0x128] sm:$0xf]  ;;  %v15016_v15 = vld [vmem:[#allocation196_spill] sm:$0xff]  ;;  %v12264_v4 = vpop.permute.xlu1 %3876 }
 0x4d9   :  { %v12256_v18 = vadd.f32 %v1920_v5, %v12078_v55  ;;  %v1932_v52 = vmul.f32 %v12170_v32, %v15014_v40  ;;  %v1935_v20 = vmul.f32 %v12170_v32, %v15015_v46  ;;  %v1934_v10 = vmul.f32 %v12170_v32, %v15016_v15  ;;  %15017 = vst [vmem:[#allocation267_spill] sm:$0xff] %v12264_v4  ;;  %v12278_v40 = vpop.permute.xlu0 %3871  ;;  %v15036_v4 = vld [vmem:[#allocation228_spill] sm:$0xff] }
 0x4da   :  { %v12267_v13 = vadd.f32 %v1923_v41, %v12089_v28  ;;  %v12270_v11 = vadd.f32 %v1922_v59, %v12092_v34  ;;  %v12273_v55 = vadd.f32 %v1925_v24, %v12095_v36  ;;  %v12276_v5 = vadd.f32 %v1924_v6, %v12098_v58  ;;  %15018 = vst [vmem:[#allocation268_spill] sm:$0xff] %v12278_v40  ;;  %v4680_v36 = vld [vmem:[#allocation2 + $0x134] sm:$0xf]  ;;  %v15019_v59 = vld [vmem:[#allocation197_spill] sm:$0xff]  ;;  %v4679_v24 = vld [vmem:[#allocation2 + $0x130] sm:$0xf] }
 0x4db   :  { %4918 = vperm.xlu1 %9561, %v4678_v50   ;;  %v12281_v46 = vadd.f32 %v1927_v49, %v12103_v61  ;;  %v12284_v15 = vadd.f32 %v1926_v9, %v12106_v62  ;;  %v12287_v28 = vadd.f32 %v1929_v0, %v12109_v3  ;;  %v12290_v34 = vadd.f32 %v1928_v8, %v12112_v63  ;;  %v15023_v9 = vld [vmem:[#allocation200_spill] sm:$0xff]  ;;  %v15024_v8 = vld [vmem:[#allocation201_spill] sm:$0xff]  ;;  %v15025_v50 = vld [vmem:[#allocation202_spill] sm:$0xff] }
 0x4dc   :  { %4913 = vperm.xlu0 %9560, %v4677_v54   ;;  %v12293_v58 = vadd.f32 %v1931_v39, %v12115_v35  ;;  %v12296_v41 = vadd.f32 %v1930_v45, %v12118_v60  ;;  %v12299_v61 = vadd.f32 %v1933_v2, %v12121_v17  ;;  %v1937_v62 = vmul.f32 %v12170_v32, %v15019_v59  ;;  %v15020_v35 = vld [vmem:[#allocation198_spill] sm:$0xff]  ;;  %v12314_v54 = vpop.permute.xlu1 %3886  ;;  %v15022_v17 = vld [vmem:[#allocation199_spill] sm:$0xff]  ;;  %v15028_v45 = vld [vmem:[#allocation204_spill] sm:$0xff] }
 0x4dd   :  { %v12304_v3 = vadd.f32 %v1932_v52, %v12126_v37  ;;  %v12307_v63 = vadd.f32 %v1935_v20, %v12129_v22  ;;  %v12310_v6 = vadd.f32 %v1934_v10, %v12132_v19  ;;  %v1936_v60 = vmul.f32 %v12170_v32, %v15020_v35  ;;  %15021 = vst [vmem:[#allocation269_spill] sm:$0xff] %v12314_v54  ;;  %v12324_v39 = vpop.permute.xlu0 %3881  ;;  %v15027_v19 = vld [vmem:[#allocation203_spill] sm:$0xff]  ;;  %v15029_v52 = vld [vmem:[#allocation205_spill] sm:$0xff]  ;;  %v15030_v59 = vld [vmem:[#allocation206_spill] sm:$0xff] }
 0x4de   :  { %v1939_v49 = vmul.f32 %v12170_v32, %v15022_v17  ;;  %v1938_v0 = vmul.f32 %v12170_v32, %v15023_v9  ;;  %v1941_v37 = vmul.f32 %v12170_v32, %v15024_v8  ;;  %v1940_v22 = vmul.f32 %v12170_v32, %v15025_v50  ;;  %15026 = vst [vmem:[#allocation270_spill] sm:$0xff] %v12324_v39  ;;  %v4682_v17 = vld [vmem:[#allocation2 + $0x13c] sm:$0xf]  ;;  %v15031_v8 = vld [vmem:[#allocation207_spill] sm:$0xff]  ;;  %v15033_v39 = vld [vmem:[#allocation209_spill] sm:$0xff] }
 0x4df   :  { %4928 = vperm.xlu1 %9561, %v4680_v36   ;;  %v1943_v10 = vmul.f32 %v12170_v32, %v15027_v19  ;;  %v1942_v2 = vmul.f32 %v12170_v32, %v15028_v45  ;;  %v1945_v20 = vmul.f32 %v12170_v32, %v15029_v52  ;;  %v1944_v35 = vmul.f32 %v12170_v32, %v15030_v59  ;;  %v15032_v50 = vld [vmem:[#allocation208_spill] sm:$0xff]  ;;  %v15034_v40 = vld [vmem:[#allocation210_spill] sm:$0xff]  ;;  %v12348_v59 = vld [vmem:[#allocation6 + $0x3] ss:$0 sm:$0xff] }
 0x4e0   :  { %4923 = vperm.xlu0 %9560, %v4679_v24   ;;  %v12335_v9 = vadd.f32 %v1937_v62, %v12157_v16  ;;  %v1947_v36 = vmul.f32 %v12170_v32, %v15031_v8  ;;  %v1946_v19 = vmul.f32 %v12170_v32, %v15032_v50  ;;  %v1949_v45 = vmul.f32 %v12170_v32, %v15033_v39  ;;  %v4681_v54 = vld [vmem:[#allocation2 + $0x138] sm:$0xf]  ;;  %v12354_v1 = vpop.permute.xlu1 %3896 }
 0x4e1   :  { %v12344_v52 = vadd.f32 %v1936_v60, %v12166_v27  ;;  %v1948_v24 = vmul.f32 %v12170_v32, %v15034_v40  ;;  %v15035_v16 = vld [vmem:[#allocation227_spill] sm:$0xff]  ;;  %v2439_v8 = vmul.f32 %v12348_v59, %v15036_v4  ;;  %15037 = vst [vmem:[#allocation271_spill] sm:$0xff] %v12354_v1  ;;  %v12357_v50 = vadd.f32 %v1939_v49, %v12179_v56  ;;  %v12368_v40 = vpop.permute.xlu0 %3891  ;;  %v15054_v1 = vld [vmem:[#allocation242_spill] sm:$0xff] }
 0x4e2   :  { %v2440_v62 = vmul.f32 %v12348_v59, %v15035_v16  ;;  %v12360_v39 = vadd.f32 %v1938_v0, %v12182_v14  ;;  %v12363_v27 = vadd.f32 %v1941_v37, %v12185_v44  ;;  %v12366_v32 = vadd.f32 %v1940_v22, %v12188_v26  ;;  %15038 = vst [vmem:[#allocation272_spill] sm:$0xff] %v12368_v40  ;;  %v1559_v44 = vld [vmem:[#allocation2 + $0xfc] sm:$0xf]  ;;  %v15039_v0 = vld [vmem:[#allocation229_spill] sm:$0xff]  ;;  %v1558_v37 = vld [vmem:[#allocation2 + $0xf8] sm:$0xf] }
 0x4e3   :  { %4938 = vperm.xlu1 %9561, %v4682_v17   ;;  %v12371_v60 = vadd.f32 %v1943_v10, %v12193_v12  ;;  %v12374_v4 = vadd.f32 %v1942_v2, %v12196_v21  ;;  %v12377_v56 = vadd.f32 %v1945_v20, %v12199_v57  ;;  %v12380_v14 = vadd.f32 %v1944_v35, %v12202_v31  ;;  %v15043_v2 = vld [vmem:[#allocation232_spill] sm:$0xff]  ;;  %v15044_v35 = vld [vmem:[#allocation233_spill] sm:$0xff]  ;;  %v15045_v17 = vld [vmem:[#allocation234_spill] sm:$0xff] }
 0x4e4   :  { %4933 = vperm.xlu0 %9560, %v4681_v54   ;;  %v12383_v26 = vadd.f32 %v1947_v36, %v12205_v30  ;;  %v12386_v49 = vadd.f32 %v1946_v19, %v12208_v23  ;;  %v12389_v12 = vadd.f32 %v1949_v45, %v12211_v51  ;;  %v2442_v21 = vmul.f32 %v12348_v59, %v15039_v0  ;;  %v15040_v30 = vld [vmem:[#allocation230_spill] sm:$0xff]  ;;  %v12404_v22 = vpop.permute.xlu1 %4267  ;;  %v15042_v51 = vld [vmem:[#allocation231_spill] sm:$0xff]  ;;  %v15048_v45 = vld [vmem:[#allocation236_spill] sm:$0xff] }
 0x4e5   :  { %v12394_v57 = vadd.f32 %v1948_v24, %v12216_v25  ;;  %v12397_v31 = vadd.f32 %v2440_v62, %v12219_v29  ;;  %v12400_v54 = vadd.f32 %v2439_v8, %v12222_v48  ;;  %v2441_v23 = vmul.f32 %v12348_v59, %v15040_v30  ;;  %15041 = vst [vmem:[#allocation273_spill] sm:$0xff] %v12404_v22  ;;  %v12414_v36 = vpop.permute.xlu0 %4262  ;;  %v15047_v48 = vld [vmem:[#allocation235_spill] sm:$0xff]  ;;  %v15049_v16 = vld [vmem:[#allocation237_spill] sm:$0xff]  ;;  %v15050_v8 = vld [vmem:[#allocation238_spill] sm:$0xff] }
 0x4e6   :  { %v2444_v10 = vmul.f32 %v12348_v59, %v15042_v51  ;;  %v2443_v20 = vmul.f32 %v12348_v59, %v15043_v2  ;;  %v2446_v25 = vmul.f32 %v12348_v59, %v15044_v35  ;;  %v2445_v29 = vmul.f32 %v12348_v59, %v15045_v17  ;;  %15046 = vst [vmem:[#allocation274_spill] sm:$0xff] %v12414_v36  ;;  %v1561_v30 = vld [vmem:[#allocation2 + $0x104] sm:$0xf]  ;;  %v15051_v2 = vld [vmem:[#allocation239_spill] sm:$0xff]  ;;  %v15052_v35 = vld [vmem:[#allocation240_spill] sm:$0xff] }
 0x4e7   :  { %1823 = vperm.xlu1 %9561, %v1559_v44   ;;  %v2448_v19 = vmul.f32 %v12348_v59, %v15047_v48  ;;  %v2447_v24 = vmul.f32 %v12348_v59, %v15048_v45  ;;  %v2450_v62 = vmul.f32 %v12348_v59, %v15049_v16  ;;  %v2449_v0 = vmul.f32 %v12348_v59, %v15050_v8  ;;  %v15053_v48 = vld [vmem:[#allocation241_spill] sm:$0xff]  ;;  %v15055_v8 = vld [vmem:[#allocation243_spill] sm:$0xff] }
 0x4e8   :  { %1818 = vperm.xlu0 %9560, %v1558_v37   ;;  %v12425_v51 = vadd.f32 %v2442_v21, %v12247_v53  ;;  %v2452_v44 = vmul.f32 %v12348_v59, %v15051_v2  ;;  %v2451_v17 = vmul.f32 %v12348_v59, %v15052_v35  ;;  %v2454_v45 = vmul.f32 %v12348_v59, %v15053_v48  ;;  %v1560_v40 = vld [vmem:[#allocation2 + $0x100] sm:$0xf]  ;;  %v12442_v2 = vpop.permute.xlu1 %4277 }
 0x4e9   :  { %v12434_v16 = vadd.f32 %v2441_v23, %v12256_v18  ;;  %v2453_v37 = vmul.f32 %v12348_v59, %v15054_v1  ;;  %v2456_v53 = vmul.f32 %v12348_v59, %v15055_v8  ;;  %v15056_v21 = vld [vmem:[#allocation244_spill] sm:$0xff]  ;;  %15057 = vst [vmem:[#allocation33_spill] sm:$0xff] %v12442_v2  ;;  %v12445_v35 = vadd.f32 %v2444_v10, %v12267_v13  ;;  %v12456_v1 = vpop.permute.xlu0 %4272 }
 0x4ea   :  { %v2455_v36 = vmul.f32 %v12348_v59, %v15056_v21  ;;  %v12448_v48 = vadd.f32 %v2443_v20, %v12270_v11  ;;  %v12451_v18 = vadd.f32 %v2446_v25, %v12273_v55  ;;  %v12454_v23 = vadd.f32 %v2445_v29, %v12276_v5  ;;  %15058 = vst [vmem:[#allocation34_spill] sm:$0xff] %v12456_v1  ;;  %v1563_v55 = vld [vmem:[#allocation2 + $0x10c] sm:$0xf]  ;;  %v15059_v20 = vld [vmem:[#allocation245_spill] sm:$0xff]  ;;  %v15076_v2 = vld [vmem:[#allocation276_spill] sm:$0xff] }
 0x4eb   :  { %1833 = vperm.xlu1 %9561, %v1561_v30   ;;  %v12459_v8 = vadd.f32 %v2448_v19, %v12281_v46  ;;  %v12462_v21 = vadd.f32 %v2447_v24, %v12284_v15  ;;  %v12465_v13 = vadd.f32 %v2450_v62, %v12287_v28  ;;  %v12468_v11 = vadd.f32 %v2449_v0, %v12290_v34  ;;  %v1562_v25 = vld [vmem:[#allocation2 + $0x108] sm:$0xf]  ;;  %v15063_v24 = vld [vmem:[#allocation248_spill] sm:$0xff] }
 0x4ec   :  { %1828 = vperm.xlu0 %9560, %v1560_v40   ;;  %v12471_v5 = vadd.f32 %v2452_v44, %v12293_v58  ;;  %v12474_v10 = vadd.f32 %v2451_v17, %v12296_v41  ;;  %v12477_v46 = vadd.f32 %v2454_v45, %v12299_v61  ;;  %v2458_v15 = vmul.f32 %v12348_v59, %v15059_v20  ;;  %v15060_v58 = vld [vmem:[#allocation246_spill] sm:$0xff]  ;;  %v12492_v29 = vpop.permute.xlu1 %4287  ;;  %v15062_v61 = vld [vmem:[#allocation247_spill] sm:$0xff]  ;;  %v15064_v0 = vld [vmem:[#allocation249_spill] sm:$0xff] }
 0x4ed   :  { %v12482_v28 = vadd.f32 %v2453_v37, %v12304_v3  ;;  %v12485_v34 = vadd.f32 %v2456_v53, %v12307_v63  ;;  %v12488_v40 = vadd.f32 %v2455_v36, %v12310_v6  ;;  %v2457_v41 = vmul.f32 %v12348_v59, %v15060_v58  ;;  %15061 = vst [vmem:[#allocation35_spill] sm:$0xff] %v12492_v29  ;;  %v15065_v30 = vld [vmem:[#allocation250_spill] sm:$0xff]  ;;  %v12502_v44 = vpop.permute.xlu0 %4282  ;;  %v15067_v6 = vld [vmem:[#allocation251_spill] sm:$0xff]  ;;  %v15068_v17 = vld [vmem:[#allocation252_spill] sm:$0xff] }
 0x4ee   :  { %v2460_v19 = vmul.f32 %v12348_v59, %v15062_v61  ;;  %v2459_v62 = vmul.f32 %v12348_v59, %v15063_v24  ;;  %v2462_v3 = vmul.f32 %v12348_v59, %v15064_v0  ;;  %v2461_v63 = vmul.f32 %v12348_v59, %v15065_v30  ;;  %15066 = vst [vmem:[#allocation36_spill] sm:$0xff] %v12502_v44  ;;  %v15069_v37 = vld [vmem:[#allocation253_spill] sm:$0xff]  ;;  %v15070_v20 = vld [vmem:[#allocation254_spill] sm:$0xff]  ;;  %v15071_v0 = vld [vmem:[#allocation255_spill] sm:$0xff] }
 0x4ef   :  { %1843 = vperm.xlu1 %9561, %v1563_v55   ;;  %v2464_v36 = vmul.f32 %v12348_v59, %v15067_v6  ;;  %v2463_v45 = vmul.f32 %v12348_v59, %v15068_v17  ;;  %v2466_v53 = vmul.f32 %v12348_v59, %v15069_v37  ;;  %v2465_v58 = vmul.f32 %v12348_v59, %v15070_v20  ;;  %v1567_v61 = vld [vmem:[#allocation2 + $0x124] sm:$0xf]  ;;  %v15072_v30 = vld [vmem:[#allocation256_spill] sm:$0xff]  ;;  %v15074_v1 = vld [vmem:[#allocation258_spill] sm:$0xff] }
 0x4f0   :  { %1838 = vperm.xlu0 %9560, %v1562_v25   ;;  %v12513_v24 = vadd.f32 %v2458_v15, %v12335_v9  ;;  %v2468_v55 = vmul.f32 %v12348_v59, %v15071_v0  ;;  %v2467_v6 = vmul.f32 %v12348_v59, %v15072_v30  ;;  %v15073_v44 = vld [vmem:[#allocation257_spill] sm:$0xff]  ;;  %v12522_v37 = vadd.f32 %v2457_v41, %v12344_v52  ;;  %v15075_v9 = vld [vmem:[#allocation275_spill] sm:$0xff]  ;;  %v12532_v22 = vpop.permute.xlu1 %4297 }
 0x4f1   :  { %v2470_v17 = vmul.f32 %v12348_v59, %v15073_v44  ;;  %v1566_v29 = vld [vmem:[#allocation2 + $0x120] sm:$0xf]  ;;  %v2469_v25 = vmul.f32 %v12348_v59, %v15074_v1  ;;  %v12526_v20 = vld [vmem:[#allocation6 + $0x4] ss:$0 sm:$0xff]  ;;  %v12535_v30 = vadd.f32 %v2460_v19, %v12357_v50  ;;  %v12538_v44 = vadd.f32 %v2459_v62, %v12360_v39  ;;  %v12546_v1 = vpop.permute.xlu0 %4292 }
 0x4f2   :  { %v2960_v15 = vmul.f32 %v12526_v20, %v15075_v9  ;;  %v2959_v0 = vmul.f32 %v12526_v20, %v15076_v2  ;;  %v12541_v52 = vadd.f32 %v2462_v3, %v12363_v27  ;;  %v12544_v59 = vadd.f32 %v2461_v63, %v12366_v32  ;;  %v1569_v27 = vld [vmem:[#allocation2 + $0x12c] sm:$0xf]  ;;  %v15077_v62 = vld [vmem:[#allocation277_spill] sm:$0xff] }
 0x4f3   :  { %1863 = vperm.xlu1 %9561, %v1567_v61   ;;  %v12549_v41 = vadd.f32 %v2464_v36, %v12371_v60  ;;  %v12552_v2 = vadd.f32 %v2463_v45, %v12374_v4  ;;  %v12555_v50 = vadd.f32 %v2466_v53, %v12377_v56  ;;  %v12558_v39 = vadd.f32 %v2465_v58, %v12380_v14  ;;  %v1568_v3 = vld [vmem:[#allocation2 + $0x128] sm:$0xf]  ;;  %v15080_v45 = vld [vmem:[#allocation280_spill] sm:$0xff] }
 0x4f4   :  { %1858 = vperm.xlu0 %9560, %v1566_v29   ;;  %v12561_v32 = vadd.f32 %v2468_v55, %v12383_v26  ;;  %v12564_v19 = vadd.f32 %v2467_v6, %v12386_v49  ;;  %v12567_v60 = vadd.f32 %v2470_v17, %v12389_v12  ;;  %v2962_v4 = vmul.f32 %v12526_v20, %v15077_v62  ;;  %v15078_v26 = vld [vmem:[#allocation278_spill] sm:$0xff]  ;;  %v12582_v63 = vpop.permute.xlu1 %4307  ;;  %v15079_v12 = vld [vmem:[#allocation279_spill] sm:$0xff]  ;;  %v15081_v58 = vld [vmem:[#allocation281_spill] sm:$0xff] }
 0x4f5   :  { %v12572_v56 = vadd.f32 %v2469_v25, %v12394_v57  ;;  %v12575_v14 = vadd.f32 %v2960_v15, %v12397_v31  ;;  %v12578_v29 = vadd.f32 %v2959_v0, %v12400_v54  ;;  %v2961_v49 = vmul.f32 %v12526_v20, %v15078_v26  ;;  %v15082_v61 = vld [vmem:[#allocation282_spill] sm:$0xff]  ;;  %v12592_v55 = vpop.permute.xlu0 %4302  ;;  %v15083_v54 = vld [vmem:[#allocation283_spill] sm:$0xff]  ;;  %v15084_v17 = vld [vmem:[#allocation284_spill] sm:$0xff] }
 0x4f6   :  { %v2964_v36 = vmul.f32 %v12526_v20, %v15079_v12  ;;  %v2963_v53 = vmul.f32 %v12526_v20, %v15080_v45  ;;  %v2966_v57 = vmul.f32 %v12526_v20, %v15081_v58  ;;  %v2965_v31 = vmul.f32 %v12526_v20, %v15082_v61  ;;  %v1571_v0 = vld [vmem:[#allocation2 + $0x134] sm:$0xf]  ;;  %v1570_v45 = vld [vmem:[#allocation2 + $0x130] sm:$0xf] }
 0x4f7   :  { %1873 = vperm.xlu1 %9561, %v1569_v27   ;;  %v2968_v6 = vmul.f32 %v12526_v20, %v15083_v54  ;;  %v2967_v25 = vmul.f32 %v12526_v20, %v15084_v17  ;;  %v2970_v9 = vmul.f32 %v12526_v20, %v11525_v33  ;;  %v2969_v15 = vmul.f32 %v12526_v20, %v11527_v38  ;;  %v15090_v17 = vld [vmem:[#allocation133_spill] sm:$0xff] }
 0x4f8   :  { %1868 = vperm.xlu0 %9560, %v1568_v3   ;;  %v12603_v62 = vadd.f32 %v2962_v4, %v12425_v51  ;;  %v2972_v27 = vmul.f32 %v12526_v20, %v11535_v43  ;;  %v2971_v26 = vmul.f32 %v12526_v20, %v11537_v47  ;;  %v2974_v12 = vmul.f32 %v12526_v20, %v11548_v7  ;;  %v15085_v3 = vld [vmem:[#allocation129_spill] sm:$0xff]  ;;  %v15086_v4 = vld [vmem:[#allocation130_spill] sm:$0xff]  ;;  %v12620_v43 = vpop.permute.xlu1 %4317 }
 0x4f9   :  { %v12612_v33 = vadd.f32 %v2961_v49, %v12434_v16  ;;  %v2973_v38 = vmul.f32 %v12526_v20, %v11550_v42  ;;  %v2976_v51 = vmul.f32 %v12526_v20, %v15085_v3  ;;  %v2975_v58 = vmul.f32 %v12526_v20, %v15086_v4  ;;  %v12634_v42 = vpop.permute.xlu0 %4312  ;;  %v2082_v3 = vld [vmem:[#allocation2 + $0x124] sm:$0xf]  ;;  %v15097_v4 = vld [vmem:[#allocation139_spill] sm:$0xff] }
 0x4fa   :  { %v12623_v47 = vadd.f32 %v2964_v36, %v12445_v35  ;;  %v12626_v7 = vadd.f32 %v2963_v53, %v12448_v48  ;;  %v12629_v16 = vadd.f32 %v2966_v57, %v12451_v18  ;;  %v12632_v49 = vadd.f32 %v2965_v31, %v12454_v23  ;;  %v2080_v18 = vld [vmem:[#allocation2 + $0x11c] sm:$0xf]  ;;  %v15087_v53 = vld [vmem:[#allocation131_spill] sm:$0xff] }
 0x4fb   :  { %1883 = vperm.xlu1 %9561, %v1571_v0   ;;  %v12637_v61 = vadd.f32 %v2968_v6, %v12459_v8  ;;  %v12640_v54 = vadd.f32 %v2967_v25, %v12462_v21  ;;  %v12643_v35 = vadd.f32 %v2970_v9, %v12465_v13  ;;  %v12646_v48 = vadd.f32 %v2969_v15, %v12468_v11  ;;  %v2079_v57 = vld [vmem:[#allocation2 + $0x118] sm:$0xf]  ;;  %v9570_v13 = vld [vmem:[%s14757_s29] sm:$0xff]   ;;  %v15091_v9 = vld [vmem:[#allocation134_spill] sm:$0xff] }
 0x4fc   :  { %1878 = vperm.xlu0 %9560, %v1570_v45   ;;  %v12649_v23 = vadd.f32 %v2972_v27, %v12471_v5  ;;  %v12652_v36 = vadd.f32 %v2971_v26, %v12474_v10  ;;  %v12655_v8 = vadd.f32 %v2974_v12, %v12477_v46  ;;  %v2978_v21 = vmul.f32 %v12526_v20, %v15087_v53  ;;  %v15088_v31 = vld [vmem:[#allocation132_spill] sm:$0xff]  ;;  %v12673_v6 = vpop.permute.xlu1 %4327  ;;  %v15092_v0 = vld [vmem:[#allocation135_spill] sm:$0xff]  ;;  %v15095_v26 = vld [vmem:[#allocation137_spill] sm:$0xff] }
 0x4fd   :  { %v12663_v11 = vadd.f32 %v2973_v38, %v12482_v28  ;;  %v12666_v5 = vadd.f32 %v2976_v51, %v12485_v34  ;;  %v12669_v10 = vadd.f32 %v2975_v58, %v12488_v40  ;;  %v2977_v46 = vmul.f32 %v12526_v20, %v15088_v31  ;;  %15089 = vst [vmem:[#allocation37_spill] sm:$0xff] %v12673_v6  ;;  %v12681_v27 = vpop.permute.xlu0 %4322  ;;  %v15094_v34 = vld [vmem:[#allocation136_spill] sm:$0xff]  ;;  %v15096_v45 = vld [vmem:[#allocation138_spill] sm:$0xff]  ;;  %v15099_v31 = vld [vmem:[#allocation141_spill] sm:$0xff] }
 0x4fe   :  { %v2980_v25 = vmul.f32 %v12526_v20, %v15090_v17  ;;  %v2979_v15 = vmul.f32 %v12526_v20, %v15091_v9  ;;  %v2982_v28 = vmul.f32 %v12526_v20, %v15092_v0  ;;  %15093 = vst [vmem:[#allocation38_spill] sm:$0xff] %v12681_v27  ;;  %9116 = vmatprep.subr.bf16.mxu0 %v9570_v13  ;;  %v2081_v9 = vld [vmem:[#allocation2 + $0x120] sm:$0xf]  ;;  %v9573_v0 = vld [vmem:[%s14757_s29 + $0x8] sm:$0xff]  }
 0x4ff   :  { %2344 = vperm.xlu1 %9561, %v2080_v18   ;;  %v2981_v40 = vmul.f32 %v12526_v20, %v15094_v34  ;;  %v2984_v12 = vmul.f32 %v12526_v20, %v15095_v26  ;;  %v2983_v38 = vmul.f32 %v12526_v20, %v15096_v45  ;;  %9117 = vmatpush3.bf16.msra.mxu0 %v9570_v13  ;;  %v15098_v18 = vld [vmem:[#allocation140_spill] sm:$0xff]  ;;  %v15100_v13 = vld [vmem:[#allocation142_spill] sm:$0xff] }
 0x500   :  { %2339 = vperm.xlu0 %9560, %v2079_v57   ;;  %v12690_v51 = vadd.f32 %v2978_v21, %v12513_v24  ;;  %v2986_v58 = vmul.f32 %v12526_v20, %v15097_v4  ;;  %v2985_v53 = vmul.f32 %v12526_v20, %v15098_v18  ;;  %v2988_v17 = vmul.f32 %v12526_v20, %v15099_v31  ;;  %v15101_v21 = vld [vmem:[#allocation143_spill] sm:$0xff]  ;;  %v15102_v26 = vld [vmem:[#allocation144_spill] sm:$0xff]  ;;  %v12710_v4 = vpop.permute.xlu1 %4337 }
 0x501   :  { %v12702_v57 = vadd.f32 %v2977_v46, %v12522_v37  ;;  %v2987_v24 = vmul.f32 %v12526_v20, %v15100_v13  ;;  %v2990_v34 = vmul.f32 %v12526_v20, %v15101_v21  ;;  %v2989_v45 = vmul.f32 %v12526_v20, %v15102_v26  ;;  %15103 = vst [vmem:[#allocation39_spill] sm:$0xff] %v12710_v4  ;;  %v12721_v46 = vpop.permute.xlu0 %4332  ;;  %v15120_v4 = vld [vmem:[#allocation158_spill] sm:$0xff] }
 0x502   :  { %v12713_v18 = vadd.f32 %v2980_v25, %v12535_v30  ;;  %v12716_v31 = vadd.f32 %v2979_v15, %v12538_v44  ;;  %v12719_v37 = vadd.f32 %v2982_v28, %v12541_v52  ;;  %15104 = vst [vmem:[#allocation40_spill] sm:$0xff] %v12721_v46  ;;  %9118 = vmatprep.subr.bf16.mxu0 %v9573_v0  ;;  %v2084_v30 = vld [vmem:[#allocation2 + $0x12c] sm:$0xf]  ;;  %v15105_v15 = vld [vmem:[#allocation145_spill] sm:$0xff] }
 0x503   :  { %2354 = vperm.xlu1 %9561, %v2082_v3   ;;  %v12724_v13 = vadd.f32 %v2981_v40, %v12544_v59  ;;  %v12727_v20 = vadd.f32 %v2984_v12, %v12549_v41  ;;  %v12730_v21 = vadd.f32 %v2983_v38, %v12552_v2  ;;  %9119 = vmatpush3.bf16.msra.mxu0 %v9573_v0  ;;  %v12741_v59 = vld [vmem:[#allocation6 + $0x5] ss:$0 sm:$0xff]  ;;  %v2083_v28 = vld [vmem:[#allocation2 + $0x128] sm:$0xf]  ;;  %v15108_v38 = vld [vmem:[#allocation147_spill] sm:$0xff] }
 0x504   :  { %2349 = vperm.xlu0 %9560, %v2081_v9   ;;  %v12733_v44 = vadd.f32 %v2986_v58, %v12555_v50  ;;  %v12736_v52 = vadd.f32 %v2985_v53, %v12558_v39  ;;  %v12739_v25 = vadd.f32 %v2988_v17, %v12561_v32  ;;  %v3481_v41 = vmul.f32 %v12741_v59, %v15105_v15  ;;  %v15106_v39 = vld [vmem:[#allocation146_spill] sm:$0xff]  ;;  %v12756_v32 = vpop.permute.xlu1 %4347  ;;  %v15109_v58 = vld [vmem:[#allocation148_spill] sm:$0xff]  ;;  %v15110_v17 = vld [vmem:[#allocation149_spill] sm:$0xff] }
 0x505   :  { %v12746_v2 = vadd.f32 %v2987_v24, %v12564_v19  ;;  %v12749_v40 = vadd.f32 %v2990_v34, %v12567_v60  ;;  %v12752_v50 = vadd.f32 %v2989_v45, %v12572_v56  ;;  %v3480_v12 = vmul.f32 %v12741_v59, %v15106_v39  ;;  %15107 = vst [vmem:[#allocation41_spill] sm:$0xff] %v12756_v32  ;;  %v15111_v9 = vld [vmem:[#allocation150_spill] sm:$0xff]  ;;  %v12766_v0 = vpop.permute.xlu0 %4342  ;;  %v15113_v56 = vld [vmem:[#allocation151_spill] sm:$0xff]  ;;  %v15114_v34 = vld [vmem:[#allocation152_spill] sm:$0xff] }
 0x506   :  { %v3483_v3 = vmul.f32 %v12741_v59, %v15108_v38  ;;  %v3482_v53 = vmul.f32 %v12741_v59, %v15109_v58  ;;  %v3485_v19 = vmul.f32 %v12741_v59, %v15110_v17  ;;  %v3484_v60 = vmul.f32 %v12741_v59, %v15111_v9  ;;  %15112 = vst [vmem:[#allocation42_spill] sm:$0xff] %v12766_v0  ;;  %v15115_v45 = vld [vmem:[#allocation153_spill] sm:$0xff]  ;;  %v15116_v39 = vld [vmem:[#allocation154_spill] sm:$0xff]  ;;  %v15117_v9 = vld [vmem:[#allocation155_spill] sm:$0xff] }
 0x507   :  { %2364 = vperm.xlu1 %9561, %v2084_v30   ;;  %v3487_v24 = vmul.f32 %v12741_v59, %v15113_v56  ;;  %v3486_v26 = vmul.f32 %v12741_v59, %v15114_v34  ;;  %v3489_v15 = vmul.f32 %v12741_v59, %v15115_v45  ;;  %v3488_v38 = vmul.f32 %v12741_v59, %v15116_v39  ;;  %v2088_v58 = vld [vmem:[#allocation2 + $0x144] sm:$0xf]  ;;  %v15118_v0 = vld [vmem:[#allocation156_spill] sm:$0xff]  ;;  %v15121_v39 = vld [vmem:[#allocation159_spill] sm:$0xff] }
 0x508   :  { %2359 = vperm.xlu0 %9560, %v2083_v28   ;;  %v12777_v17 = vadd.f32 %v3481_v41, %v12575_v14  ;;  %v3491_v30 = vmul.f32 %v12741_v59, %v15117_v9  ;;  %v3490_v56 = vmul.f32 %v12741_v59, %v15118_v0  ;;  %v15119_v32 = vld [vmem:[#allocation157_spill] sm:$0xff]  ;;  %v12786_v45 = vadd.f32 %v3480_v12, %v12578_v29  ;;  %v15122_v41 = vld [vmem:[#allocation160_spill] sm:$0xff]  ;;  %v12794_v9 = vpop.permute.xlu1 %4357 }
 0x509   :  { %v3493_v34 = vmul.f32 %v12741_v59, %v15119_v32  ;;  %v2087_v46 = vld [vmem:[#allocation2 + $0x140] sm:$0xf]  ;;  %v3492_v28 = vmul.f32 %v12741_v59, %v15120_v4  ;;  %v3495_v14 = vmul.f32 %v12741_v59, %v15121_v39  ;;  %v3494_v27 = vmul.f32 %v12741_v59, %v15122_v41  ;;  %15123 = vst [vmem:[#allocation43_spill] sm:$0xff] %v12794_v9  ;;  %v12808_v4 = vpop.permute.xlu0 %4352 }
 0x50a   :  { %v12797_v0 = vadd.f32 %v3483_v3, %v12603_v62  ;;  %v12800_v32 = vadd.f32 %v3482_v53, %v12612_v33  ;;  %v12803_v29 = vadd.f32 %v3485_v19, %v12623_v47  ;;  %v12806_v12 = vadd.f32 %v3484_v60, %v12626_v7  ;;  %15124 = vst [vmem:[#allocation44_spill] sm:$0xff] %v12808_v4  ;;  %v2090_v47 = vld [vmem:[#allocation2 + $0x14c] sm:$0xf]  ;;  %v15125_v53 = vld [vmem:[#allocation161_spill] sm:$0xff] }
 0x50b   :  { %2384 = vperm.xlu1 %9561, %v2088_v58   ;;  %v12811_v39 = vadd.f32 %v3487_v24, %v12629_v16  ;;  %v12814_v41 = vadd.f32 %v3486_v26, %v12632_v49  ;;  %v12817_v62 = vadd.f32 %v3489_v15, %v12637_v61  ;;  %v12820_v33 = vadd.f32 %v3488_v38, %v12640_v54  ;;  %v2089_v19 = vld [vmem:[#allocation2 + $0x148] sm:$0xf]  ;;  %v15128_v24 = vld [vmem:[#allocation163_spill] sm:$0xff] }
 0x50c   :  { %2379 = vperm.xlu0 %9560, %v2087_v46   ;;  %v12823_v7 = vadd.f32 %v3491_v30, %v12643_v35  ;;  %v12826_v3 = vadd.f32 %v3490_v56, %v12646_v48  ;;  %v12829_v16 = vadd.f32 %v3493_v34, %v12649_v23  ;;  %v3497_v49 = vmul.f32 %v12741_v59, %v15125_v53  ;;  %v15126_v35 = vld [vmem:[#allocation162_spill] sm:$0xff]  ;;  %v12844_v60 = vpop.permute.xlu1 %4367  ;;  %v9580_v23 = vld [vmem:[%s14757_s29 + $0x20] sm:$0xff]   ;;  %v15133_v30 = vld [vmem:[#allocation167_spill] sm:$0xff] }
 0x50d   :  { %v12834_v61 = vadd.f32 %v3492_v28, %v12652_v36  ;;  %v12837_v54 = vadd.f32 %v3495_v14, %v12655_v8  ;;  %v12840_v46 = vadd.f32 %v3494_v27, %v12663_v11  ;;  %v3496_v48 = vmul.f32 %v12741_v59, %v15126_v35  ;;  %15127 = vst [vmem:[#allocation45_spill] sm:$0xff] %v12844_v60  ;;  %v15129_v36 = vld [vmem:[#allocation164_spill] sm:$0xff]  ;;  %v15130_v8 = vld [vmem:[#allocation165_spill] sm:$0xff]  ;;  %v15131_v11 = vld [vmem:[#allocation166_spill] sm:$0xff]  ;;  %v12857_v58 = vpop.permute.xlu0 %4362 }
 0x50e   :  { %v3499_v26 = vmul.f32 %v12741_v59, %v15128_v24  ;;  %v3498_v15 = vmul.f32 %v12741_v59, %v15129_v36  ;;  %v3501_v38 = vmul.f32 %v12741_v59, %v15130_v8  ;;  %v3500_v27 = vmul.f32 %v12741_v59, %v15131_v11  ;;  %15132 = vst [vmem:[#allocation46_spill] sm:$0xff] %v12857_v58  ;;  %v15134_v34 = vld [vmem:[#allocation168_spill] sm:$0xff]  ;;  %v15135_v14 = vld [vmem:[#allocation169_spill] sm:$0xff]  ;;  %v2092_v35 = vld [vmem:[#allocation2 + $0x154] sm:$0xf] }
 0x50f   :  { %2394 = vperm.xlu1 %9561, %v2090_v47   ;;  %v3503_v56 = vmul.f32 %v12741_v59, %v15133_v30  ;;  %v3502_v28 = vmul.f32 %v12741_v59, %v15134_v34  ;;  %v3505_v53 = vmul.f32 %v12741_v59, %v15135_v14  ;;  %9128 = vmatprep.subr.bf16.mxu0 %v9580_v23  ;;  %v15136_v36 = vld [vmem:[#allocation170_spill] sm:$0xff]  ;;  %v15137_v11 = vld [vmem:[#allocation171_spill] sm:$0xff]  ;;  %v15138_v58 = vld [vmem:[#allocation172_spill] sm:$0xff] }
 0x510   :  { %2389 = vperm.xlu0 %9560, %v2089_v19   ;;  %v12866_v24 = vadd.f32 %v3497_v49, %v12666_v5  ;;  %v3504_v8 = vmul.f32 %v12741_v59, %v15136_v36  ;;  %v3507_v47 = vmul.f32 %v12741_v59, %v15137_v11  ;;  %v3506_v30 = vmul.f32 %v12741_v59, %v15138_v58  ;;  %v2091_v60 = vld [vmem:[#allocation2 + $0x150] sm:$0xf]  ;;  %v15139_v34 = vld [vmem:[#allocation173_spill] sm:$0xff]  ;;  %v15142_v49 = vld [vmem:[#allocation176_spill] sm:$0xff]  ;;  %v12882_v36 = vpop.permute.xlu1 %4377 }
 0x511   :  { %v3509_v4 = vmul.f32 %v12741_v59, %v15139_v34  ;;  %v15140_v14 = vld [vmem:[#allocation174_spill] sm:$0xff]  ;;  %v15141_v23 = vld [vmem:[#allocation175_spill] sm:$0xff]  ;;  %v3510_v9 = vmul.f32 %v12741_v59, %v15142_v49  ;;  %15143 = vst [vmem:[#allocation47_spill] sm:$0xff] %v12882_v36  ;;  %v12885_v11 = vadd.f32 %v3496_v48, %v12669_v10  ;;  %v12888_v58 = vadd.f32 %v3499_v26, %v12690_v51  ;;  %v12919_v26 = vld [vmem:[#allocation6 + $0x6] ss:$0 sm:$0xff] }
 0x512   :  { %v3508_v19 = vmul.f32 %v12741_v59, %v15140_v14  ;;  %v3511_v5 = vmul.f32 %v12741_v59, %v15141_v23  ;;  %v12891_v6 = vadd.f32 %v3498_v15, %v12702_v57  ;;  %v12894_v34 = vadd.f32 %v3501_v38, %v12713_v18  ;;  %v12896_v14 = vpop.permute.xlu0 %4372  ;;  %v2600_v57 = vld [vmem:[#allocation2 + $0x120] sm:$0xf]  ;;  %v2599_v15 = vld [vmem:[#allocation2 + $0x11c] sm:$0xf]  ;;  %v15148_v38 = vld [vmem:[#allocation178_spill] sm:$0xff] }
 0x513   :  { %15144 = vst [vmem:[#allocation48_spill] sm:$0xff] %v12896_v14  ;;  %2404 = vperm.xlu1 %9561, %v2092_v35   ;;  %v12899_v23 = vadd.f32 %v3500_v27, %v12716_v31  ;;  %v12902_v59 = vadd.f32 %v3503_v56, %v12719_v37  ;;  %v12905_v10 = vadd.f32 %v3502_v28, %v12724_v13  ;;  %v15145_v37 = vld [vmem:[#allocation177_spill] sm:$0xff]  ;;  %v15149_v56 = vld [vmem:[#allocation211_spill] sm:$0xff] }
 0x514   :  { %v12908_v51 = vadd.f32 %v3505_v53, %v12727_v20  ;;  %2399 = vperm.xlu0 %9560, %v2091_v60   ;;  %v12911_v18 = vadd.f32 %v3504_v8, %v12730_v21  ;;  %v12914_v48 = vadd.f32 %v3507_v47, %v12733_v44  ;;  %v12917_v31 = vadd.f32 %v3506_v30, %v12736_v52  ;;  %v12935_v52 = vpop.permute.xlu1 %4387  ;;  %v15150_v53 = vld [vmem:[#allocation212_spill] sm:$0xff]  ;;  %v15155_v47 = vld [vmem:[#allocation259_spill] sm:$0xff]  ;;  %v2602_v49 = vld [vmem:[#allocation2 + $0x128] sm:$0xf] }
 0x515   :  { %v4002_v13 = vmul.f32 %v12919_v26, %v15145_v37  ;;  %v12924_v20 = vadd.f32 %v3509_v4, %v12739_v25  ;;  %v12927_v60 = vadd.f32 %v3508_v19, %v12746_v2  ;;  %v12930_v21 = vadd.f32 %v3511_v5, %v12749_v40  ;;  %15147 = vst [vmem:[#allocation50_spill] sm:$0xff] %v12935_v52  ;;  %v15151_v4 = vld [vmem:[#allocation213_spill] sm:$0xff]  ;;  %v15153_v40 = vld [vmem:[#allocation214_spill] sm:$0xff]  ;;  %v15156_v19 = vld [vmem:[#allocation260_spill] sm:$0xff] }
 0x516   :  { %v12933_v44 = vadd.f32 %v3510_v9, %v12752_v50  ;;  %v4001_v27 = vmul.f32 %v12919_v26, %v15148_v38  ;;  %v4004_v28 = vmul.f32 %v12919_v26, %v15149_v56  ;;  %v4003_v25 = vmul.f32 %v12919_v26, %v15150_v53  ;;  %v12945_v35 = vpop.permute.xlu0 %4382  ;;  %v15154_v9 = vld [vmem:[#allocation215_spill] sm:$0xff]  ;;  %v15157_v38 = vld [vmem:[#allocation216_spill] sm:$0xff]  ;;  %v15158_v56 = vld [vmem:[#allocation217_spill] sm:$0xff] }
 0x517   :  { %v4006_v2 = vmul.f32 %v12919_v26, %v15151_v4  ;;  %15152 = vst [vmem:[#allocation51_spill] sm:$0xff] %v12945_v35  ;;  %2864 = vperm.xlu1 %9561, %v2600_v57   ;;  %v4005_v50 = vmul.f32 %v12919_v26, %v15153_v40  ;;  %v4008_v8 = vmul.f32 %v12919_v26, %v15154_v9  ;;  %v15159_v4 = vld [vmem:[#allocation218_spill] sm:$0xff]  ;;  %v2601_v9 = vld [vmem:[#allocation2 + $0x124] sm:$0xf]  ;;  %v15161_v35 = vld [vmem:[#allocation220_spill] sm:$0xff] }
 0x518   :  { %15146 = vst [vmem:[#allocation49_spill] sm:$0xff] %v12933_v44  ;;  %v4007_v30 = vmul.f32 %v12919_v26, %v15155_v47  ;;  %v4010_v5 = vmul.f32 %v12919_v26, %v15156_v19  ;;  %2859 = vperm.xlu0 %9560, %v2599_v15   ;;  %v12956_v37 = vadd.f32 %v4002_v13, %v12777_v17  ;;  %v15160_v44 = vld [vmem:[#allocation219_spill] sm:$0xff]  ;;  %v15162_v19 = vld [vmem:[#allocation261_spill] sm:$0xff]  ;;  %v15163_v13 = vld [vmem:[#allocation262_spill] sm:$0xff] }
 0x519   :  { %v4009_v57 = vmul.f32 %v12919_v26, %v15157_v38  ;;  %v4012_v53 = vmul.f32 %v12919_v26, %v15158_v56  ;;  %v4011_v40 = vmul.f32 %v12919_v26, %v15159_v4  ;;  %v4014_v47 = vmul.f32 %v12919_v26, %v15160_v44  ;;  %v12972_v38 = vpop.permute.xlu1 %4397 }
 0x51a   :  { %v4013_v15 = vmul.f32 %v12919_v26, %v15161_v35  ;;  %v4016_v17 = vmul.f32 %v12919_v26, %v15162_v19  ;;  %v4015_v52 = vmul.f32 %v12919_v26, %v15163_v13  ;;  %15164 = vst [vmem:[#allocation52_spill] sm:$0xff] %v12972_v38  ;;  %v12975_v56 = vadd.f32 %v4001_v27, %v12786_v45  ;;  %v12986_v35 = vpop.permute.xlu0 %4392 }
 0x51b   :  { %v12978_v4 = vadd.f32 %v4004_v28, %v12797_v0  ;;  %v12981_v14 = vadd.f32 %v4003_v25, %v12800_v32  ;;  %v12984_v44 = vadd.f32 %v4006_v2, %v12803_v29  ;;  %15165 = vst [vmem:[#allocation81_spill] sm:$0xff] %v12986_v35  ;;  %2874 = vperm.xlu1 %9561, %v2602_v49   ;;  %v2604_v32 = vld [vmem:[#allocation2 + $0x130] sm:$0xf]  ;;  %v15166_v28 = vld [vmem:[#allocation221_spill] sm:$0xff]  ;;  %v2603_v25 = vld [vmem:[#allocation2 + $0x12c] sm:$0xf] }
 0x51c   :  { %v12989_v19 = vadd.f32 %v4005_v50, %v12806_v12  ;;  %v12992_v13 = vadd.f32 %v4008_v8, %v12811_v39  ;;  %v12995_v45 = vadd.f32 %v4007_v30, %v12814_v41  ;;  %v12998_v0 = vadd.f32 %v4010_v5, %v12817_v62  ;;  %2869 = vperm.xlu0 %9560, %v2601_v9   ;;  %v403_v41 = vld [vmem:[%s14521_s4 + $0xfc] sm:$0xf]  ;;  %v15168_v50 = vld [vmem:[#allocation222_spill] sm:$0xff]  ;;  %v15169_v30 = vld [vmem:[#allocation223_spill] sm:$0xff] }
 0x51d   :  { %v13001_v29 = vadd.f32 %v4009_v57, %v12820_v33  ;;  %v13004_v27 = vadd.f32 %v4012_v53, %v12823_v7  ;;  %v13007_v12 = vadd.f32 %v4011_v40, %v12826_v3  ;;  %v4018_v39 = vmul.f32 %v12919_v26, %v15166_v28  ;;  %v13026_v2 = vpop.permute.xlu1 %4407  ;;  %468 = vst.msk [vmem:[#allocation2 + $0x160] sm:$0xf] %vm239_vm0, %v403_v41  ;;  %v15170_v5 = vld [vmem:[#allocation224_spill] sm:$0xff]  ;;  %v15171_v49 = vld [vmem:[#allocation225_spill] sm:$0xff]  ;;  %v15174_v53 = vld [vmem:[#allocation263_spill] sm:$0xff] }
 0x51e   :  { %v13015_v62 = vadd.f32 %v4014_v47, %v12829_v16  ;;  %v13018_v33 = vadd.f32 %v4013_v15, %v12834_v61  ;;  %v13021_v7 = vadd.f32 %v4016_v17, %v12837_v54  ;;  %v13024_v3 = vadd.f32 %v4015_v52, %v12840_v46  ;;  %15167 = vst [vmem:[#allocation82_spill] sm:$0xff] %v13026_v2  ;;  %v13037_v57 = vpop.permute.xlu0 %4402  ;;  %v15173_v46 = vld [vmem:[#allocation226_spill] sm:$0xff]  ;;  %v15175_v9 = vld [vmem:[#allocation264_spill] sm:$0xff]  ;;  %v15176_v15 = vld [vmem:[#allocation265_spill] sm:$0xff] }
 0x51f   :  { %v4017_v8 = vmul.f32 %v12919_v26, %v15168_v50  ;;  %v4020_v16 = vmul.f32 %v12919_v26, %v15169_v30  ;;  %v4019_v61 = vmul.f32 %v12919_v26, %v15170_v5  ;;  %v4022_v54 = vmul.f32 %v12919_v26, %v15171_v49  ;;  %15172 = vst [vmem:[#allocation53_spill] sm:$0xff] %v13037_v57  ;;  %v2608_v28 = vld [vmem:[#allocation2 + $0x148] sm:$0xf]  ;;  %v15178_v30 = vld [vmem:[#allocation267_spill] sm:$0xff]  ;;  %v15179_v49 = vld [vmem:[#allocation268_spill] sm:$0xff] }
 0x520   :  { %2884 = vperm.xlu1 %9561, %v2604_v32   ;;  %v4021_v52 = vmul.f32 %v12919_v26, %v15173_v46  ;;  %v4024_v40 = vmul.f32 %v12919_v26, %v15174_v53  ;;  %v4023_v47 = vmul.f32 %v12919_v26, %v15175_v9  ;;  %v4026_v17 = vmul.f32 %v12919_v26, %v15176_v15  ;;  %v15177_v50 = vld [vmem:[#allocation266_spill] sm:$0xff]  ;;  %v2607_v53 = vld [vmem:[#allocation2 + $0x144] sm:$0xf]  ;;  %v13060_v15 = vld [vmem:[#allocation6 + $0x7] ss:$0 sm:$0xff] }
 0x521   :  { %2879 = vperm.xlu0 %9560, %v2603_v25   ;;  %v13048_v41 = vadd.f32 %v4018_v39, %v12866_v24  ;;  %v4025_v32 = vmul.f32 %v12919_v26, %v15177_v50  ;;  %v4028_v5 = vmul.f32 %v12919_v26, %v15178_v30  ;;  %v4027_v46 = vmul.f32 %v12919_v26, %v15179_v49  ;;  %v15180_v57 = vld [vmem:[#allocation269_spill] sm:$0xff]  ;;  %v15181_v2 = vld [vmem:[#allocation270_spill] sm:$0xff]  ;;  %v13066_v38 = vpop.permute.xlu1 %4417 }
 0x522   :  { %v4030_v9 = vmul.f32 %v12919_v26, %v15180_v57  ;;  %v4029_v25 = vmul.f32 %v12919_v26, %v15181_v2  ;;  %v15182_v24 = vld [vmem:[#allocation273_spill] sm:$0xff]  ;;  %v15183_v35 = vld [vmem:[#allocation274_spill] sm:$0xff]  ;;  %v13069_v30 = vadd.f32 %v4017_v8, %v12885_v11  ;;  %v13072_v49 = vadd.f32 %v4020_v16, %v12888_v58  ;;  %v13080_v36 = vpop.permute.xlu0 %4412  ;;  %v15184_v16 = vld [vmem:[#allocation271_spill] sm:$0xff] }
 0x523   :  { %v4523_v39 = vmul.f32 %v13060_v15, %v15182_v24  ;;  %v4522_v50 = vmul.f32 %v13060_v15, %v15183_v35  ;;  %v13075_v57 = vadd.f32 %v4019_v61, %v12891_v6  ;;  %v13078_v2 = vadd.f32 %v4022_v54, %v12894_v34  ;;  %v2610_v6 = vld [vmem:[#allocation2 + $0x150] sm:$0xf]  ;;  %v2609_v61 = vld [vmem:[#allocation2 + $0x14c] sm:$0xf] }
 0x524   :  { %2904 = vperm.xlu1 %9561, %v2608_v28   ;;  %v13083_v24 = vadd.f32 %v4021_v52, %v12899_v23  ;;  %v13086_v35 = vadd.f32 %v4024_v40, %v12902_v59  ;;  %v13089_v11 = vadd.f32 %v4023_v47, %v12905_v10  ;;  %v13092_v58 = vadd.f32 %v4026_v17, %v12908_v51  ;;  %v15187_v17 = vld [vmem:[#allocation35_spill] sm:$0xff] }
 0x525   :  { %2899 = vperm.xlu0 %9560, %v2607_v53   ;;  %v13095_v34 = vadd.f32 %v4025_v32, %v12911_v18  ;;  %v13098_v8 = vadd.f32 %v4028_v5, %v12914_v48  ;;  %v13101_v23 = vadd.f32 %v4027_v46, %v12917_v31  ;;  %v4032_v59 = vmul.f32 %v12919_v26, %v15184_v16  ;;  %v4789_v52 = vpop.permute.xlu1 %4788  ;;  %v15185_v48 = vld [vmem:[#allocation33_spill] sm:$0xff]  ;;  %v15186_v31 = vld [vmem:[#allocation34_spill] sm:$0xff]  ;;  %v15188_v5 = vld [vmem:[#allocation36_spill] sm:$0xff] }
 0x526   :  { %v13106_v10 = vadd.f32 %v4030_v9, %v12924_v20  ;;  %v13109_v51 = vadd.f32 %v4029_v25, %v12927_v60  ;;  %v4587_v54 = vadd.f32 %v4523_v39, %v12956_v37  ;;  %v4586_v18 = vadd.f32 %v4522_v50, %v12975_v56  ;;  %v13119_v32 = vld [vmem:[#allocation6 + $0x8] ss:$0 sm:$0xff]  ;;  %v4784_v60 = vpop.permute.xlu0 %4783  ;;  %v2612_v9 = vld [vmem:[#allocation2 + $0x158] sm:$0xf] }
 0x527   :  { %v4525_v40 = vmul.f32 %v13060_v15, %v15185_v48  ;;  %v4524_v47 = vmul.f32 %v13060_v15, %v15186_v31  ;;  %v4527_v28 = vmul.f32 %v13060_v15, %v15187_v17  ;;  %v5044_v20 = vmul.f32 %v13119_v32, %v4789_v52  ;;  %v15189_v39 = vld [vmem:[#allocation272_spill] sm:$0xff]  ;;  %v2611_v52 = vld [vmem:[#allocation2 + $0x154] sm:$0xf] }
 0x528   :  { %2914 = vperm.xlu1 %9561, %v2610_v6   ;;  %v4526_v37 = vmul.f32 %v13060_v15, %v15188_v5  ;;  %v4529_v56 = vmul.f32 %v13060_v15, %v12532_v22  ;;  %v4528_v46 = vmul.f32 %v13060_v15, %v12546_v1  ;;  %v5043_v53 = vmul.f32 %v13119_v32, %v4784_v60  ;;  %v15190_v60 = vld [vmem:[#allocation37_spill] sm:$0xff] }
 0x529   :  { %2909 = vperm.xlu0 %9560, %v2609_v61   ;;  %v13130_v25 = vadd.f32 %v4032_v59, %v12930_v21  ;;  %v13134_v50 = vmul.f32 %v12919_v26, %v15189_v39  ;;  %v4531_v6 = vmul.f32 %v13060_v15, %v12582_v63  ;;  %v5108_v16 = vadd.f32 %v5044_v20, %v4587_v54  ;;  %v4799_v59 = vpop.permute.xlu1 %4798  ;;  %v15193_v39 = vld [vmem:[#allocation40_spill] sm:$0xff] }
 0x52a   :  { %v4530_v22 = vmul.f32 %v13060_v15, %v12592_v55  ;;  %v4533_v1 = vmul.f32 %v13060_v15, %v12620_v43  ;;  %v4532_v61 = vmul.f32 %v13060_v15, %v12634_v42  ;;  %v5107_v21 = vadd.f32 %v5043_v53, %v4586_v18  ;;  %v4794_v54 = vpop.permute.xlu0 %4793 }
 0x52b   :  { %v4589_v48 = vadd.f32 %v4525_v40, %v12978_v4  ;;  %v4588_v26 = vadd.f32 %v4524_v47, %v12981_v14  ;;  %v4591_v31 = vadd.f32 %v4527_v28, %v12984_v44  ;;  %v5046_v63 = vmul.f32 %v13119_v32, %v4799_v59  ;;  %v3121_v4 = vld [vmem:[#allocation2 + $0x124] sm:$0xf]  ;;  %v13162_v44 = vld [vmem:[%s14861_s8] ss:$0 sm:$0xff] }
 0x52c   :  { %2924 = vperm.xlu1 %9561, %v2612_v9   ;;  %v4590_v55 = vadd.f32 %v4526_v37, %v12989_v19  ;;  %v13150_v17 = vadd.f32 %v4529_v56, %v12992_v13  ;;  %v13153_v43 = vadd.f32 %v4528_v46, %v12995_v45  ;;  %v5045_v42 = vmul.f32 %v13119_v32, %v4794_v54  ;;  %v3120_v40 = vld [vmem:[#allocation2 + $0x120] sm:$0xf]  ;;  %v15191_v37 = vld [vmem:[#allocation38_spill] sm:$0xff]  ;;  %v15192_v9 = vld [vmem:[#allocation39_spill] sm:$0xff] }
 0x52d   :  { %2919 = vperm.xlu0 %9560, %v2611_v52   ;;  %v13157_v14 = vadd.f32 %v4531_v6, %v12998_v0  ;;  %v5179_v19 = vadd.f32 %v13162_v44, %v5108_v16  ;;  %v5178_v13 = vadd.f32 %v13162_v44, %v5107_v21  ;;  %v5110_v18 = vadd.f32 %v5046_v63, %v4589_v48  ;;  %v4809_v20 = vpop.permute.xlu1 %4808  ;;  %v3123_v52 = vld [vmem:[#allocation2 + $0x12c] sm:$0xf]  ;;  %v3122_v48 = vld [vmem:[#allocation2 + $0x128] sm:$0xf] }
 0x52e   :  { %v13167_v45 = vadd.f32 %v4530_v22, %v13001_v29  ;;  %v13170_v47 = vadd.f32 %v4533_v1, %v13004_v27  ;;  %v13173_v0 = vadd.f32 %v4532_v61, %v13007_v12  ;;  %v5109_v28 = vadd.f32 %v5045_v42, %v4588_v26  ;;  %v4804_v29 = vpop.permute.xlu0 %4803  ;;  %v15194_v22 = vld [vmem:[#allocation41_spill] sm:$0xff]  ;;  %v15195_v26 = vld [vmem:[#allocation42_spill] sm:$0xff] }
 0x52f   :  { %v4535_v5 = vmul.f32 %v13060_v15, %v15190_v60  ;;  %v4534_v56 = vmul.f32 %v13060_v15, %v15191_v37  ;;  %v5181_v46 = vadd.f32 %v13162_v44, %v5110_v18  ;;  %v5048_v53 = vmul.f32 %v13119_v32, %v4809_v20  ;;  %v15196_v20 = vld [vmem:[#allocation43_spill] sm:$0xff] }
 0x530   :  { %3385 = vperm.xlu1 %9561, %v3121_v4   ;;  %v4537_v27 = vmul.f32 %v13060_v15, %v15192_v9  ;;  %v4536_v12 = vmul.f32 %v13060_v15, %v15193_v39  ;;  %v5180_v6 = vadd.f32 %v13162_v44, %v5109_v28  ;;  %v5047_v16 = vmul.f32 %v13119_v32, %v4804_v29  ;;  %v3124_v29 = vld [vmem:[#allocation2 + $0x130] sm:$0xf] }
 0x531   :  { %3380 = vperm.xlu0 %9560, %v3120_v40   ;;  %v4539_v1 = vmul.f32 %v13060_v15, %v15194_v22  ;;  %v5243_v61 = vmax.f32 %v5179_v19, 0.0  ;;  %v5242_v21 = vmax.f32 %v5178_v13, 0.0  ;;  %v5112_v59 = vadd.f32 %v5048_v53, %v4591_v31  ;;  %v4819_v18 = vpop.permute.xlu1 %4818 }
 0x532   :  { %v4538_v63 = vmul.f32 %v13060_v15, %v15195_v26  ;;  %v5245_v54 = vmax.f32 %v5181_v46, 0.0  ;;  %v5244_v42 = vmax.f32 %v5180_v6, 0.0  ;;  %v5111_v4 = vadd.f32 %v5047_v16, %v4590_v55  ;;  %v4814_v31 = vpop.permute.xlu0 %4813  ;;  %v15197_v55 = vld [vmem:[#allocation44_spill] sm:$0xff]  ;;  %v15198_v16 = vld [vmem:[#allocation45_spill] sm:$0xff]  ;;  %v3129_v26 = vld [vmem:[#allocation2 + $0x14c] sm:$0xf] }
 0x533   :  { %v13192_v28 = vadd.f32 %v4535_v5, %v13015_v62  ;;  %v13195_v40 = vadd.f32 %v4534_v56, %v13018_v33  ;;  %v4541_v60 = vmul.f32 %v13060_v15, %v15196_v20  ;;  %v5050_v19 = vmul.f32 %v13119_v32, %v4819_v18  ;;  %v3125_v33 = vld [vmem:[#allocation2 + $0x134] sm:$0xf]  ;;  %v13215_v46 = vld [vmem:[%s14871_s18] ss:$0 sm:$0xff] }
 0x534   :  { %3395 = vperm.xlu1 %9561, %v3123_v52   ;;  %v13201_v13 = vadd.f32 %v4537_v27, %v13021_v7  ;;  %v13204_v37 = vadd.f32 %v4536_v12, %v13024_v3  ;;  %v4540_v62 = vmul.f32 %v13060_v15, %v15197_v55  ;;  %v5183_v5 = vadd.f32 %v13162_v44, %v5112_v59 }
 0x535   :  { %3390 = vperm.xlu0 %9560, %v3122_v48   ;;  %v13210_v56 = vadd.f32 %v4539_v1, %v13048_v41  ;;  %v5314_v7 = vmul.f32 %v13215_v46, %v5243_v61  ;;  %v5313_v3 = vmul.f32 %v13215_v46, %v5242_v21  ;;  %v5182_v53 = vadd.f32 %v13162_v44, %v5111_v4  ;;  %v4829_v12 = vpop.permute.xlu1 %4828  ;;  %v15199_v21 = vld [vmem:[#allocation46_spill] sm:$0xff] }
 0x536   :  { %v13221_v9 = vadd.f32 %v4538_v63, %v13069_v30  ;;  %v5316_v27 = vmul.f32 %v13215_v46, %v5245_v54  ;;  %v5315_v41 = vmul.f32 %v13215_v46, %v5244_v42  ;;  %v5049_v39 = vmul.f32 %v13119_v32, %v4814_v31  ;;  %v4824_v61 = vpop.permute.xlu0 %4823  ;;  %v3128_v4 = vld [vmem:[#allocation2 + $0x148] sm:$0xf] }
 0x537   :  { %v13227_v6 = vadd.f32 %v4541_v60, %v13072_v49  ;;  %v4543_v52 = vmul.f32 %v13060_v15, %v15198_v16  ;;  %v5114_v22 = vadd.f32 %v5050_v19, %v13150_v17  ;;  %v5052_v1 = vmul.f32 %v13119_v32, %v4829_v12  ;;  %v13244_v17 = vld [vmem:[%s14874_s3] ss:$0 sm:$0xff]  ;;  %v3130_v12 = vld [vmem:[#allocation2 + $0x150] sm:$0xf] }
 0x538   :  { %3405 = vperm.xlu1 %9561, %v3125_v33   ;;  %v13234_v30 = vadd.f32 %v4540_v62, %v13075_v57  ;;  %v13238_v59 = vmul.f32 %v13060_v15, %v15199_v21  ;;  %v5247_v48 = vmax.f32 %v5183_v5, 0.0  ;;  %v5051_v49 = vmul.f32 %v13119_v32, %v4824_v61 }
 0x539   :  { %3400 = vperm.xlu0 %9560, %v3124_v29   ;;  %v13247_v63 = vadd.f32 %v13244_v17, %v5314_v7  ;;  %v13250_v57 = vadd.f32 %v13244_v17, %v5313_v3  ;;  %v5246_v54 = vmax.f32 %v5182_v53, 0.0  ;;  %v5116_v42 = vadd.f32 %v5052_v1, %v13157_v14  ;;  %v4839_v31 = vpop.permute.xlu1 %4838  ;;  %v15200_v7 = vld [vmem:[#allocation47_spill] sm:$0xff] }
 0x53a   :  { %v13254_v18 = vadd.f32 %v13244_v17, %v5316_v27  ;;  %v13257_v20 = vadd.f32 %v13244_v17, %v5315_v41  ;;  %v5113_v60 = vadd.f32 %v5049_v39, %v13153_v43  ;;  %v5115_v19 = vadd.f32 %v5051_v49, %v13167_v45  ;;  %v4834_v33 = vpop.permute.xlu0 %4833 }
 0x53b   :  { %v13262_v55 = vadd.f32 %v4543_v52, %v13078_v2  ;;  %v5185_v62 = vadd.f32 %v13162_v44, %v5114_v22  ;;  %v5187_v5 = vadd.f32 %v13162_v44, %v5116_v42  ;;  %v5054_v14 = vmul.f32 %v13119_v32, %v4839_v31  ;;  %v3131_v2 = vld [vmem:[#allocation2 + $0x154] sm:$0xf] }
 0x53c   :  { %3425 = vperm.xlu1 %9561, %v3129_v26   ;;  %v13269_v3 = vmul.f32 %v13060_v15, %v15200_v7  ;;  %v5318_v43 = vmul.f32 %v13215_v46, %v5247_v48  ;;  %v5186_v45 = vadd.f32 %v13162_v44, %v5115_v19  ;;  %v5053_v53 = vmul.f32 %v13119_v32, %v4834_v33 }
 0x53d   :  { %3420 = vperm.xlu0 %9560, %v3128_v4   ;;  %v5436_v29 = vmax.f32 %v13250_v57, %v13247_v63  ;;  %v5317_v27 = vmul.f32 %v13215_v46, %v5246_v54  ;;  %v5251_v41 = vmax.f32 %v5187_v5, 0.0  ;;  %v5118_v39 = vadd.f32 %v5054_v14, %v13170_v47  ;;  %v4849_v61 = vpop.permute.xlu1 %4848 }
 0x53e   :  { %v5437_v16 = vmax.f32 %v13257_v20, %v13254_v18  ;;  %v5184_v52 = vadd.f32 %v13162_v44, %v5113_v60  ;;  %v5250_v22 = vmax.f32 %v5186_v45, 0.0  ;;  %v5117_v1 = vadd.f32 %v5053_v53, %v13173_v0  ;;  %v4844_v63 = vpop.permute.xlu0 %4843  ;;  %v3133_v0 = vld [vmem:[#allocation2 + $0x15c] sm:$0xf] }
 0x53f   :  { %v5249_v21 = vmax.f32 %v5185_v62, 0.0  ;;  %v5322_v48 = vmul.f32 %v13215_v46, %v5251_v41  ;;  %v5189_v49 = vadd.f32 %v13162_v44, %v5118_v39  ;;  %v5056_v26 = vmul.f32 %v13119_v32, %v4849_v61  ;;  %v3132_v62 = vld [vmem:[#allocation2 + $0x158] sm:$0xf] }
 0x540   :  { %3435 = vperm.xlu1 %9561, %v3131_v2   ;;  %v13286_v47 = vadd.f32 %v13244_v17, %v5318_v43  ;;  %v5321_v57 = vmul.f32 %v13215_v46, %v5250_v22  ;;  %v5188_v54 = vadd.f32 %v13162_v44, %v5117_v1  ;;  %v5055_v42 = vmul.f32 %v13119_v32, %v4844_v63 }
 0x541   :  { %3430 = vperm.xlu0 %9560, %v3130_v12   ;;  %v13292_v4 = vadd.f32 %v13244_v17, %v5317_v27  ;;  %v5393_v60 = vadd.f32 %v13244_v17, %v5322_v48  ;;  %v5253_v19 = vmax.f32 %v5189_v49, 0.0  ;;  %v5120_v31 = vadd.f32 %v5056_v26, %v13192_v28  ;;  %v4859_v43 = vpop.permute.xlu1 %4858  ;;  %v3641_v48 = vld [vmem:[#allocation2 + $0x140] sm:$0xf] }
 0x542   :  { %v5248_v5 = vmax.f32 %v5184_v52, 0.0  ;;  %v5392_v14 = vadd.f32 %v13244_v17, %v5321_v57  ;;  %v5252_v33 = vmax.f32 %v5188_v54, 0.0  ;;  %v5119_v7 = vadd.f32 %v5055_v42, %v13195_v40  ;;  %v4854_v41 = vpop.permute.xlu0 %4853  ;;  %v3642_v40 = vld [vmem:[#allocation2 + $0x144] sm:$0xf] }
 0x543   :  { %v5320_v45 = vmul.f32 %v13215_v46, %v5249_v21  ;;  %v5324_v53 = vmul.f32 %v13215_v46, %v5253_v19  ;;  %v5191_v2 = vadd.f32 %v13162_v44, %v5120_v31  ;;  %v5058_v27 = vmul.f32 %v13119_v32, %v4859_v43  ;;  %v3644_v31 = vld [vmem:[#allocation2 + $0x14c] sm:$0xf] }
 0x544   :  { %3445 = vperm.xlu1 %9561, %v3133_v0   ;;  %v5452_v39 = vmax.f32 %v5392_v14, %v5393_v60  ;;  %v5323_v28 = vmul.f32 %v13215_v46, %v5252_v33  ;;  %v5190_v12 = vadd.f32 %v13162_v44, %v5119_v7  ;;  %v5057_v52 = vmul.f32 %v13119_v32, %v4854_v41  ;;  %v3643_v7 = vld [vmem:[#allocation2 + $0x148] sm:$0xf] }
 0x545   :  { %3440 = vperm.xlu0 %9560, %v3132_v62   ;;  %v5438_v22 = vmax.f32 %v13292_v4, %v13286_v47  ;;  %v5395_v1 = vadd.f32 %v13244_v17, %v5324_v53  ;;  %v5255_v61 = vmax.f32 %v5191_v2, 0.0  ;;  %v5122_v21 = vadd.f32 %v5058_v27, %v13201_v13  ;;  %v4869_v54 = vpop.permute.xlu1 %4868 }
 0x546   :  { %v5468_v49 = vmax.f32 %v5436_v29, %v5452_v39  ;;  %v5394_v26 = vadd.f32 %v13244_v17, %v5323_v28  ;;  %v5254_v63 = vmax.f32 %v5190_v12, 0.0  ;;  %v5121_v57 = vadd.f32 %v5057_v52, %v13204_v37  ;;  %v4864_v4 = vpop.permute.xlu0 %4863  ;;  %v3646_v52 = vld [vmem:[#allocation2 + $0x154] sm:$0xf] }
 0x547   :  { %v5319_v42 = vmul.f32 %v13215_v46, %v5248_v5  ;;  %v5326_v0 = vmul.f32 %v13215_v46, %v5255_v61  ;;  %v5193_v60 = vadd.f32 %v13162_v44, %v5122_v21  ;;  %v5060_v47 = vmul.f32 %v13119_v32, %v4869_v54  ;;  %v15202_v61 = vld [vmem:[#allocation50_spill] sm:$0xff] }
 0x548   :  { %3906 = vperm.xlu1 %9561, %v3642_v40   ;;  %5522 = vst.msk [vmem:[#allocation3 + $0x34] sm:$0xf] %vm5480_vm1, %v5468_v49  ;;  %v5453_v13 = vmax.f32 %v5394_v26, %v5395_v1  ;;  %v5325_v29 = vmul.f32 %v13215_v46, %v5254_v63  ;;  %v5192_v19 = vadd.f32 %v13162_v44, %v5121_v57  ;;  %v15201_v40 = vld [vmem:[#allocation48_spill] sm:$0xff]  ;;  %v3645_v26 = vld [vmem:[#allocation2 + $0x150] sm:$0xf] }
 0x549   :  { %v5059_v37 = vmul.f32 %v13119_v32, %v4864_v4  ;;  %3901 = vperm.xlu0 %9560, %v3641_v48   ;;  %v5391_v62 = vadd.f32 %v13244_v17, %v5320_v45  ;;  %v5397_v5 = vadd.f32 %v13244_v17, %v5326_v0  ;;  %v5257_v14 = vmax.f32 %v5193_v60, 0.0  ;;  %v4879_v41 = vpop.permute.xlu1 %4878  ;;  %v15203_v63 = vld [vmem:[#allocation51_spill] sm:$0xff] }
 0x54a   :  { %v5124_v33 = vadd.f32 %v5060_v47, %v13210_v56  ;;  %v5469_v43 = vmax.f32 %v5437_v16, %v5453_v13  ;;  %v5396_v53 = vadd.f32 %v13244_v17, %v5325_v29  ;;  %v5256_v2 = vmax.f32 %v5192_v19, 0.0  ;;  %v4874_v56 = vpop.permute.xlu0 %4873 }
 0x54b   :  { %v5123_v27 = vadd.f32 %v5059_v37, %v13221_v9  ;;  %v5390_v39 = vadd.f32 %v13244_v17, %v5319_v42  ;;  %v5328_v45 = vmul.f32 %v13215_v46, %v5257_v14  ;;  %v5062_v12 = vmul.f32 %v13119_v32, %v4879_v41  ;;  %v15206_v41 = vld [vmem:[#allocation81_spill] sm:$0xff] }
 0x54c   :  { %v5195_v28 = vadd.f32 %v13162_v44, %v5124_v33  ;;  %3916 = vperm.xlu1 %9561, %v3644_v31   ;;  %5523 = vst.msk [vmem:[#allocation3 + $0x38] sm:$0xf] %vm5480_vm1, %v5469_v43  ;;  %v5454_v18 = vmax.f32 %v5396_v53, %v5397_v5  ;;  %v5327_v20 = vmul.f32 %v13215_v46, %v5256_v2  ;;  %v3650_v5 = vld [vmem:[#allocation2 + $0x16c] sm:$0xf]  ;;  %v3649_v53 = vld [vmem:[#allocation2 + $0x168] sm:$0xf] }
 0x54d   :  { %v5194_v16 = vadd.f32 %v13162_v44, %v5123_v27  ;;  %v5061_v9 = vmul.f32 %v13119_v32, %v4874_v56  ;;  %3911 = vperm.xlu0 %9560, %v3643_v7   ;;  %v4544_v1 = vmul.f32 %v13060_v15, %v15201_v40  ;;  %v4547_v21 = vmul.f32 %v13060_v15, %v15202_v61  ;;  %v4889_v60 = vpop.permute.xlu1 %4888  ;;  %v15205_v7 = vld [vmem:[#allocation52_spill] sm:$0xff] }
 0x54e   :  { %v5399_v48 = vadd.f32 %v13244_v17, %v5328_v45  ;;  %v5126_v49 = vadd.f32 %v5062_v12, %v13227_v6  ;;  %v4546_v57 = vmul.f32 %v13060_v15, %v15203_v63  ;;  %v5470_v54 = vmax.f32 %v5438_v22, %v5454_v18  ;;  %v4884_v19 = vpop.permute.xlu0 %4883 }
 0x54f   :  { %v5398_v42 = vadd.f32 %v13244_v17, %v5327_v20  ;;  %v5125_v0 = vadd.f32 %v5061_v9, %v13234_v30  ;;  %v5259_v47 = vmax.f32 %v5195_v28, 0.0  ;;  %v5258_v4 = vmax.f32 %v5194_v16, 0.0  ;;  %v15204_v30 = vld [vmem:[#allocation49_spill] sm:$0xff] }
 0x550   :  { %v5197_v13 = vadd.f32 %v13162_v44, %v5126_v49  ;;  %v5064_v29 = vmul.f32 %v13119_v32, %v4889_v60  ;;  %3926 = vperm.xlu1 %9561, %v3646_v52   ;;  %v5439_v37 = vmax.f32 %v5390_v39, %v5391_v62  ;;  %5524 = vst.msk [vmem:[#allocation3 + $0x3c] sm:$0xf] %vm5480_vm1, %v5470_v54  ;;  %v15208_v9 = vld [vmem:[#allocation53_spill] sm:$0xff] }
 0x551   :  { %v5455_v6 = vmax.f32 %v5398_v42, %v5399_v48  ;;  %v5196_v31 = vadd.f32 %v13162_v44, %v5125_v0  ;;  %v5063_v22 = vmul.f32 %v13119_v32, %v4884_v19  ;;  %3921 = vperm.xlu0 %9560, %v3645_v26   ;;  %v4095_v14 = vadd.f32 %v13134_v50, %v15204_v30  ;;  %v4899_v28 = vpop.permute.xlu1 %4898  ;;  %v3652_v50 = vld [vmem:[#allocation2 + $0x174] sm:$0xf]  ;;  %v3653_v0 = vld [vmem:[#allocation2 + $0x178] sm:$0xf] }
 0x552   :  { %v4606_v33 = vadd.f32 %v13238_v59, %v13083_v24  ;;  %v4549_v43 = vmul.f32 %v13060_v15, %v15205_v7  ;;  %v5128_v62 = vadd.f32 %v5064_v29, %v13262_v55  ;;  %v4609_v2 = vadd.f32 %v13269_v3, %v13086_v35  ;;  %v4894_v18 = vpop.permute.xlu0 %4893  ;;  %v15207_v3 = vld [vmem:[#allocation82_spill] sm:$0xff] }
 0x553   :  { %v4608_v27 = vadd.f32 %v4544_v1, %v13089_v11  ;;  %v4548_v39 = vmul.f32 %v13060_v15, %v15206_v41  ;;  %v5471_v45 = vmax.f32 %v5439_v37, %v5455_v6  ;;  %v5330_v12 = vmul.f32 %v13215_v46, %v5259_v47 }
 0x554   :  { %v5329_v24 = vmul.f32 %v13215_v46, %v5258_v4  ;;  %v5261_v59 = vmax.f32 %v5197_v13, 0.0  ;;  %v5260_v56 = vmax.f32 %v5196_v31, 0.0  ;;  %3946 = vperm.xlu1 %9561, %v3650_v5   ;;  %v4611_v55 = vadd.f32 %v4547_v21, %v13092_v58  ;;  %v3651_v58 = vld [vmem:[#allocation2 + $0x170] sm:$0xf]  ;;  %v4163_v31 = vld [vmem:[#allocation2 + $0x148] sm:$0xf] }
 0x555   :  { %v4610_v35 = vadd.f32 %v4546_v57, %v13095_v34  ;;  %v4551_v11 = vmul.f32 %v13060_v15, %v15207_v3  ;;  %5525 = vst.msk [vmem:[#allocation3 + $0x40] sm:$0xf] %vm5480_vm1, %v5471_v45  ;;  %v5127_v20 = vadd.f32 %v5063_v22, %v4606_v33  ;;  %3941 = vperm.xlu0 %9560, %v3649_v53   ;;  %v4909_v49 = vpop.permute.xlu1 %4908  ;;  %v9568_v22 = vld [vmem:[#allocation3 + $0x34] sm:$0xff]  }
 0x556   :  { %v4613_v16 = vadd.f32 %v4549_v43, %v13098_v8  ;;  %v4550_v52 = vmul.f32 %v13060_v15, %v15208_v9  ;;  %v4553_v40 = vmul.f32 %v13060_v15, %v13066_v38  ;;  %v5199_v1 = vadd.f32 %v13162_v44, %v5128_v62  ;;  %v4904_v57 = vpop.permute.xlu0 %4903  ;;  %v4165_v9 = vld [vmem:[#allocation2 + $0x150] sm:$0xf] }
 0x557   :  { %v4612_v34 = vadd.f32 %v4548_v39, %v13101_v23  ;;  %v4552_v61 = vmul.f32 %v13060_v15, %v13080_v36  ;;  %v5066_v21 = vmul.f32 %v13119_v32, %v4899_v28  ;;  %v5065_v48 = vmul.f32 %v13119_v32, %v4894_v18  ;;  %v3654_v23 = vld [vmem:[#allocation2 + $0x17c] sm:$0xf] }
 0x558   :  { %v13381_v8 = vadd.f32 %v13244_v17, %v5330_v12  ;;  %v13384_v26 = vadd.f32 %v13244_v17, %v5329_v24  ;;  %v5332_v38 = vmul.f32 %v13215_v46, %v5261_v59  ;;  %v5068_v63 = vmul.f32 %v13119_v32, %v4909_v49  ;;  %3956 = vperm.xlu1 %9561, %v3652_v50  }
 0x559   :  { %v4615_v36 = vadd.f32 %v4551_v11, %v13106_v10  ;;  %v5331_v15 = vmul.f32 %v13215_v46, %v5260_v56  ;;  %v5198_v54 = vadd.f32 %v13162_v44, %v5127_v20  ;;  %v5067_v42 = vmul.f32 %v13119_v32, %v4904_v57  ;;  %3951 = vperm.xlu0 %9560, %v3651_v58  }
 0x55a   :  { %v4614_v60 = vadd.f32 %v4550_v52, %v13109_v51  ;;  %v13394_v47 = vadd.f32 %v4553_v40, %v13130_v25  ;;  %v5263_v4 = vmax.f32 %v5199_v1, 0.0  ;;  %v5132_v13 = vadd.f32 %v5068_v63, %v4611_v55  ;;  %v4919_v6 = vpop.permute.xlu1 %4918 }
 0x55b   :  { %v13396_v29 = vadd.f32 %v4552_v61, %v4095_v14  ;;  %v5130_v19 = vadd.f32 %v5066_v21, %v4609_v2  ;;  %v5129_v37 = vadd.f32 %v5065_v48, %v4608_v27  ;;  %v5131_v10 = vadd.f32 %v5067_v42, %v4610_v35  ;;  %v4914_v33 = vpop.permute.xlu0 %4913  ;;  %v4162_v2 = vld [vmem:[#allocation2 + $0x144] sm:$0xf] }
 0x55c   :  { %v5440_v5 = vmax.f32 %v13384_v26, %v13381_v8  ;;  %v13401_v30 = vadd.f32 %v13244_v17, %v5332_v38  ;;  %v5203_v51 = vadd.f32 %v13162_v44, %v5132_v13  ;;  %v5070_v25 = vmul.f32 %v13119_v32, %v4919_v6  ;;  %3966 = vperm.xlu1 %9561, %v3654_v23   ;;  %v9569_v14 = vld [vmem:[#allocation3 + $0x3c] sm:$0xff]  }
 0x55d   :  { %v13406_v7 = vadd.f32 %v13244_v17, %v5331_v15  ;;  %v5262_v43 = vmax.f32 %v5198_v54, 0.0  ;;  %v5202_v62 = vadd.f32 %v13162_v44, %v5131_v10  ;;  %v5069_v53 = vmul.f32 %v13119_v32, %v4914_v33  ;;  %3961 = vperm.xlu0 %9560, %v3653_v0   ;;  %v4167_v0 = vld [vmem:[#allocation2 + $0x158] sm:$0xf] }
 0x55e   :  { %v5334_v27 = vmul.f32 %v13215_v46, %v5263_v4  ;;  %v5267_v41 = vmax.f32 %v5203_v51, 0.0  ;;  %v5134_v39 = vadd.f32 %v5070_v25, %v4613_v16  ;;  %v5641_v45 = vpack.c.bf16 %v9569_v14, %v9568_v22  ;;  %v4929_v59 = vpop.permute.xlu1 %4928 }
 0x55f   :  { %v5201_v28 = vadd.f32 %v13162_v44, %v5130_v19  ;;  %v5200_v50 = vadd.f32 %v13162_v44, %v5129_v37  ;;  %v5266_v12 = vmax.f32 %v5202_v62, 0.0  ;;  %v5133_v24 = vadd.f32 %v5069_v53, %v4612_v34  ;;  %v4924_v35 = vpop.permute.xlu0 %4923  ;;  %v4164_v34 = vld [vmem:[#allocation2 + $0x14c] sm:$0xf]  ;;  %v4166_v37 = vld [vmem:[#allocation2 + $0x154] sm:$0xf] }
 0x560   :  { %v5338_v56 = vmul.f32 %v13215_v46, %v5267_v41  ;;  %v5205_v18 = vadd.f32 %v13162_v44, %v5134_v39  ;;  %v5072_v55 = vmul.f32 %v13119_v32, %v4929_v59  ;;  %4427 = vperm.xlu1 %9561, %v4163_v31   ;;  %9112 = vmatprep.mubr.msk.bf16.mxu0 %vm5660_vm2, %v5641_v45 }
 0x561   :  { %v5441_v3 = vmax.f32 %v13406_v7, %v13401_v30  ;;  %v5337_v11 = vmul.f32 %v13215_v46, %v5266_v12  ;;  %v5204_v20 = vadd.f32 %v13162_v44, %v5133_v24  ;;  %v5071_v16 = vmul.f32 %v13119_v32, %v4924_v35  ;;  %4422 = vperm.xlu0 %9560, %v4162_v2   ;;  %v4170_v2 = vld [vmem:[#allocation2 + $0x16c] sm:$0xf]  ;;  %v4172_v35 = vld [vmem:[#allocation2 + $0x174] sm:$0xf] }
 0x562   :  { %v5333_v52 = vmul.f32 %v13215_v46, %v5262_v43  ;;  %v5409_v40 = vadd.f32 %v13244_v17, %v5338_v56  ;;  %v5269_v1 = vmax.f32 %v5205_v18, 0.0  ;;  %v5136_v58 = vadd.f32 %v5072_v55, %v4615_v36  ;;  %v4939_v8 = vpop.permute.xlu1 %4938  ;;  %v4171_v43 = vld [vmem:[#allocation2 + $0x170] sm:$0xf]  ;;  %v4173_v18 = vld [vmem:[#allocation2 + $0x178] sm:$0xf] }
 0x563   :  { %v5265_v61 = vmax.f32 %v5201_v28, 0.0  ;;  %v5408_v21 = vadd.f32 %v13244_v17, %v5337_v11  ;;  %v5268_v48 = vmax.f32 %v5204_v20, 0.0  ;;  %v5135_v49 = vadd.f32 %v5071_v16, %v4614_v60  ;;  %v4934_v23 = vpop.permute.xlu0 %4933 }
 0x564   :  { %v5264_v26 = vmax.f32 %v5200_v50, 0.0  ;;  %v5340_v38 = vmul.f32 %v13215_v46, %v5269_v1  ;;  %v5207_v63 = vadd.f32 %v13162_v44, %v5136_v58  ;;  %v5074_v57 = vmul.f32 %v13119_v32, %v4939_v8  ;;  %4437 = vperm.xlu1 %9561, %v4165_v9   ;;  %v9574_v8 = vld [vmem:[#allocation3] sm:$0xff]  }
 0x565   :  { %v5456_v15 = vmax.f32 %v5408_v21, %v5409_v40  ;;  %v5339_v54 = vmul.f32 %v13215_v46, %v5268_v48  ;;  %v5206_v36 = vadd.f32 %v13162_v44, %v5135_v49  ;;  %v5073_v42 = vmul.f32 %v13119_v32, %v4934_v23  ;;  %4432 = vperm.xlu0 %9560, %v4164_v34   ;;  %v4175_v40 = vld [vmem:[#allocation2 + $0x180] sm:$0xf]  ;;  %v4686_v48 = vld [vmem:[#allocation2 + $0x154] sm:$0xf] }
 0x566   :  { %v5405_v60 = vadd.f32 %v13244_v17, %v5334_v27  ;;  %v5411_v4 = vadd.f32 %v13244_v17, %v5340_v38  ;;  %v5271_v13 = vmax.f32 %v5207_v63, 0.0  ;;  %v5138_v19 = vadd.f32 %v5074_v57, %v13394_v47  ;;  %v13436_v30 = vpop.permute.xlu1 %1823  ;;  %v4685_v38 = vld [vmem:[#allocation2 + $0x150] sm:$0xf] }
 0x567   :  { %v5472_v10 = vmax.f32 %v5440_v5, %v5456_v15  ;;  %v5410_v6 = vadd.f32 %v13244_v17, %v5339_v54  ;;  %v5270_v31 = vmax.f32 %v5206_v36, 0.0  ;;  %v5137_v22 = vadd.f32 %v5073_v42, %v13396_v29  ;;  %v13442_v14 = vpop.permute.xlu0 %1818  ;;  %v4688_v54 = vld [vmem:[#allocation2 + $0x15c] sm:$0xf]  ;;  %v4687_v42 = vld [vmem:[#allocation2 + $0x158] sm:$0xf] }
 0x568   :  { %v5404_v32 = vadd.f32 %v13244_v17, %v5333_v52  ;;  %v5336_v51 = vmul.f32 %v13215_v46, %v5265_v61  ;;  %v5342_v25 = vmul.f32 %v13215_v46, %v5271_v13  ;;  %v5209_v33 = vadd.f32 %v13162_v44, %v5138_v19  ;;  %4447 = vperm.xlu1 %9561, %v4167_v0   ;;  %v4684_v61 = vld [vmem:[#allocation2 + $0x14c] sm:$0xf]  ;;  %v4692_v13 = vld [vmem:[#allocation2 + $0x174] sm:$0xf]  ;;  %v4691_v19 = vld [vmem:[#allocation2 + $0x170] sm:$0xf] }
 0x569   :  { %v5335_v47 = vmul.f32 %v13215_v46, %v5264_v26  ;;  %5526 = vst.msk [vmem:[#allocation3 + $0x4c] sm:$0xf] %vm5480_vm1, %v5472_v10  ;;  %v5457_v5 = vmax.f32 %v5410_v6, %v5411_v4  ;;  %v5341_v29 = vmul.f32 %v13215_v46, %v5270_v31  ;;  %v5208_v7 = vadd.f32 %v13162_v44, %v5137_v22  ;;  %v9575_v26 = vld [vmem:[#allocation3 + $0x8] sm:$0xff]   ;;  %v9579_v6 = vld [vmem:[#allocation3 + $0x38] sm:$0xff]  }
 0x56a   :  { %4442 = vperm.xlu0 %9560, %v4166_v37   ;;  %v5413_v62 = vadd.f32 %v13244_v17, %v5342_v25  ;;  %v5273_v53 = vmax.f32 %v5209_v33, 0.0  ;;  %v13450_v45 = vpop.permute.xlu1 %1833  ;;  %v5442_v28 = vmax.f32 %v5404_v32, %v5405_v60  ;;  %v5407_v44 = vadd.f32 %v13244_v17, %v5336_v51  ;;  %v9577_v37 = vld [vmem:[#allocation3 + $0x20] sm:$0xff]   ;;  %v9576_v22 = vld [vmem:[#allocation3 + $0x18] sm:$0xff]   ;;  %v4694_v32 = vld [vmem:[#allocation2 + $0x17c] sm:$0xf] }
 0x56b   :  { %v5473_v27 = vmax.f32 %v5441_v3, %v5457_v5  ;;  %v5412_v41 = vadd.f32 %v13244_v17, %v5341_v29  ;;  %v5272_v39 = vmax.f32 %v5208_v7, 0.0  ;;  %v13453_v12 = vpop.permute.xlu0 %1828  ;;  %v5406_v24 = vadd.f32 %v13244_v17, %v5335_v47  ;;  %v9578_v51 = vld [vmem:[#allocation3 + $0x30] sm:$0xff]   ;;  %v4693_v25 = vld [vmem:[#allocation2 + $0x178] sm:$0xf]  ;;  %v9583_v29 = vld [vmem:[%s14757_s29 + $0x28] sm:$0xff]  }
 0x56c   :  { %v5344_v50 = vmul.f32 %v13215_v46, %v5273_v53  ;;  %4467 = vperm.xlu1 %9561, %v4171_v43   ;;  %v5582_v36 = vpack.c.bf16 %v9575_v26, %v9574_v8  ;;  %v5583_v33 = vpack.c.bf16 %v9577_v37, %v9576_v22  ;;  %v5584_v5 = vpack.c.bf16 %v9579_v6, %v9578_v51  ;;  %v4696_v43 = vld [vmem:[#allocation2 + $0x184] sm:$0xf]  ;;  %v15220_v6 = vld [vmem:[#allocation76_spill] sm:$0xff]  ;;  %v9589_v51 = vld [vmem:[#allocation3 + $0x40] sm:$0xff]  }
 0x56d   :  { %5527 = vst.msk [vmem:[#allocation3 + $0x50] sm:$0xf] %vm5480_vm1, %v5473_v27  ;;  %v5458_v59 = vmax.f32 %v5412_v41, %v5413_v62  ;;  %v5343_v56 = vmul.f32 %v13215_v46, %v5272_v39  ;;  %v5443_v9 = vmax.f32 %v5406_v24, %v5407_v44  ;;  %v4174_v46 = vld [vmem:[#allocation2 + $0x17c] sm:$0xf]  ;;  %v9585_v53 = vld [vmem:[#allocation3 + $0x10] sm:$0xff]  }
 0x56e   :  { %4462 = vperm.xlu0 %9560, %v4170_v2   ;;  %v5415_v55 = vadd.f32 %v13244_v17, %v5344_v50  ;;  %v13461_v20 = vpop.permute.xlu1 %1843  ;;  %v9584_v62 = vld [vmem:[#allocation3 + $0x8] sm:$0xff]   ;;  %v4695_v2 = vld [vmem:[#allocation2 + $0x180] sm:$0xf]  ;;  %v1565_v24 = vld [vmem:[#allocation2 + $0x114] sm:$0xf] }
 0x56f   :  { %v5474_v3 = vmax.f32 %v5442_v28, %v5458_v59  ;;  %v5414_v11 = vadd.f32 %v13244_v17, %v5343_v56  ;;  %v13463_v16 = vpop.permute.xlu0 %1838  ;;  %v4683_v17 = vld [vmem:[#allocation2 + $0x148] sm:$0xf]  ;;  %v9770_v41 = vld [vmem:[%s14757_s29 + $0x20] sm:$0xff]   ;;  %v13506_v28 = vld [vmem:[%s14757_s29 + $0x30] sm:$0xff]   ;;  %v5876_v59 = vpack.c.bf16 %v9585_v53, %v9584_v62 }
 0x570   :  { %4477 = vperm.xlu1 %9561, %v4173_v18   ;;  %v9581_v44 = vld [vmem:[#allocation3 + $0x48] sm:$0xff]   ;;  %v1564_v56 = vld [vmem:[#allocation2 + $0x110] sm:$0xf]  ;;  %v15215_v8 = vld [vmem:[#allocation69_spill] sm:$0xff] }
 0x571   :  { %5528 = vst.msk [vmem:[#allocation3 + $0x54] sm:$0xf] %vm5480_vm1, %v5474_v3  ;;  %v5459_v52 = vmax.f32 %v5414_v11, %v5415_v55  ;;  %v13516_v3 = vld [vmem:[#allocation6] ss:$0 sm:$0xff]  ;;  %v15223_v62 = vld [vmem:[#allocation115_spill] sm:$0xff] }
 0x572   :  { %4472 = vperm.xlu0 %9560, %v4172_v35   ;;  %v13466_v58 = vpop.permute.xlu1 %1863  ;;  %15210 = vst [vmem:[#allocation55_spill] sm:$0xff] %v13516_v3  ;;  %v15211_v11 = vld [vmem:[#allocation65_spill] sm:$0xff]  ;;  %v913_v26 = vmul.f32 %v13516_v3, %v15215_v8  ;;  %v918_v22 = vmul.f32 %v13516_v3, %v15220_v6  ;;  %v2086_v8 = vld [vmem:[#allocation2 + $0x134] sm:$0xf] }
 0x573   :  { %v5475_v1 = vmax.f32 %v5443_v9, %v5459_v52  ;;  %v13468_v34 = vpop.permute.xlu0 %1858  ;;  %v13520_v9 = vmul.f32 %v13516_v3, %v15211_v11  ;;  %v15212_v52 = vld [vmem:[#allocation66_spill] sm:$0xff]  ;;  %v15227_v11 = vld [vmem:[#allocation117_spill] sm:$0xff] }
 0x574   :  { %4487 = vperm.xlu1 %9561, %v4175_v40   ;;  %v9571_v57 = vld [vmem:[#allocation3 + $0x4c] sm:$0xff]   ;;  %v13524_v40 = vmul.f32 %v13516_v3, %v15212_v52 }
 0x575   :  { %5529 = vst.msk [vmem:[#allocation3 + $0x58] sm:$0xf] %vm5480_vm1, %v5475_v1  ;;  %v15213_v1 = vld [vmem:[#allocation67_spill] sm:$0xff]  ;;  %v13577_v6 = vld [vmem:[#allocation6 + $0x2] ss:$0 sm:$0xff] }
 0x576   :  { %4482 = vperm.xlu0 %9560, %v4174_v46   ;;  %v13471_v21 = vpop.permute.xlu1 %1873  ;;  %v1573_v46 = vld [vmem:[#allocation2 + $0x13c] sm:$0xf] }
 0x577   :  { %v13473_v49 = vpop.permute.xlu0 %1868 }
 0x578   :  { %4948 = vperm.xlu1 %9561, %v4684_v61   ;;  %v9582_v27 = vld [vmem:[#allocation3 + $0x50] sm:$0xff]   ;;  %v911_v61 = vmul.f32 %v13516_v3, %v15213_v1  ;;  %v15228_v1 = vld [vmem:[#allocation118_spill] sm:$0xff] }
 0x579   :  { %v5585_v18 = vpack.c.bf16 %v9582_v27, %v9581_v44  ;;  %v9586_v44 = vld [vmem:[#allocation3 + $0x20] sm:$0xff]  }
 0x57a   :  { %4943 = vperm.xlu0 %9560, %v4683_v17   ;;  %v13475_v63 = vpop.permute.xlu1 %1883  ;;  %v15214_v17 = vld [vmem:[#allocation68_spill] sm:$0xff] }
 0x57b   :  { %v13477_v23 = vpop.permute.xlu0 %1878 }
 0x57c   :  { %4958 = vperm.xlu1 %9561, %v4686_v48   ;;  %v9572_v15 = vld [vmem:[#allocation3 + $0x54] sm:$0xff]   ;;  %v910_v48 = vmul.f32 %v13516_v3, %v15214_v17 }
 0x57d   :  { %v5642_v0 = vpack.c.bf16 %v9572_v15, %v9571_v57  ;;  %v1572_v15 = vld [vmem:[#allocation2 + $0x138] sm:$0xf] }
 0x57e   :  { %4953 = vperm.xlu0 %9560, %v4685_v38   ;;  %v13479_v60 = vpop.permute.xlu1 %2344  ;;  %v15216_v38 = vld [vmem:[#allocation70_spill] sm:$0xff] }
 0x57f   :  { %v13481_v4 = vpop.permute.xlu0 %2339  ;;  %9113 = vmatmul.mubr.msk.bf16.gmra.mrb[4].mxu0 %vm5660_vm2, %v5642_v0  ;;  %v912_v57 = vmul.f32 %v13516_v3, %v15216_v38  ;;  %v15218_v0 = vld [vmem:[#allocation74_spill] sm:$0xff] }
 0x580   :  { %15209 = vst [vmem:[#allocation54_spill] sm:$0xff] %v13481_v4  ;;  %4968 = vperm.xlu1 %9561, %v4688_v54   ;;  %9120 = vmatprep.mubr.msk.bf16.mxu0 %vm5660_vm2, %v5582_v36  ;;  %v9587_v54 = vld [vmem:[#allocation3 + $0x28] sm:$0xff]   ;;  %v15217_v36 = vld [vmem:[#allocation73_spill] sm:$0xff] }
 0x581   :  { %v9588_v38 = vld [vmem:[#allocation3 + $0x38] sm:$0xff]   ;;  %v13592_v4 = vld [vmem:[#allocation6 + $0x3] ss:$0 sm:$0xff] }
 0x582   :  { %4963 = vperm.xlu0 %9560, %v4687_v42   ;;  %v13485_v10 = vpop.permute.xlu1 %2354  ;;  %v917_v42 = vmul.f32 %v13516_v3, %v15217_v36  ;;  %v15229_v36 = vld [vmem:[#allocation121_spill] sm:$0xff] }
 0x583   :  { %v13487_v31 = vpop.permute.xlu0 %2349 }
 0x584   :  { %4988 = vperm.xlu1 %9561, %v4692_v13   ;;  %v916_v13 = vmul.f32 %v13516_v3, %v15218_v0  ;;  %v15230_v0 = vld [vmem:[#allocation122_spill] sm:$0xff] }
 0x586   :  { %4983 = vperm.xlu0 %9560, %v4691_v19   ;;  %v13489_v47 = vpop.permute.xlu1 %2364  ;;  %v15219_v19 = vld [vmem:[#allocation75_spill] sm:$0xff] }
 0x587   :  { %v13494_v7 = vpop.permute.xlu0 %2359  ;;  %9121 = vmatmul.mubr.msk.bf16.vlgmr.msra.gmra.mrb[0].mxu0 %vm5660_vm2, %v5583_v33  ;;  %v919_v37 = vmul.f32 %v13516_v3, %v15219_v19 }
 0x588   :  { %4998 = vperm.xlu1 %9561, %v4694_v32   ;;  %9124 = vmatprep.mubr.msk.bf16.mxu0 %vm5660_vm2, %v5584_v5  ;;  %v15222_v5 = vld [vmem:[#allocation78_spill] sm:$0xff] }
 0x589   :  { %9129 = vmatpush3.bf16.msra.mxu0 %v9770_v41 }
 0x58a   :  { %4993 = vperm.xlu0 %9560, %v4693_v25   ;;  %v13501_v39 = vpop.permute.xlu1 %2384  ;;  %9130 = vmatprep.subr.bf16.mxu0 %v9583_v29  ;;  %v15221_v25 = vld [vmem:[#allocation77_spill] sm:$0xff] }
 0x58b   :  { %v13508_v50 = vpop.permute.xlu0 %2379  ;;  %v13547_v33 = vmul.f32 %v13516_v3, %v15221_v25  ;;  %v1953_v25 = vmul.f32 %v13577_v6, %v13450_v45 }
 0x58c   :  { %5008 = vperm.xlu1 %9561, %v4696_v43   ;;  %v13553_v43 = vld [vmem:[#allocation6 + $0x1] ss:$0 sm:$0xff] }
 0x58d   :  { %9131 = vmatpush3.bf16.msra.mxu0 %v9583_v29  ;;  %v13551_v29 = vmul.f32 %v13516_v3, %v15222_v5  ;;  %v1432_v53 = vmul.f32 %v13553_v43, %v15223_v62  ;;  %v1434_v52 = vmul.f32 %v13553_v43, %v15227_v11  ;;  %v1433_v17 = vmul.f32 %v13553_v43, %v15228_v1  ;;  %v2085_v5 = vld [vmem:[#allocation2 + $0x130] sm:$0xf] }
 0x58e   :  { %5003 = vperm.xlu0 %9560, %v4695_v2   ;;  %v13510_v55 = vpop.permute.xlu1 %2394  ;;  %9140 = vmatprep.subr.bf16.mxu0 %v13506_v28  ;;  %v15224_v2 = vld [vmem:[#allocation116_spill] sm:$0xff]  ;;  %v1437_v19 = vmul.f32 %v13553_v43, %v15230_v0  ;;  %v5877_v62 = vpack.c.bf16 %v9587_v54, %v9586_v44  ;;  %v1952_v11 = vmul.f32 %v13577_v6, %v13453_v12 }
 0x58f   :  { %v13513_v35 = vpop.permute.xlu0 %2389  ;;  %9125 = vmatmul.mubr.msk.bf16.gmra.mrb[4].mxu0 %vm5660_vm2, %v5585_v18  ;;  %v1431_v27 = vmul.f32 %v13553_v43, %v15224_v2  ;;  %v15231_v2 = vld [vmem:[#allocation123_spill] sm:$0xff]  ;;  %v1496_v3 = vadd.f32 %v1432_v53, %v911_v61  ;;  %v2474_v54 = vmul.f32 %v13592_v4, %v13485_v10  ;;  %v1498_v12 = vadd.f32 %v1434_v52, %v913_v26  ;;  %v2094_v61 = vld [vmem:[#allocation2 + $0x15c] sm:$0xf] }
 0x590   :  { %1853 = vperm.xlu1 %9561, %v1565_v24   ;;  %9132 = vmatprep.mubr.msk.bf16.mxu0 %vm5660_vm2, %v5876_v59  ;;  %v15225_v24 = vld [vmem:[#allocation113_spill] sm:$0xff]  ;;  %v9595_v0 = vld [vmem:[%s14757_s29 + $0x38] sm:$0xff]   ;;  %v1501_v53 = vadd.f32 %v1437_v19, %v916_v13  ;;  %v1955_v10 = vmul.f32 %v13577_v6, %v13461_v20  ;;  %v2476_v20 = vmul.f32 %v13592_v4, %v13489_v47  ;;  %v15234_v19 = vld [vmem:[#allocation126_spill] sm:$0xff] }
 0x591   :  { %v13563_v59 = vmul.f32 %v13553_v43, %v15225_v24  ;;  %v1440_v24 = vmul.f32 %v13553_v43, %v15231_v2  ;;  %v1495_v45 = vadd.f32 %v1431_v27, %v910_v48  ;;  %v1497_v2 = vadd.f32 %v1433_v17, %v912_v57  ;;  %v9594_v17 = vld [vmem:[#allocation3 + $0x20] sm:$0xff]  }
 0x592   :  { %1848 = vperm.xlu0 %9560, %v1564_v56   ;;  %v13543_v32 = vpop.permute.xlu1 %2404  ;;  %v15226_v56 = vld [vmem:[#allocation114_spill] sm:$0xff]  ;;  %v2017_v27 = vadd.f32 %v1953_v25, %v1496_v3  ;;  %v2019_v47 = vadd.f32 %v1955_v10, %v1498_v12  ;;  %v2480_v12 = vmul.f32 %v13592_v4, %v13501_v39 }
 0x593   :  { %v13559_v41 = vpop.permute.xlu0 %2399  ;;  %v13567_v18 = vmul.f32 %v13553_v43, %v15226_v56  ;;  %v15232_v56 = vld [vmem:[#allocation124_spill] sm:$0xff]  ;;  %v2016_v57 = vadd.f32 %v1952_v11, %v1495_v45  ;;  %v1959_v11 = vmul.f32 %v13577_v6, %v13466_v58  ;;  %v2605_v45 = vld [vmem:[#allocation2 + $0x134] sm:$0xf] }
 0x594   :  { %1893 = vperm.xlu1 %9561, %v1573_v46   ;;  %v1438_v46 = vmul.f32 %v13553_v43, %v15229_v36  ;;  %v5878_v36 = vpack.c.bf16 %v9589_v51, %v9588_v38  ;;  %v2473_v51 = vmul.f32 %v13592_v4, %v13487_v31  ;;  %v2093_v38 = vld [vmem:[#allocation2 + $0x158] sm:$0xf]  ;;  %v1954_v31 = vmul.f32 %v13577_v6, %v13463_v16 }
 0x595   :  { %v2538_v13 = vadd.f32 %v2474_v54, %v2017_v27  ;;  %v1441_v16 = vmul.f32 %v13553_v43, %v15234_v19 }
 0x596   :  { %1888 = vperm.xlu0 %9560, %v1572_v15   ;;  %v1439_v15 = vmul.f32 %v13553_v43, %v15232_v56  ;;  %v13587_v1 = vpop.permute.xlu1 %2864  ;;  %v1502_v48 = vadd.f32 %v1438_v46, %v917_v42  ;;  %v9591_v56 = vld [vmem:[#allocation3 + $0x58] sm:$0xff]   ;;  %v13615_v46 = vld [vmem:[#allocation6 + $0x4] ss:$0 sm:$0xff]  ;;  %v2537_v25 = vadd.f32 %v2473_v51, %v2016_v57  ;;  %v1958_v51 = vmul.f32 %v13577_v6, %v13468_v34 }
 0x597   :  { %v13596_v44 = vpop.permute.xlu0 %2859  ;;  %9133 = vmatmul.mubr.msk.bf16.vlgmr.msra.gmra.mrb[0].mxu0 %vm5660_vm2, %v5877_v62  ;;  %v15233_v42 = vld [vmem:[#allocation125_spill] sm:$0xff] }
 0x598   :  { %2374 = vperm.xlu1 %9561, %v2086_v8   ;;  %9136 = vmatprep.mubr.msk.bf16.mxu0 %vm5660_vm2, %v5878_v36  ;;  %v13605_v8 = vadd.f32 %v1440_v24, %v919_v37  ;;  %v13607_v26 = vadd.f32 %v1439_v15, %v918_v22  ;;  %v1442_v3 = vmul.f32 %v13553_v43, %v15233_v42  ;;  %v9590_v22 = vld [vmem:[#allocation3 + $0x50] sm:$0xff]   ;;  %v2606_v24 = vld [vmem:[#allocation2 + $0x138] sm:$0xf]  ;;  %v9593_v15 = vld [vmem:[#allocation3 + $0x18] sm:$0xff]  }
 0x599   :  { %9141 = vmatpush3.bf16.msra.mxu0 %v13506_v28  ;;  %v5879_v54 = vpack.c.bf16 %v9591_v56, %v9590_v22  ;;  %v6031_v57 = vpack.c.bf16 %v9594_v17, %v9593_v15  ;;  %v9597_v56 = vld [vmem:[#allocation3 + $0x38] sm:$0xff]   ;;  %v2023_v39 = vadd.f32 %v1959_v11, %v1502_v48  ;;  %v1961_v17 = vmul.f32 %v13577_v6, %v13471_v21 }
 0x59a   :  { %2369 = vperm.xlu0 %9560, %v2085_v5   ;;  %v2875_v52 = vpop.permute.xlu1 %2874  ;;  %9142 = vmatprep.subr.bf16.mxu0 %v9595_v0  ;;  %v2475_v5 = vmul.f32 %v13592_v4, %v13494_v7 }
 0x59b   :  { %v2994_v28 = vmul.f32 %v13615_v46, %v2875_v52  ;;  %v2870_v37 = vpop.permute.xlu0 %2869  ;;  %v1506_v52 = vadd.f32 %v1442_v3, %v13547_v33  ;;  %v2482_v33 = vmul.f32 %v13592_v4, %v13510_v55  ;;  %v1950_v55 = vmul.f32 %v13577_v6, %v13442_v14 }
 0x59c   :  { %2414 = vperm.xlu1 %9561, %v2094_v61   ;;  %v2993_v62 = vmul.f32 %v13615_v46, %v2870_v37  ;;  %v2018_v61 = vadd.f32 %v1954_v31, %v1497_v2  ;;  %v2479_v2 = vmul.f32 %v13592_v4, %v13508_v50  ;;  %v2614_v31 = vld [vmem:[#allocation2 + $0x160] sm:$0xf]  ;;  %v2022_v37 = vadd.f32 %v1958_v51, %v1501_v53 }
 0x59d   :  { %v13625_v36 = vadd.f32 %v2994_v28, %v2538_v13  ;;  %9143 = vmatpush3.bf16.msra.mxu0 %v9595_v0  ;;  %v2613_v13 = vld [vmem:[#allocation2 + $0x15c] sm:$0xf]  ;;  %v1505_v28 = vadd.f32 %v1441_v16, %v13551_v29  ;;  %v1960_v50 = vmul.f32 %v13577_v6, %v13473_v49  ;;  %v1951_v29 = vmul.f32 %v13577_v6, %v13436_v30  ;;  %v3126_v30 = vld [vmem:[#allocation2 + $0x138] sm:$0xf] }
 0x59e   :  { %2409 = vperm.xlu0 %9560, %v2093_v38   ;;  %v13629_v27 = vadd.f32 %v2993_v62, %v2537_v25  ;;  %v2540_v38 = vadd.f32 %v2476_v20, %v2019_v47  ;;  %v2539_v0 = vadd.f32 %v2475_v5, %v2018_v61  ;;  %v9596_v20 = vld [vmem:[#allocation3 + $0x30] sm:$0xff]   ;;  %v2544_v5 = vadd.f32 %v2480_v12, %v2023_v39  ;;  %v3127_v62 = vld [vmem:[#allocation2 + $0x13c] sm:$0xf] }
 0x59f   :  { %v2885_v7 = vpop.permute.xlu1 %2884  ;;  %9137 = vmatmul.mubr.msk.bf16.gmra.mrb[4].mxu0 %vm5660_vm2, %v5879_v54  ;;  %v9599_v25 = vld [vmem:[#allocation3 + $0x50] sm:$0xff]   ;;  %v6032_v3 = vpack.c.bf16 %v9597_v56, %v9596_v20  ;;  %v2543_v53 = vadd.f32 %v2479_v2, %v2022_v37  ;;  %v2481_v49 = vmul.f32 %v13592_v4, %v13513_v35  ;;  %v2025_v15 = vadd.f32 %v1961_v17, %v13605_v8 }
 0x5a0   :  { %v2996_v10 = vmul.f32 %v13615_v46, %v2885_v7  ;;  %v2880_v58 = vpop.permute.xlu0 %2879  ;;  %2894 = vperm.xlu1 %9561, %v2606_v24   ;;  %9144 = vmatprep.mubr.msk.bf16.mxu0 %vm5660_vm2, %v6031_v57  ;;  %v9598_v24 = vld [vmem:[#allocation3 + $0x48] sm:$0xff]   ;;  %v1963_v47 = vmul.f32 %v13577_v6, %v13475_v63  ;;  %v1962_v35 = vmul.f32 %v13577_v6, %v13477_v23  ;;  %v9602_v63 = vld [vmem:[%s14757_s29 + $0x40] sm:$0xff]  }
 0x5a1   :  { %v2995_v34 = vmul.f32 %v13615_v46, %v2880_v58  ;;  %v6033_v51 = vpack.c.bf16 %v9599_v25, %v9598_v24  ;;  %v2546_v7 = vadd.f32 %v2482_v33, %v2025_v15  ;;  %v2484_v14 = vmul.f32 %v13592_v4, %v13543_v32  ;;  %v3135_v32 = vld [vmem:[#allocation2 + $0x164] sm:$0xf]  ;;  %9152 = vmatprep.subr.bf16.mxu0 %v9602_v63  ;;  %v3655_v24 = vld [vmem:[#allocation2 + $0x180] sm:$0xf] }
 0x5a2   :  { %2889 = vperm.xlu0 %9560, %v2605_v45   ;;  %v13642_v42 = vadd.f32 %v2996_v10, %v2540_v38  ;;  %v2024_v45 = vadd.f32 %v1960_v50, %v13607_v26  ;;  %v2483_v23 = vmul.f32 %v13592_v4, %v13559_v41  ;;  %v1494_v12 = vadd.f32 %v13563_v59, %v13520_v9  ;;  %v9605_v50 = vld [vmem:[%s14757_s29 + $0x48] sm:$0xff]  }
 0x5a3   :  { %v13647_v22 = vadd.f32 %v2995_v34, %v2539_v0  ;;  %v2905_v19 = vpop.permute.xlu1 %2904  ;;  %v2027_v10 = vadd.f32 %v1963_v47, %v1506_v52  ;;  %v2472_v58 = vmul.f32 %v13592_v4, %v13479_v60  ;;  %v3134_v0 = vld [vmem:[#allocation2 + $0x160] sm:$0xf]  ;;  %v1493_v41 = vadd.f32 %v13567_v18, %v13524_v40  ;;  %v15235_v34 = vld [vmem:[#allocation54_spill] sm:$0xff] }
 0x5a4   :  { %v3000_v21 = vmul.f32 %v13615_v46, %v2905_v19  ;;  %v2900_v48 = vpop.permute.xlu0 %2899  ;;  %2934 = vperm.xlu1 %9561, %v2614_v31   ;;  %v2545_v26 = vadd.f32 %v2481_v49, %v2024_v45  ;;  %v2026_v2 = vadd.f32 %v1962_v35, %v1505_v28  ;;  %v2471_v31 = vmul.f32 %v13592_v4, %v15235_v34  ;;  %v3648_v28 = vld [vmem:[#allocation2 + $0x15c] sm:$0xf]  ;;  %v4169_v35 = vld [vmem:[#allocation2 + $0x160] sm:$0xf] }
 0x5a5   :  { %v2999_v16 = vmul.f32 %v13615_v46, %v2900_v48  ;;  %v2015_v9 = vadd.f32 %v1951_v29, %v1494_v12  ;;  %v2548_v59 = vadd.f32 %v2484_v14, %v2027_v10  ;;  %v2992_v60 = vmul.f32 %v13615_v46, %v13587_v1  ;;  %v3647_v1 = vld [vmem:[#allocation2 + $0x158] sm:$0xf] }
 0x5a6   :  { %2929 = vperm.xlu0 %9560, %v2613_v13   ;;  %v13662_v11 = vadd.f32 %v3000_v21, %v2544_v5  ;;  %v2014_v20 = vadd.f32 %v1950_v55, %v1493_v41  ;;  %v2547_v37 = vadd.f32 %v2483_v23, %v2026_v2  ;;  %v2991_v40 = vmul.f32 %v13615_v46, %v13596_v44  ;;  %v4689_v41 = vld [vmem:[#allocation2 + $0x160] sm:$0xf] }
 0x5a7   :  { %v13667_v54 = vadd.f32 %v2999_v16, %v2543_v53  ;;  %v2915_v61 = vpop.permute.xlu1 %2914  ;;  %9145 = vmatmul.mubr.msk.bf16.vlgmr.msra.gmra.mrb[0].mxu0 %vm5660_vm2, %v6032_v3  ;;  %v2536_v19 = vadd.f32 %v2472_v58, %v2015_v9  ;;  %v13705_v3 = vld [vmem:[#allocation6 + $0x5] ss:$0 sm:$0xff] }
 0x5a8   :  { %v3002_v8 = vmul.f32 %v13615_v46, %v2915_v61  ;;  %v2910_v57 = vpop.permute.xlu0 %2909  ;;  %3415 = vperm.xlu1 %9561, %v3127_v62   ;;  %9148 = vmatprep.mubr.msk.bf16.mxu0 %vm5660_vm2, %v6033_v51  ;;  %v2535_v5 = vadd.f32 %v2471_v31, %v2014_v20  ;;  %v3656_v16 = vld [vmem:[#allocation2 + $0x184] sm:$0xf]  ;;  %v4168_v51 = vld [vmem:[#allocation2 + $0x15c] sm:$0xf] }
 0x5a9   :  { %v3001_v38 = vmul.f32 %v13615_v46, %v2910_v57  ;;  %9153 = vmatpush3.bf16.msra.mxu0 %v9602_v63  ;;  %v3056_v48 = vadd.f32 %v2992_v60, %v2536_v19  ;;  %v4690_v58 = vld [vmem:[#allocation2 + $0x164] sm:$0xf] }
 0x5aa   :  { %3410 = vperm.xlu0 %9560, %v3126_v30   ;;  %v13684_v56 = vadd.f32 %v3002_v8, %v2546_v7  ;;  %9154 = vmatprep.subr.bf16.mxu0 %v9605_v50  ;;  %v3055_v53 = vadd.f32 %v2991_v40, %v2535_v5  ;;  %v13756_v5 = vld [vmem:[%s14757_s29 + $0x50] sm:$0xff]  }
 0x5ab   :  { %v13690_v39 = vadd.f32 %v3001_v38, %v2545_v26  ;;  %v2925_v17 = vpop.permute.xlu1 %2924  ;;  %v4177_v26 = vld [vmem:[#allocation2 + $0x188] sm:$0xf]  ;;  %v4176_v38 = vld [vmem:[#allocation2 + $0x184] sm:$0xf] }
 0x5ac   :  { %v3004_v52 = vmul.f32 %v13615_v46, %v2925_v17  ;;  %v2920_v13 = vpop.permute.xlu0 %2919  ;;  %3455 = vperm.xlu1 %9561, %v3135_v32   ;;  %v4698_v17 = vld [vmem:[#allocation2 + $0x18c] sm:$0xf] }
 0x5ad   :  { %v3003_v18 = vmul.f32 %v13615_v46, %v2920_v13  ;;  %9155 = vmatpush3.bf16.msra.mxu0 %v9605_v50 }
 0x5ae   :  { %3450 = vperm.xlu0 %9560, %v3134_v0   ;;  %v13701_v25 = vadd.f32 %v3004_v52, %v2548_v59  ;;  %v4697_v59 = vld [vmem:[#allocation2 + $0x188] sm:$0xf]  ;;  %9164 = vmatprep.subr.bf16.mxu0 %v13756_v5 }
 0x5af   :  { %v13703_v33 = vadd.f32 %v3003_v18, %v2547_v37  ;;  %v3386_v21 = vpop.permute.xlu1 %3385 }
 0x5b0   :  { %v3513_v44 = vmul.f32 %v13705_v3, %v3386_v21  ;;  %v3381_v29 = vpop.permute.xlu0 %3380  ;;  %3936 = vperm.xlu1 %9561, %v3648_v28  }
 0x5b1   :  { %v3512_v49 = vmul.f32 %v13705_v3, %v3381_v29 }
 0x5b2   :  { %3931 = vperm.xlu0 %9560, %v3647_v1   ;;  %v13709_v62 = vadd.f32 %v3513_v44, %v3056_v48 }
 0x5b3   :  { %v13711_v55 = vadd.f32 %v3512_v49, %v3055_v53  ;;  %v3396_v15 = vpop.permute.xlu1 %3395 }
 0x5b4   :  { %v3515_v47 = vmul.f32 %v13705_v3, %v3396_v15  ;;  %v3391_v30 = vpop.permute.xlu0 %3390  ;;  %3976 = vperm.xlu1 %9561, %v3656_v16  }
 0x5b5   :  { %v3514_v45 = vmul.f32 %v13705_v3, %v3391_v30 }
 0x5b6   :  { %3971 = vperm.xlu0 %9560, %v3655_v24   ;;  %v13716_v61 = vadd.f32 %v3515_v47, %v13625_v36 }
 0x5b7   :  { %v13719_v7 = vadd.f32 %v3514_v45, %v13629_v27  ;;  %v3406_v14 = vpop.permute.xlu1 %3405 }
 0x5b8   :  { %v3517_v8 = vmul.f32 %v13705_v3, %v3406_v14  ;;  %v3401_v57 = vpop.permute.xlu0 %3400  ;;  %4457 = vperm.xlu1 %9561, %v4169_v35   ;;  %v13761_v35 = vld [vmem:[#allocation6 + $0x6] ss:$0 sm:$0xff] }
 0x5b9   :  { %v3516_v63 = vmul.f32 %v13705_v3, %v3401_v57 }
 0x5ba   :  { %4452 = vperm.xlu0 %9560, %v4168_v51   ;;  %v13724_v23 = vadd.f32 %v3517_v8, %v13642_v42 }
 0x5bb   :  { %v13727_v36 = vadd.f32 %v3516_v63, %v13647_v22  ;;  %v3426_v32 = vpop.permute.xlu1 %3425 }
 0x5bc   :  { %v3521_v27 = vmul.f32 %v13705_v3, %v3426_v32  ;;  %v3421_v12 = vpop.permute.xlu0 %3420  ;;  %4497 = vperm.xlu1 %9561, %v4177_v26   ;;  %v13771_v32 = vld [vmem:[#allocation6 + $0x7] ss:$0 sm:$0xff] }
 0x5bd   :  { %v3520_v10 = vmul.f32 %v13705_v3, %v3421_v12 }
 0x5be   :  { %4492 = vperm.xlu0 %9560, %v4176_v38   ;;  %v13732_v0 = vadd.f32 %v3521_v27, %v13662_v11 }
 0x5bf   :  { %v13735_v42 = vadd.f32 %v3520_v10, %v13667_v54  ;;  %v3436_v2 = vpop.permute.xlu1 %3435 }
 0x5c0   :  { %v3523_v22 = vmul.f32 %v13705_v3, %v3436_v2  ;;  %v3431_v34 = vpop.permute.xlu0 %3430  ;;  %4978 = vperm.xlu1 %9561, %v4690_v58  }
 0x5c1   :  { %v3522_v31 = vmul.f32 %v13705_v3, %v3431_v34 }
 0x5c2   :  { %4973 = vperm.xlu0 %9560, %v4689_v41   ;;  %v13740_v9 = vadd.f32 %v3523_v22, %v13684_v56 }
 0x5c3   :  { %v13743_v11 = vadd.f32 %v3522_v31, %v13690_v39  ;;  %v3446_v60 = vpop.permute.xlu1 %3445 }
 0x5c4   :  { %v3525_v54 = vmul.f32 %v13705_v3, %v3446_v60  ;;  %v3441_v52 = vpop.permute.xlu0 %3440  ;;  %5018 = vperm.xlu1 %9561, %v4698_v17  }
 0x5c5   :  { %v3524_v13 = vmul.f32 %v13705_v3, %v3441_v52 }
 0x5c6   :  { %5013 = vperm.xlu0 %9560, %v4697_v59   ;;  %v13748_v20 = vadd.f32 %v3525_v54, %v13701_v25 }
 0x5c7   :  { %v13751_v37 = vadd.f32 %v3524_v13, %v13703_v33  ;;  %v3907_v56 = vpop.permute.xlu1 %3906 }
 0x5c8   :  { %v3902_v40 = vpop.permute.xlu0 %3901  ;;  %v4034_v51 = vmul.f32 %v13761_v35, %v3907_v56  ;;  %v13788_v56 = vld [vmem:[#allocation6 + $0x8] ss:$0 sm:$0xff] }
 0x5c9   :  { %v4033_v14 = vmul.f32 %v13761_v35, %v3902_v40 }
 0x5ca   :  { %v4098_v41 = vadd.f32 %v4034_v51, %v13709_v62 }
 0x5cb   :  { %v3917_v18 = vpop.permute.xlu1 %3916  ;;  %v4097_v2 = vadd.f32 %v4033_v14, %v13711_v55 }
 0x5cc   :  { %v3912_v28 = vpop.permute.xlu0 %3911  ;;  %v4036_v8 = vmul.f32 %v13761_v35, %v3917_v18 }
 0x5cd   :  { %v4035_v57 = vmul.f32 %v13761_v35, %v3912_v28 }
 0x5ce   :  { %v4100_v22 = vadd.f32 %v4036_v8, %v13716_v61 }
 0x5cf   :  { %v3927_v39 = vpop.permute.xlu1 %3926  ;;  %v4099_v31 = vadd.f32 %v4035_v57, %v13719_v7 }
 0x5d0   :  { %v3922_v50 = vpop.permute.xlu0 %3921  ;;  %v4038_v63 = vmul.f32 %v13761_v35, %v3927_v39 }
 0x5d1   :  { %v4037_v38 = vmul.f32 %v13761_v35, %v3922_v50 }
 0x5d2   :  { %v4102_v17 = vadd.f32 %v4038_v63, %v13724_v23 }
 0x5d3   :  { %v3947_v19 = vpop.permute.xlu1 %3946  ;;  %v4101_v52 = vadd.f32 %v4037_v38, %v13727_v36 }
 0x5d4   :  { %v3942_v1 = vpop.permute.xlu0 %3941  ;;  %v4042_v10 = vmul.f32 %v13761_v35, %v3947_v19 }
 0x5d5   :  { %v4041_v34 = vmul.f32 %v13761_v35, %v3942_v1 }
 0x5d6   :  { %v4106_v40 = vadd.f32 %v4042_v10, %v13732_v0 }
 0x5d7   :  { %v3957_v21 = vpop.permute.xlu1 %3956  ;;  %v4105_v28 = vadd.f32 %v4041_v34, %v13735_v42  ;;  %v13806_v42 = vld [vmem:[%s14861_s8] ss:$0 sm:$0xff] }
 0x5d8   :  { %v3952_v25 = vpop.permute.xlu0 %3951  ;;  %v4044_v59 = vmul.f32 %v13761_v35, %v3957_v21 }
 0x5d9   :  { %v4043_v60 = vmul.f32 %v13761_v35, %v3952_v25 }
 0x5da   :  { %v4108_v19 = vadd.f32 %v4044_v59, %v13740_v9  ;;  %v13832_v59 = vld [vmem:[%s14874_s3] ss:$0 sm:$0xff] }
 0x5db   :  { %v3967_v48 = vpop.permute.xlu1 %3966  ;;  %v4107_v1 = vadd.f32 %v4043_v60, %v13743_v11 }
 0x5dc   :  { %v3962_v33 = vpop.permute.xlu0 %3961  ;;  %v4046_v39 = vmul.f32 %v13761_v35, %v3967_v48 }
 0x5df   :  { %v4428_v44 = vpop.permute.xlu1 %4427 }
 0x5e0   :  { %v4423_v29 = vpop.permute.xlu0 %4422  ;;  %v4555_v27 = vmul.f32 %v13771_v32, %v4428_v44  ;;  %v13801_v44 = vmul.f32 %v13761_v35, %v3962_v33  ;;  %v4110_v33 = vadd.f32 %v4046_v39, %v13748_v20 }
 0x5e1   :  { %v4554_v58 = vmul.f32 %v13771_v32, %v4423_v29 }
 0x5e2   :  { %v4619_v13 = vadd.f32 %v4555_v27, %v4098_v41 }
 0x5e3   :  { %v4438_v53 = vpop.permute.xlu1 %4437  ;;  %v4618_v7 = vadd.f32 %v4554_v58, %v4097_v2 }
 0x5e4   :  { %v4433_v49 = vpop.permute.xlu0 %4432  ;;  %v4557_v62 = vmul.f32 %v13771_v32, %v4438_v53 }
 0x5e5   :  { %v4556_v23 = vmul.f32 %v13771_v32, %v4433_v49 }
 0x5e6   :  { %v4621_v29 = vadd.f32 %v4557_v62, %v4100_v22 }
 0x5e7   :  { %v4448_v16 = vpop.permute.xlu1 %4447  ;;  %v4620_v49 = vadd.f32 %v4556_v23, %v4099_v31 }
 0x5e8   :  { %v4559_v36 = vmul.f32 %v13771_v32, %v4448_v16 }
 0x5e9   :  { %v4443_v24 = vpop.permute.xlu0 %4442 }
 0x5ea   :  { %v4558_v21 = vmul.f32 %v13771_v32, %v4443_v24  ;;  %v4623_v51 = vadd.f32 %v4559_v36, %v4102_v17 }
 0x5eb   :  { %v4468_v15 = vpop.permute.xlu1 %4467 }
 0x5ec   :  { %v4563_v11 = vmul.f32 %v13771_v32, %v4468_v15  ;;  %v4622_v57 = vadd.f32 %v4558_v21, %v4101_v52  ;;  %v13819_v15 = vld [vmem:[%s14871_s18] ss:$0 sm:$0xff] }
 0x5ed   :  { %v4463_v47 = vpop.permute.xlu0 %4462 }
 0x5ee   :  { %v4562_v63 = vmul.f32 %v13771_v32, %v4463_v47  ;;  %v4627_v34 = vadd.f32 %v4563_v11, %v4106_v40 }
 0x5ef   :  { %v4478_v30 = vpop.permute.xlu1 %4477 }
 0x5f0   :  { %v4565_v58 = vmul.f32 %v13771_v32, %v4478_v30 }
 0x5f1   :  { %v13759_v45 = vpop.permute.xlu0 %4472 }
 0x5f2   :  { %v4564_v30 = vmul.f32 %v13771_v32, %v13759_v45 }
 0x5f3   :  { %v13768_v26 = vpop.permute.xlu1 %4487 }
 0x5f5   :  { %v13774_v12 = vpop.permute.xlu0 %4482 }
 0x5f7   :  { %v4949_v54 = vpop.permute.xlu1 %4948 }
 0x5f8   :  { %v5076_v55 = vmul.f32 %v13788_v56, %v4949_v54 }
 0x5f9   :  { %v4944_v61 = vpop.permute.xlu0 %4943 }
 0x5fa   :  { %v5075_v18 = vmul.f32 %v13788_v56, %v4944_v61  ;;  %v5140_v50 = vadd.f32 %v5076_v55, %v4619_v13  ;;  %v4626_v13 = vadd.f32 %v4562_v63, %v4105_v28 }
 0x5fb   :  { %v4959_v0 = vpop.permute.xlu1 %4958 }
 0x5fc   :  { %v5139_v25 = vadd.f32 %v5075_v18, %v4618_v7  ;;  %v5211_v48 = vadd.f32 %v13806_v42, %v5140_v50  ;;  %v5078_v53 = vmul.f32 %v13788_v56, %v4959_v0  ;;  %v4629_v7 = vadd.f32 %v4565_v58, %v4108_v19 }
 0x5fd   :  { %v4954_v9 = vpop.permute.xlu0 %4953 }
 0x5fe   :  { %v5210_v16 = vadd.f32 %v13806_v42, %v5139_v25  ;;  %v5077_v24 = vmul.f32 %v13788_v56, %v4954_v9  ;;  %v5275_v14 = vmax.f32 %v5211_v48, 0.0  ;;  %v5142_v8 = vadd.f32 %v5078_v53, %v4621_v29 }
 0x5ff   :  { %v4969_v10 = vpop.permute.xlu1 %4968  ;;  %v4628_v25 = vadd.f32 %v4564_v30, %v4107_v1  ;;  %v4567_v48 = vmul.f32 %v13771_v32, %v13768_v26 }
 0x600   :  { %v5274_v38 = vmax.f32 %v5210_v16, 0.0  ;;  %v5141_v27 = vadd.f32 %v5077_v24, %v4620_v49  ;;  %v5346_v41 = vmul.f32 %v13819_v15, %v5275_v14  ;;  %v5213_v20 = vadd.f32 %v13806_v42, %v5142_v8 }
 0x601   :  { %v5080_v2 = vmul.f32 %v13788_v56, %v4969_v10  ;;  %v4964_v22 = vpop.permute.xlu0 %4963  ;;  %v4566_v16 = vmul.f32 %v13771_v32, %v13774_v12  ;;  %v4631_v58 = vadd.f32 %v4567_v48, %v4110_v33 }
 0x602   :  { %v5345_v47 = vmul.f32 %v13819_v15, %v5274_v38  ;;  %v5212_v31 = vadd.f32 %v13806_v42, %v5141_v27  ;;  %v5079_v17 = vmul.f32 %v13788_v56, %v4964_v22  ;;  %v13835_v60 = vadd.f32 %v13832_v59, %v5346_v41 }
 0x603   :  { %v5277_v54 = vmax.f32 %v5213_v20, 0.0  ;;  %v5144_v52 = vadd.f32 %v5080_v2, %v4623_v51  ;;  %v4989_v40 = vpop.permute.xlu1 %4988  ;;  %v4109_v38 = vadd.f32 %v13801_v44, %v13751_v37 }
 0x604   :  { %v13838_v62 = vadd.f32 %v13832_v59, %v5345_v47  ;;  %v5276_v55 = vmax.f32 %v5212_v31, 0.0  ;;  %v5143_v61 = vadd.f32 %v5079_v17, %v4622_v57  ;;  %v5084_v18 = vmul.f32 %v13788_v56, %v4989_v40 }
 0x605   :  { %v5348_v45 = vmul.f32 %v13819_v15, %v5277_v54  ;;  %v5215_v23 = vadd.f32 %v13806_v42, %v5144_v52  ;;  %v4984_v39 = vpop.permute.xlu0 %4983 }
 0x606   :  { %v5444_v36 = vmax.f32 %v13838_v62, %v13835_v60  ;;  %v5347_v50 = vmul.f32 %v13819_v15, %v5276_v55  ;;  %v5214_v28 = vadd.f32 %v13806_v42, %v5143_v61  ;;  %v5083_v21 = vmul.f32 %v13788_v56, %v4984_v39 }
 0x607   :  { %v5419_v0 = vadd.f32 %v13832_v59, %v5348_v45  ;;  %v5279_v19 = vmax.f32 %v5215_v23, 0.0  ;;  %v5148_v29 = vadd.f32 %v5084_v18, %v4627_v34  ;;  %v4999_v11 = vpop.permute.xlu1 %4998  ;;  %v4630_v34 = vadd.f32 %v4566_v16, %v4109_v38 }
 0x608   :  { %v5418_v53 = vadd.f32 %v13832_v59, %v5347_v50  ;;  %v5278_v9 = vmax.f32 %v5214_v28, 0.0  ;;  %v5147_v49 = vadd.f32 %v5083_v21, %v4626_v13  ;;  %v5086_v1 = vmul.f32 %v13788_v56, %v4999_v11 }
 0x609   :  { %v5350_v24 = vmul.f32 %v13819_v15, %v5279_v19  ;;  %v5219_v51 = vadd.f32 %v13806_v42, %v5148_v29  ;;  %v4994_v14 = vpop.permute.xlu0 %4993 }
 0x60a   :  { %v5445_v8 = vmax.f32 %v5418_v53, %v5419_v0  ;;  %v5349_v57 = vmul.f32 %v13819_v15, %v5278_v9  ;;  %v5218_v26 = vadd.f32 %v13806_v42, %v5147_v49  ;;  %v5085_v63 = vmul.f32 %v13788_v56, %v4994_v14 }
 0x60b   :  { %v5421_v27 = vadd.f32 %v13832_v59, %v5350_v24  ;;  %v5283_v12 = vmax.f32 %v5219_v51, 0.0  ;;  %v5150_v10 = vadd.f32 %v5086_v1, %v4629_v7  ;;  %v5009_v22 = vpop.permute.xlu1 %5008 }
 0x60c   :  { %v5420_v41 = vadd.f32 %v13832_v59, %v5349_v57  ;;  %v5282_v20 = vmax.f32 %v5218_v26, 0.0  ;;  %v5149_v2 = vadd.f32 %v5085_v63, %v4628_v25  ;;  %v5088_v17 = vmul.f32 %v13788_v56, %v5009_v22 }
 0x60d   :  { %v5354_v47 = vmul.f32 %v13819_v15, %v5283_v12  ;;  %v5221_v31 = vadd.f32 %v13806_v42, %v5150_v10  ;;  %v5004_v30 = vpop.permute.xlu0 %5003  ;;  %v9604_v10 = vld [vmem:[#allocation3 + $0x24] sm:$0xff]  }
 0x60e   :  { %v5446_v60 = vmax.f32 %v5420_v41, %v5421_v27  ;;  %v5353_v37 = vmul.f32 %v13819_v15, %v5282_v20  ;;  %v5220_v44 = vadd.f32 %v13806_v42, %v5149_v2  ;;  %v5087_v33 = vmul.f32 %v13788_v56, %v5004_v30  ;;  %v9603_v41 = vld [vmem:[#allocation3 + $0x1c] sm:$0xff]  }
 0x60f   :  { %v5425_v54 = vadd.f32 %v13832_v59, %v5354_v47  ;;  %v5285_v52 = vmax.f32 %v5221_v31, 0.0  ;;  %v5152_v13 = vadd.f32 %v5088_v17, %v4631_v58  ;;  %v1854_v40 = vpop.permute.xlu1 %1853  ;;  %v6185_v22 = vpack.c.bf16 %v9604_v10, %v9603_v41  ;;  %v9607_v47 = vld [vmem:[#allocation3 + $0x3c] sm:$0xff]   ;;  %v9609_v17 = vld [vmem:[#allocation3 + $0x54] sm:$0xff]  }
 0x610   :  { %v5424_v62 = vadd.f32 %v13832_v59, %v5353_v37  ;;  %v5284_v55 = vmax.f32 %v5220_v44, 0.0  ;;  %v5151_v61 = vadd.f32 %v5087_v33, %v4630_v34  ;;  %v9608_v37 = vld [vmem:[#allocation3 + $0x4c] sm:$0xff]  }
 0x611   :  { %v5356_v7 = vmul.f32 %v13819_v15, %v5285_v52  ;;  %v5223_v45 = vadd.f32 %v13806_v42, %v5152_v13  ;;  %v1849_v23 = vpop.permute.xlu0 %1848  ;;  %v9611_v33 = vld [vmem:[%s14757_s29 + $0x58] sm:$0xff]   ;;  %v6187_v52 = vpack.c.bf16 %v9609_v17, %v9608_v37 }
 0x612   :  { %v5460_v18 = vmax.f32 %v5424_v62, %v5425_v54  ;;  %v5355_v39 = vmul.f32 %v13819_v15, %v5284_v55  ;;  %v5222_v50 = vadd.f32 %v13806_v42, %v5151_v61  ;;  %v15236_v13 = vld [vmem:[#allocation119_spill] sm:$0xff]  ;;  %v15237_v61 = vld [vmem:[#allocation120_spill] sm:$0xff] }
 0x613   :  { %v5427_v28 = vadd.f32 %v13832_v59, %v5356_v7  ;;  %v5287_v21 = vmax.f32 %v5223_v45, 0.0  ;;  %v13878_v29 = vpop.permute.xlu1 %1893  ;;  %v1436_v62 = vmul.f32 %v13553_v43, %v15236_v13  ;;  %v1435_v7 = vmul.f32 %v13553_v43, %v15237_v61  ;;  %v15238_v45 = vld [vmem:[#allocation71_spill] sm:$0xff] }
 0x614   :  { %v5476_v25 = vmax.f32 %v5444_v36, %v5460_v18  ;;  %v5426_v0 = vadd.f32 %v13832_v59, %v5355_v39  ;;  %v5286_v19 = vmax.f32 %v5222_v50, 0.0  ;;  %v15239_v18 = vld [vmem:[#allocation55_spill] sm:$0xff]  ;;  %v1957_v50 = vmul.f32 %v13577_v6, %v1854_v40 }
 0x615   :  { %v5358_v48 = vmul.f32 %v13819_v15, %v5287_v21  ;;  %v13881_v53 = vpop.permute.xlu0 %1888  ;;  %v915_v39 = vmul.f32 %v15239_v18, %v15238_v45  ;;  %v15240_v21 = vld [vmem:[#allocation72_spill] sm:$0xff] }
 0x616   :  { %5530 = vst.msk [vmem:[#allocation3 + $0x64] sm:$0xf] %vm5480_vm1, %v5476_v25  ;;  %v5461_v9 = vmax.f32 %v5426_v0, %v5427_v28  ;;  %v5357_v49 = vmul.f32 %v13819_v15, %v5286_v19  ;;  %v13915_v28 = vld [vmem:[%s14757_s29 + $0x60] sm:$0xff]   ;;  %v914_v25 = vmul.f32 %v15239_v18, %v15240_v21  ;;  %v1956_v0 = vmul.f32 %v13577_v6, %v1849_v23 }
 0x617   :  { %v5429_v11 = vadd.f32 %v13832_v59, %v5358_v48  ;;  %v2375_v36 = vpop.permute.xlu1 %2374  ;;  %v1500_v48 = vadd.f32 %v1436_v62, %v915_v39  ;;  %v1965_v23 = vmul.f32 %v13577_v6, %v13878_v29 }
 0x618   :  { %v5477_v16 = vmax.f32 %v5445_v8, %v5461_v9  ;;  %v5428_v24 = vadd.f32 %v13832_v59, %v5357_v49  ;;  %v15241_v9 = vld [vmem:[#allocation127_spill] sm:$0xff]  ;;  %v2478_v49 = vmul.f32 %v13592_v4, %v2375_v36  ;;  %v1499_v40 = vadd.f32 %v1435_v7, %v914_v25  ;;  %v15244_v36 = vld [vmem:[#allocation80_spill] sm:$0xff] }
 0x619   :  { %v2370_v51 = vpop.permute.xlu0 %2369  ;;  %v2021_v10 = vadd.f32 %v1957_v50, %v1500_v48  ;;  %v922_v41 = vmul.f32 %v15239_v18, %v15244_v36 }
 0x61a   :  { %5531 = vst.msk [vmem:[#allocation3 + $0x68] sm:$0xf] %vm5480_vm1, %v5477_v16  ;;  %v5462_v1 = vmax.f32 %v5428_v24, %v5429_v11  ;;  %v15242_v16 = vld [vmem:[#allocation128_spill] sm:$0xff] }
 0x61b   :  { %v2415_v57 = vpop.permute.xlu1 %2414  ;;  %v1443_v24 = vmul.f32 %v13553_v43, %v15242_v16  ;;  %v2542_v17 = vadd.f32 %v2478_v49, %v2021_v10 }
 0x61c   :  { %v5478_v14 = vmax.f32 %v5446_v60, %v5462_v1  ;;  %v9606_v60 = vld [vmem:[#allocation3 + $0x34] sm:$0xff]   ;;  %v2477_v1 = vmul.f32 %v13592_v4, %v2370_v51 }
 0x61d   :  { %v13888_v26 = vpop.permute.xlu0 %2409  ;;  %v9600_v12 = vld [vmem:[#allocation3 + $0x60] sm:$0xff]   ;;  %v6186_v44 = vpack.c.bf16 %v9607_v47, %v9606_v60  ;;  %v2486_v60 = vmul.f32 %v13592_v4, %v2415_v57 }
 0x61e   :  { %5532 = vst.msk [vmem:[#allocation3 + $0x6c] sm:$0xf] %vm5480_vm1, %v5478_v14  ;;  %v15243_v14 = vld [vmem:[#allocation79_spill] sm:$0xff] }
 0x61f   :  { %v2895_v63 = vpop.permute.xlu1 %2894 }
 0x621   :  { %v2890_v38 = vpop.permute.xlu0 %2889 }
 0x622   :  { %v2997_v51 = vmul.f32 %v13615_v46, %v2890_v38 }
 0x623   :  { %v13891_v27 = vpop.permute.xlu1 %2934 }
 0x625   :  { %v13893_v8 = vpop.permute.xlu0 %2929  ;;  %v9601_v58 = vld [vmem:[#allocation3 + $0x68] sm:$0xff]  }
 0x626   :  { %v6034_v20 = vpack.c.bf16 %v9601_v58, %v9600_v12  ;;  %v923_v12 = vmul.f32 %v15239_v18, %v15243_v14  ;;  %v2998_v58 = vmul.f32 %v13615_v46, %v2895_v63  ;;  %v1507_v63 = vadd.f32 %v1443_v24, %v922_v41 }
 0x627   :  { %v3416_v2 = vpop.permute.xlu1 %3415  ;;  %v3005_v57 = vmul.f32 %v13615_v46, %v13893_v8 }
 0x628   :  { %9149 = vmatmul.mubr.msk.bf16.gmra.mrb[4].mxu0 %vm5660_vm2, %v6034_v20  ;;  %v2020_v20 = vadd.f32 %v1956_v0, %v1499_v40  ;;  %v3519_v29 = vmul.f32 %v13705_v3, %v3416_v2  ;;  %v3062_v62 = vadd.f32 %v2998_v58, %v2542_v17 }
 0x629   :  { %v3411_v34 = vpop.permute.xlu0 %3410  ;;  %9156 = vmatprep.mubr.msk.bf16.mxu0 %vm5660_vm2, %v6185_v22 }
 0x62a   :  { %v3583_v18 = vadd.f32 %v3519_v29, %v3062_v62 }
 0x62b   :  { %v3456_v31 = vpop.permute.xlu1 %3455 }
 0x62d   :  { %v13897_v30 = vpop.permute.xlu0 %3450 }
 0x62f   :  { %v3937_v54 = vpop.permute.xlu1 %3936 }
 0x630   :  { %9157 = vmatmul.mubr.msk.bf16.vlgmr.msra.gmra.mrb[0].mxu0 %vm5660_vm2, %v6186_v44  ;;  %v2541_v44 = vadd.f32 %v2477_v1, %v2020_v20 }
 0x631   :  { %v3932_v55 = vpop.permute.xlu0 %3931  ;;  %9160 = vmatprep.mubr.msk.bf16.mxu0 %vm5660_vm2, %v6187_v52  ;;  %9165 = vmatpush3.bf16.msra.mxu0 %v13756_v5  ;;  %v1444_v5 = vmul.f32 %v13553_v43, %v15241_v9  ;;  %v1964_v43 = vmul.f32 %v13577_v6, %v13881_v53  ;;  %v3518_v52 = vmul.f32 %v13705_v3, %v3411_v34 }
 0x632   :  { %9166 = vmatprep.subr.bf16.mxu0 %v9611_v33  ;;  %v3006_v6 = vmul.f32 %v13615_v46, %v13891_v27  ;;  %v4040_v53 = vmul.f32 %v13761_v35, %v3937_v54  ;;  %v3061_v61 = vadd.f32 %v2997_v51, %v2541_v44  ;;  %v4039_v2 = vmul.f32 %v13761_v35, %v3932_v55 }
 0x633   :  { %v3977_v19 = vpop.permute.xlu1 %3976  ;;  %v1508_v47 = vadd.f32 %v1444_v5, %v923_v12  ;;  %v2028_v38 = vadd.f32 %v1964_v43, %v1507_v63  ;;  %v3526_v27 = vmul.f32 %v13705_v3, %v13897_v30 }
 0x634   :  { %v3582_v50 = vadd.f32 %v3518_v52, %v3061_v61  ;;  %v4104_v25 = vadd.f32 %v4040_v53, %v3583_v18  ;;  %v4048_v46 = vmul.f32 %v13761_v35, %v3977_v19  ;;  %v9615_v61 = vld [vmem:[#allocation3 + $0x28] sm:$0xff]   ;;  %v9620_v18 = vld [vmem:[#allocation3 + $0x58] sm:$0xff]  }
 0x635   :  { %v3972_v11 = vpop.permute.xlu0 %3971  ;;  %9167 = vmatpush3.bf16.msra.mxu0 %v9611_v33  ;;  %v2485_v33 = vmul.f32 %v13592_v4, %v13888_v26  ;;  %v2029_v13 = vadd.f32 %v1965_v23, %v1508_v47  ;;  %v3527_v4 = vmul.f32 %v13705_v3, %v3456_v31 }
 0x636   :  { %9176 = vmatprep.subr.bf16.mxu0 %v13915_v28  ;;  %v4103_v55 = vadd.f32 %v4039_v2, %v3582_v50  ;;  %v4047_v0 = vmul.f32 %v13761_v35, %v3972_v11  ;;  %v9614_v2 = vld [vmem:[#allocation3 + $0x20] sm:$0xff]  }
 0x637   :  { %v4458_v22 = vpop.permute.xlu1 %4457  ;;  %v2550_v45 = vadd.f32 %v2486_v60, %v2029_v13  ;;  %v2549_v39 = vadd.f32 %v2485_v33, %v2028_v38 }
 0x638   :  { %v4561_v26 = vmul.f32 %v13771_v32, %v4458_v22 }
 0x639   :  { %v4453_v37 = vpop.permute.xlu0 %4452  ;;  %v3070_v21 = vadd.f32 %v3006_v6, %v2550_v45  ;;  %v3069_v8 = vadd.f32 %v3005_v57, %v2549_v39  ;;  %v6340_v45 = vpack.c.bf16 %v9615_v61, %v9614_v2 }
 0x63a   :  { %v4560_v54 = vmul.f32 %v13771_v32, %v4453_v37  ;;  %v4625_v9 = vadd.f32 %v4561_v26, %v4104_v25  ;;  %v9619_v26 = vld [vmem:[#allocation3 + $0x50] sm:$0xff]  }
 0x63b   :  { %v4498_v7 = vpop.permute.xlu1 %4497  ;;  %v3591_v31 = vadd.f32 %v3527_v4, %v3070_v21  ;;  %v3590_v16 = vadd.f32 %v3526_v27, %v3069_v8  ;;  %v9617_v4 = vld [vmem:[#allocation3 + $0x38] sm:$0xff]   ;;  %v6342_v39 = vpack.c.bf16 %v9620_v18, %v9619_v26  ;;  %v9626_v27 = vld [vmem:[%s14757_s29 + $0x70] sm:$0xff]   ;;  %v9622_v21 = vld [vmem:[#allocation3 + $0x68] sm:$0xff]  }
 0x63c   :  { %v4569_v5 = vmul.f32 %v13771_v32, %v4498_v7  ;;  %v4624_v3 = vadd.f32 %v4560_v54, %v4103_v55  ;;  %v9625_v54 = vld [vmem:[#allocation3 + $0x38] sm:$0xff]   ;;  %v9624_v25 = vld [vmem:[#allocation3 + $0x30] sm:$0xff]   ;;  %v9630_v55 = vld [vmem:[#allocation3 + $0x68] sm:$0xff]  }
 0x63d   :  { %v4493_v34 = vpop.permute.xlu0 %4492  ;;  %v4112_v1 = vadd.f32 %v4048_v46, %v3591_v31  ;;  %v4111_v14 = vadd.f32 %v4047_v0, %v3590_v16  ;;  %v6495_v8 = vpack.c.bf16 %v9625_v54, %v9624_v25  ;;  %v9627_v0 = vld [vmem:[#allocation3 + $0x48] sm:$0xff]   ;;  %v9636_v16 = vld [vmem:[%s14757_s29 + $0x80] sm:$0xff]  }
 0x63e   :  { %v4568_v30 = vmul.f32 %v13771_v32, %v4493_v34  ;;  %v9621_v34 = vld [vmem:[%s14757_s29 + $0x68] sm:$0xff]  }
 0x63f   :  { %v4979_v48 = vpop.permute.xlu1 %4978  ;;  %v4633_v35 = vadd.f32 %v4569_v5, %v4112_v1 }
 0x640   :  { %v5082_v49 = vmul.f32 %v13788_v56, %v4979_v48  ;;  %v4632_v36 = vadd.f32 %v4568_v30, %v4111_v14  ;;  %v9629_v48 = vld [vmem:[#allocation3 + $0x60] sm:$0xff]  }
 0x641   :  { %v4974_v40 = vpop.permute.xlu0 %4973  ;;  %v6497_v5 = vpack.c.bf16 %v9630_v55, %v9629_v48 }
 0x642   :  { %v5081_v24 = vmul.f32 %v13788_v56, %v4974_v40  ;;  %v5146_v19 = vadd.f32 %v5082_v49, %v4625_v9  ;;  %v9631_v9 = vld [vmem:[%s14757_s29 + $0x78] sm:$0xff]   ;;  %v9632_v49 = vld [vmem:[#allocation3 + $0x78] sm:$0xff]   ;;  %v9633_v40 = vld [vmem:[#allocation3 + $0x80] sm:$0xff]  }
 0x643   :  { %v5019_v10 = vpop.permute.xlu1 %5018  ;;  %v6498_v30 = vpack.c.bf16 %v9633_v40, %v9632_v49 }
 0x644   :  { %v5145_v12 = vadd.f32 %v5081_v24, %v4624_v3  ;;  %v5217_v11 = vadd.f32 %v13806_v42, %v5146_v19  ;;  %v5090_v23 = vmul.f32 %v13788_v56, %v5019_v10  ;;  %v9635_v3 = vld [vmem:[#allocation3 + $0x3c] sm:$0xff]   ;;  %v9634_v24 = vld [vmem:[#allocation3 + $0x34] sm:$0xff]   ;;  %v9639_v10 = vld [vmem:[#allocation3 + $0x64] sm:$0xff]  }
 0x645   :  { %v5014_v58 = vpop.permute.xlu0 %5013  ;;  %v6650_v1 = vpack.c.bf16 %v9635_v3, %v9634_v24  ;;  %v9638_v19 = vld [vmem:[#allocation3 + $0x54] sm:$0xff]  }
 0x646   :  { %v5216_v41 = vadd.f32 %v13806_v42, %v5145_v12  ;;  %v5089_v20 = vmul.f32 %v13788_v56, %v5014_v58  ;;  %v5281_v43 = vmax.f32 %v5217_v11, 0.0  ;;  %v5154_v32 = vadd.f32 %v5090_v23, %v4633_v35  ;;  %v9637_v12 = vld [vmem:[#allocation3 + $0x4c] sm:$0xff]   ;;  %v9641_v11 = vld [vmem:[%s14757_s29 + $0x88] sm:$0xff]  }
 0x647   :  { %v6651_v35 = vpack.c.bf16 %v9638_v19, %v9637_v12  ;;  %v9642_v58 = vld [vmem:[#allocation3 + $0x7c] sm:$0xff]  }
 0x648   :  { %v5280_v51 = vmax.f32 %v5216_v41, 0.0  ;;  %v5153_v22 = vadd.f32 %v5089_v20, %v4632_v36  ;;  %v5225_v47 = vadd.f32 %v13806_v42, %v5154_v32  ;;  %v5352_v17 = vmul.f32 %v13819_v15, %v5281_v43  ;;  %v9643_v36 = vld [vmem:[#allocation3 + $0x84] sm:$0xff]   ;;  %v9644_v43 = vld [vmem:[#allocation3 + $0x38] sm:$0xff]  }
 0x649   :  { %v9645_v41 = vld [vmem:[#allocation3 + $0x40] sm:$0xff]   ;;  %v6653_v20 = vpack.c.bf16 %v9643_v36, %v9642_v58  ;;  %v15245_v32 = vmov 0.0  }
 0x64a   :  { %v5351_v60 = vmul.f32 %v13819_v15, %v5280_v51  ;;  %v5224_v29 = vadd.f32 %v13806_v42, %v5153_v22  ;;  %v5289_v37 = vmax.f32 %v5225_v47, 0.0  ;;  %v5423_v33 = vadd.f32 %v13832_v59, %v5352_v17  ;;  %v9612_v42 = vld [vmem:[#allocation3 + $0x64] sm:$0xff]   ;;  %v9647_v22 = vld [vmem:[#allocation3 + $0x58] sm:$0xff]   ;;  %v9646_v17 = vld [vmem:[#allocation3 + $0x50] sm:$0xff]   ;;  %7038 = vst.msk [vmem:[#allocation4 + $0x14] sm:$0xf] %vm7032_vm3, %v15245_v32  ;;  %9220 = vmatprep.mubr.msk.bf16.mxu1 %vm10102_vm4, %v15245_v32 }
 0x64b   :  { %v6805_v51 = vpack.c.bf16 %v9645_v41, %v9644_v43  ;;  %7033 = vst.msk [vmem:[#allocation4] sm:$0xf] %vm7032_vm3, %v15245_v32  ;;  %7034 = vst.msk [vmem:[#allocation4 + $0x4] sm:$0xf] %vm7032_vm3, %v15245_v32 }
 0x64c   :  { %v5288_v63 = vmax.f32 %v5224_v29, 0.0  ;;  %v5360_v44 = vmul.f32 %v13819_v15, %v5289_v37  ;;  %v5422_v56 = vadd.f32 %v13832_v59, %v5351_v60  ;;  %v9648_v60 = vld [vmem:[#allocation3 + $0x68] sm:$0xff]   ;;  %v6806_v29 = vpack.c.bf16 %v9647_v22, %v9646_v17  ;;  %7035 = vst.msk [vmem:[#allocation4 + $0x8] sm:$0xf] %vm7032_vm3, %v15245_v32  ;;  %7036 = vst.msk [vmem:[#allocation4 + $0xc] sm:$0xf] %vm7032_vm3, %v15245_v32 }
 0x64d   :  { %7037 = vst.msk [vmem:[#allocation4 + $0x10] sm:$0xf] %vm7032_vm3, %v15245_v32  ;;  %7039 = vst.msk [vmem:[#allocation4 + $0x18] sm:$0xf] %vm7032_vm3, %v15245_v32 }
 0x64e   :  { %v5359_v52 = vmul.f32 %v13819_v15, %v5288_v63  ;;  %v5431_v13 = vadd.f32 %v13832_v59, %v5360_v44  ;;  %v5447_v6 = vmax.f32 %v5422_v56, %v5423_v33  ;;  %v9618_v15 = vld [vmem:[#allocation3 + $0x40] sm:$0xff]   ;;  %v9651_v44 = vld [vmem:[#allocation3 + $0x88] sm:$0xff]   ;;  %7040 = vst.msk [vmem:[#allocation4 + $0x1c] sm:$0xf] %vm7032_vm3, %v15245_v32  ;;  %7041 = vst.msk [vmem:[#allocation4 + $0x20] sm:$0xf] %vm7032_vm3, %v15245_v32 }
 0x64f   :  { %v9650_v63 = vld [vmem:[#allocation3 + $0x80] sm:$0xff]   ;;  %7042 = vst.msk [vmem:[#allocation4 + $0x24] sm:$0xf] %vm7032_vm3, %v15245_v32  ;;  %7043 = vst.msk [vmem:[#allocation4 + $0x28] sm:$0xf] %vm7032_vm3, %v15245_v32  ;;  %v9652_v56 = vld [vmem:[%s15246_s5 + $0x20] sm:$0xff]  }
 0x650   :  { %v5430_v62 = vadd.f32 %v13832_v59, %v5359_v52  ;;  %v6341_v59 = vpack.c.bf16 %v9618_v15, %v9617_v4  ;;  %v6808_v33 = vpack.c.bf16 %v9651_v44, %v9650_v63  ;;  %7044 = vst.msk [vmem:[#allocation4 + $0x2c] sm:$0xf] %vm7032_vm3, %v15245_v32  ;;  %7045 = vst.msk [vmem:[#allocation4 + $0x30] sm:$0xf] %vm7032_vm3, %v15245_v32  ;;  %9213 = vmatpush3.bf16.msra.mxu1 %v9652_v56  ;;  %v9653_v52 = vld [vmem:[%s15246_s5 + $0x28] sm:$0xff]  }
 0x651   :  { %7046 = vst.msk [vmem:[#allocation4 + $0x34] sm:$0xf] %vm7032_vm3, %v15245_v32  ;;  %7047 = vst.msk [vmem:[#allocation4 + $0x38] sm:$0xf] %vm7032_vm3, %v15245_v32  ;;  %9214 = vmatprep.subr.bf16.mxu1 %v15245_v32 }
 0x652   :  { %v5463_v53 = vmax.f32 %v5430_v62, %v5431_v13  ;;  %7048 = vst.msk [vmem:[#allocation4 + $0x3c] sm:$0xf] %vm7032_vm3, %v15245_v32  ;;  %v9654_v13 = vld [vmem:[%s15246_s5 + $0x30] sm:$0xff]   ;;  %v9655_v62 = vld [vmem:[%s15246_s5 + $0x38] sm:$0xff]  }
 0x654   :  { %v5479_v38 = vmax.f32 %v5447_v6, %v5463_v53  ;;  %9215 = vmatpush3.bf16.msra.mxu1 %v9653_v52  ;;  %v14060_v6 = vld [vmem:[#allocation8] ss:$0 sm:$0xff] }
 0x655   :  { %9216 = vmatprep.subr.bf16.mxu1 %v15245_v32 }
 0x656   :  { %5533 = vst.msk [vmem:[#allocation3 + $0x70] sm:$0xf] %vm5480_vm1, %v5479_v38 }
 0x658   :  { %9217 = vmatpush3.bf16.msra.mxu1 %v9654_v13 }
 0x659   :  { %9218 = vmatprep.subr.bf16.mxu1 %v15245_v32 }
 0x65c   :  { %9219 = vmatpush3.bf16.msra.mxu1 %v9655_v62 }
 0x65d   :  { %v9613_v57 = vld [vmem:[#allocation3 + $0x6c] sm:$0xff]   ;;  %9224 = vmatprep.subr.bf16.mxu1 %v15245_v32 }
 0x65e   :  { %v6188_v7 = vpack.c.bf16 %v9613_v57, %v9612_v42  ;;  %v9623_v50 = vld [vmem:[#allocation3 + $0x70] sm:$0xff]   ;;  %v14063_v57 = vld [vmem:[#allocation10] ss:$0 sm:$0xff] }
 0x65f   :  { %v6343_v46 = vpack.c.bf16 %v9623_v50, %v9622_v21  ;;  %v9640_v14 = vld [vmem:[#allocation3 + $0x6c] sm:$0xff]  }
 0x660   :  { %9161 = vmatmul.mubr.msk.bf16.gmra.mrb[4].mxu0 %vm5660_vm2, %v6188_v7  ;;  %v6652_v23 = vpack.c.bf16 %v9640_v14, %v9639_v10  ;;  %v9649_v47 = vld [vmem:[#allocation3 + $0x70] sm:$0xff]  }
 0x661   :  { %9168 = vmatprep.mubr.msk.bf16.mxu0 %vm5660_vm2, %v6340_v45  ;;  %v6807_v37 = vpack.c.bf16 %v9649_v47, %v9648_v60 }
 0x668   :  { %9169 = vmatmul.mubr.msk.bf16.vlgmr.msra.gmra.mrb[0].mxu0 %vm5660_vm2, %v6341_v59 }
 0x669   :  { %9177 = vmatpush3.bf16.msra.mxu0 %v13915_v28  ;;  %9172 = vmatprep.mubr.msk.bf16.mxu0 %vm5660_vm2, %v6342_v39  ;;  %v9628_v28 = vld [vmem:[#allocation3 + $0x50] sm:$0xff]  }
 0x66a   :  { %9178 = vmatprep.subr.bf16.mxu0 %v9621_v34  ;;  %v6496_v31 = vpack.c.bf16 %v9628_v28, %v9627_v0 }
 0x66d   :  { %9179 = vmatpush3.bf16.msra.mxu0 %v9621_v34  ;;  %v14068_v34 = vld [vmem:[#allocation11] ss:$0 sm:$0xff] }
 0x66e   :  { %9188 = vmatprep.subr.bf16.mxu0 %v9626_v27 }
 0x670   :  { %9173 = vmatmul.mubr.msk.bf16.gmra.mrb[4].mxu0 %vm5660_vm2, %v6343_v46 }
 0x671   :  { %9180 = vmatprep.mubr.msk.bf16.mxu0 %vm5660_vm2, %v6495_v8 }
 0x678   :  { %9181 = vmatmul.mubr.msk.bf16.vlgmr.msra.gmra.mrb[0].mxu0 %vm5660_vm2, %v6496_v31 }
 0x679   :  { %9189 = vmatpush3.bf16.msra.mxu0 %v9626_v27  ;;  %9184 = vmatprep.mubr.msk.bf16.mxu0 %vm5660_vm2, %v6497_v5 }
 0x67a   :  { %9190 = vmatprep.subr.bf16.mxu0 %v9631_v9 }
 0x67d   :  { %9191 = vmatpush3.bf16.msra.mxu0 %v9631_v9 }
 0x67e   :  { %9200 = vmatprep.subr.bf16.mxu0 %v9636_v16 }
 0x680   :  { %9185 = vmatmul.mubr.msk.bf16.gmra.mrb[4].mxu0 %vm5660_vm2, %v6498_v30 }
 0x681   :  { %9192 = vmatprep.mubr.msk.bf16.mxu0 %vm5660_vm2, %v6650_v1 }
 0x688   :  { %9193 = vmatmul.mubr.msk.bf16.vlgmr.msra.gmra.mrb[0].mxu0 %vm5660_vm2, %v6651_v35 }
 0x689   :  { %9201 = vmatpush3.bf16.msra.mxu0 %v9636_v16  ;;  %9196 = vmatprep.mubr.msk.bf16.mxu0 %vm5660_vm2, %v6652_v23 }
 0x68a   :  { %9202 = vmatprep.subr.bf16.mxu0 %v9641_v11 }
 0x68d   :  { %9203 = vmatpush3.bf16.msra.mxu0 %v9641_v11 }
 0x68e   :  { %9320 = vmatprep.subr.bf16.mxu0 %v15245_v32 }
 0x690   :  { %9197 = vmatmul.mubr.msk.bf16.gmra.mrb[4].mxu0 %vm5660_vm2, %v6653_v20 }
 0x691   :  { %9204 = vmatprep.mubr.msk.bf16.mxu0 %vm5660_vm2, %v6805_v51 }
 0x698   :  { %9205 = vmatmul.mubr.msk.bf16.vlgmr.msra.gmra.mrb[0].mxu0 %vm5660_vm2, %v6806_v29 }
 0x699   :  { %9208 = vmatprep.mubr.msk.bf16.mxu0 %vm5660_vm2, %v6807_v37 }
 0x6a0   :  { %9209 = vmatmul.mubr.msk.bf16.gmra.mrb[4].mxu0 %vm5660_vm2, %v6808_v33 }
 0x6a1   :  { %9336 = vmatprep.mubr.msk.bf16.mxu0 %vm10102_vm4, %v15245_v32 }
 0x76b   :  { %v9206_v53 = vpop.f32.mrb[0].mxu0 }
 0x76c   :  { %v6921_v38 = vcombine.high %v9206_v53, %v9206_v53  ;;  %v6946_v42 = vadd.f32 %v9206_v53, %v14060_v6  ;;  %v6872_v61 = vpop.f32.mrb[1].mxu0 }
 0x76d   :  { %v6919_v2 = vcombine.high %v6872_v61, %v6872_v61  ;;  %v6942_v7 = vadd.f32 %v14060_v6, %v6872_v61  ;;  %v9207_v45 = vpop.f32.mrb[2].mxu0 }
 0x76e   :  { %v6947_v15 = vadd.f32 %v14060_v6, %v6921_v38  ;;  %v6962_v18 = vmax.f32 %v6946_v42, 0.0  ;;  %v6922_v4 = vcombine.high %v9207_v45, %v9207_v45  ;;  %v6948_v26 = vadd.f32 %v9207_v45, %v14060_v6  ;;  %v6875_v59 = vpop.f32.mrb[3].mxu0 }
 0x76f   :  { %v6943_v39 = vadd.f32 %v14060_v6, %v6919_v2  ;;  %v6958_v50 = vmax.f32 %v6942_v7, 0.0  ;;  %v6920_v27 = vcombine.high %v6875_v59, %v6875_v59  ;;  %v6944_v54 = vadd.f32 %v14060_v6, %v6875_v59 }
 0x770   :  { %v6963_v21 = vmax.f32 %v6947_v15, 0.0  ;;  %v6985_v25 = vmul.f32 %v14063_v57, %v6962_v18  ;;  %v6949_v46 = vadd.f32 %v14060_v6, %v6922_v4  ;;  %v6964_v8 = vmax.f32 %v6948_v26, 0.0 }
 0x771   :  { %v6959_v28 = vmax.f32 %v6943_v39, 0.0  ;;  %v6981_v55 = vmul.f32 %v14063_v57, %v6958_v50  ;;  %v6945_v0 = vadd.f32 %v14060_v6, %v6920_v27  ;;  %v6960_v48 = vmax.f32 %v6944_v54, 0.0 }
 0x772   :  { %v6986_v31 = vmul.f32 %v14063_v57, %v6963_v21  ;;  %v7008_v9 = vadd.f32 %v14068_v34, %v6985_v25  ;;  %v6965_v5 = vmax.f32 %v6949_v46, 0.0  ;;  %v6987_v49 = vmul.f32 %v14063_v57, %v6964_v8 }
 0x773   :  { %v6982_v40 = vmul.f32 %v14063_v57, %v6959_v28  ;;  %v7004_v16 = vadd.f32 %v14068_v34, %v6981_v55  ;;  %v6961_v3 = vmax.f32 %v6945_v0, 0.0  ;;  %v6983_v30 = vmul.f32 %v14063_v57, %v6960_v48  ;;  %v9210_v24 = vpop.f32.mrb[4].mxu0 }
 0x774   :  { %v7009_v1 = vadd.f32 %v14068_v34, %v6986_v31  ;;  %v6988_v19 = vmul.f32 %v14063_v57, %v6965_v5  ;;  %v7010_v14 = vadd.f32 %v14068_v34, %v6987_v49  ;;  %v6925_v12 = vcombine.high %v9210_v24, %v9210_v24  ;;  %v6888_v10 = vpop.f32.mrb[5].mxu0 }
 0x775   :  { %v7005_v35 = vadd.f32 %v14068_v34, %v6982_v40  ;;  %v6984_v11 = vmul.f32 %v14063_v57, %v6961_v3  ;;  %v7006_v23 = vadd.f32 %v14068_v34, %v6983_v30  ;;  %v6954_v58 = vadd.f32 %v9210_v24, %v14060_v6  ;;  %v9211_v36 = vpop.f32.mrb[6].mxu0  ;;  %v9658_v24 = vld [vmem:[%s15246_s5] sm:$0xff]  }
 0x776   :  { %v7024_v41 = vmax.f32 %v7008_v9, %v7009_v1  ;;  %v7011_v20 = vadd.f32 %v14068_v34, %v6988_v19  ;;  %v6955_v43 = vadd.f32 %v14060_v6, %v6925_v12  ;;  %v6923_v51 = vcombine.high %v6888_v10, %v6888_v10  ;;  %v6891_v22 = vpop.f32.mrb[7].mxu0  ;;  %v9709_v12 = vld [vmem:[%s14475_s13 + $0x48] sm:$0xff]  }
 0x777   :  { %v7020_v47 = vmax.f32 %v7004_v16, %v7005_v35  ;;  %v7007_v17 = vadd.f32 %v14068_v34, %v6984_v11  ;;  %v6970_v60 = vmax.f32 %v6954_v58, 0.0  ;;  %v6950_v29 = vadd.f32 %v14060_v6, %v6888_v10  ;;  %v9661_v10 = vld [vmem:[%s15246_s5 + $0x18] sm:$0xff]   ;;  %v9662_v35 = vld [vmem:[#allocation4] sm:$0xff]  }
 0x778   :  { %v7025_v37 = vmax.f32 %v7010_v14, %v7011_v20  ;;  %v6971_v63 = vmax.f32 %v6955_v43, 0.0  ;;  %v6951_v44 = vadd.f32 %v14060_v6, %v6923_v51  ;;  %v6926_v33 = vcombine.high %v9211_v36, %v9211_v36  ;;  %v9660_v14 = vld [vmem:[%s15246_s5 + $0x10] sm:$0xff]   ;;  %v9664_v58 = vld [vmem:[%s15246_s5 + $0x40] sm:$0xff]   ;;  %v9667_v43 = vld [vmem:[%s15246_s5 + $0x58] sm:$0xff]  }
 0x779   :  { %v7028_v56 = vmax.f32 %v7020_v47, %v7024_v41  ;;  %v7021_v52 = vmax.f32 %v7006_v23, %v7007_v17  ;;  %v6993_v13 = vmul.f32 %v14063_v57, %v6970_v60  ;;  %v6966_v62 = vmax.f32 %v6950_v29, 0.0  ;;  %v9711_v23 = vld [vmem:[%s14475_s13 + $0x50] sm:$0xff]   ;;  %v9665_v41 = vld [vmem:[%s15246_s5 + $0x48] sm:$0xff]   ;;  %v9670_v47 = vld [vmem:[%s15246_s5 + $0x60] sm:$0xff]  }
 0x77a   :  { %v6994_v53 = vmul.f32 %v14063_v57, %v6971_v63  ;;  %v6967_v38 = vmax.f32 %v6951_v44, 0.0  ;;  %v6956_v42 = vadd.f32 %v9211_v36, %v14060_v6  ;;  %v6957_v61 = vadd.f32 %v14060_v6, %v6926_v33  ;;  %v9666_v20 = vld [vmem:[%s15246_s5 + $0x50] sm:$0xff]   ;;  %v9668_v51 = vld [vmem:[#allocation4 + $0x8] sm:$0xff]   ;;  %v9676_v33 = vld [vmem:[%s15246_s5 + $0x80] sm:$0xff]  }
 0x77b   :  { %7050 = vst.msk [vmem:[#allocation4 + $0x14] sm:$0xf] %vm7032_vm3, %v7028_v56  ;;  %v7029_v2 = vmax.f32 %v7021_v52, %v7025_v37  ;;  %v7016_v7 = vadd.f32 %v14068_v34, %v6993_v13  ;;  %v6989_v45 = vmul.f32 %v14063_v57, %v6966_v62  ;;  %v6924_v15 = vcombine.high %v6891_v22, %v6891_v22  ;;  %v9671_v60 = vld [vmem:[%s15246_s5 + $0x68] sm:$0xff]   ;;  %v9672_v29 = vld [vmem:[%s15246_s5 + $0x70] sm:$0xff]   ;;  %v9673_v37 = vld [vmem:[%s15246_s5 + $0x78] sm:$0xff]  }
 0x77c   :  { %v7017_v18 = vadd.f32 %v14068_v34, %v6994_v53  ;;  %v6990_v4 = vmul.f32 %v14063_v57, %v6967_v38  ;;  %v6972_v26 = vmax.f32 %v6956_v42, 0.0  ;;  %v6973_v59 = vmax.f32 %v6957_v61, 0.0  ;;  %v9677_v52 = vld [vmem:[%s15246_s5 + $0x88] sm:$0xff]   ;;  %v9678_v13 = vld [vmem:[%s15246_s5 + $0x90] sm:$0xff]   ;;  %v9679_v62 = vld [vmem:[%s15246_s5 + $0x98] sm:$0xff]  }
 0x77d   :  { %7051 = vst.msk [vmem:[#allocation4 + $0x18] sm:$0xf] %vm7032_vm3, %v7029_v2  ;;  %v7012_v39 = vadd.f32 %v14068_v34, %v6989_v45  ;;  %v6952_v50 = vadd.f32 %v14060_v6, %v6891_v22  ;;  %v6953_v27 = vadd.f32 %v14060_v6, %v6924_v15  ;;  %v9656_v6 = vld [vmem:[#allocation4 + $0x4] sm:$0xff]   ;;  %v9685_v45 = vld [vmem:[%s15246_s5 + $0xb8] sm:$0xff]  }
 0x77e   :  { %v7026_v54 = vmax.f32 %v7016_v7, %v7017_v18  ;;  %v7013_v21 = vadd.f32 %v14068_v34, %v6990_v4  ;;  %v6995_v25 = vmul.f32 %v14063_v57, %v6972_v26  ;;  %v6996_v46 = vmul.f32 %v14063_v57, %v6973_v59  ;;  %v9682_v42 = vld [vmem:[%s15246_s5 + $0xa0] sm:$0xff]   ;;  %v9683_v2 = vld [vmem:[%s15246_s5 + $0xa8] sm:$0xff]   ;;  %v9684_v7 = vld [vmem:[%s15246_s5 + $0xb0] sm:$0xff]  }
 0x77f   :  { %v6968_v8 = vmax.f32 %v6952_v50, 0.0  ;;  %v6969_v28 = vmax.f32 %v6953_v27, 0.0  ;;  %v9688_v4 = vld [vmem:[%s15246_s5 + $0xc0] sm:$0xff]   ;;  %v9689_v59 = vld [vmem:[%s15246_s5 + $0xc8] sm:$0xff]   ;;  %v9691_v50 = vld [vmem:[%s15246_s5 + $0xd8] sm:$0xff]  }
 0x780   :  { %v7022_v55 = vmax.f32 %v7012_v39, %v7013_v21  ;;  %v7019_v0 = vadd.f32 %v14068_v34, %v6996_v46  ;;  %v7018_v48 = vadd.f32 %v14068_v34, %v6995_v25  ;;  %v9690_v39 = vld [vmem:[%s15246_s5 + $0xd0] sm:$0xff]   ;;  %v9694_v21 = vld [vmem:[%s15246_s5 + $0xe0] sm:$0xff]   ;;  %v9695_v46 = vld [vmem:[%s15246_s5 + $0xe8] sm:$0xff]  }
 0x781   :  { %v6991_v31 = vmul.f32 %v14063_v57, %v6968_v8  ;;  %v6992_v9 = vmul.f32 %v14063_v57, %v6969_v28  ;;  %v9659_v57 = vld [vmem:[%s15246_s5 + $0x8] sm:$0xff]   ;;  %v9696_v8 = vld [vmem:[%s15246_s5 + $0xf0] sm:$0xff]   ;;  %v9697_v28 = vld [vmem:[%s15246_s5 + $0xf8] sm:$0xff]  }
 0x782   :  { %v7030_v5 = vmax.f32 %v7022_v55, %v7026_v54  ;;  %v7027_v49 = vmax.f32 %v7018_v48, %v7019_v0  ;;  %v9663_v11 = vld [vmem:[#allocation4 + $0x10] sm:$0xff]   ;;  %v9700_v48 = vld [vmem:[%s15246_s5 + $0x100] sm:$0xff]  }
 0x783   :  { %v7014_v40 = vadd.f32 %v14068_v34, %v6991_v31  ;;  %v7015_v16 = vadd.f32 %v14068_v34, %v6992_v9  ;;  %v9707_v34 = vld [vmem:[%s14475_s13 + $0x40] sm:$0xff]   ;;  %v7066_v36 = vpack.c.bf16 %v9663_v11, %v9662_v35  ;;  %v9674_v44 = vld [vmem:[#allocation4 + $0x10] sm:$0xff]   ;;  %v9701_v9 = vld [vmem:[%s15246_s5 + $0x108] sm:$0xff]  }
 0x784   :  { %7052 = vst.msk [vmem:[#allocation4 + $0x24] sm:$0xf] %vm7032_vm3, %v7030_v5  ;;  %v9657_v3 = vld [vmem:[#allocation4 + $0x14] sm:$0xff]   ;;  %9321 = vmatpush3.bf16.msra.mxu0 %v9707_v34  ;;  %v9715_v34 = vld [vmem:[%s14475_s13 + $0x60] sm:$0xff]  }
 0x785   :  { %v7023_v30 = vmax.f32 %v7014_v40, %v7015_v16  ;;  %v7088_v1 = vpack.c.bf16 %v9657_v3, %v9656_v6  ;;  %9322 = vmatprep.subr.bf16.mxu0 %v15245_v32  ;;  %v9669_v22 = vld [vmem:[#allocation4 + $0x18] sm:$0xff]   ;;  %v9693_v54 = vld [vmem:[#allocation4 + $0x30] sm:$0xff]   ;;  %v9706_v16 = vld [vmem:[%s14475_s13] sm:$0xff]  }
 0x786   :  { %v7248_v17 = vpack.c.bf16 %v9669_v22, %v9668_v51  ;;  %v9680_v38 = vld [vmem:[#allocation4 + $0x14] sm:$0xff]  }
 0x787   :  { %v7031_v19 = vmax.f32 %v7023_v30, %v7027_v49  ;;  %9221 = vmatmul.mubr.msk.bf16.vlgmr.msra.gmra.mrb[0].mxu1 %vm7122_vm5, %v7088_v1  ;;  %v9686_v18 = vld [vmem:[#allocation4 + $0x18] sm:$0xff]   ;;  %v9702_v5 = vld [vmem:[%s15246_s5 + $0x110] sm:$0xff]   ;;  %v9708_v30 = vld [vmem:[%s14475_s13 + $0x8] sm:$0xff]  }
 0x788   :  { %9225 = vmatpush3.bf16.msra.mxu1 %v9658_v24  ;;  %9232 = vmatprep.mubr.msk.bf16.mxu1 %vm10102_vm4, %v15245_v32  ;;  %v9699_v0 = vld [vmem:[#allocation4 + $0x34] sm:$0xff]  }
 0x789   :  { %7053 = vst.msk [vmem:[#allocation4 + $0x28] sm:$0xf] %vm7032_vm3, %v7031_v19  ;;  %9226 = vmatprep.subr.bf16.mxu1 %v15245_v32  ;;  %9323 = vmatpush3.bf16.msra.mxu0 %v9709_v12  ;;  %v9703_v6 = vld [vmem:[%s15246_s5 + $0x118] sm:$0xff]   ;;  %v9710_v24 = vld [vmem:[%s14475_s13 + $0x10] sm:$0xff]   ;;  %v9717_v12 = vld [vmem:[%s14475_s13 + $0x68] sm:$0xff]  }
 0x78a   :  { %9324 = vmatprep.subr.bf16.mxu0 %v15245_v32  ;;  %v9705_v40 = vld [vmem:[#allocation4 + $0x38] sm:$0xff]   ;;  %v9719_v35 = vld [vmem:[%s14475_s13 + $0x70] sm:$0xff]  }
 0x78b   :  { %v9675_v63 = vld [vmem:[#allocation4 + $0x20] sm:$0xff]   ;;  %v9712_v1 = vld [vmem:[%s14475_s13 + $0x18] sm:$0xff]  }
 0x78c   :  { %9227 = vmatpush3.bf16.msra.mxu1 %v9659_v57  ;;  %v7341_v56 = vpack.c.bf16 %v9675_v63, %v9674_v44  ;;  %v9692_v27 = vld [vmem:[#allocation4 + $0x20] sm:$0xff]   ;;  %v9713_v19 = vld [vmem:[%s14475_s13 + $0x58] sm:$0xff]  }
 0x78d   :  { %9228 = vmatprep.subr.bf16.mxu1 %v15245_v32  ;;  %9325 = vmatpush3.bf16.msra.mxu0 %v9711_v23  ;;  %v7619_v25 = vpack.c.bf16 %v9693_v54, %v9692_v27  ;;  %v9714_v57 = vld [vmem:[%s14475_s13 + $0x20] sm:$0xff]   ;;  %v9720_v11 = vld [vmem:[%s14475_s13 + $0x38] sm:$0xff]  }
 0x78e   :  { %9326 = vmatprep.subr.bf16.mxu0 %v15245_v32  ;;  %v9721_v23 = vld [vmem:[%s14475_s13 + $0x78] sm:$0xff]  }
 0x78f   :  { %v9725_v27 = vld [vmem:[#allocation19 + $0x18] sm:$0xff]   ;;  %v9726_v54 = vld [vmem:[#allocation19 + $0x20] sm:$0xff]  }
 0x790   :  { %9229 = vmatpush3.bf16.msra.mxu1 %v9660_v14  ;;  %v9681_v53 = vld [vmem:[#allocation4 + $0x24] sm:$0xff]  }
 0x791   :  { %9230 = vmatprep.subr.bf16.mxu1 %v15245_v32  ;;  %v7433_v61 = vpack.c.bf16 %v9681_v53, %v9680_v38  ;;  %v9687_v15 = vld [vmem:[#allocation4 + $0x28] sm:$0xff]   ;;  %9327 = vmatpush3.bf16.msra.mxu0 %v9713_v19  ;;  %v8893_v53 = vld [vmem:[#allocation16] ss:$0 sm:$0xff] }
 0x792   :  { %v7526_v26 = vpack.c.bf16 %v9687_v15, %v9686_v18  ;;  %v9698_v55 = vld [vmem:[#allocation4 + $0x24] sm:$0xff]   ;;  %9328 = vmatprep.subr.bf16.mxu0 %v15245_v32 }
 0x793   :  { %v7712_v31 = vpack.c.bf16 %v9699_v0, %v9698_v55  ;;  %v9704_v49 = vld [vmem:[#allocation4 + $0x28] sm:$0xff]   ;;  %v9740_v55 = vld [vmem:[%s14479_s17 + $0x10] sm:$0xff]   ;;  %v9741_v0 = vld [vmem:[%s14479_s17 + $0x18] sm:$0xff]  }
 0x794   :  { %9231 = vmatpush3.bf16.msra.mxu1 %v9661_v10  ;;  %v7805_v3 = vpack.c.bf16 %v9705_v40, %v9704_v49  ;;  %v9716_v14 = vld [vmem:[%s14475_s13 + $0x28] sm:$0xff]   ;;  %v9718_v10 = vld [vmem:[%s14475_s13 + $0x30] sm:$0xff]  }
 0x795   :  { %9236 = vmatprep.subr.bf16.mxu1 %v15245_v32  ;;  %9329 = vmatpush3.bf16.msra.mxu0 %v9715_v34  ;;  %v8910_v49 = vld [vmem:[#allocation17] ss:$0 sm:$0xff]  ;;  %v9730_v34 = vld [vmem:[%s14481_s19] sm:$0xff]  }
 0x796   :  { %9330 = vmatprep.subr.bf16.mxu0 %v15245_v32 }
 0x797   :  { %9233 = vmatmul.mubr.msk.bf16.vlgmr.msra.gmra.mrb[0].mxu1 %vm7122_vm5, %v7066_v36 }
 0x798   :  { %9237 = vmatpush3.bf16.msra.mxu1 %v9664_v58  ;;  %9244 = vmatprep.mubr.msk.bf16.mxu1 %vm10102_vm4, %v15245_v32  ;;  %v8891_v58 = vld [vmem:[#allocation13] ss:$0 sm:$0xff] }
 0x799   :  { %9238 = vmatprep.subr.bf16.mxu1 %v15245_v32  ;;  %9331 = vmatpush3.bf16.msra.mxu0 %v9717_v12  ;;  %v9731_v12 = vld [vmem:[%s14481_s19 + $0x8] sm:$0xff]  }
 0x79a   :  { %9332 = vmatprep.subr.bf16.mxu0 %v15245_v32 }
 0x79c   :  { %9239 = vmatpush3.bf16.msra.mxu1 %v9665_v41 }
 0x79d   :  { %9240 = vmatprep.subr.bf16.mxu1 %v15245_v32  ;;  %9333 = vmatpush3.bf16.msra.mxu0 %v9719_v35  ;;  %v9733_v35 = vld [vmem:[%s14481_s19 + $0x18] sm:$0xff]  }
 0x79e   :  { %9334 = vmatprep.subr.bf16.mxu0 %v15245_v32 }
 0x7a0   :  { %9241 = vmatpush3.bf16.msra.mxu1 %v9666_v20 }
 0x7a1   :  { %9242 = vmatprep.subr.bf16.mxu1 %v15245_v32  ;;  %9335 = vmatpush3.bf16.msra.mxu0 %v9721_v23  ;;  %v9735_v23 = vld [vmem:[%s14481_s19 + $0x28] sm:$0xff]  }
 0x7a2   :  { %9360 = vmatprep.subr.bf16.mxu0 %v15245_v32 }
 0x7a4   :  { %9243 = vmatpush3.bf16.msra.mxu1 %v9667_v43 }
 0x7a5   :  { %9248 = vmatprep.subr.bf16.mxu1 %v15245_v32 }
 0x7a7   :  { %9245 = vmatmul.mubr.msk.bf16.vlgmr.msra.gmra.mrb[0].mxu1 %vm7122_vm5, %v7248_v17 }
 0x7a8   :  { %9249 = vmatpush3.bf16.msra.mxu1 %v9670_v47  ;;  %9256 = vmatprep.mubr.msk.bf16.mxu1 %vm10102_vm4, %v15245_v32 }
 0x7a9   :  { %9250 = vmatprep.subr.bf16.mxu1 %v15245_v32 }
 0x7ac   :  { %9251 = vmatpush3.bf16.msra.mxu1 %v9671_v60 }
 0x7ad   :  { %9252 = vmatprep.subr.bf16.mxu1 %v15245_v32 }
 0x7b0   :  { %9253 = vmatpush3.bf16.msra.mxu1 %v9672_v29 }
 0x7b1   :  { %9254 = vmatprep.subr.bf16.mxu1 %v15245_v32 }
 0x7b4   :  { %9255 = vmatpush3.bf16.msra.mxu1 %v9673_v37  ;;  %v8892_v37 = vld [vmem:[#allocation14] ss:$0 sm:$0xff] }
 0x7b5   :  { %9260 = vmatprep.subr.bf16.mxu1 %v15245_v32 }
 0x7b7   :  { %9257 = vmatmul.mubr.msk.bf16.vlgmr.msra.gmra.mrb[0].mxu1 %vm7122_vm5, %v7341_v56 }
 0x7b8   :  { %9261 = vmatpush3.bf16.msra.mxu1 %v9676_v33  ;;  %9268 = vmatprep.mubr.msk.bf16.mxu1 %vm10102_vm4, %v15245_v32 }
 0x7b9   :  { %9262 = vmatprep.subr.bf16.mxu1 %v15245_v32 }
 0x7bc   :  { %9263 = vmatpush3.bf16.msra.mxu1 %v9677_v52 }
 0x7bd   :  { %9264 = vmatprep.subr.bf16.mxu1 %v15245_v32 }
 0x7c0   :  { %9265 = vmatpush3.bf16.msra.mxu1 %v9678_v13 }
 0x7c1   :  { %9266 = vmatprep.subr.bf16.mxu1 %v15245_v32 }
 0x7c4   :  { %9267 = vmatpush3.bf16.msra.mxu1 %v9679_v62 }
 0x7c5   :  { %9272 = vmatprep.subr.bf16.mxu1 %v15245_v32 }
 0x7c7   :  { %9269 = vmatmul.mubr.msk.bf16.vlgmr.msra.gmra.mrb[0].mxu1 %vm7122_vm5, %v7433_v61 }
 0x7c8   :  { %9273 = vmatpush3.bf16.msra.mxu1 %v9682_v42  ;;  %9280 = vmatprep.mubr.msk.bf16.mxu1 %vm10102_vm4, %v15245_v32 }
 0x7c9   :  { %9274 = vmatprep.subr.bf16.mxu1 %v15245_v32 }
 0x7cc   :  { %9275 = vmatpush3.bf16.msra.mxu1 %v9683_v2 }
 0x7cd   :  { %9276 = vmatprep.subr.bf16.mxu1 %v15245_v32 }
 0x7d0   :  { %9277 = vmatpush3.bf16.msra.mxu1 %v9684_v7 }
 0x7d1   :  { %9278 = vmatprep.subr.bf16.mxu1 %v15245_v32 }
 0x7d4   :  { %9279 = vmatpush3.bf16.msra.mxu1 %v9685_v45 }
 0x7d5   :  { %9284 = vmatprep.subr.bf16.mxu1 %v15245_v32 }
 0x7d7   :  { %9281 = vmatmul.mubr.msk.bf16.vlgmr.msra.gmra.mrb[0].mxu1 %vm7122_vm5, %v7526_v26  ;;  %v9722_v26 = vld [vmem:[#allocation19] sm:$0xff]  }
 0x7d8   :  { %9285 = vmatpush3.bf16.msra.mxu1 %v9688_v4  ;;  %9292 = vmatprep.mubr.msk.bf16.mxu1 %vm10102_vm4, %v15245_v32 }
 0x7d9   :  { %9286 = vmatprep.subr.bf16.mxu1 %v15245_v32 }
 0x7dc   :  { %9287 = vmatpush3.bf16.msra.mxu1 %v9689_v59 }
 0x7dd   :  { %9288 = vmatprep.subr.bf16.mxu1 %v15245_v32 }
 0x7e0   :  { %9289 = vmatpush3.bf16.msra.mxu1 %v9690_v39  ;;  %v9723_v39 = vld [vmem:[#allocation19 + $0x8] sm:$0xff]  }
 0x7e1   :  { %9290 = vmatprep.subr.bf16.mxu1 %v15245_v32 }
 0x7e4   :  { %9291 = vmatpush3.bf16.msra.mxu1 %v9691_v50  ;;  %v9724_v50 = vld [vmem:[#allocation19 + $0x10] sm:$0xff]  }
 0x7e5   :  { %9296 = vmatprep.subr.bf16.mxu1 %v15245_v32 }
 0x7e7   :  { %9293 = vmatmul.mubr.msk.bf16.vlgmr.msra.gmra.mrb[0].mxu1 %vm7122_vm5, %v7619_v25  ;;  %v9728_v25 = vld [vmem:[#allocation19 + $0x30] sm:$0xff]  }
 0x7e8   :  { %9297 = vmatpush3.bf16.msra.mxu1 %v9694_v21  ;;  %9304 = vmatprep.mubr.msk.bf16.mxu1 %vm10102_vm4, %v15245_v32  ;;  %v9727_v21 = vld [vmem:[#allocation19 + $0x28] sm:$0xff]  }
 0x7e9   :  { %9298 = vmatprep.subr.bf16.mxu1 %v15245_v32 }
 0x7ec   :  { %9299 = vmatpush3.bf16.msra.mxu1 %v9695_v46  ;;  %v9729_v46 = vld [vmem:[#allocation19 + $0x38] sm:$0xff]  }
 0x7ed   :  { %9300 = vmatprep.subr.bf16.mxu1 %v15245_v32 }
 0x7f0   :  { %9301 = vmatpush3.bf16.msra.mxu1 %v9696_v8  ;;  %v9738_v8 = vld [vmem:[%s14479_s17] sm:$0xff]  }
 0x7f1   :  { %9302 = vmatprep.subr.bf16.mxu1 %v15245_v32 }
 0x7f4   :  { %9303 = vmatpush3.bf16.msra.mxu1 %v9697_v28  ;;  %v9739_v28 = vld [vmem:[%s14479_s17 + $0x8] sm:$0xff]  }
 0x7f5   :  { %9308 = vmatprep.subr.bf16.mxu1 %v15245_v32 }
 0x7f7   :  { %9305 = vmatmul.mubr.msk.bf16.vlgmr.msra.gmra.mrb[0].mxu1 %vm7122_vm5, %v7712_v31  ;;  %v9743_v31 = vld [vmem:[%s14479_s17 + $0x28] sm:$0xff]  }
 0x7f8   :  { %9309 = vmatpush3.bf16.msra.mxu1 %v9700_v48  ;;  %9316 = vmatprep.mubr.msk.bf16.mxu1 %vm10102_vm4, %v15245_v32  ;;  %v9742_v48 = vld [vmem:[%s14479_s17 + $0x20] sm:$0xff]  }
 0x7f9   :  { %9310 = vmatprep.subr.bf16.mxu1 %v15245_v32 }
 0x7fc   :  { %9311 = vmatpush3.bf16.msra.mxu1 %v9701_v9 }
 0x7fd   :  { %9312 = vmatprep.subr.bf16.mxu1 %v15245_v32 }
 0x800   :  { %9313 = vmatpush3.bf16.msra.mxu1 %v9702_v5 }
 0x801   :  { %9314 = vmatprep.subr.bf16.mxu1 %v15245_v32 }
 0x804   :  { %9315 = vmatpush3.bf16.msra.mxu1 %v9703_v6 }
 0x805   :  { %9340 = vmatprep.subr.bf16.mxu1 %v15245_v32 }
 0x807   :  { %9317 = vmatmul.mubr.msk.bf16.vlgmr.msra.gmra.mrb[0].mxu1 %vm7122_vm5, %v7805_v3 }
 0x808   :  { %9341 = vmatpush3.bf16.msra.mxu1 %v9706_v16  ;;  %9356 = vmatprep.mubr.msk.bf16.mxu1 %vm10102_vm4, %v15245_v32 }
 0x809   :  { %9342 = vmatprep.subr.bf16.mxu1 %v15245_v32 }
 0x80c   :  { %9343 = vmatpush3.bf16.msra.mxu1 %v9708_v30 }
 0x80d   :  { %9344 = vmatprep.subr.bf16.mxu1 %v15245_v32 }
 0x810   :  { %9345 = vmatpush3.bf16.msra.mxu1 %v9710_v24 }
 0x811   :  { %9346 = vmatprep.subr.bf16.mxu1 %v15245_v32 }
 0x814   :  { %9347 = vmatpush3.bf16.msra.mxu1 %v9712_v1 }
 0x815   :  { %9348 = vmatprep.subr.bf16.mxu1 %v15245_v32 }
 0x818   :  { %9349 = vmatpush3.bf16.msra.mxu1 %v9714_v57 }
 0x819   :  { %9350 = vmatprep.subr.bf16.mxu1 %v15245_v32 }
 0x81c   :  { %9351 = vmatpush3.bf16.msra.mxu1 %v9716_v14 }
 0x81d   :  { %9352 = vmatprep.subr.bf16.mxu1 %v15245_v32 }
 0x820   :  { %9353 = vmatpush3.bf16.msra.mxu1 %v9718_v10  ;;  %v9732_v10 = vld [vmem:[%s14481_s19 + $0x10] sm:$0xff]  }
 0x821   :  { %9354 = vmatprep.subr.bf16.mxu1 %v15245_v32 }
 0x824   :  { %9355 = vmatpush3.bf16.msra.mxu1 %v9720_v11  ;;  %v9734_v11 = vld [vmem:[%s14481_s19 + $0x20] sm:$0xff]  }
 0x825   :  { %9380 = vmatprep.subr.bf16.mxu1 %v15245_v32 }
 0x8da   :  { %v7876_v36 = vpop.f32.mrb[0].mxu1 }
 0x8db   :  { %v7887_v41 = vcombine.high %v7876_v36, %v7876_v36  ;;  %v7898_v20 = vadd.f32 %v8891_v58, %v7876_v36  ;;  %v9318_v43 = vpop.f32.mrb[1].mxu1  ;;  %v9737_v36 = vld [vmem:[%s14481_s19 + $0x38] sm:$0xff]  }
 0x8dc   :  { %v7879_v51 = vpop.f32.mrb[2].mxu1  ;;  %v8911_v43 = vld [vmem:[#allocation20] ss:$0 sm:$0xff] }
 0x8dd   :  { %v7899_v22 = vadd.f32 %v8891_v58, %v7887_v41  ;;  %v7902_v47 = vmax.f32 %v7898_v20, 0.0  ;;  %v7888_v17 = vcombine.high %v7879_v51, %v7879_v51  ;;  %v7900_v60 = vadd.f32 %v8891_v58, %v7879_v51  ;;  %v9319_v29 = vpop.f32.mrb[3].mxu1  ;;  %v9744_v41 = vld [vmem:[%s14479_s17 + $0x30] sm:$0xff]   ;;  %v9745_v20 = vld [vmem:[%s14479_s17 + $0x38] sm:$0xff]  }
 0x8df   :  { %v7903_v63 = vmax.f32 %v7899_v22, 0.0  ;;  %v7901_v44 = vadd.f32 %v8891_v58, %v7888_v17  ;;  %v7904_v33 = vmax.f32 %v7900_v60, 0.0  ;;  %v7913_v56 = vmul.f32 %v8892_v37, %v7902_v47  ;;  %v9736_v58 = vld [vmem:[%s14481_s19 + $0x30] sm:$0xff]  }
 0x8e1   :  { %v7914_v52 = vmul.f32 %v8892_v37, %v7903_v63  ;;  %v7905_v13 = vmax.f32 %v7901_v44, 0.0  ;;  %v7915_v62 = vmul.f32 %v8892_v37, %v7904_v33  ;;  %v7924_v61 = vadd.f32 %v8893_v53, %v7913_v56  ;;  %v9747_v44 = vld [vmem:[%s14483_s21 + $0x8] sm:$0xff]   ;;  %v9748_v33 = vld [vmem:[%s14483_s21 + $0x10] sm:$0xff]   ;;  %v9749_v56 = vld [vmem:[%s14483_s21 + $0x18] sm:$0xff]  }
 0x8e3   :  { %v7925_v38 = vadd.f32 %v8893_v53, %v7914_v52  ;;  %v7916_v42 = vmul.f32 %v8892_v37, %v7905_v13  ;;  %v7926_v2 = vadd.f32 %v8893_v53, %v7915_v62  ;;  %v9746_v37 = vld [vmem:[%s14483_s21] sm:$0xff]   ;;  %v8929_v52 = vld [vmem:[#allocation22] ss:$0 sm:$0xff] }
 0x8e5   :  { %v7927_v7 = vadd.f32 %v8893_v53, %v7916_v42  ;;  %v7928_v45 = vmax.f32 %v7924_v61, %v7925_v38 }
 0x8e7   :  { %v7929_v15 = vmax.f32 %v7926_v2, %v7927_v7  ;;  %v9750_v7 = vld [vmem:[%s14485_s23] sm:$0xff]  }
 0x8e9   :  { %v7930_v18 = vmax.f32 %v7928_v45, %v7929_v15  ;;  %v9751_v45 = vld [vmem:[%s14485_s23 + $0x8] sm:$0xff]   ;;  %v9752_v15 = vld [vmem:[%s14485_s23 + $0x10] sm:$0xff]  }
 0x8eb   :  { %v14337_v4 = vpack.c.bf16 %v7930_v18, %v7930_v18  ;;  %v9753_v18 = vld [vmem:[%s14485_s23 + $0x18] sm:$0xff]  }
 0x8ed   :  { %9357 = vmatmul.mubr.bf16.vlgmr.msra.gmra.mrb[4].mxu1 %v14337_v4  ;;  %v7965_v59 = vrot.slane %v14337_v4, 1 }
 0x8ee   :  { %9396 = vmatprep.mubr.msk.bf16.mxu1 %vm10102_vm4, %v15245_v32  ;;  %9381 = vmatpush3.bf16.msra.mxu1 %v9738_v8 }
 0x8ef   :  { %9337 = vmatmul.mubr.bf16.vlgmr.msra.gmra.mrb[8].mxu0 %v7965_v59  ;;  %9382 = vmatprep.subr.bf16.mxu1 %v15245_v32 }
 0x8f0   :  { %9361 = vmatpush3.bf16.msra.mxu0 %v9722_v26  ;;  %9376 = vmatprep.mubr.msk.bf16.mxu0 %vm10102_vm4, %v15245_v32 }
 0x8f1   :  { %9362 = vmatprep.subr.bf16.mxu0 %v15245_v32 }
 0x8f2   :  { %9383 = vmatpush3.bf16.msra.mxu1 %v9739_v28  ;;  %v8938_v28 = vld [vmem:[#allocation23] ss:$0 sm:$0xff] }
 0x8f3   :  { %9384 = vmatprep.subr.bf16.mxu1 %v15245_v32 }
 0x8f4   :  { %9363 = vmatpush3.bf16.msra.mxu0 %v9723_v39 }
 0x8f5   :  { %9364 = vmatprep.subr.bf16.mxu0 %v15245_v32 }
 0x8f6   :  { %9385 = vmatpush3.bf16.msra.mxu1 %v9740_v55 }
 0x8f7   :  { %9386 = vmatprep.subr.bf16.mxu1 %v15245_v32 }
 0x8f8   :  { %9365 = vmatpush3.bf16.msra.mxu0 %v9724_v50 }
 0x8f9   :  { %9366 = vmatprep.subr.bf16.mxu0 %v15245_v32 }
 0x8fa   :  { %9387 = vmatpush3.bf16.msra.mxu1 %v9741_v0 }
 0x8fb   :  { %9388 = vmatprep.subr.bf16.mxu1 %v15245_v32 }
 0x8fc   :  { %9367 = vmatpush3.bf16.msra.mxu0 %v9725_v27 }
 0x8fd   :  { %9368 = vmatprep.subr.bf16.mxu0 %v15245_v32 }
 0x8fe   :  { %9389 = vmatpush3.bf16.msra.mxu1 %v9742_v48 }
 0x8ff   :  { %9390 = vmatprep.subr.bf16.mxu1 %v15245_v32 }
 0x900   :  { %9369 = vmatpush3.bf16.msra.mxu0 %v9726_v54 }
 0x901   :  { %9370 = vmatprep.subr.bf16.mxu0 %v15245_v32 }
 0x902   :  { %9391 = vmatpush3.bf16.msra.mxu1 %v9743_v31 }
 0x903   :  { %9392 = vmatprep.subr.bf16.mxu1 %v15245_v32 }
 0x904   :  { %9371 = vmatpush3.bf16.msra.mxu0 %v9727_v21 }
 0x905   :  { %9372 = vmatprep.subr.bf16.mxu0 %v15245_v32 }
 0x906   :  { %9393 = vmatpush3.bf16.msra.mxu1 %v9744_v41 }
 0x907   :  { %9394 = vmatprep.subr.bf16.mxu1 %v15245_v32 }
 0x908   :  { %9373 = vmatpush3.bf16.msra.mxu0 %v9728_v25 }
 0x909   :  { %9374 = vmatprep.subr.bf16.mxu0 %v15245_v32 }
 0x90a   :  { %9395 = vmatpush3.bf16.msra.mxu1 %v9745_v20 }
 0x90b   :  { %9420 = vmatprep.subr.bf16.mxu1 %v15245_v32 }
 0x90c   :  { %9375 = vmatpush3.bf16.msra.mxu0 %v9729_v46 }
 0x90d   :  { %9400 = vmatprep.subr.bf16.mxu0 %v15245_v32 }
 0x9c0   :  { %v8137_v9 = vpop.f32.mrb[4].mxu1 }
 0x9c1   :  { %v9358_v5 = vpop.f32.mrb[5].mxu1 }
 0x9c2   :  { %v8049_v6 = vpop.f32.mrb[8].mxu0  ;;  %v8140_v40 = vpop.f32.mrb[6].mxu1 }
 0x9c3   :  { %v8138_v16 = vadd.f32 %v8137_v9, %v8049_v6  ;;  %v9338_v3 = vpop.f32.mrb[9].mxu0  ;;  %v9359_v30 = vpop.f32.mrb[7].mxu1  ;;  %v8944_v6 = vld [vmem:[#allocation25] ss:$0 sm:$0xff] }
 0x9c4   :  { %v8052_v24 = vpop.f32.mrb[10].mxu0 }
 0x9c5   :  { %v8150_v1 = vadd.f32 %v8910_v49, %v8138_v16  ;;  %v9339_v19 = vpop.f32.mrb[11].mxu0 }
 0x9c7   :  { %v8151_v57 = vmax.f32 %v8150_v1, 0.0 }
 0x9c9   :  { %v8152_v14 = vpack.c.bf16 %v8151_v57, %v8151_v57 }
 0x9cb   :  { %9377 = vmatmul.mubr.bf16.vlgmr.msra.gmra.mrb[12].mxu0 %v8152_v14 }
 0x9cc   :  { %9401 = vmatpush3.bf16.msra.mxu0 %v9730_v34  ;;  %9416 = vmatprep.mubr.msk.bf16.mxu0 %vm10102_vm4, %v15245_v32 }
 0x9cd   :  { %9402 = vmatprep.subr.bf16.mxu0 %v15245_v32 }
 0x9d0   :  { %9403 = vmatpush3.bf16.msra.mxu0 %v9731_v12 }
 0x9d1   :  { %9404 = vmatprep.subr.bf16.mxu0 %v15245_v32 }
 0x9d4   :  { %9405 = vmatpush3.bf16.msra.mxu0 %v9732_v10 }
 0x9d5   :  { %9406 = vmatprep.subr.bf16.mxu0 %v15245_v32 }
 0x9d8   :  { %9407 = vmatpush3.bf16.msra.mxu0 %v9733_v35 }
 0x9d9   :  { %9408 = vmatprep.subr.bf16.mxu0 %v15245_v32 }
 0x9dc   :  { %9409 = vmatpush3.bf16.msra.mxu0 %v9734_v11 }
 0x9dd   :  { %9410 = vmatprep.subr.bf16.mxu0 %v15245_v32 }
 0x9e0   :  { %9411 = vmatpush3.bf16.msra.mxu0 %v9735_v23 }
 0x9e1   :  { %9412 = vmatprep.subr.bf16.mxu0 %v15245_v32 }
 0x9e4   :  { %9413 = vmatpush3.bf16.msra.mxu0 %v9736_v58 }
 0x9e5   :  { %9414 = vmatprep.subr.bf16.mxu0 %v15245_v32 }
 0x9e8   :  { %9415 = vmatpush3.bf16.msra.mxu0 %v9737_v36 }
 0x9eb   :  { %9417 = vmatmul.mubr.bf16.vlgmr.msra.gmra.mrb[16].mxu0 %v14337_v4  ;;  %v8920_v4 = vld [vmem:[#allocation5] ss:$0 sm:$0xff] }
 0xa9e   :  { %v8258_v51 = vpop.f32.mrb[12].mxu0 }
 0xa9f   :  { %v8259_v22 = vadd.f32 %v8911_v43, %v8258_v51  ;;  %v9378_v47 = vpop.f32.mrb[13].mxu0 }
 0xaa0   :  { %v8261_v17 = vpop.f32.mrb[14].mxu0 }
 0xaa1   :  { %v8264_v60 = vmax.f32 %v8259_v22, 0.0  ;;  %v9379_v29 = vpop.f32.mrb[15].mxu0 }
 0xaa3   :  { %v8265_v63 = vpack.c.bf16 %v8264_v60, %v8264_v60 }
 0xaa5   :  { %9397 = vmatmul.mubr.bf16.vlgmr.msra.gmra.mrb[8].mxu1 %v8265_v63 }
 0xaa6   :  { %9421 = vmatpush3.bf16.msra.mxu1 %v9746_v37  ;;  %9428 = vmatprep.mubr.msk.bf16.mxu1 %vm10102_vm4, %v15245_v32 }
 0xaa7   :  { %9422 = vmatprep.subr.bf16.mxu1 %v15245_v32 }
 0xaaa   :  { %9423 = vmatpush3.bf16.msra.mxu1 %v9747_v44 }
 0xaab   :  { %9424 = vmatprep.subr.bf16.mxu1 %v15245_v32 }
 0xaae   :  { %9425 = vmatpush3.bf16.msra.mxu1 %v9748_v33 }
 0xaaf   :  { %9426 = vmatprep.subr.bf16.mxu1 %v15245_v32 }
 0xab2   :  { %9427 = vmatpush3.bf16.msra.mxu1 %v9749_v56 }
 0xab3   :  { %9432 = vmatprep.subr.bf16.mxu1 %v15245_v32 }
 0xabe   :  { %v8490_v13 = vpop.f32.mrb[16].mxu0 }
 0xabf   :  { %v8491_v62 = vadd.f32 %v8929_v52, %v8490_v13  ;;  %v9418_v53 = vpop.f32.mrb[17].mxu0 }
 0xac0   :  { %v8493_v38 = vpop.f32.mrb[18].mxu0 }
 0xac1   :  { %v8496_v42 = vmax.f32 %v8491_v62, 0.0  ;;  %v9419_v61 = vpop.f32.mrb[19].mxu0 }
 0xac3   :  { %v8497_v2 = vpack.c.bf16 %v8496_v42, %v8496_v42 }
 0xac5   :  { %9429 = vmatmul.mubr.msk.bf16.vlgmr.msra.gmra.mrb[12].mxu1 %vm7122_vm5, %v8497_v2 }
 0xac6   :  { %9440 = vmatprep.mubr.msk.bf16.mxu1 %vm10102_vm4, %v15245_v32  ;;  %9433 = vmatpush3.bf16.msra.mxu1 %v9750_v7 }
 0xac7   :  { %9434 = vmatprep.subr.bf16.mxu1 %v15245_v32 }
 0xaca   :  { %9435 = vmatpush3.bf16.msra.mxu1 %v9751_v45 }
 0xacb   :  { %9436 = vmatprep.subr.bf16.mxu1 %v15245_v32 }
 0xace   :  { %9437 = vmatpush3.bf16.msra.mxu1 %v9752_v15 }
 0xacf   :  { %9438 = vmatprep.subr.bf16.mxu1 %v15245_v32 }
 0xad2   :  { %9439 = vmatpush3.bf16.msra.mxu1 %v9753_v18 }
 0xb78   :  { %v8371_v26 = vpop.f32.mrb[8].mxu1 }
 0xb79   :  { %v8372_v59 = vadd.f32 %v8920_v4, %v8371_v26  ;;  %v9398_v39 = vpop.f32.mrb[9].mxu1 }
 0xb7a   :  { %v8374_v50 = vpop.f32.mrb[10].mxu1 }
 0xb7b   :  { %v8377_v27 = vsub.f32 0.0, %v8372_v59  ;;  %v9399_v54 = vpop.f32.mrb[11].mxu1 }
 0xb7d   :  { %v8378_v21 = vmul.f32 1.442695, %v8377_v27 }
 0xb7f   :  { %9754 = vpow2.f32 %v8378_v21 }
 0xb89   :  { %v9755_v25 = vpop.eup %9754 }
 0xb8a   :  { %v8380_v46 = vadd.f32 1.0, %v9755_v25 }
 0xb8c   :  { %9756 = vrcp.f32 %v8380_v46 }
 0xb96   :  { %v9757_v8 = vpop.eup %9756 }
 0xb97   :  { %8384 = vst.msk [vmem:[%s14487_s25] sm:$0x3] %vm8383_vm6, %v9757_v8 }
 0xb98   :  { %v8574_v32 = vpop.f32.mrb[12].mxu1 }
 0xb99   :  { %v8575_v55 = vadd.f32 %v8938_v28, %v8574_v32  ;;  %v9430_v0 = vpop.f32.mrb[13].mxu1 }
 0xb9a   :  { %v8577_v48 = vpop.f32.mrb[14].mxu1 }
 0xb9b   :  { %v8580_v31 = vmax.f32 %v8575_v55, 0.0  ;;  %v9431_v9 = vpop.f32.mrb[15].mxu1 }
 0xb9d   :  { %v8581_v5 = vpack.c.bf16 %v8580_v31, %v8580_v31 }
 0xb9f   :  { %9441 = vmatmul.mubr.msk.bf16.vlgmr.msra.gmra.mrb[16].mxu1 %vm7122_vm5, %v8581_v5 }
 0xc72   :  { %v8658_v49 = vpop.f32.mrb[16].mxu1 }
 0xc73   :  { %v8659_v40 = vadd.f32 %v8944_v6, %v8658_v49  ;;  %v9442_v16 = vpop.f32.mrb[17].mxu1 }
 0xc74   :  { %v8661_v3 = vpop.f32.mrb[18].mxu1 }
 0xc75   :  { %8665 = vst.msk [vmem:[%s14488_s26] sm:$0xf] %vm8664_vm7, %v8659_v40  ;;  %v9443_v30 = vpop.f32.mrb[19].mxu1 }
 0xc76   :  { %8674 = vsyncpa [#allocation7], 1 }
 0xc77   :  { %8675 = vsyncpa [#allocation9], 1 }
 0xc78   :  { %8676 = vsyncpa [#allocation12], 1 }
 0xc79   :  { %8677 = vsyncpa [#allocation15], 1 }
 0xc7a   :  { %8678 = vsyncpa [#allocation18], 1 }
 0xc7b   :  { %8679 = vsyncpa [#allocation21], 1 }
 0xc7c   :  { %8680 = vsyncpa [#allocation24], 1 }

</bundles_post_ra>
